<compile_context>
chip_gen: v6e
topology: v6e:2x2x1
jax: 0.10.0
libtpu: 0.0.40
codegen_flags: <defaults>
</compile_context>

<pallas_src>
import numpy as np
import jax
import jax.numpy as jnp
from jax import lax
from jax.experimental import pallas as pl
from jax.experimental.pallas import tpu as pltpu

EPS = 1e-5
LANE = 128
_VMEM = pl.BlockSpec(memory_space=pltpu.MemorySpace.VMEM)

# (kernel, stride, padding, output_padding) for the four ConvTranspose2d layers.
_CONVS = ((4, 1, 0, 0), (5, 2, 1, 0), (5, 2, 1, 1), (5, 1, 2, 0))


def _arch(nf, nc):
    """Static per-layer geometry: channels, spatial sizes, correlation paddings."""
    c = [nf * 4, nf * 4, nf * 2, nf, nc]                     # C0 .. C4
    hw, lo, hp = [4], [], []                                 # spatial, left pad, padded size
    for (k, s, p, op) in _CONVS:
        lo.append(k - 1 - p)
        hp.append((hw[-1] - 1) * s + 1 + 2 * (k - 1 - p) + op)
        hw.append(hp[-1] - k + 1)
    return c, hw, lo, hp


# --------------------------------------------------- host-side weight folding ---

def _band(w_pt, w_in, s, p, op, li_pad, lo_pad):
    """ConvTranspose2d weight (C_in, C_out, k, k) -> per-kernel-row band matrices
    [k, li_pad, lo_pad].  Each maps the (w, c_in) lanes of one (undilated) input
    height row to the (j, c_out) lanes of one output height row; kernel-column taps
    + width zero-dilation / padding / output_padding are folded in.  Unused rows /
    columns (lane padding) stay zero."""
    c_in, c_out, k, _ = w_pt.shape
    lo_ = k - 1 - p
    w_out = (w_in - 1) * s - 2 * p + k + op
    wf = w_pt[:, :, ::-1, ::-1]                              # flipped kernel (corr form)
    b = np.zeros((k, li_pad, lo_pad), np.float32)
    for kp in range(k):
        for w in range(w_in):
            for j in range(w_out):
                q = lo_ + s * w - j
                if 0 <= q < k:
                    b[kp, w * c_in:(w + 1) * c_in, j * c_out:(j + 1) * c_out] = wf[:, :, kp, q]
    return b


def prepare_decoder(params, args):
    """One-time (host-side, numpy) preparation of the packed constant operands."""
    nf, nc = args["num_filters"], args["num_channels"]
    din = args["latent_dim"] + args["code_dim"]
    c, hw, lo, hp = _arch(nf, nc)
    f32 = lambda x: np.asarray(x, np.float32)

    # ---- layer 1: fold Linear (+ UnFlatten(4)) + ConvT1 into ONE matrix ----------
    c0 = c[0]
    bnd1 = _band(f32(params["w1"]), 4, *_CONVS[0][1:], li_pad=4 * c0, lo_pad=LANE)
    wlin, blin = f32(params["lin_w"]), f32(params["lin_b"])   # (conv_dim, din), (conv_dim,)
    lin_w_blk = np.zeros((4, din, 4 * c0), np.float32)        # per unflattened height h
    lin_b_blk = np.zeros((4, 4 * c0), np.float32)
    for h in range(4):
        for w in range(4):
            for ci in range(c0):
                e = ci * 16 + h * 4 + w                       # UnFlatten NCHW flat index
                lin_w_blk[h, :, w * c0 + ci] = wlin[e, :]
                lin_b_blk[h, w * c0 + ci] = blin[e]
    k1, h1 = _CONVS[0][0], hw[1]
    cw1 = np.zeros((h1, din, LANE), np.float32)
    cb1 = np.zeros((h1, LANE), np.float32)
    for i in range(h1):
        for kp in range(k1):
            h = i + kp - lo[0]
            if 0 <= h < 4:
                cw1[i] += lin_w_blk[h] @ bnd1[kp]
                cb1[i] += lin_b_blk[h] @ bnd1[kp]
    # NOTE: conv biases b1/b2/b3 are dropped (per-channel constants are exactly
    # cancelled by the following batch-stat BatchNorm).  The folded linear bias is
    # spatially varying after the conv and IS kept (cb1).
    cw1_cat = cw1.transpose(1, 0, 2).reshape(din, h1 * LANE)  # [din, 7*128]
    cb1_cat = cb1.reshape(1, h1 * LANE)

    # ---- layers 2-4: band matrices, lane-padded to 128, K-concatenated -----------
    bnd2 = _band(f32(params["w2"]), hw[1], *_CONVS[1][1:], li_pad=LANE, lo_pad=LANE)
    bnd3 = _band(f32(params["w3"]), hw[2], *_CONVS[2][1:], li_pad=LANE, lo_pad=LANE)
    bnd4 = _band(f32(params["w4"]), hw[3], *_CONVS[3][1:], li_pad=LANE, lo_pad=LANE)
    bands_cat = np.concatenate(
        [bnd2.reshape(-1, LANE), bnd3.reshape(-1, LANE), bnd4.reshape(-1, LANE)], 0)

    # ---- BatchNorm pooling constants ---------------------------------------------
    def pool(w_out, ch):                                      # lanes -> channels (0/1)
        pmat = np.zeros((LANE, 16), np.float32)
        for j in range(w_out * ch):
            pmat[j, j % ch] = 1.0
        return pmat

    def poolt_g(w_out, ch, gamma):                            # channels -> lanes, gamma-scaled
        pt = np.zeros((16, LANE), np.float32)
        for j in range(w_out * ch):
            pt[j % ch, j] = gamma[j % ch]
        return pt

    def lanes(w_out, ch, vec):                                # per-channel vec -> lane vector
        v = np.zeros((LANE,), np.float32)
        for j in range(w_out * ch):
            v[j] = vec[j % ch]
        return v

    pools = np.concatenate(
        [pool(hw[1], c[1]), pool(hw[2], c[2]), pool(hw[3], c[3])], 0)  # [384, 16]

    misc = np.zeros((52, LANE), np.float32)
    misc[0:16, :] = poolt_g(hw[1], c[1], f32(params["g1"]))
    misc[16:32, :] = poolt_g(hw[2], c[2], f32(params["g2"]))
    misc[32:48, :] = poolt_g(hw[3], c[3], f32(params["g3"]))
    misc[48, :] = lanes(hw[1], c[1], f32(params["be1"]))
    misc[49, :] = lanes(hw[2], c[2], f32(params["be2"]))
    misc[50, :] = lanes(hw[3], c[3], f32(params["be3"]))
    misc[51, :] = lanes(hw[4], c[4], f32(params["b4"]))

    arrays = (
        jnp.asarray(cw1_cat, jnp.bfloat16),   # folded Linear+ConvT1 weight
        jnp.asarray(cb1_cat, jnp.float32),    # folded linear bias (spatially varying)
        jnp.asarray(bands_cat, jnp.bfloat16),  # ConvT2/3/4 K-concatenated band matrices
        jnp.asarray(pools, jnp.float32),      # BN lane->channel poolers
        jnp.asarray(misc, jnp.float32),       # BN broadcast-back (gamma-folded) + betas + b4
    )
    return dict(arrays=arrays, nf=nf, nc=nc, din=din)


# ----------------------------------------------------------------- fused kernel ---

def _make_kernel(n, nf, nc):
    c, hw, lo, hp = _arch(nf, nc)
    ks = [cv[0] for cv in _CONVS]
    ss = [cv[1] for cv in _CONVS]
    h1, h2, h3, h4 = hw[1], hw[2], hw[3], hw[4]

    def bn_scale_shift(s, sq, pool, poolt_g, beta_l, count):
        # Batch-stat BN folded to per-lane scale/shift.  One stacked stats matmul
        # ([2,128]@[128,16]) and one broadcast-back matmul ([2,16]@[16,128]); gamma is
        # folded into poolt_g host-side, beta arrives as a precomputed lane vector.
        stat = jnp.dot(jnp.concatenate([s, sq], axis=0), pool,
                       preferred_element_type=jnp.float32)          # [2, 16]
        inv = 1.0 / count
        mean = stat[0:1, :] * inv
        var = stat[1:2, :] * inv - mean * mean                      # biased (BN train)
        u = lax.rsqrt(var + EPS)
        su = jnp.dot(jnp.concatenate([u, mean * u], axis=0), poolt_g,
                     preferred_element_type=jnp.float32)            # [2, 128]
        return su[0:1, :], beta_l - su[1:2, :]                      # scale_l, shift_l

    def stage(get_slab, xp_ref, scale_l, shift_l, h_in, lo_h, s_h, hp_h):
        # Height zero-dilation / padding with BN-apply + ReLU fused into the data-slab
        # writes; each [n,128] slab is written exactly once (no full-buffer memset).
        zeros = jnp.zeros((n, LANE), jnp.float32)
        for r in range(hp_h):
            h, rem = divmod(r - lo_h, s_h)
            if rem == 0 and 0 <= h < h_in:
                xp_ref[r * n:(r + 1) * n, :] = jnp.maximum(
                    get_slab(h) * scale_l + shift_l, 0.0)
            else:
                xp_ref[r * n:(r + 1) * n, :] = zeros

    def im2col(xp_ref, xc_ref, h_out, k):
        # Height im2col: k aligned column-block copies (f32 -> bf16 cast fused in).
        for p in range(k):
            xc_ref[:, p * LANE:(p + 1) * LANE] = (
                xp_ref[p * n:(p + h_out) * n, :].astype(jnp.bfloat16))

    off2 = 0
    off3 = ks[1] * LANE
    off4 = (ks[1] + ks[2]) * LANE
    off5 = (ks[1] + ks[2] + ks[3]) * LANE

    def kernel(z_ref, cw1_ref, cb1_ref, bands_ref, pools_ref, misc_ref,
               out_ref, y2_ref, y3_ref, xp2_ref, xp3_ref, xp4_ref,
               xc2_ref, xc3_ref, xc4_ref):
        # ---- Linear + ConvT1 (folded): ONE [n,din] @ [din, 7*128] bf16 matmul ------
        zb = z_ref[...].astype(jnp.bfloat16)
        y1 = jnp.dot(zb, cw1_ref[...],
                     preferred_element_type=jnp.float32) + cb1_ref[...]   # [n, 7*128]
        blk1 = [y1[:, i * LANE:(i + 1) * LANE] for i in range(h1)]
        acc = blk1[0]
        accq = blk1[0] * blk1[0]
        for b in blk1[1:]:
            acc = acc + b
            accq = accq + b * b
        s1 = jnp.sum(acc, axis=0, keepdims=True)
        q1 = jnp.sum(accq, axis=0, keepdims=True)
        sc1, sh1 = bn_scale_shift(s1, q1, pools_ref[0:LANE, :], misc_ref[0:16, :],
                                  misc_ref[48:49, :], float(n * h1 * h1))
        stage(lambda h: blk1[h], xp2_ref, sc1, sh1, h1, lo[1], ss[1], hp[1])

        # ---- ConvT2 + BN + ReLU: im2col + ONE [120,640]@[640,128] matmul -----------
        im2col(xp2_ref, xc2_ref, h2, ks[1])
        y2_ref[...] = jnp.dot(xc2_ref[...], bands_ref[off2:off3, :],
                              preferred_element_type=jnp.float32)
        y2 = y2_ref[...]
        s2 = jnp.sum(y2, axis=0, keepdims=True)
        q2 = jnp.sum(y2 * y2, axis=0, keepdims=True)
        sc2, sh2 = bn_scale_shift(s2, q2, pools_ref[LANE:2 * LANE, :],
                                  misc_ref[16:32, :], misc_ref[49:50, :],
                                  float(n * h2 * h2))
        stage(lambda h: y2_ref[h * n:(h + 1) * n, :], xp3_ref, sc2, sh2,
              h2, lo[2], ss[2], hp[2])

        # ---- ConvT3 + BN + ReLU: im2col + ONE [256,640]@[640,128] matmul -----------
        im2col(xp3_ref, xc3_ref, h3, ks[2])
        y3_ref[...] = jnp.dot(xc3_ref[...], bands_ref[off3:off4, :],
                              preferred_element_type=jnp.float32)
        y3 = y3_ref[...]
        s3 = jnp.sum(y3, axis=0, keepdims=True)
        q3 = jnp.sum(y3 * y3, axis=0, keepdims=True)
        sc3, sh3 = bn_scale_shift(s3, q3, pools_ref[2 * LANE:3 * LANE, :],
                                  misc_ref[32:48, :], misc_ref[50:51, :],
                                  float(n * h3 * h3))
        stage(lambda h: y3_ref[h * n:(h + 1) * n, :], xp4_ref, sc3, sh3,
              h3, lo[3], ss[3], hp[3])

        # ---- ConvT4 + bias + Sigmoid: im2col + ONE [256,640]@[640,128] matmul ------
        im2col(xp4_ref, xc4_ref, h4, ks[3])
        y4 = jnp.dot(xc4_ref[...], bands_ref[off4:off5, :],
                     preferred_element_type=jnp.float32) + misc_ref[51:52, :]
        out_ref[...] = jax.nn.sigmoid(y4)                      # lane-dense [h4*n, 128]

    scratch = [
        pltpu.VMEM((h2 * n, LANE), jnp.float32),               # y2 (pre-BN conv2 out)
        pltpu.VMEM((h3 * n, LANE), jnp.float32),               # y3 (pre-BN conv3 out)
        pltpu.VMEM((hp[1] * n, LANE), jnp.float32),            # xp2: dilated/padded act 1
        pltpu.VMEM((hp[2] * n, LANE), jnp.float32),            # xp3
        pltpu.VMEM((hp[3] * n, LANE), jnp.float32),            # xp4
        pltpu.VMEM((h2 * n, ks[1] * LANE), jnp.bfloat16),      # xc2: height-im2col, bf16
        pltpu.VMEM((h3 * n, ks[2] * LANE), jnp.bfloat16),      # xc3
        pltpu.VMEM((h4 * n, ks[3] * LANE), jnp.bfloat16),      # xc4
    ]
    out_shape = jax.ShapeDtypeStruct((h4 * n, LANE), jnp.float32)
    return kernel, scratch, out_shape, h4


def emission_additive_decoder_forward(zts, prep, args):
    """zts: [B, T, latent_dim + code_dim] -> [B, T, dim, dim] (num_channels == 1)."""
    assert prep["nc"] == 1, "final view folds the channel dim -> num_channels must be 1"
    b, t, d = zts.shape
    assert d == prep["din"]
    n = b * t
    assert n % 8 == 0, "n = B*T must be a multiple of 8 for sublane-aligned slabs"
    z = zts.reshape(n, d).astype(jnp.float32)
    kernel, scratch, out_shape, dim = _make_kernel(n, prep["nf"], prep["nc"])
    assert args["dim"] == dim
    y = pl.pallas_call(
        kernel,
        out_shape=out_shape,
        in_specs=[_VMEM] * (1 + len(prep["arrays"])),
        out_specs=_VMEM,
        scratch_shapes=scratch,
    )(z, *prep["arrays"])
    # kernel output rows are (height, sample), lanes 0:dim are width (rest zero-pad):
    x = y[:, :dim].reshape(dim, n, dim).transpose(1, 0, 2)
    return x.reshape(b, t, dim, dim)


# ------------------------------------------------------- pure-JAX reference ---

def _ref_conv_transpose(x, w, b, stride, pad, out_pad):
    k = w.shape[2]
    w_corr = jnp.flip(w, axis=(2, 3)).transpose(1, 0, 2, 3)   # (C_out, C_in, k, k)
    lo = k - 1 - pad
    out = lax.conv_general_dilated(
        x, w_corr, window_strides=(1, 1),
        padding=[(lo, lo + out_pad), (lo, lo + out_pad)],
        lhs_dilation=(stride, stride),
        dimension_numbers=("NCHW", "OIHW", "NCHW"))
    return out + b.reshape(1, -1, 1, 1)


def _ref_bn_relu(x, g, beta):
    mean = x.mean(axis=(0, 2, 3), keepdims=True)
    var = ((x - mean) ** 2).mean(axis=(0, 2, 3), keepdims=True)
    xh = (x - mean) * lax.rsqrt(var + EPS)
    return jnp.maximum(xh * g.reshape(1, -1, 1, 1) + beta.reshape(1, -1, 1, 1), 0.0)


def reference_forward(zts, params, args):
    b, t, d = zts.shape
    nf = args["num_filters"]
    conv_dim = nf * 4 ** 3
    z = zts.reshape(b * t, d)
    h = z @ params["lin_w"].T + params["lin_b"]
    x = h.reshape(b * t, conv_dim // 16, 4, 4)
    x = _ref_bn_relu(_ref_conv_transpose(x, params["w1"], params["b1"], 1, 0, 0),
                     params["g1"], params["be1"])
    x = _ref_bn_relu(_ref_conv_transpose(x, params["w2"], params["b2"], 2, 1, 0),
                     params["g2"], params["be2"])
    x = _ref_bn_relu(_ref_conv_transpose(x, params["w3"], params["b3"], 2, 1, 1),
                     params["g3"], params["be3"])
    x = jax.nn.sigmoid(_ref_conv_transpose(x, params["w4"], params["b4"], 1, 2, 0))
    return x.reshape(b, x.shape[0] // b, args["dim"], args["dim"])


# ------------------------------------------------------------------- setup ---

def init_params(key, args):
    nf = args["num_filters"]
    conv_dim = nf * 4 ** 3
    in_dim = args["latent_dim"] + args["code_dim"]
    ks = jax.random.split(key, 10)

    def rnd(k, shape, scale=0.1):
        return scale * jax.random.normal(k, shape, jnp.float32)

    return dict(
        lin_w=rnd(ks[0], (conv_dim, in_dim)),                 # PyTorch Linear (out, in)
        lin_b=rnd(ks[1], (conv_dim,)),
        # ConvTranspose2d weights: (C_in, C_out, kH, kW)
        w1=rnd(ks[2], (conv_dim // 16, nf * 4, 4, 4)), b1=rnd(ks[3], (nf * 4,)),
        g1=jnp.ones((nf * 4,), jnp.float32), be1=jnp.zeros((nf * 4,), jnp.float32),
        w2=rnd(ks[4], (nf * 4, nf * 2, 5, 5)), b2=rnd(ks[5], (nf * 2,)),
        g2=jnp.ones((nf * 2,), jnp.float32), be2=jnp.zeros((nf * 2,), jnp.float32),
        w3=rnd(ks[6], (nf * 2, nf, 5, 5)), b3=rnd(ks[7], (nf,)),
        g3=jnp.ones((nf,), jnp.float32), be3=jnp.zeros((nf,), jnp.float32),
        w4=rnd(ks[8], (nf, args["num_channels"], 5, 5)),
        b4=rnd(ks[9], (args["num_channels"],)),
    )


if __name__ == "__main__":
    args = dict(num_filters=4, latent_dim=16, code_dim=8, num_channels=1, dim=32)
    key = jax.random.PRNGKey(0)
    pkey, xkey = jax.random.split(key)
    params = init_params(pkey, args)

    B, T = 2, 4
    zts = jax.random.normal(
        xkey, (B, T, args["latent_dim"] + args["code_dim"]), jnp.float32)

    prep = prepare_decoder(params, args)
    out = emission_additive_decoder_forward(zts, prep, args)
    out = jax.block_until_ready(out)

    assert out.shape == (B, T, args["dim"], args["dim"]), out.shape
    ref = reference_forward(zts, params, args)
    err = float(jnp.max(jnp.abs(out - ref)))
    # Tolerance accounts for bf16 MXU operands (band matrices + activation casts);
    # any structural bug produces O(0.1 - 1) errors.
    assert err < 2e-2, f"max abs error {err}"
    print("KERNEL_OK")
</pallas_src>

<mosaic_0001>
module attributes {stable_mosaic.version = 11 : i64} {
  func.func @kernel(%arg0: memref<8x24xf32, #tpu.memory_space<vmem>>, %arg1: memref<24x896xbf16, #tpu.memory_space<vmem>>, %arg2: memref<1x896xf32, #tpu.memory_space<vmem>>, %arg3: memref<1920x128xbf16, #tpu.memory_space<vmem>>, %arg4: memref<384x16xf32, #tpu.memory_space<vmem>>, %arg5: memref<52x128xf32, #tpu.memory_space<vmem>>, %arg6: memref<256x128xf32, #tpu.memory_space<vmem>>, %arg7: memref<120x128xf32, #tpu.memory_space<vmem>>, %arg8: memref<256x128xf32, #tpu.memory_space<vmem>>, %arg9: memref<152x128xf32, #tpu.memory_space<vmem>>, %arg10: memref<288x128xf32, #tpu.memory_space<vmem>>, %arg11: memref<288x128xf32, #tpu.memory_space<vmem>>, %arg12: memref<120x640xbf16, #tpu.memory_space<vmem>>, %arg13: memref<256x640xbf16, #tpu.memory_space<vmem>>, %arg14: memref<256x640xbf16, #tpu.memory_space<vmem>>) attributes {dimension_semantics = [], scalar_prefetch = 0 : i64, scratch_operands = 8 : i64, tpu.core_type = #tpu.core_type<tc>} {
    %c0 = arith.constant 0 : index
    %c0_0 = arith.constant 0 : index
    %0 = vector.load %arg0[%c0, %c0_0] : memref<8x24xf32, #tpu.memory_space<vmem>>, vector<8x24xf32>
    %1 = arith.truncf %0 : vector<8x24xf32> to vector<8x24xbf16>
    %c0_1 = arith.constant 0 : index
    %c0_2 = arith.constant 0 : index
    %2 = vector.load %arg1[%c0_1, %c0_2] : memref<24x896xbf16, #tpu.memory_space<vmem>>, vector<24x896xbf16>
    %cst = arith.constant dense<0.000000e+00> : vector<8x896xf32>
    %3 = tpu.matmul %1, %2, %cst {dimension_numbers = #tpu.dot_dimension_numbers<[1], [0], [0], [1], [0, 0, 1, 1], [], []>} : vector<8x24xbf16>, vector<24x896xbf16>, vector<8x896xf32> -> vector<8x896xf32>
    %c0_3 = arith.constant 0 : index
    %c0_4 = arith.constant 0 : index
    %4 = vector.load %arg2[%c0_3, %c0_4] : memref<1x896xf32, #tpu.memory_space<vmem>>, vector<1x896xf32>
    %5 = vector.broadcast %4 : vector<1x896xf32> to vector<8x896xf32>
    %6 = arith.addf %3, %5 : vector<8x896xf32>
    %7 = vector.extract_strided_slice %6 {offsets = [0, 0], sizes = [8, 128], strides = [1, 1]} : vector<8x896xf32> to vector<8x128xf32>
    %8 = vector.extract_strided_slice %6 {offsets = [0, 128], sizes = [8, 128], strides = [1, 1]} : vector<8x896xf32> to vector<8x128xf32>
    %9 = vector.extract_strided_slice %6 {offsets = [0, 256], sizes = [8, 128], strides = [1, 1]} : vector<8x896xf32> to vector<8x128xf32>
    %10 = vector.extract_strided_slice %6 {offsets = [0, 384], sizes = [8, 128], strides = [1, 1]} : vector<8x896xf32> to vector<8x128xf32>
    %11 = vector.extract_strided_slice %6 {offsets = [0, 512], sizes = [8, 128], strides = [1, 1]} : vector<8x896xf32> to vector<8x128xf32>
    %12 = vector.extract_strided_slice %6 {offsets = [0, 640], sizes = [8, 128], strides = [1, 1]} : vector<8x896xf32> to vector<8x128xf32>
    %13 = vector.extract_strided_slice %6 {offsets = [0, 768], sizes = [8, 128], strides = [1, 1]} : vector<8x896xf32> to vector<8x128xf32>
    %14 = arith.mulf %7, %7 : vector<8x128xf32>
    %15 = arith.addf %7, %8 : vector<8x128xf32>
    %16 = arith.mulf %8, %8 : vector<8x128xf32>
    %17 = arith.addf %14, %16 : vector<8x128xf32>
    %18 = arith.addf %15, %9 : vector<8x128xf32>
    %19 = arith.mulf %9, %9 : vector<8x128xf32>
    %20 = arith.addf %17, %19 : vector<8x128xf32>
    %21 = arith.addf %18, %10 : vector<8x128xf32>
    %22 = arith.mulf %10, %10 : vector<8x128xf32>
    %23 = arith.addf %20, %22 : vector<8x128xf32>
    %24 = arith.addf %21, %11 : vector<8x128xf32>
    %25 = arith.mulf %11, %11 : vector<8x128xf32>
    %26 = arith.addf %23, %25 : vector<8x128xf32>
    %27 = arith.addf %24, %12 : vector<8x128xf32>
    %28 = arith.mulf %12, %12 : vector<8x128xf32>
    %29 = arith.addf %26, %28 : vector<8x128xf32>
    %30 = arith.addf %27, %13 : vector<8x128xf32>
    %31 = arith.mulf %13, %13 : vector<8x128xf32>
    %32 = arith.addf %29, %31 : vector<8x128xf32>
    %cst_5 = arith.constant dense<0.000000e+00> : vector<128xf32>
    %33 = vector.multi_reduction <add>, %30, %cst_5 [0] : vector<8x128xf32> to vector<128xf32>
    %34 = vector.shape_cast %33 : vector<128xf32> to vector<1x128xf32>
    %cst_6 = arith.constant dense<0.000000e+00> : vector<128xf32>
    %35 = vector.multi_reduction <add>, %32, %cst_6 [0] : vector<8x128xf32> to vector<128xf32>
    %36 = vector.shape_cast %35 : vector<128xf32> to vector<1x128xf32>
    %c0_7 = arith.constant 0 : index
    %c0_8 = arith.constant 0 : index
    %37 = vector.load %arg4[%c0_7, %c0_8] : memref<384x16xf32, #tpu.memory_space<vmem>>, vector<128x16xf32>
    %c0_9 = arith.constant 0 : index
    %c0_10 = arith.constant 0 : index
    %38 = vector.load %arg5[%c0_9, %c0_10] : memref<52x128xf32, #tpu.memory_space<vmem>>, vector<16x128xf32>
    %c48 = arith.constant 48 : index
    %c0_11 = arith.constant 0 : index
    %39 = vector.load %arg5[%c48, %c0_11] : memref<52x128xf32, #tpu.memory_space<vmem>>, vector<1x128xf32>
    %40 = tpu.concatenate %34, %36 in 0 : vector<1x128xf32>, vector<1x128xf32> -> vector<2x128xf32>
    %cst_12 = arith.constant dense<0.000000e+00> : vector<2x16xf32>
    %41 = tpu.matmul %40, %37, %cst_12 {dimension_numbers = #tpu.dot_dimension_numbers<[1], [0], [0], [1], [0, 0, 1, 1], [], []>} : vector<2x128xf32>, vector<128x16xf32>, vector<2x16xf32> -> vector<2x16xf32>
    %42 = vector.extract_strided_slice %41 {offsets = [0, 0], sizes = [1, 16], strides = [1, 1]} : vector<2x16xf32> to vector<1x16xf32>
    %cst_13 = arith.constant 0.00255102036 : f32
    %43 = vector.broadcast %cst_13 : f32 to vector<1x16xf32>
    %44 = arith.mulf %42, %43 : vector<1x16xf32>
    %45 = vector.extract_strided_slice %41 {offsets = [1, 0], sizes = [1, 16], strides = [1, 1]} : vector<2x16xf32> to vector<1x16xf32>
    %cst_14 = arith.constant 0.00255102036 : f32
    %46 = vector.broadcast %cst_14 : f32 to vector<1x16xf32>
    %47 = arith.mulf %45, %46 : vector<1x16xf32>
    %48 = arith.mulf %44, %44 : vector<1x16xf32>
    %49 = arith.subf %47, %48 : vector<1x16xf32>
    %cst_15 = arith.constant 9.99999974E-6 : f32
    %50 = vector.broadcast %cst_15 : f32 to vector<1x16xf32>
    %51 = arith.addf %49, %50 : vector<1x16xf32>
    %52 = math.rsqrt %51 : vector<1x16xf32>
    %53 = arith.mulf %44, %52 : vector<1x16xf32>
    %54 = tpu.concatenate %52, %53 in 0 : vector<1x16xf32>, vector<1x16xf32> -> vector<2x16xf32>
    %cst_16 = arith.constant dense<0.000000e+00> : vector<2x128xf32>
    %55 = tpu.matmul %54, %38, %cst_16 {dimension_numbers = #tpu.dot_dimension_numbers<[1], [0], [0], [1], [0, 0, 1, 1], [], []>} : vector<2x16xf32>, vector<16x128xf32>, vector<2x128xf32> -> vector<2x128xf32>
    %56 = vector.extract_strided_slice %55 {offsets = [0, 0], sizes = [1, 128], strides = [1, 1]} : vector<2x128xf32> to vector<1x128xf32>
    %57 = vector.extract_strided_slice %55 {offsets = [1, 0], sizes = [1, 128], strides = [1, 1]} : vector<2x128xf32> to vector<1x128xf32>
    %58 = arith.subf %39, %57 : vector<1x128xf32>
    %cst_17 = arith.constant 0.000000e+00 : f32
    %59 = vector.broadcast %cst_17 : f32 to vector<8x128xf32>
    %c0_18 = arith.constant 0 : index
    %c0_19 = arith.constant 0 : index
    %60 = vector.load %arg9[%c0_18, %c0_19] : memref<152x128xf32, #tpu.memory_space<vmem>>, vector<8x128xf32>
    tpu.vector_store %arg9[%c0_18, %c0_19], %59 {strides = array<i32>} : memref<152x128xf32, #tpu.memory_space<vmem>>, vector<8x128xf32>,
    %c8 = arith.constant 8 : index
    %c0_20 = arith.constant 0 : index
    %61 = vector.load %arg9[%c8, %c0_20] : memref<152x128xf32, #tpu.memory_space<vmem>>, vector<8x128xf32>
    tpu.vector_store %arg9[%c8, %c0_20], %59 {strides = array<i32>} : memref<152x128xf32, #tpu.memory_space<vmem>>, vector<8x128xf32>,
    %c16 = arith.constant 16 : index
    %c0_21 = arith.constant 0 : index
    %62 = vector.load %arg9[%c16, %c0_21] : memref<152x128xf32, #tpu.memory_space<vmem>>, vector<8x128xf32>
    tpu.vector_store %arg9[%c16, %c0_21], %59 {strides = array<i32>} : memref<152x128xf32, #tpu.memory_space<vmem>>, vector<8x128xf32>,
    %63 = vector.broadcast %56 : vector<1x128xf32> to vector<8x128xf32>
    %64 = arith.mulf %7, %63 : vector<8x128xf32>
    %65 = vector.broadcast %58 : vector<1x128xf32> to vector<8x128xf32>
    %66 = arith.addf %64, %65 : vector<8x128xf32>
    %cst_22 = arith.constant 0.000000e+00 : f32
    %67 = vector.broadcast %cst_22 : f32 to vector<8x128xf32>
    %68 = arith.maximumf %66, %67 : vector<8x128xf32>
    %c24 = arith.constant 24 : index
    %c0_23 = arith.constant 0 : index
    %69 = vector.load %arg9[%c24, %c0_23] : memref<152x128xf32, #tpu.memory_space<vmem>>, vector<8x128xf32>
    tpu.vector_store %arg9[%c24, %c0_23], %68 {strides = array<i32>} : memref<152x128xf32, #tpu.memory_space<vmem>>, vector<8x128xf32>,
    %c32 = arith.constant 32 : index
    %c0_24 = arith.constant 0 : index
    %70 = vector.load %arg9[%c32, %c0_24] : memref<152x128xf32, #tpu.memory_space<vmem>>, vector<8x128xf32>
    tpu.vector_store %arg9[%c32, %c0_24], %59 {strides = array<i32>} : memref<152x128xf32, #tpu.memory_space<vmem>>, vector<8x128xf32>,
    %71 = vector.broadcast %56 : vector<1x128xf32> to vector<8x128xf32>
    %72 = arith.mulf %8, %71 : vector<8x128xf32>
    %73 = vector.broadcast %58 : vector<1x128xf32> to vector<8x128xf32>
    %74 = arith.addf %72, %73 : vector<8x128xf32>
    %cst_25 = arith.constant 0.000000e+00 : f32
    %75 = vector.broadcast %cst_25 : f32 to vector<8x128xf32>
    %76 = arith.maximumf %74, %75 : vector<8x128xf32>
    %c40 = arith.constant 40 : index
    %c0_26 = arith.constant 0 : index
    %77 = vector.load %arg9[%c40, %c0_26] : memref<152x128xf32, #tpu.memory_space<vmem>>, vector<8x128xf32>
    tpu.vector_store %arg9[%c40, %c0_26], %76 {strides = array<i32>} : memref<152x128xf32, #tpu.memory_space<vmem>>, vector<8x128xf32>,
    %c48_27 = arith.constant 48 : index
    %c0_28 = arith.constant 0 : index
    %78 = vector.load %arg9[%c48_27, %c0_28] : memref<152x128xf32, #tpu.memory_space<vmem>>, vector<8x128xf32>
    tpu.vector_store %arg9[%c48_27, %c0_28], %59 {strides = array<i32>} : memref<152x128xf32, #tpu.memory_space<vmem>>, vector<8x128xf32>,
    %79 = vector.broadcast %56 : vector<1x128xf32> to vector<8x128xf32>
    %80 = arith.mulf %9, %79 : vector<8x128xf32>
    %81 = vector.broadcast %58 : vector<1x128xf32> to vector<8x128xf32>
    %82 = arith.addf %80, %81 : vector<8x128xf32>
    %cst_29 = arith.constant 0.000000e+00 : f32
    %83 = vector.broadcast %cst_29 : f32 to vector<8x128xf32>
    %84 = arith.maximumf %82, %83 : vector<8x128xf32>
    %c56 = arith.constant 56 : index
    %c0_30 = arith.constant 0 : index
    %85 = vector.load %arg9[%c56, %c0_30] : memref<152x128xf32, #tpu.memory_space<vmem>>, vector<8x128xf32>
    tpu.vector_store %arg9[%c56, %c0_30], %84 {strides = array<i32>} : memref<152x128xf32, #tpu.memory_space<vmem>>, vector<8x128xf32>,
    %c64 = arith.constant 64 : index
    %c0_31 = arith.constant 0 : index
    %86 = vector.load %arg9[%c64, %c0_31] : memref<152x128xf32, #tpu.memory_space<vmem>>, vector<8x128xf32>
    tpu.vector_store %arg9[%c64, %c0_31], %59 {strides = array<i32>} : memref<152x128xf32, #tpu.memory_space<vmem>>, vector<8x128xf32>,
    %87 = vector.broadcast %56 : vector<1x128xf32> to vector<8x128xf32>
    %88 = arith.mulf %10, %87 : vector<8x128xf32>
    %89 = vector.broadcast %58 : vector<1x128xf32> to vector<8x128xf32>
    %90 = arith.addf %88, %89 : vector<8x128xf32>
    %cst_32 = arith.constant 0.000000e+00 : f32
    %91 = vector.broadcast %cst_32 : f32 to vector<8x128xf32>
    %92 = arith.maximumf %90, %91 : vector<8x128xf32>
    %c72 = arith.constant 72 : index
    %c0_33 = arith.constant 0 : index
    %93 = vector.load %arg9[%c72, %c0_33] : memref<152x128xf32, #tpu.memory_space<vmem>>, vector<8x128xf32>
    tpu.vector_store %arg9[%c72, %c0_33], %92 {strides = array<i32>} : memref<152x128xf32, #tpu.memory_space<vmem>>, vector<8x128xf32>,
    %c80 = arith.constant 80 : index
    %c0_34 = arith.constant 0 : index
    %94 = vector.load %arg9[%c80, %c0_34] : memref<152x128xf32, #tpu.memory_space<vmem>>, vector<8x128xf32>
    tpu.vector_store %arg9[%c80, %c0_34], %59 {strides = array<i32>} : memref<152x128xf32, #tpu.memory_space<vmem>>, vector<8x128xf32>,
    %95 = vector.broadcast %56 : vector<1x128xf32> to vector<8x128xf32>
    %96 = arith.mulf %11, %95 : vector<8x128xf32>
    %97 = vector.broadcast %58 : vector<1x128xf32> to vector<8x128xf32>
    %98 = arith.addf %96, %97 : vector<8x128xf32>
    %cst_35 = arith.constant 0.000000e+00 : f32
    %99 = vector.broadcast %cst_35 : f32 to vector<8x128xf32>
    %100 = arith.maximumf %98, %99 : vector<8x128xf32>
    %c88 = arith.constant 88 : index
    %c0_36 = arith.constant 0 : index
    %101 = vector.load %arg9[%c88, %c0_36] : memref<152x128xf32, #tpu.memory_space<vmem>>, vector<8x128xf32>
    tpu.vector_store %arg9[%c88, %c0_36], %100 {strides = array<i32>} : memref<152x128xf32, #tpu.memory_space<vmem>>, vector<8x128xf32>,
    %c96 = arith.constant 96 : index
    %c0_37 = arith.constant 0 : index
    %102 = vector.load %arg9[%c96, %c0_37] : memref<152x128xf32, #tpu.memory_space<vmem>>, vector<8x128xf32>
    tpu.vector_store %arg9[%c96, %c0_37], %59 {strides = array<i32>} : memref<152x128xf32, #tpu.memory_space<vmem>>, vector<8x128xf32>,
    %103 = vector.broadcast %56 : vector<1x128xf32> to vector<8x128xf32>
    %104 = arith.mulf %12, %103 : vector<8x128xf32>
    %105 = vector.broadcast %58 : vector<1x128xf32> to vector<8x128xf32>
    %106 = arith.addf %104, %105 : vector<8x128xf32>
    %cst_38 = arith.constant 0.000000e+00 : f32
    %107 = vector.broadcast %cst_38 : f32 to vector<8x128xf32>
    %108 = arith.maximumf %106, %107 : vector<8x128xf32>
    %c104 = arith.constant 104 : index
    %c0_39 = arith.constant 0 : index
    %109 = vector.load %arg9[%c104, %c0_39] : memref<152x128xf32, #tpu.memory_space<vmem>>, vector<8x128xf32>
    tpu.vector_store %arg9[%c104, %c0_39], %108 {strides = array<i32>} : memref<152x128xf32, #tpu.memory_space<vmem>>, vector<8x128xf32>,
    %c112 = arith.constant 112 : index
    %c0_40 = arith.constant 0 : index
    %110 = vector.load %arg9[%c112, %c0_40] : memref<152x128xf32, #tpu.memory_space<vmem>>, vector<8x128xf32>
    tpu.vector_store %arg9[%c112, %c0_40], %59 {strides = array<i32>} : memref<152x128xf32, #tpu.memory_space<vmem>>, vector<8x128xf32>,
    %111 = vector.broadcast %56 : vector<1x128xf32> to vector<8x128xf32>
    %112 = arith.mulf %13, %111 : vector<8x128xf32>
    %113 = vector.broadcast %58 : vector<1x128xf32> to vector<8x128xf32>
    %114 = arith.addf %112, %113 : vector<8x128xf32>
    %cst_41 = arith.constant 0.000000e+00 : f32
    %115 = vector.broadcast %cst_41 : f32 to vector<8x128xf32>
    %116 = arith.maximumf %114, %115 : vector<8x128xf32>
    %c120 = arith.constant 120 : index
    %c0_42 = arith.constant 0 : index
    %117 = vector.load %arg9[%c120, %c0_42] : memref<152x128xf32, #tpu.memory_space<vmem>>, vector<8x128xf32>
    tpu.vector_store %arg9[%c120, %c0_42], %116 {strides = array<i32>} : memref<152x128xf32, #tpu.memory_space<vmem>>, vector<8x128xf32>,
    %c128 = arith.constant 128 : index
    %c0_43 = arith.constant 0 : index
    %118 = vector.load %arg9[%c128, %c0_43] : memref<152x128xf32, #tpu.memory_space<vmem>>, vector<8x128xf32>
    tpu.vector_store %arg9[%c128, %c0_43], %59 {strides = array<i32>} : memref<152x128xf32, #tpu.memory_space<vmem>>, vector<8x128xf32>,
    %c136 = arith.constant 136 : index
    %c0_44 = arith.constant 0 : index
    %119 = vector.load %arg9[%c136, %c0_44] : memref<152x128xf32, #tpu.memory_space<vmem>>, vector<8x128xf32>
    tpu.vector_store %arg9[%c136, %c0_44], %59 {strides = array<i32>} : memref<152x128xf32, #tpu.memory_space<vmem>>, vector<8x128xf32>,
    %c144 = arith.constant 144 : index
    %c0_45 = arith.constant 0 : index
    %120 = vector.load %arg9[%c144, %c0_45] : memref<152x128xf32, #tpu.memory_space<vmem>>, vector<8x128xf32>
    tpu.vector_store %arg9[%c144, %c0_45], %59 {strides = array<i32>} : memref<152x128xf32, #tpu.memory_space<vmem>>, vector<8x128xf32>,
    %c0_46 = arith.constant 0 : index
    %c0_47 = arith.constant 0 : index
    %121 = vector.load %arg9[%c0_46, %c0_47] : memref<152x128xf32, #tpu.memory_space<vmem>>, vector<120x128xf32>
    %122 = arith.truncf %121 : vector<120x128xf32> to vector<120x128xbf16>
    %c0_48 = arith.constant 0 : index
    %c0_49 = arith.constant 0 : index
    %123 = vector.load %arg12[%c0_48, %c0_49] : memref<120x640xbf16, #tpu.memory_space<vmem>>, vector<120x128xbf16>
    tpu.vector_store %arg12[%c0_48, %c0_49], %122 {strides = array<i32>} : memref<120x640xbf16, #tpu.memory_space<vmem>>, vector<120x128xbf16>,
    %c8_50 = arith.constant 8 : index
    %c0_51 = arith.constant 0 : index
    %124 = vector.load %arg9[%c8_50, %c0_51] : memref<152x128xf32, #tpu.memory_space<vmem>>, vector<120x128xf32>
    %125 = arith.truncf %124 : vector<120x128xf32> to vector<120x128xbf16>
    %c0_52 = arith.constant 0 : index
    %c128_53 = arith.constant 128 : index
    %126 = vector.load %arg12[%c0_52, %c128_53] : memref<120x640xbf16, #tpu.memory_space<vmem>>, vector<120x128xbf16>
    tpu.vector_store %arg12[%c0_52, %c128_53], %125 {strides = array<i32>} : memref<120x640xbf16, #tpu.memory_space<vmem>>, vector<120x128xbf16>,
    %c16_54 = arith.constant 16 : index
    %c0_55 = arith.constant 0 : index
    %127 = vector.load %arg9[%c16_54, %c0_55] : memref<152x128xf32, #tpu.memory_space<vmem>>, vector<120x128xf32>
    %128 = arith.truncf %127 : vector<120x128xf32> to vector<120x128xbf16>
    %c0_56 = arith.constant 0 : index
    %c256 = arith.constant 256 : index
    %129 = vector.load %arg12[%c0_56, %c256] : memref<120x640xbf16, #tpu.memory_space<vmem>>, vector<120x128xbf16>
    tpu.vector_store %arg12[%c0_56, %c256], %128 {strides = array<i32>} : memref<120x640xbf16, #tpu.memory_space<vmem>>, vector<120x128xbf16>,
    %c24_57 = arith.constant 24 : index
    %c0_58 = arith.constant 0 : index
    %130 = vector.load %arg9[%c24_57, %c0_58] : memref<152x128xf32, #tpu.memory_space<vmem>>, vector<120x128xf32>
    %131 = arith.truncf %130 : vector<120x128xf32> to vector<120x128xbf16>
    %c0_59 = arith.constant 0 : index
    %c384 = arith.constant 384 : index
    %132 = vector.load %arg12[%c0_59, %c384] : memref<120x640xbf16, #tpu.memory_space<vmem>>, vector<120x128xbf16>
    tpu.vector_store %arg12[%c0_59, %c384], %131 {strides = array<i32>} : memref<120x640xbf16, #tpu.memory_space<vmem>>, vector<120x128xbf16>,
    %c32_60 = arith.constant 32 : index
    %c0_61 = arith.constant 0 : index
    %133 = vector.load %arg9[%c32_60, %c0_61] : memref<152x128xf32, #tpu.memory_space<vmem>>, vector<120x128xf32>
    %134 = arith.truncf %133 : vector<120x128xf32> to vector<120x128xbf16>
    %c0_62 = arith.constant 0 : index
    %c512 = arith.constant 512 : index
    %135 = vector.load %arg12[%c0_62, %c512] : memref<120x640xbf16, #tpu.memory_space<vmem>>, vector<120x128xbf16>
    tpu.vector_store %arg12[%c0_62, %c512], %134 {strides = array<i32>} : memref<120x640xbf16, #tpu.memory_space<vmem>>, vector<120x128xbf16>,
    %c0_63 = arith.constant 0 : index
    %c0_64 = arith.constant 0 : index
    %136 = vector.load %arg12[%c0_63, %c0_64] : memref<120x640xbf16, #tpu.memory_space<vmem>>, vector<120x640xbf16>
    %c0_65 = arith.constant 0 : index
    %c0_66 = arith.constant 0 : index
    %137 = vector.load %arg3[%c0_65, %c0_66] : memref<1920x128xbf16, #tpu.memory_space<vmem>>, vector<640x128xbf16>
    %cst_67 = arith.constant dense<0.000000e+00> : vector<120x128xf32>
    %138 = tpu.matmul %136, %137, %cst_67 {dimension_numbers = #tpu.dot_dimension_numbers<[1], [0], [0], [1], [0, 0, 1, 1], [], []>} : vector<120x640xbf16>, vector<640x128xbf16>, vector<120x128xf32> -> vector<120x128xf32>
    %c0_68 = arith.constant 0 : index
    %c0_69 = arith.constant 0 : index
    %139 = vector.load %arg7[%c0_68, %c0_69] : memref<120x128xf32, #tpu.memory_space<vmem>>, vector<120x128xf32>
    tpu.vector_store %arg7[%c0_68, %c0_69], %138 {strides = array<i32>} : memref<120x128xf32, #tpu.memory_space<vmem>>, vector<120x128xf32>,
    %c0_70 = arith.constant 0 : index
    %c0_71 = arith.constant 0 : index
    %140 = vector.load %arg7[%c0_70, %c0_71] : memref<120x128xf32, #tpu.memory_space<vmem>>, vector<120x128xf32>
    %cst_72 = arith.constant dense<0.000000e+00> : vector<128xf32>
    %141 = vector.multi_reduction <add>, %140, %cst_72 [0] : vector<120x128xf32> to vector<128xf32>
    %142 = vector.shape_cast %141 : vector<128xf32> to vector<1x128xf32>
    %143 = arith.mulf %140, %140 : vector<120x128xf32>
    %cst_73 = arith.constant dense<0.000000e+00> : vector<128xf32>
    %144 = vector.multi_reduction <add>, %143, %cst_73 [0] : vector<120x128xf32> to vector<128xf32>
    %145 = vector.shape_cast %144 : vector<128xf32> to vector<1x128xf32>
    %c128_74 = arith.constant 128 : index
    %c0_75 = arith.constant 0 : index
    %146 = vector.load %arg4[%c128_74, %c0_75] : memref<384x16xf32, #tpu.memory_space<vmem>>, vector<128x16xf32>
    %c16_76 = arith.constant 16 : index
    %c0_77 = arith.constant 0 : index
    %147 = vector.load %arg5[%c16_76, %c0_77] : memref<52x128xf32, #tpu.memory_space<vmem>>, vector<16x128xf32>
    %c49 = arith.constant 49 : index
    %c0_78 = arith.constant 0 : index
    %148 = vector.load %arg5[%c49, %c0_78] : memref<52x128xf32, #tpu.memory_space<vmem>>, vector<1x128xf32>
    %149 = tpu.concatenate %142, %145 in 0 : vector<1x128xf32>, vector<1x128xf32> -> vector<2x128xf32>
    %cst_79 = arith.constant dense<0.000000e+00> : vector<2x16xf32>
    %150 = tpu.matmul %149, %146, %cst_79 {dimension_numbers = #tpu.dot_dimension_numbers<[1], [0], [0], [1], [0, 0, 1, 1], [], []>} : vector<2x128xf32>, vector<128x16xf32>, vector<2x16xf32> -> vector<2x16xf32>
    %151 = vector.extract_strided_slice %150 {offsets = [0, 0], sizes = [1, 16], strides = [1, 1]} : vector<2x16xf32> to vector<1x16xf32>
    %cst_80 = arith.constant 5.55555569E-4 : f32
    %152 = vector.broadcast %cst_80 : f32 to vector<1x16xf32>
    %153 = arith.mulf %151, %152 : vector<1x16xf32>
    %154 = vector.extract_strided_slice %150 {offsets = [1, 0], sizes = [1, 16], strides = [1, 1]} : vector<2x16xf32> to vector<1x16xf32>
    %cst_81 = arith.constant 5.55555569E-4 : f32
    %155 = vector.broadcast %cst_81 : f32 to vector<1x16xf32>
    %156 = arith.mulf %154, %155 : vector<1x16xf32>
    %157 = arith.mulf %153, %153 : vector<1x16xf32>
    %158 = arith.subf %156, %157 : vector<1x16xf32>
    %cst_82 = arith.constant 9.99999974E-6 : f32
    %159 = vector.broadcast %cst_82 : f32 to vector<1x16xf32>
    %160 = arith.addf %158, %159 : vector<1x16xf32>
    %161 = math.rsqrt %160 : vector<1x16xf32>
    %162 = arith.mulf %153, %161 : vector<1x16xf32>
    %163 = tpu.concatenate %161, %162 in 0 : vector<1x16xf32>, vector<1x16xf32> -> vector<2x16xf32>
    %cst_83 = arith.constant dense<0.000000e+00> : vector<2x128xf32>
    %164 = tpu.matmul %163, %147, %cst_83 {dimension_numbers = #tpu.dot_dimension_numbers<[1], [0], [0], [1], [0, 0, 1, 1], [], []>} : vector<2x16xf32>, vector<16x128xf32>, vector<2x128xf32> -> vector<2x128xf32>
    %165 = vector.extract_strided_slice %164 {offsets = [0, 0], sizes = [1, 128], strides = [1, 1]} : vector<2x128xf32> to vector<1x128xf32>
    %166 = vector.extract_strided_slice %164 {offsets = [1, 0], sizes = [1, 128], strides = [1, 1]} : vector<2x128xf32> to vector<1x128xf32>
    %167 = arith.subf %148, %166 : vector<1x128xf32>
    %cst_84 = arith.constant 0.000000e+00 : f32
    %168 = vector.broadcast %cst_84 : f32 to vector<8x128xf32>
    %c0_85 = arith.constant 0 : index
    %c0_86 = arith.constant 0 : index
    %169 = vector.load %arg10[%c0_85, %c0_86] : memref<288x128xf32, #tpu.memory_space<vmem>>, vector<8x128xf32>
    tpu.vector_store %arg10[%c0_85, %c0_86], %168 {strides = array<i32>} : memref<288x128xf32, #tpu.memory_space<vmem>>, vector<8x128xf32>,
    %c8_87 = arith.constant 8 : index
    %c0_88 = arith.constant 0 : index
    %170 = vector.load %arg10[%c8_87, %c0_88] : memref<288x128xf32, #tpu.memory_space<vmem>>, vector<8x128xf32>
    tpu.vector_store %arg10[%c8_87, %c0_88], %168 {strides = array<i32>} : memref<288x128xf32, #tpu.memory_space<vmem>>, vector<8x128xf32>,
    %c16_89 = arith.constant 16 : index
    %c0_90 = arith.constant 0 : index
    %171 = vector.load %arg10[%c16_89, %c0_90] : memref<288x128xf32, #tpu.memory_space<vmem>>, vector<8x128xf32>
    tpu.vector_store %arg10[%c16_89, %c0_90], %168 {strides = array<i32>} : memref<288x128xf32, #tpu.memory_space<vmem>>, vector<8x128xf32>,
    %c0_91 = arith.constant 0 : index
    %c0_92 = arith.constant 0 : index
    %172 = vector.load %arg7[%c0_91, %c0_92] : memref<120x128xf32, #tpu.memory_space<vmem>>, vector<8x128xf32>
    %173 = vector.broadcast %165 : vector<1x128xf32> to vector<8x128xf32>
    %174 = arith.mulf %172, %173 : vector<8x128xf32>
    %175 = vector.broadcast %167 : vector<1x128xf32> to vector<8x128xf32>
    %176 = arith.addf %174, %175 : vector<8x128xf32>
    %cst_93 = arith.constant 0.000000e+00 : f32
    %177 = vector.broadcast %cst_93 : f32 to vector<8x128xf32>
    %178 = arith.maximumf %176, %177 : vector<8x128xf32>
    %c24_94 = arith.constant 24 : index
    %c0_95 = arith.constant 0 : index
    %179 = vector.load %arg10[%c24_94, %c0_95] : memref<288x128xf32, #tpu.memory_space<vmem>>, vector<8x128xf32>
    tpu.vector_store %arg10[%c24_94, %c0_95], %178 {strides = array<i32>} : memref<288x128xf32, #tpu.memory_space<vmem>>, vector<8x128xf32>,
    %c32_96 = arith.constant 32 : index
    %c0_97 = arith.constant 0 : index
    %180 = vector.load %arg10[%c32_96, %c0_97] : memref<288x128xf32, #tpu.memory_space<vmem>>, vector<8x128xf32>
    tpu.vector_store %arg10[%c32_96, %c0_97], %168 {strides = array<i32>} : memref<288x128xf32, #tpu.memory_space<vmem>>, vector<8x128xf32>,
    %c8_98 = arith.constant 8 : index
    %c0_99 = arith.constant 0 : index
    %181 = vector.load %arg7[%c8_98, %c0_99] : memref<120x128xf32, #tpu.memory_space<vmem>>, vector<8x128xf32>
    %182 = vector.broadcast %165 : vector<1x128xf32> to vector<8x128xf32>
    %183 = arith.mulf %181, %182 : vector<8x128xf32>
    %184 = vector.broadcast %167 : vector<1x128xf32> to vector<8x128xf32>
    %185 = arith.addf %183, %184 : vector<8x128xf32>
    %cst_100 = arith.constant 0.000000e+00 : f32
    %186 = vector.broadcast %cst_100 : f32 to vector<8x128xf32>
    %187 = arith.maximumf %185, %186 : vector<8x128xf32>
    %c40_101 = arith.constant 40 : index
    %c0_102 = arith.constant 0 : index
    %188 = vector.load %arg10[%c40_101, %c0_102] : memref<288x128xf32, #tpu.memory_space<vmem>>, vector<8x128xf32>
    tpu.vector_store %arg10[%c40_101, %c0_102], %187 {strides = array<i32>} : memref<288x128xf32, #tpu.memory_space<vmem>>, vector<8x128xf32>,
    %c48_103 = arith.constant 48 : index
    %c0_104 = arith.constant 0 : index
    %189 = vector.load %arg10[%c48_103, %c0_104] : memref<288x128xf32, #tpu.memory_space<vmem>>, vector<8x128xf32>
    tpu.vector_store %arg10[%c48_103, %c0_104], %168 {strides = array<i32>} : memref<288x128xf32, #tpu.memory_space<vmem>>, vector<8x128xf32>,
    %c16_105 = arith.constant 16 : index
    %c0_106 = arith.constant 0 : index
    %190 = vector.load %arg7[%c16_105, %c0_106] : memref<120x128xf32, #tpu.memory_space<vmem>>, vector<8x128xf32>
    %191 = vector.broadcast %165 : vector<1x128xf32> to vector<8x128xf32>
    %192 = arith.mulf %190, %191 : vector<8x128xf32>
    %193 = vector.broadcast %167 : vector<1x128xf32> to vector<8x128xf32>
    %194 = arith.addf %192, %193 : vector<8x128xf32>
    %cst_107 = arith.constant 0.000000e+00 : f32
    %195 = vector.broadcast %cst_107 : f32 to vector<8x128xf32>
    %196 = arith.maximumf %194, %195 : vector<8x128xf32>
    %c56_108 = arith.constant 56 : index
    %c0_109 = arith.constant 0 : index
    %197 = vector.load %arg10[%c56_108, %c0_109] : memref<288x128xf32, #tpu.memory_space<vmem>>, vector<8x128xf32>
    tpu.vector_store %arg10[%c56_108, %c0_109], %196 {strides = array<i32>} : memref<288x128xf32, #tpu.memory_space<vmem>>, vector<8x128xf32>,
    %c64_110 = arith.constant 64 : index
    %c0_111 = arith.constant 0 : index
    %198 = vector.load %arg10[%c64_110, %c0_111] : memref<288x128xf32, #tpu.memory_space<vmem>>, vector<8x128xf32>
    tpu.vector_store %arg10[%c64_110, %c0_111], %168 {strides = array<i32>} : memref<288x128xf32, #tpu.memory_space<vmem>>, vector<8x128xf32>,
    %c24_112 = arith.constant 24 : index
    %c0_113 = arith.constant 0 : index
    %199 = vector.load %arg7[%c24_112, %c0_113] : memref<120x128xf32, #tpu.memory_space<vmem>>, vector<8x128xf32>
    %200 = vector.broadcast %165 : vector<1x128xf32> to vector<8x128xf32>
    %201 = arith.mulf %199, %200 : vector<8x128xf32>
    %202 = vector.broadcast %167 : vector<1x128xf32> to vector<8x128xf32>
    %203 = arith.addf %201, %202 : vector<8x128xf32>
    %cst_114 = arith.constant 0.000000e+00 : f32
    %204 = vector.broadcast %cst_114 : f32 to vector<8x128xf32>
    %205 = arith.maximumf %203, %204 : vector<8x128xf32>
    %c72_115 = arith.constant 72 : index
    %c0_116 = arith.constant 0 : index
    %206 = vector.load %arg10[%c72_115, %c0_116] : memref<288x128xf32, #tpu.memory_space<vmem>>, vector<8x128xf32>
    tpu.vector_store %arg10[%c72_115, %c0_116], %205 {strides = array<i32>} : memref<288x128xf32, #tpu.memory_space<vmem>>, vector<8x128xf32>,
    %c80_117 = arith.constant 80 : index
    %c0_118 = arith.constant 0 : index
    %207 = vector.load %arg10[%c80_117, %c0_118] : memref<288x128xf32, #tpu.memory_space<vmem>>, vector<8x128xf32>
    tpu.vector_store %arg10[%c80_117, %c0_118], %168 {strides = array<i32>} : memref<288x128xf32, #tpu.memory_space<vmem>>, vector<8x128xf32>,
    %c32_119 = arith.constant 32 : index
    %c0_120 = arith.constant 0 : index
    %208 = vector.load %arg7[%c32_119, %c0_120] : memref<120x128xf32, #tpu.memory_space<vmem>>, vector<8x128xf32>
    %209 = vector.broadcast %165 : vector<1x128xf32> to vector<8x128xf32>
    %210 = arith.mulf %208, %209 : vector<8x128xf32>
    %211 = vector.broadcast %167 : vector<1x128xf32> to vector<8x128xf32>
    %212 = arith.addf %210, %211 : vector<8x128xf32>
    %cst_121 = arith.constant 0.000000e+00 : f32
    %213 = vector.broadcast %cst_121 : f32 to vector<8x128xf32>
    %214 = arith.maximumf %212, %213 : vector<8x128xf32>
    %c88_122 = arith.constant 88 : index
    %c0_123 = arith.constant 0 : index
    %215 = vector.load %arg10[%c88_122, %c0_123] : memref<288x128xf32, #tpu.memory_space<vmem>>, vector<8x128xf32>
    tpu.vector_store %arg10[%c88_122, %c0_123], %214 {strides = array<i32>} : memref<288x128xf32, #tpu.memory_space<vmem>>, vector<8x128xf32>,
    %c96_124 = arith.constant 96 : index
    %c0_125 = arith.constant 0 : index
    %216 = vector.load %arg10[%c96_124, %c0_125] : memref<288x128xf32, #tpu.memory_space<vmem>>, vector<8x128xf32>
    tpu.vector_store %arg10[%c96_124, %c0_125], %168 {strides = array<i32>} : memref<288x128xf32, #tpu.memory_space<vmem>>, vector<8x128xf32>,
    %c40_126 = arith.constant 40 : index
    %c0_127 = arith.constant 0 : index
    %217 = vector.load %arg7[%c40_126, %c0_127] : memref<120x128xf32, #tpu.memory_space<vmem>>, vector<8x128xf32>
    %218 = vector.broadcast %165 : vector<1x128xf32> to vector<8x128xf32>
    %219 = arith.mulf %217, %218 : vector<8x128xf32>
    %220 = vector.broadcast %167 : vector<1x128xf32> to vector<8x128xf32>
    %221 = arith.addf %219, %220 : vector<8x128xf32>
    %cst_128 = arith.constant 0.000000e+00 : f32
    %222 = vector.broadcast %cst_128 : f32 to vector<8x128xf32>
    %223 = arith.maximumf %221, %222 : vector<8x128xf32>
    %c104_129 = arith.constant 104 : index
    %c0_130 = arith.constant 0 : index
    %224 = vector.load %arg10[%c104_129, %c0_130] : memref<288x128xf32, #tpu.memory_space<vmem>>, vector<8x128xf32>
    tpu.vector_store %arg10[%c104_129, %c0_130], %223 {strides = array<i32>} : memref<288x128xf32, #tpu.memory_space<vmem>>, vector<8x128xf32>,
    %c112_131 = arith.constant 112 : index
    %c0_132 = arith.constant 0 : index
    %225 = vector.load %arg10[%c112_131, %c0_132] : memref<288x128xf32, #tpu.memory_space<vmem>>, vector<8x128xf32>
    tpu.vector_store %arg10[%c112_131, %c0_132], %168 {strides = array<i32>} : memref<288x128xf32, #tpu.memory_space<vmem>>, vector<8x128xf32>,
    %c48_133 = arith.constant 48 : index
    %c0_134 = arith.constant 0 : index
    %226 = vector.load %arg7[%c48_133, %c0_134] : memref<120x128xf32, #tpu.memory_space<vmem>>, vector<8x128xf32>
    %227 = vector.broadcast %165 : vector<1x128xf32> to vector<8x128xf32>
    %228 = arith.mulf %226, %227 : vector<8x128xf32>
    %229 = vector.broadcast %167 : vector<1x128xf32> to vector<8x128xf32>
    %230 = arith.addf %228, %229 : vector<8x128xf32>
    %cst_135 = arith.constant 0.000000e+00 : f32
    %231 = vector.broadcast %cst_135 : f32 to vector<8x128xf32>
    %232 = arith.maximumf %230, %231 : vector<8x128xf32>
    %c120_136 = arith.constant 120 : index
    %c0_137 = arith.constant 0 : index
    %233 = vector.load %arg10[%c120_136, %c0_137] : memref<288x128xf32, #tpu.memory_space<vmem>>, vector<8x128xf32>
    tpu.vector_store %arg10[%c120_136, %c0_137], %232 {strides = array<i32>} : memref<288x128xf32, #tpu.memory_space<vmem>>, vector<8x128xf32>,
    %c128_138 = arith.constant 128 : index
    %c0_139 = arith.constant 0 : index
    %234 = vector.load %arg10[%c128_138, %c0_139] : memref<288x128xf32, #tpu.memory_space<vmem>>, vector<8x128xf32>
    tpu.vector_store %arg10[%c128_138, %c0_139], %168 {strides = array<i32>} : memref<288x128xf32, #tpu.memory_space<vmem>>, vector<8x128xf32>,
    %c56_140 = arith.constant 56 : index
    %c0_141 = arith.constant 0 : index
    %235 = vector.load %arg7[%c56_140, %c0_141] : memref<120x128xf32, #tpu.memory_space<vmem>>, vector<8x128xf32>
    %236 = vector.broadcast %165 : vector<1x128xf32> to vector<8x128xf32>
    %237 = arith.mulf %235, %236 : vector<8x128xf32>
    %238 = vector.broadcast %167 : vector<1x128xf32> to vector<8x128xf32>
    %239 = arith.addf %237, %238 : vector<8x128xf32>
    %cst_142 = arith.constant 0.000000e+00 : f32
    %240 = vector.broadcast %cst_142 : f32 to vector<8x128xf32>
    %241 = arith.maximumf %239, %240 : vector<8x128xf32>
    %c136_143 = arith.constant 136 : index
    %c0_144 = arith.constant 0 : index
    %242 = vector.load %arg10[%c136_143, %c0_144] : memref<288x128xf32, #tpu.memory_space<vmem>>, vector<8x128xf32>
    tpu.vector_store %arg10[%c136_143, %c0_144], %241 {strides = array<i32>} : memref<288x128xf32, #tpu.memory_space<vmem>>, vector<8x128xf32>,
    %c144_145 = arith.constant 144 : index
    %c0_146 = arith.constant 0 : index
    %243 = vector.load %arg10[%c144_145, %c0_146] : memref<288x128xf32, #tpu.memory_space<vmem>>, vector<8x128xf32>
    tpu.vector_store %arg10[%c144_145, %c0_146], %168 {strides = array<i32>} : memref<288x128xf32, #tpu.memory_space<vmem>>, vector<8x128xf32>,
    %c64_147 = arith.constant 64 : index
    %c0_148 = arith.constant 0 : index
    %244 = vector.load %arg7[%c64_147, %c0_148] : memref<120x128xf32, #tpu.memory_space<vmem>>, vector<8x128xf32>
    %245 = vector.broadcast %165 : vector<1x128xf32> to vector<8x128xf32>
    %246 = arith.mulf %244, %245 : vector<8x128xf32>
    %247 = vector.broadcast %167 : vector<1x128xf32> to vector<8x128xf32>
    %248 = arith.addf %246, %247 : vector<8x128xf32>
    %cst_149 = arith.constant 0.000000e+00 : f32
    %249 = vector.broadcast %cst_149 : f32 to vector<8x128xf32>
    %250 = arith.maximumf %248, %249 : vector<8x128xf32>
    %c152 = arith.constant 152 : index
    %c0_150 = arith.constant 0 : index
    %251 = vector.load %arg10[%c152, %c0_150] : memref<288x128xf32, #tpu.memory_space<vmem>>, vector<8x128xf32>
    tpu.vector_store %arg10[%c152, %c0_150], %250 {strides = array<i32>} : memref<288x128xf32, #tpu.memory_space<vmem>>, vector<8x128xf32>,
    %c160 = arith.constant 160 : index
    %c0_151 = arith.constant 0 : index
    %252 = vector.load %arg10[%c160, %c0_151] : memref<288x128xf32, #tpu.memory_space<vmem>>, vector<8x128xf32>
    tpu.vector_store %arg10[%c160, %c0_151], %168 {strides = array<i32>} : memref<288x128xf32, #tpu.memory_space<vmem>>, vector<8x128xf32>,
    %c72_152 = arith.constant 72 : index
    %c0_153 = arith.constant 0 : index
    %253 = vector.load %arg7[%c72_152, %c0_153] : memref<120x128xf32, #tpu.memory_space<vmem>>, vector<8x128xf32>
    %254 = vector.broadcast %165 : vector<1x128xf32> to vector<8x128xf32>
    %255 = arith.mulf %253, %254 : vector<8x128xf32>
    %256 = vector.broadcast %167 : vector<1x128xf32> to vector<8x128xf32>
    %257 = arith.addf %255, %256 : vector<8x128xf32>
    %cst_154 = arith.constant 0.000000e+00 : f32
    %258 = vector.broadcast %cst_154 : f32 to vector<8x128xf32>
    %259 = arith.maximumf %257, %258 : vector<8x128xf32>
    %c168 = arith.constant 168 : index
    %c0_155 = arith.constant 0 : index
    %260 = vector.load %arg10[%c168, %c0_155] : memref<288x128xf32, #tpu.memory_space<vmem>>, vector<8x128xf32>
    tpu.vector_store %arg10[%c168, %c0_155], %259 {strides = array<i32>} : memref<288x128xf32, #tpu.memory_space<vmem>>, vector<8x128xf32>,
    %c176 = arith.constant 176 : index
    %c0_156 = arith.constant 0 : index
    %261 = vector.load %arg10[%c176, %c0_156] : memref<288x128xf32, #tpu.memory_space<vmem>>, vector<8x128xf32>
    tpu.vector_store %arg10[%c176, %c0_156], %168 {strides = array<i32>} : memref<288x128xf32, #tpu.memory_space<vmem>>, vector<8x128xf32>,
    %c80_157 = arith.constant 80 : index
    %c0_158 = arith.constant 0 : index
    %262 = vector.load %arg7[%c80_157, %c0_158] : memref<120x128xf32, #tpu.memory_space<vmem>>, vector<8x128xf32>
    %263 = vector.broadcast %165 : vector<1x128xf32> to vector<8x128xf32>
    %264 = arith.mulf %262, %263 : vector<8x128xf32>
    %265 = vector.broadcast %167 : vector<1x128xf32> to vector<8x128xf32>
    %266 = arith.addf %264, %265 : vector<8x128xf32>
    %cst_159 = arith.constant 0.000000e+00 : f32
    %267 = vector.broadcast %cst_159 : f32 to vector<8x128xf32>
    %268 = arith.maximumf %266, %267 : vector<8x128xf32>
    %c184 = arith.constant 184 : index
    %c0_160 = arith.constant 0 : index
    %269 = vector.load %arg10[%c184, %c0_160] : memref<288x128xf32, #tpu.memory_space<vmem>>, vector<8x128xf32>
    tpu.vector_store %arg10[%c184, %c0_160], %268 {strides = array<i32>} : memref<288x128xf32, #tpu.memory_space<vmem>>, vector<8x128xf32>,
    %c192 = arith.constant 192 : index
    %c0_161 = arith.constant 0 : index
    %270 = vector.load %arg10[%c192, %c0_161] : memref<288x128xf32, #tpu.memory_space<vmem>>, vector<8x128xf32>
    tpu.vector_store %arg10[%c192, %c0_161], %168 {strides = array<i32>} : memref<288x128xf32, #tpu.memory_space<vmem>>, vector<8x128xf32>,
    %c88_162 = arith.constant 88 : index
    %c0_163 = arith.constant 0 : index
    %271 = vector.load %arg7[%c88_162, %c0_163] : memref<120x128xf32, #tpu.memory_space<vmem>>, vector<8x128xf32>
    %272 = vector.broadcast %165 : vector<1x128xf32> to vector<8x128xf32>
    %273 = arith.mulf %271, %272 : vector<8x128xf32>
    %274 = vector.broadcast %167 : vector<1x128xf32> to vector<8x128xf32>
    %275 = arith.addf %273, %274 : vector<8x128xf32>
    %cst_164 = arith.constant 0.000000e+00 : f32
    %276 = vector.broadcast %cst_164 : f32 to vector<8x128xf32>
    %277 = arith.maximumf %275, %276 : vector<8x128xf32>
    %c200 = arith.constant 200 : index
    %c0_165 = arith.constant 0 : index
    %278 = vector.load %arg10[%c200, %c0_165] : memref<288x128xf32, #tpu.memory_space<vmem>>, vector<8x128xf32>
    tpu.vector_store %arg10[%c200, %c0_165], %277 {strides = array<i32>} : memref<288x128xf32, #tpu.memory_space<vmem>>, vector<8x128xf32>,
    %c208 = arith.constant 208 : index
    %c0_166 = arith.constant 0 : index
    %279 = vector.load %arg10[%c208, %c0_166] : memref<288x128xf32, #tpu.memory_space<vmem>>, vector<8x128xf32>
    tpu.vector_store %arg10[%c208, %c0_166], %168 {strides = array<i32>} : memref<288x128xf32, #tpu.memory_space<vmem>>, vector<8x128xf32>,
    %c96_167 = arith.constant 96 : index
    %c0_168 = arith.constant 0 : index
    %280 = vector.load %arg7[%c96_167, %c0_168] : memref<120x128xf32, #tpu.memory_space<vmem>>, vector<8x128xf32>
    %281 = vector.broadcast %165 : vector<1x128xf32> to vector<8x128xf32>
    %282 = arith.mulf %280, %281 : vector<8x128xf32>
    %283 = vector.broadcast %167 : vector<1x128xf32> to vector<8x128xf32>
    %284 = arith.addf %282, %283 : vector<8x128xf32>
    %cst_169 = arith.constant 0.000000e+00 : f32
    %285 = vector.broadcast %cst_169 : f32 to vector<8x128xf32>
    %286 = arith.maximumf %284, %285 : vector<8x128xf32>
    %c216 = arith.constant 216 : index
    %c0_170 = arith.constant 0 : index
    %287 = vector.load %arg10[%c216, %c0_170] : memref<288x128xf32, #tpu.memory_space<vmem>>, vector<8x128xf32>
    tpu.vector_store %arg10[%c216, %c0_170], %286 {strides = array<i32>} : memref<288x128xf32, #tpu.memory_space<vmem>>, vector<8x128xf32>,
    %c224 = arith.constant 224 : index
    %c0_171 = arith.constant 0 : index
    %288 = vector.load %arg10[%c224, %c0_171] : memref<288x128xf32, #tpu.memory_space<vmem>>, vector<8x128xf32>
    tpu.vector_store %arg10[%c224, %c0_171], %168 {strides = array<i32>} : memref<288x128xf32, #tpu.memory_space<vmem>>, vector<8x128xf32>,
    %c104_172 = arith.constant 104 : index
    %c0_173 = arith.constant 0 : index
    %289 = vector.load %arg7[%c104_172, %c0_173] : memref<120x128xf32, #tpu.memory_space<vmem>>, vector<8x128xf32>
    %290 = vector.broadcast %165 : vector<1x128xf32> to vector<8x128xf32>
    %291 = arith.mulf %289, %290 : vector<8x128xf32>
    %292 = vector.broadcast %167 : vector<1x128xf32> to vector<8x128xf32>
    %293 = arith.addf %291, %292 : vector<8x128xf32>
    %cst_174 = arith.constant 0.000000e+00 : f32
    %294 = vector.broadcast %cst_174 : f32 to vector<8x128xf32>
    %295 = arith.maximumf %293, %294 : vector<8x128xf32>
    %c232 = arith.constant 232 : index
    %c0_175 = arith.constant 0 : index
    %296 = vector.load %arg10[%c232, %c0_175] : memref<288x128xf32, #tpu.memory_space<vmem>>, vector<8x128xf32>
    tpu.vector_store %arg10[%c232, %c0_175], %295 {strides = array<i32>} : memref<288x128xf32, #tpu.memory_space<vmem>>, vector<8x128xf32>,
    %c240 = arith.constant 240 : index
    %c0_176 = arith.constant 0 : index
    %297 = vector.load %arg10[%c240, %c0_176] : memref<288x128xf32, #tpu.memory_space<vmem>>, vector<8x128xf32>
    tpu.vector_store %arg10[%c240, %c0_176], %168 {strides = array<i32>} : memref<288x128xf32, #tpu.memory_space<vmem>>, vector<8x128xf32>,
    %c112_177 = arith.constant 112 : index
    %c0_178 = arith.constant 0 : index
    %298 = vector.load %arg7[%c112_177, %c0_178] : memref<120x128xf32, #tpu.memory_space<vmem>>, vector<8x128xf32>
    %299 = vector.broadcast %165 : vector<1x128xf32> to vector<8x128xf32>
    %300 = arith.mulf %298, %299 : vector<8x128xf32>
    %301 = vector.broadcast %167 : vector<1x128xf32> to vector<8x128xf32>
    %302 = arith.addf %300, %301 : vector<8x128xf32>
    %cst_179 = arith.constant 0.000000e+00 : f32
    %303 = vector.broadcast %cst_179 : f32 to vector<8x128xf32>
    %304 = arith.maximumf %302, %303 : vector<8x128xf32>
    %c248 = arith.constant 248 : index
    %c0_180 = arith.constant 0 : index
    %305 = vector.load %arg10[%c248, %c0_180] : memref<288x128xf32, #tpu.memory_space<vmem>>, vector<8x128xf32>
    tpu.vector_store %arg10[%c248, %c0_180], %304 {strides = array<i32>} : memref<288x128xf32, #tpu.memory_space<vmem>>, vector<8x128xf32>,
    %c256_181 = arith.constant 256 : index
    %c0_182 = arith.constant 0 : index
    %306 = vector.load %arg10[%c256_181, %c0_182] : memref<288x128xf32, #tpu.memory_space<vmem>>, vector<8x128xf32>
    tpu.vector_store %arg10[%c256_181, %c0_182], %168 {strides = array<i32>} : memref<288x128xf32, #tpu.memory_space<vmem>>, vector<8x128xf32>,
    %c264 = arith.constant 264 : index
    %c0_183 = arith.constant 0 : index
    %307 = vector.load %arg10[%c264, %c0_183] : memref<288x128xf32, #tpu.memory_space<vmem>>, vector<8x128xf32>
    tpu.vector_store %arg10[%c264, %c0_183], %168 {strides = array<i32>} : memref<288x128xf32, #tpu.memory_space<vmem>>, vector<8x128xf32>,
    %c272 = arith.constant 272 : index
    %c0_184 = arith.constant 0 : index
    %308 = vector.load %arg10[%c272, %c0_184] : memref<288x128xf32, #tpu.memory_space<vmem>>, vector<8x128xf32>
    tpu.vector_store %arg10[%c272, %c0_184], %168 {strides = array<i32>} : memref<288x128xf32, #tpu.memory_space<vmem>>, vector<8x128xf32>,
    %c280 = arith.constant 280 : index
    %c0_185 = arith.constant 0 : index
    %309 = vector.load %arg10[%c280, %c0_185] : memref<288x128xf32, #tpu.memory_space<vmem>>, vector<8x128xf32>
    tpu.vector_store %arg10[%c280, %c0_185], %168 {strides = array<i32>} : memref<288x128xf32, #tpu.memory_space<vmem>>, vector<8x128xf32>,
    %c0_186 = arith.constant 0 : index
    %c0_187 = arith.constant 0 : index
    %310 = vector.load %arg10[%c0_186, %c0_187] : memref<288x128xf32, #tpu.memory_space<vmem>>, vector<256x128xf32>
    %311 = arith.truncf %310 : vector<256x128xf32> to vector<256x128xbf16>
    %c0_188 = arith.constant 0 : index
    %c0_189 = arith.constant 0 : index
    %312 = vector.load %arg13[%c0_188, %c0_189] : memref<256x640xbf16, #tpu.memory_space<vmem>>, vector<256x128xbf16>
    tpu.vector_store %arg13[%c0_188, %c0_189], %311 {strides = array<i32>} : memref<256x640xbf16, #tpu.memory_space<vmem>>, vector<256x128xbf16>,
    %c8_190 = arith.constant 8 : index
    %c0_191 = arith.constant 0 : index
    %313 = vector.load %arg10[%c8_190, %c0_191] : memref<288x128xf32, #tpu.memory_space<vmem>>, vector<256x128xf32>
    %314 = arith.truncf %313 : vector<256x128xf32> to vector<256x128xbf16>
    %c0_192 = arith.constant 0 : index
    %c128_193 = arith.constant 128 : index
    %315 = vector.load %arg13[%c0_192, %c128_193] : memref<256x640xbf16, #tpu.memory_space<vmem>>, vector<256x128xbf16>
    tpu.vector_store %arg13[%c0_192, %c128_193], %314 {strides = array<i32>} : memref<256x640xbf16, #tpu.memory_space<vmem>>, vector<256x128xbf16>,
    %c16_194 = arith.constant 16 : index
    %c0_195 = arith.constant 0 : index
    %316 = vector.load %arg10[%c16_194, %c0_195] : memref<288x128xf32, #tpu.memory_space<vmem>>, vector<256x128xf32>
    %317 = arith.truncf %316 : vector<256x128xf32> to vector<256x128xbf16>
    %c0_196 = arith.constant 0 : index
    %c256_197 = arith.constant 256 : index
    %318 = vector.load %arg13[%c0_196, %c256_197] : memref<256x640xbf16, #tpu.memory_space<vmem>>, vector<256x128xbf16>
    tpu.vector_store %arg13[%c0_196, %c256_197], %317 {strides = array<i32>} : memref<256x640xbf16, #tpu.memory_space<vmem>>, vector<256x128xbf16>,
    %c24_198 = arith.constant 24 : index
    %c0_199 = arith.constant 0 : index
    %319 = vector.load %arg10[%c24_198, %c0_199] : memref<288x128xf32, #tpu.memory_space<vmem>>, vector<256x128xf32>
    %320 = arith.truncf %319 : vector<256x128xf32> to vector<256x128xbf16>
    %c0_200 = arith.constant 0 : index
    %c384_201 = arith.constant 384 : index
    %321 = vector.load %arg13[%c0_200, %c384_201] : memref<256x640xbf16, #tpu.memory_space<vmem>>, vector<256x128xbf16>
    tpu.vector_store %arg13[%c0_200, %c384_201], %320 {strides = array<i32>} : memref<256x640xbf16, #tpu.memory_space<vmem>>, vector<256x128xbf16>,
    %c32_202 = arith.constant 32 : index
    %c0_203 = arith.constant 0 : index
    %322 = vector.load %arg10[%c32_202, %c0_203] : memref<288x128xf32, #tpu.memory_space<vmem>>, vector<256x128xf32>
    %323 = arith.truncf %322 : vector<256x128xf32> to vector<256x128xbf16>
    %c0_204 = arith.constant 0 : index
    %c512_205 = arith.constant 512 : index
    %324 = vector.load %arg13[%c0_204, %c512_205] : memref<256x640xbf16, #tpu.memory_space<vmem>>, vector<256x128xbf16>
    tpu.vector_store %arg13[%c0_204, %c512_205], %323 {strides = array<i32>} : memref<256x640xbf16, #tpu.memory_space<vmem>>, vector<256x128xbf16>,
    %c0_206 = arith.constant 0 : index
    %c0_207 = arith.constant 0 : index
    %325 = vector.load %arg13[%c0_206, %c0_207] : memref<256x640xbf16, #tpu.memory_space<vmem>>, vector<256x640xbf16>
    %c640 = arith.constant 640 : index
    %c0_208 = arith.constant 0 : index
    %326 = vector.load %arg3[%c640, %c0_208] : memref<1920x128xbf16, #tpu.memory_space<vmem>>, vector<640x128xbf16>
    %cst_209 = arith.constant dense<0.000000e+00> : vector<256x128xf32>
    %327 = tpu.matmul %325, %326, %cst_209 {dimension_numbers = #tpu.dot_dimension_numbers<[1], [0], [0], [1], [0, 0, 1, 1], [], []>} : vector<256x640xbf16>, vector<640x128xbf16>, vector<256x128xf32> -> vector<256x128xf32>
    %c0_210 = arith.constant 0 : index
    %c0_211 = arith.constant 0 : index
    %328 = vector.load %arg8[%c0_210, %c0_211] : memref<256x128xf32, #tpu.memory_space<vmem>>, vector<256x128xf32>
    tpu.vector_store %arg8[%c0_210, %c0_211], %327 {strides = array<i32>} : memref<256x128xf32, #tpu.memory_space<vmem>>, vector<256x128xf32>,
    %c0_212 = arith.constant 0 : index
    %c0_213 = arith.constant 0 : index
    %329 = vector.load %arg8[%c0_212, %c0_213] : memref<256x128xf32, #tpu.memory_space<vmem>>, vector<256x128xf32>
    %cst_214 = arith.constant dense<0.000000e+00> : vector<128xf32>
    %330 = vector.multi_reduction <add>, %329, %cst_214 [0] : vector<256x128xf32> to vector<128xf32>
    %331 = vector.shape_cast %330 : vector<128xf32> to vector<1x128xf32>
    %332 = arith.mulf %329, %329 : vector<256x128xf32>
    %cst_215 = arith.constant dense<0.000000e+00> : vector<128xf32>
    %333 = vector.multi_reduction <add>, %332, %cst_215 [0] : vector<256x128xf32> to vector<128xf32>
    %334 = vector.shape_cast %333 : vector<128xf32> to vector<1x128xf32>
    %c256_216 = arith.constant 256 : index
    %c0_217 = arith.constant 0 : index
    %335 = vector.load %arg4[%c256_216, %c0_217] : memref<384x16xf32, #tpu.memory_space<vmem>>, vector<128x16xf32>
    %c32_218 = arith.constant 32 : index
    %c0_219 = arith.constant 0 : index
    %336 = vector.load %arg5[%c32_218, %c0_219] : memref<52x128xf32, #tpu.memory_space<vmem>>, vector<16x128xf32>
    %c50 = arith.constant 50 : index
    %c0_220 = arith.constant 0 : index
    %337 = vector.load %arg5[%c50, %c0_220] : memref<52x128xf32, #tpu.memory_space<vmem>>, vector<1x128xf32>
    %338 = tpu.concatenate %331, %334 in 0 : vector<1x128xf32>, vector<1x128xf32> -> vector<2x128xf32>
    %cst_221 = arith.constant dense<0.000000e+00> : vector<2x16xf32>
    %339 = tpu.matmul %338, %335, %cst_221 {dimension_numbers = #tpu.dot_dimension_numbers<[1], [0], [0], [1], [0, 0, 1, 1], [], []>} : vector<2x128xf32>, vector<128x16xf32>, vector<2x16xf32> -> vector<2x16xf32>
    %340 = vector.extract_strided_slice %339 {offsets = [0, 0], sizes = [1, 16], strides = [1, 1]} : vector<2x16xf32> to vector<1x16xf32>
    %cst_222 = arith.constant 1.22070313E-4 : f32
    %341 = vector.broadcast %cst_222 : f32 to vector<1x16xf32>
    %342 = arith.mulf %340, %341 : vector<1x16xf32>
    %343 = vector.extract_strided_slice %339 {offsets = [1, 0], sizes = [1, 16], strides = [1, 1]} : vector<2x16xf32> to vector<1x16xf32>
    %cst_223 = arith.constant 1.22070313E-4 : f32
    %344 = vector.broadcast %cst_223 : f32 to vector<1x16xf32>
    %345 = arith.mulf %343, %344 : vector<1x16xf32>
    %346 = arith.mulf %342, %342 : vector<1x16xf32>
    %347 = arith.subf %345, %346 : vector<1x16xf32>
    %cst_224 = arith.constant 9.99999974E-6 : f32
    %348 = vector.broadcast %cst_224 : f32 to vector<1x16xf32>
    %349 = arith.addf %347, %348 : vector<1x16xf32>
    %350 = math.rsqrt %349 : vector<1x16xf32>
    %351 = arith.mulf %342, %350 : vector<1x16xf32>
    %352 = tpu.concatenate %350, %351 in 0 : vector<1x16xf32>, vector<1x16xf32> -> vector<2x16xf32>
    %cst_225 = arith.constant dense<0.000000e+00> : vector<2x128xf32>
    %353 = tpu.matmul %352, %336, %cst_225 {dimension_numbers = #tpu.dot_dimension_numbers<[1], [0], [0], [1], [0, 0, 1, 1], [], []>} : vector<2x16xf32>, vector<16x128xf32>, vector<2x128xf32> -> vector<2x128xf32>
    %354 = vector.extract_strided_slice %353 {offsets = [0, 0], sizes = [1, 128], strides = [1, 1]} : vector<2x128xf32> to vector<1x128xf32>
    %355 = vector.extract_strided_slice %353 {offsets = [1, 0], sizes = [1, 128], strides = [1, 1]} : vector<2x128xf32> to vector<1x128xf32>
    %356 = arith.subf %337, %355 : vector<1x128xf32>
    %cst_226 = arith.constant 0.000000e+00 : f32
    %357 = vector.broadcast %cst_226 : f32 to vector<8x128xf32>
    %c0_227 = arith.constant 0 : index
    %c0_228 = arith.constant 0 : index
    %358 = vector.load %arg11[%c0_227, %c0_228] : memref<288x128xf32, #tpu.memory_space<vmem>>, vector<8x128xf32>
    tpu.vector_store %arg11[%c0_227, %c0_228], %357 {strides = array<i32>} : memref<288x128xf32, #tpu.memory_space<vmem>>, vector<8x128xf32>,
    %c8_229 = arith.constant 8 : index
    %c0_230 = arith.constant 0 : index
    %359 = vector.load %arg11[%c8_229, %c0_230] : memref<288x128xf32, #tpu.memory_space<vmem>>, vector<8x128xf32>
    tpu.vector_store %arg11[%c8_229, %c0_230], %357 {strides = array<i32>} : memref<288x128xf32, #tpu.memory_space<vmem>>, vector<8x128xf32>,
    %c0_231 = arith.constant 0 : index
    %c0_232 = arith.constant 0 : index
    %360 = vector.load %arg8[%c0_231, %c0_232] : memref<256x128xf32, #tpu.memory_space<vmem>>, vector<8x128xf32>
    %361 = vector.broadcast %354 : vector<1x128xf32> to vector<8x128xf32>
    %362 = arith.mulf %360, %361 : vector<8x128xf32>
    %363 = vector.broadcast %356 : vector<1x128xf32> to vector<8x128xf32>
    %364 = arith.addf %362, %363 : vector<8x128xf32>
    %cst_233 = arith.constant 0.000000e+00 : f32
    %365 = vector.broadcast %cst_233 : f32 to vector<8x128xf32>
    %366 = arith.maximumf %364, %365 : vector<8x128xf32>
    %c16_234 = arith.constant 16 : index
    %c0_235 = arith.constant 0 : index
    %367 = vector.load %arg11[%c16_234, %c0_235] : memref<288x128xf32, #tpu.memory_space<vmem>>, vector<8x128xf32>
    tpu.vector_store %arg11[%c16_234, %c0_235], %366 {strides = array<i32>} : memref<288x128xf32, #tpu.memory_space<vmem>>, vector<8x128xf32>,
    %c8_236 = arith.constant 8 : index
    %c0_237 = arith.constant 0 : index
    %368 = vector.load %arg8[%c8_236, %c0_237] : memref<256x128xf32, #tpu.memory_space<vmem>>, vector<8x128xf32>
    %369 = vector.broadcast %354 : vector<1x128xf32> to vector<8x128xf32>
    %370 = arith.mulf %368, %369 : vector<8x128xf32>
    %371 = vector.broadcast %356 : vector<1x128xf32> to vector<8x128xf32>
    %372 = arith.addf %370, %371 : vector<8x128xf32>
    %cst_238 = arith.constant 0.000000e+00 : f32
    %373 = vector.broadcast %cst_238 : f32 to vector<8x128xf32>
    %374 = arith.maximumf %372, %373 : vector<8x128xf32>
    %c24_239 = arith.constant 24 : index
    %c0_240 = arith.constant 0 : index
    %375 = vector.load %arg11[%c24_239, %c0_240] : memref<288x128xf32, #tpu.memory_space<vmem>>, vector<8x128xf32>
    tpu.vector_store %arg11[%c24_239, %c0_240], %374 {strides = array<i32>} : memref<288x128xf32, #tpu.memory_space<vmem>>, vector<8x128xf32>,
    %c16_241 = arith.constant 16 : index
    %c0_242 = arith.constant 0 : index
    %376 = vector.load %arg8[%c16_241, %c0_242] : memref<256x128xf32, #tpu.memory_space<vmem>>, vector<8x128xf32>
    %377 = vector.broadcast %354 : vector<1x128xf32> to vector<8x128xf32>
    %378 = arith.mulf %376, %377 : vector<8x128xf32>
    %379 = vector.broadcast %356 : vector<1x128xf32> to vector<8x128xf32>
    %380 = arith.addf %378, %379 : vector<8x128xf32>
    %cst_243 = arith.constant 0.000000e+00 : f32
    %381 = vector.broadcast %cst_243 : f32 to vector<8x128xf32>
    %382 = arith.maximumf %380, %381 : vector<8x128xf32>
    %c32_244 = arith.constant 32 : index
    %c0_245 = arith.constant 0 : index
    %383 = vector.load %arg11[%c32_244, %c0_245] : memref<288x128xf32, #tpu.memory_space<vmem>>, vector<8x128xf32>
    tpu.vector_store %arg11[%c32_244, %c0_245], %382 {strides = array<i32>} : memref<288x128xf32, #tpu.memory_space<vmem>>, vector<8x128xf32>,
    %c24_246 = arith.constant 24 : index
    %c0_247 = arith.constant 0 : index
    %384 = vector.load %arg8[%c24_246, %c0_247] : memref<256x128xf32, #tpu.memory_space<vmem>>, vector<8x128xf32>
    %385 = vector.broadcast %354 : vector<1x128xf32> to vector<8x128xf32>
    %386 = arith.mulf %384, %385 : vector<8x128xf32>
    %387 = vector.broadcast %356 : vector<1x128xf32> to vector<8x128xf32>
    %388 = arith.addf %386, %387 : vector<8x128xf32>
    %cst_248 = arith.constant 0.000000e+00 : f32
    %389 = vector.broadcast %cst_248 : f32 to vector<8x128xf32>
    %390 = arith.maximumf %388, %389 : vector<8x128xf32>
    %c40_249 = arith.constant 40 : index
    %c0_250 = arith.constant 0 : index
    %391 = vector.load %arg11[%c40_249, %c0_250] : memref<288x128xf32, #tpu.memory_space<vmem>>, vector<8x128xf32>
    tpu.vector_store %arg11[%c40_249, %c0_250], %390 {strides = array<i32>} : memref<288x128xf32, #tpu.memory_space<vmem>>, vector<8x128xf32>,
    %c32_251 = arith.constant 32 : index
    %c0_252 = arith.constant 0 : index
    %392 = vector.load %arg8[%c32_251, %c0_252] : memref<256x128xf32, #tpu.memory_space<vmem>>, vector<8x128xf32>
    %393 = vector.broadcast %354 : vector<1x128xf32> to vector<8x128xf32>
    %394 = arith.mulf %392, %393 : vector<8x128xf32>
    %395 = vector.broadcast %356 : vector<1x128xf32> to vector<8x128xf32>
    %396 = arith.addf %394, %395 : vector<8x128xf32>
    %cst_253 = arith.constant 0.000000e+00 : f32
    %397 = vector.broadcast %cst_253 : f32 to vector<8x128xf32>
    %398 = arith.maximumf %396, %397 : vector<8x128xf32>
    %c48_254 = arith.constant 48 : index
    %c0_255 = arith.constant 0 : index
    %399 = vector.load %arg11[%c48_254, %c0_255] : memref<288x128xf32, #tpu.memory_space<vmem>>, vector<8x128xf32>
    tpu.vector_store %arg11[%c48_254, %c0_255], %398 {strides = array<i32>} : memref<288x128xf32, #tpu.memory_space<vmem>>, vector<8x128xf32>,
    %c40_256 = arith.constant 40 : index
    %c0_257 = arith.constant 0 : index
    %400 = vector.load %arg8[%c40_256, %c0_257] : memref<256x128xf32, #tpu.memory_space<vmem>>, vector<8x128xf32>
    %401 = vector.broadcast %354 : vector<1x128xf32> to vector<8x128xf32>
    %402 = arith.mulf %400, %401 : vector<8x128xf32>
    %403 = vector.broadcast %356 : vector<1x128xf32> to vector<8x128xf32>
    %404 = arith.addf %402, %403 : vector<8x128xf32>
    %cst_258 = arith.constant 0.000000e+00 : f32
    %405 = vector.broadcast %cst_258 : f32 to vector<8x128xf32>
    %406 = arith.maximumf %404, %405 : vector<8x128xf32>
    %c56_259 = arith.constant 56 : index
    %c0_260 = arith.constant 0 : index
    %407 = vector.load %arg11[%c56_259, %c0_260] : memref<288x128xf32, #tpu.memory_space<vmem>>, vector<8x128xf32>
    tpu.vector_store %arg11[%c56_259, %c0_260], %406 {strides = array<i32>} : memref<288x128xf32, #tpu.memory_space<vmem>>, vector<8x128xf32>,
    %c48_261 = arith.constant 48 : index
    %c0_262 = arith.constant 0 : index
    %408 = vector.load %arg8[%c48_261, %c0_262] : memref<256x128xf32, #tpu.memory_space<vmem>>, vector<8x128xf32>
    %409 = vector.broadcast %354 : vector<1x128xf32> to vector<8x128xf32>
    %410 = arith.mulf %408, %409 : vector<8x128xf32>
    %411 = vector.broadcast %356 : vector<1x128xf32> to vector<8x128xf32>
    %412 = arith.addf %410, %411 : vector<8x128xf32>
    %cst_263 = arith.constant 0.000000e+00 : f32
    %413 = vector.broadcast %cst_263 : f32 to vector<8x128xf32>
    %414 = arith.maximumf %412, %413 : vector<8x128xf32>
    %c64_264 = arith.constant 64 : index
    %c0_265 = arith.constant 0 : index
    %415 = vector.load %arg11[%c64_264, %c0_265] : memref<288x128xf32, #tpu.memory_space<vmem>>, vector<8x128xf32>
    tpu.vector_store %arg11[%c64_264, %c0_265], %414 {strides = array<i32>} : memref<288x128xf32, #tpu.memory_space<vmem>>, vector<8x128xf32>,
    %c56_266 = arith.constant 56 : index
    %c0_267 = arith.constant 0 : index
    %416 = vector.load %arg8[%c56_266, %c0_267] : memref<256x128xf32, #tpu.memory_space<vmem>>, vector<8x128xf32>
    %417 = vector.broadcast %354 : vector<1x128xf32> to vector<8x128xf32>
    %418 = arith.mulf %416, %417 : vector<8x128xf32>
    %419 = vector.broadcast %356 : vector<1x128xf32> to vector<8x128xf32>
    %420 = arith.addf %418, %419 : vector<8x128xf32>
    %cst_268 = arith.constant 0.000000e+00 : f32
    %421 = vector.broadcast %cst_268 : f32 to vector<8x128xf32>
    %422 = arith.maximumf %420, %421 : vector<8x128xf32>
    %c72_269 = arith.constant 72 : index
    %c0_270 = arith.constant 0 : index
    %423 = vector.load %arg11[%c72_269, %c0_270] : memref<288x128xf32, #tpu.memory_space<vmem>>, vector<8x128xf32>
    tpu.vector_store %arg11[%c72_269, %c0_270], %422 {strides = array<i32>} : memref<288x128xf32, #tpu.memory_space<vmem>>, vector<8x128xf32>,
    %c64_271 = arith.constant 64 : index
    %c0_272 = arith.constant 0 : index
    %424 = vector.load %arg8[%c64_271, %c0_272] : memref<256x128xf32, #tpu.memory_space<vmem>>, vector<8x128xf32>
    %425 = vector.broadcast %354 : vector<1x128xf32> to vector<8x128xf32>
    %426 = arith.mulf %424, %425 : vector<8x128xf32>
    %427 = vector.broadcast %356 : vector<1x128xf32> to vector<8x128xf32>
    %428 = arith.addf %426, %427 : vector<8x128xf32>
    %cst_273 = arith.constant 0.000000e+00 : f32
    %429 = vector.broadcast %cst_273 : f32 to vector<8x128xf32>
    %430 = arith.maximumf %428, %429 : vector<8x128xf32>
    %c80_274 = arith.constant 80 : index
    %c0_275 = arith.constant 0 : index
    %431 = vector.load %arg11[%c80_274, %c0_275] : memref<288x128xf32, #tpu.memory_space<vmem>>, vector<8x128xf32>
    tpu.vector_store %arg11[%c80_274, %c0_275], %430 {strides = array<i32>} : memref<288x128xf32, #tpu.memory_space<vmem>>, vector<8x128xf32>,
    %c72_276 = arith.constant 72 : index
    %c0_277 = arith.constant 0 : index
    %432 = vector.load %arg8[%c72_276, %c0_277] : memref<256x128xf32, #tpu.memory_space<vmem>>, vector<8x128xf32>
    %433 = vector.broadcast %354 : vector<1x128xf32> to vector<8x128xf32>
    %434 = arith.mulf %432, %433 : vector<8x128xf32>
    %435 = vector.broadcast %356 : vector<1x128xf32> to vector<8x128xf32>
    %436 = arith.addf %434, %435 : vector<8x128xf32>
    %cst_278 = arith.constant 0.000000e+00 : f32
    %437 = vector.broadcast %cst_278 : f32 to vector<8x128xf32>
    %438 = arith.maximumf %436, %437 : vector<8x128xf32>
    %c88_279 = arith.constant 88 : index
    %c0_280 = arith.constant 0 : index
    %439 = vector.load %arg11[%c88_279, %c0_280] : memref<288x128xf32, #tpu.memory_space<vmem>>, vector<8x128xf32>
    tpu.vector_store %arg11[%c88_279, %c0_280], %438 {strides = array<i32>} : memref<288x128xf32, #tpu.memory_space<vmem>>, vector<8x128xf32>,
    %c80_281 = arith.constant 80 : index
    %c0_282 = arith.constant 0 : index
    %440 = vector.load %arg8[%c80_281, %c0_282] : memref<256x128xf32, #tpu.memory_space<vmem>>, vector<8x128xf32>
    %441 = vector.broadcast %354 : vector<1x128xf32> to vector<8x128xf32>
    %442 = arith.mulf %440, %441 : vector<8x128xf32>
    %443 = vector.broadcast %356 : vector<1x128xf32> to vector<8x128xf32>
    %444 = arith.addf %442, %443 : vector<8x128xf32>
    %cst_283 = arith.constant 0.000000e+00 : f32
    %445 = vector.broadcast %cst_283 : f32 to vector<8x128xf32>
    %446 = arith.maximumf %444, %445 : vector<8x128xf32>
    %c96_284 = arith.constant 96 : index
    %c0_285 = arith.constant 0 : index
    %447 = vector.load %arg11[%c96_284, %c0_285] : memref<288x128xf32, #tpu.memory_space<vmem>>, vector<8x128xf32>
    tpu.vector_store %arg11[%c96_284, %c0_285], %446 {strides = array<i32>} : memref<288x128xf32, #tpu.memory_space<vmem>>, vector<8x128xf32>,
    %c88_286 = arith.constant 88 : index
    %c0_287 = arith.constant 0 : index
    %448 = vector.load %arg8[%c88_286, %c0_287] : memref<256x128xf32, #tpu.memory_space<vmem>>, vector<8x128xf32>
    %449 = vector.broadcast %354 : vector<1x128xf32> to vector<8x128xf32>
    %450 = arith.mulf %448, %449 : vector<8x128xf32>
    %451 = vector.broadcast %356 : vector<1x128xf32> to vector<8x128xf32>
    %452 = arith.addf %450, %451 : vector<8x128xf32>
    %cst_288 = arith.constant 0.000000e+00 : f32
    %453 = vector.broadcast %cst_288 : f32 to vector<8x128xf32>
    %454 = arith.maximumf %452, %453 : vector<8x128xf32>
    %c104_289 = arith.constant 104 : index
    %c0_290 = arith.constant 0 : index
    %455 = vector.load %arg11[%c104_289, %c0_290] : memref<288x128xf32, #tpu.memory_space<vmem>>, vector<8x128xf32>
    tpu.vector_store %arg11[%c104_289, %c0_290], %454 {strides = array<i32>} : memref<288x128xf32, #tpu.memory_space<vmem>>, vector<8x128xf32>,
    %c96_291 = arith.constant 96 : index
    %c0_292 = arith.constant 0 : index
    %456 = vector.load %arg8[%c96_291, %c0_292] : memref<256x128xf32, #tpu.memory_space<vmem>>, vector<8x128xf32>
    %457 = vector.broadcast %354 : vector<1x128xf32> to vector<8x128xf32>
    %458 = arith.mulf %456, %457 : vector<8x128xf32>
    %459 = vector.broadcast %356 : vector<1x128xf32> to vector<8x128xf32>
    %460 = arith.addf %458, %459 : vector<8x128xf32>
    %cst_293 = arith.constant 0.000000e+00 : f32
    %461 = vector.broadcast %cst_293 : f32 to vector<8x128xf32>
    %462 = arith.maximumf %460, %461 : vector<8x128xf32>
    %c112_294 = arith.constant 112 : index
    %c0_295 = arith.constant 0 : index
    %463 = vector.load %arg11[%c112_294, %c0_295] : memref<288x128xf32, #tpu.memory_space<vmem>>, vector<8x128xf32>
    tpu.vector_store %arg11[%c112_294, %c0_295], %462 {strides = array<i32>} : memref<288x128xf32, #tpu.memory_space<vmem>>, vector<8x128xf32>,
    %c104_296 = arith.constant 104 : index
    %c0_297 = arith.constant 0 : index
    %464 = vector.load %arg8[%c104_296, %c0_297] : memref<256x128xf32, #tpu.memory_space<vmem>>, vector<8x128xf32>
    %465 = vector.broadcast %354 : vector<1x128xf32> to vector<8x128xf32>
    %466 = arith.mulf %464, %465 : vector<8x128xf32>
    %467 = vector.broadcast %356 : vector<1x128xf32> to vector<8x128xf32>
    %468 = arith.addf %466, %467 : vector<8x128xf32>
    %cst_298 = arith.constant 0.000000e+00 : f32
    %469 = vector.broadcast %cst_298 : f32 to vector<8x128xf32>
    %470 = arith.maximumf %468, %469 : vector<8x128xf32>
    %c120_299 = arith.constant 120 : index
    %c0_300 = arith.constant 0 : index
    %471 = vector.load %arg11[%c120_299, %c0_300] : memref<288x128xf32, #tpu.memory_space<vmem>>, vector<8x128xf32>
    tpu.vector_store %arg11[%c120_299, %c0_300], %470 {strides = array<i32>} : memref<288x128xf32, #tpu.memory_space<vmem>>, vector<8x128xf32>,
    %c112_301 = arith.constant 112 : index
    %c0_302 = arith.constant 0 : index
    %472 = vector.load %arg8[%c112_301, %c0_302] : memref<256x128xf32, #tpu.memory_space<vmem>>, vector<8x128xf32>
    %473 = vector.broadcast %354 : vector<1x128xf32> to vector<8x128xf32>
    %474 = arith.mulf %472, %473 : vector<8x128xf32>
    %475 = vector.broadcast %356 : vector<1x128xf32> to vector<8x128xf32>
    %476 = arith.addf %474, %475 : vector<8x128xf32>
    %cst_303 = arith.constant 0.000000e+00 : f32
    %477 = vector.broadcast %cst_303 : f32 to vector<8x128xf32>
    %478 = arith.maximumf %476, %477 : vector<8x128xf32>
    %c128_304 = arith.constant 128 : index
    %c0_305 = arith.constant 0 : index
    %479 = vector.load %arg11[%c128_304, %c0_305] : memref<288x128xf32, #tpu.memory_space<vmem>>, vector<8x128xf32>
    tpu.vector_store %arg11[%c128_304, %c0_305], %478 {strides = array<i32>} : memref<288x128xf32, #tpu.memory_space<vmem>>, vector<8x128xf32>,
    %c120_306 = arith.constant 120 : index
    %c0_307 = arith.constant 0 : index
    %480 = vector.load %arg8[%c120_306, %c0_307] : memref<256x128xf32, #tpu.memory_space<vmem>>, vector<8x128xf32>
    %481 = vector.broadcast %354 : vector<1x128xf32> to vector<8x128xf32>
    %482 = arith.mulf %480, %481 : vector<8x128xf32>
    %483 = vector.broadcast %356 : vector<1x128xf32> to vector<8x128xf32>
    %484 = arith.addf %482, %483 : vector<8x128xf32>
    %cst_308 = arith.constant 0.000000e+00 : f32
    %485 = vector.broadcast %cst_308 : f32 to vector<8x128xf32>
    %486 = arith.maximumf %484, %485 : vector<8x128xf32>
    %c136_309 = arith.constant 136 : index
    %c0_310 = arith.constant 0 : index
    %487 = vector.load %arg11[%c136_309, %c0_310] : memref<288x128xf32, #tpu.memory_space<vmem>>, vector<8x128xf32>
    tpu.vector_store %arg11[%c136_309, %c0_310], %486 {strides = array<i32>} : memref<288x128xf32, #tpu.memory_space<vmem>>, vector<8x128xf32>,
    %c128_311 = arith.constant 128 : index
    %c0_312 = arith.constant 0 : index
    %488 = vector.load %arg8[%c128_311, %c0_312] : memref<256x128xf32, #tpu.memory_space<vmem>>, vector<8x128xf32>
    %489 = vector.broadcast %354 : vector<1x128xf32> to vector<8x128xf32>
    %490 = arith.mulf %488, %489 : vector<8x128xf32>
    %491 = vector.broadcast %356 : vector<1x128xf32> to vector<8x128xf32>
    %492 = arith.addf %490, %491 : vector<8x128xf32>
    %cst_313 = arith.constant 0.000000e+00 : f32
    %493 = vector.broadcast %cst_313 : f32 to vector<8x128xf32>
    %494 = arith.maximumf %492, %493 : vector<8x128xf32>
    %c144_314 = arith.constant 144 : index
    %c0_315 = arith.constant 0 : index
    %495 = vector.load %arg11[%c144_314, %c0_315] : memref<288x128xf32, #tpu.memory_space<vmem>>, vector<8x128xf32>
    tpu.vector_store %arg11[%c144_314, %c0_315], %494 {strides = array<i32>} : memref<288x128xf32, #tpu.memory_space<vmem>>, vector<8x128xf32>,
    %c136_316 = arith.constant 136 : index
    %c0_317 = arith.constant 0 : index
    %496 = vector.load %arg8[%c136_316, %c0_317] : memref<256x128xf32, #tpu.memory_space<vmem>>, vector<8x128xf32>
    %497 = vector.broadcast %354 : vector<1x128xf32> to vector<8x128xf32>
    %498 = arith.mulf %496, %497 : vector<8x128xf32>
    %499 = vector.broadcast %356 : vector<1x128xf32> to vector<8x128xf32>
    %500 = arith.addf %498, %499 : vector<8x128xf32>
    %cst_318 = arith.constant 0.000000e+00 : f32
    %501 = vector.broadcast %cst_318 : f32 to vector<8x128xf32>
    %502 = arith.maximumf %500, %501 : vector<8x128xf32>
    %c152_319 = arith.constant 152 : index
    %c0_320 = arith.constant 0 : index
    %503 = vector.load %arg11[%c152_319, %c0_320] : memref<288x128xf32, #tpu.memory_space<vmem>>, vector<8x128xf32>
    tpu.vector_store %arg11[%c152_319, %c0_320], %502 {strides = array<i32>} : memref<288x128xf32, #tpu.memory_space<vmem>>, vector<8x128xf32>,
    %c144_321 = arith.constant 144 : index
    %c0_322 = arith.constant 0 : index
    %504 = vector.load %arg8[%c144_321, %c0_322] : memref<256x128xf32, #tpu.memory_space<vmem>>, vector<8x128xf32>
    %505 = vector.broadcast %354 : vector<1x128xf32> to vector<8x128xf32>
    %506 = arith.mulf %504, %505 : vector<8x128xf32>
    %507 = vector.broadcast %356 : vector<1x128xf32> to vector<8x128xf32>
    %508 = arith.addf %506, %507 : vector<8x128xf32>
    %cst_323 = arith.constant 0.000000e+00 : f32
    %509 = vector.broadcast %cst_323 : f32 to vector<8x128xf32>
    %510 = arith.maximumf %508, %509 : vector<8x128xf32>
    %c160_324 = arith.constant 160 : index
    %c0_325 = arith.constant 0 : index
    %511 = vector.load %arg11[%c160_324, %c0_325] : memref<288x128xf32, #tpu.memory_space<vmem>>, vector<8x128xf32>
    tpu.vector_store %arg11[%c160_324, %c0_325], %510 {strides = array<i32>} : memref<288x128xf32, #tpu.memory_space<vmem>>, vector<8x128xf32>,
    %c152_326 = arith.constant 152 : index
    %c0_327 = arith.constant 0 : index
    %512 = vector.load %arg8[%c152_326, %c0_327] : memref<256x128xf32, #tpu.memory_space<vmem>>, vector<8x128xf32>
    %513 = vector.broadcast %354 : vector<1x128xf32> to vector<8x128xf32>
    %514 = arith.mulf %512, %513 : vector<8x128xf32>
    %515 = vector.broadcast %356 : vector<1x128xf32> to vector<8x128xf32>
    %516 = arith.addf %514, %515 : vector<8x128xf32>
    %cst_328 = arith.constant 0.000000e+00 : f32
    %517 = vector.broadcast %cst_328 : f32 to vector<8x128xf32>
    %518 = arith.maximumf %516, %517 : vector<8x128xf32>
    %c168_329 = arith.constant 168 : index
    %c0_330 = arith.constant 0 : index
    %519 = vector.load %arg11[%c168_329, %c0_330] : memref<288x128xf32, #tpu.memory_space<vmem>>, vector<8x128xf32>
    tpu.vector_store %arg11[%c168_329, %c0_330], %518 {strides = array<i32>} : memref<288x128xf32, #tpu.memory_space<vmem>>, vector<8x128xf32>,
    %c160_331 = arith.constant 160 : index
    %c0_332 = arith.constant 0 : index
    %520 = vector.load %arg8[%c160_331, %c0_332] : memref<256x128xf32, #tpu.memory_space<vmem>>, vector<8x128xf32>
    %521 = vector.broadcast %354 : vector<1x128xf32> to vector<8x128xf32>
    %522 = arith.mulf %520, %521 : vector<8x128xf32>
    %523 = vector.broadcast %356 : vector<1x128xf32> to vector<8x128xf32>
    %524 = arith.addf %522, %523 : vector<8x128xf32>
    %cst_333 = arith.constant 0.000000e+00 : f32
    %525 = vector.broadcast %cst_333 : f32 to vector<8x128xf32>
    %526 = arith.maximumf %524, %525 : vector<8x128xf32>
    %c176_334 = arith.constant 176 : index
    %c0_335 = arith.constant 0 : index
    %527 = vector.load %arg11[%c176_334, %c0_335] : memref<288x128xf32, #tpu.memory_space<vmem>>, vector<8x128xf32>
    tpu.vector_store %arg11[%c176_334, %c0_335], %526 {strides = array<i32>} : memref<288x128xf32, #tpu.memory_space<vmem>>, vector<8x128xf32>,
    %c168_336 = arith.constant 168 : index
    %c0_337 = arith.constant 0 : index
    %528 = vector.load %arg8[%c168_336, %c0_337] : memref<256x128xf32, #tpu.memory_space<vmem>>, vector<8x128xf32>
    %529 = vector.broadcast %354 : vector<1x128xf32> to vector<8x128xf32>
    %530 = arith.mulf %528, %529 : vector<8x128xf32>
    %531 = vector.broadcast %356 : vector<1x128xf32> to vector<8x128xf32>
    %532 = arith.addf %530, %531 : vector<8x128xf32>
    %cst_338 = arith.constant 0.000000e+00 : f32
    %533 = vector.broadcast %cst_338 : f32 to vector<8x128xf32>
    %534 = arith.maximumf %532, %533 : vector<8x128xf32>
    %c184_339 = arith.constant 184 : index
    %c0_340 = arith.constant 0 : index
    %535 = vector.load %arg11[%c184_339, %c0_340] : memref<288x128xf32, #tpu.memory_space<vmem>>, vector<8x128xf32>
    tpu.vector_store %arg11[%c184_339, %c0_340], %534 {strides = array<i32>} : memref<288x128xf32, #tpu.memory_space<vmem>>, vector<8x128xf32>,
    %c176_341 = arith.constant 176 : index
    %c0_342 = arith.constant 0 : index
    %536 = vector.load %arg8[%c176_341, %c0_342] : memref<256x128xf32, #tpu.memory_space<vmem>>, vector<8x128xf32>
    %537 = vector.broadcast %354 : vector<1x128xf32> to vector<8x128xf32>
    %538 = arith.mulf %536, %537 : vector<8x128xf32>
    %539 = vector.broadcast %356 : vector<1x128xf32> to vector<8x128xf32>
    %540 = arith.addf %538, %539 : vector<8x128xf32>
    %cst_343 = arith.constant 0.000000e+00 : f32
    %541 = vector.broadcast %cst_343 : f32 to vector<8x128xf32>
    %542 = arith.maximumf %540, %541 : vector<8x128xf32>
    %c192_344 = arith.constant 192 : index
    %c0_345 = arith.constant 0 : index
    %543 = vector.load %arg11[%c192_344, %c0_345] : memref<288x128xf32, #tpu.memory_space<vmem>>, vector<8x128xf32>
    tpu.vector_store %arg11[%c192_344, %c0_345], %542 {strides = array<i32>} : memref<288x128xf32, #tpu.memory_space<vmem>>, vector<8x128xf32>,
    %c184_346 = arith.constant 184 : index
    %c0_347 = arith.constant 0 : index
    %544 = vector.load %arg8[%c184_346, %c0_347] : memref<256x128xf32, #tpu.memory_space<vmem>>, vector<8x128xf32>
    %545 = vector.broadcast %354 : vector<1x128xf32> to vector<8x128xf32>
    %546 = arith.mulf %544, %545 : vector<8x128xf32>
    %547 = vector.broadcast %356 : vector<1x128xf32> to vector<8x128xf32>
    %548 = arith.addf %546, %547 : vector<8x128xf32>
    %cst_348 = arith.constant 0.000000e+00 : f32
    %549 = vector.broadcast %cst_348 : f32 to vector<8x128xf32>
    %550 = arith.maximumf %548, %549 : vector<8x128xf32>
    %c200_349 = arith.constant 200 : index
    %c0_350 = arith.constant 0 : index
    %551 = vector.load %arg11[%c200_349, %c0_350] : memref<288x128xf32, #tpu.memory_space<vmem>>, vector<8x128xf32>
    tpu.vector_store %arg11[%c200_349, %c0_350], %550 {strides = array<i32>} : memref<288x128xf32, #tpu.memory_space<vmem>>, vector<8x128xf32>,
    %c192_351 = arith.constant 192 : index
    %c0_352 = arith.constant 0 : index
    %552 = vector.load %arg8[%c192_351, %c0_352] : memref<256x128xf32, #tpu.memory_space<vmem>>, vector<8x128xf32>
    %553 = vector.broadcast %354 : vector<1x128xf32> to vector<8x128xf32>
    %554 = arith.mulf %552, %553 : vector<8x128xf32>
    %555 = vector.broadcast %356 : vector<1x128xf32> to vector<8x128xf32>
    %556 = arith.addf %554, %555 : vector<8x128xf32>
    %cst_353 = arith.constant 0.000000e+00 : f32
    %557 = vector.broadcast %cst_353 : f32 to vector<8x128xf32>
    %558 = arith.maximumf %556, %557 : vector<8x128xf32>
    %c208_354 = arith.constant 208 : index
    %c0_355 = arith.constant 0 : index
    %559 = vector.load %arg11[%c208_354, %c0_355] : memref<288x128xf32, #tpu.memory_space<vmem>>, vector<8x128xf32>
    tpu.vector_store %arg11[%c208_354, %c0_355], %558 {strides = array<i32>} : memref<288x128xf32, #tpu.memory_space<vmem>>, vector<8x128xf32>,
    %c200_356 = arith.constant 200 : index
    %c0_357 = arith.constant 0 : index
    %560 = vector.load %arg8[%c200_356, %c0_357] : memref<256x128xf32, #tpu.memory_space<vmem>>, vector<8x128xf32>
    %561 = vector.broadcast %354 : vector<1x128xf32> to vector<8x128xf32>
    %562 = arith.mulf %560, %561 : vector<8x128xf32>
    %563 = vector.broadcast %356 : vector<1x128xf32> to vector<8x128xf32>
    %564 = arith.addf %562, %563 : vector<8x128xf32>
    %cst_358 = arith.constant 0.000000e+00 : f32
    %565 = vector.broadcast %cst_358 : f32 to vector<8x128xf32>
    %566 = arith.maximumf %564, %565 : vector<8x128xf32>
    %c216_359 = arith.constant 216 : index
    %c0_360 = arith.constant 0 : index
    %567 = vector.load %arg11[%c216_359, %c0_360] : memref<288x128xf32, #tpu.memory_space<vmem>>, vector<8x128xf32>
    tpu.vector_store %arg11[%c216_359, %c0_360], %566 {strides = array<i32>} : memref<288x128xf32, #tpu.memory_space<vmem>>, vector<8x128xf32>,
    %c208_361 = arith.constant 208 : index
    %c0_362 = arith.constant 0 : index
    %568 = vector.load %arg8[%c208_361, %c0_362] : memref<256x128xf32, #tpu.memory_space<vmem>>, vector<8x128xf32>
    %569 = vector.broadcast %354 : vector<1x128xf32> to vector<8x128xf32>
    %570 = arith.mulf %568, %569 : vector<8x128xf32>
    %571 = vector.broadcast %356 : vector<1x128xf32> to vector<8x128xf32>
    %572 = arith.addf %570, %571 : vector<8x128xf32>
    %cst_363 = arith.constant 0.000000e+00 : f32
    %573 = vector.broadcast %cst_363 : f32 to vector<8x128xf32>
    %574 = arith.maximumf %572, %573 : vector<8x128xf32>
    %c224_364 = arith.constant 224 : index
    %c0_365 = arith.constant 0 : index
    %575 = vector.load %arg11[%c224_364, %c0_365] : memref<288x128xf32, #tpu.memory_space<vmem>>, vector<8x128xf32>
    tpu.vector_store %arg11[%c224_364, %c0_365], %574 {strides = array<i32>} : memref<288x128xf32, #tpu.memory_space<vmem>>, vector<8x128xf32>,
    %c216_366 = arith.constant 216 : index
    %c0_367 = arith.constant 0 : index
    %576 = vector.load %arg8[%c216_366, %c0_367] : memref<256x128xf32, #tpu.memory_space<vmem>>, vector<8x128xf32>
    %577 = vector.broadcast %354 : vector<1x128xf32> to vector<8x128xf32>
    %578 = arith.mulf %576, %577 : vector<8x128xf32>
    %579 = vector.broadcast %356 : vector<1x128xf32> to vector<8x128xf32>
    %580 = arith.addf %578, %579 : vector<8x128xf32>
    %cst_368 = arith.constant 0.000000e+00 : f32
    %581 = vector.broadcast %cst_368 : f32 to vector<8x128xf32>
    %582 = arith.maximumf %580, %581 : vector<8x128xf32>
    %c232_369 = arith.constant 232 : index
    %c0_370 = arith.constant 0 : index
    %583 = vector.load %arg11[%c232_369, %c0_370] : memref<288x128xf32, #tpu.memory_space<vmem>>, vector<8x128xf32>
    tpu.vector_store %arg11[%c232_369, %c0_370], %582 {strides = array<i32>} : memref<288x128xf32, #tpu.memory_space<vmem>>, vector<8x128xf32>,
    %c224_371 = arith.constant 224 : index
    %c0_372 = arith.constant 0 : index
    %584 = vector.load %arg8[%c224_371, %c0_372] : memref<256x128xf32, #tpu.memory_space<vmem>>, vector<8x128xf32>
    %585 = vector.broadcast %354 : vector<1x128xf32> to vector<8x128xf32>
    %586 = arith.mulf %584, %585 : vector<8x128xf32>
    %587 = vector.broadcast %356 : vector<1x128xf32> to vector<8x128xf32>
    %588 = arith.addf %586, %587 : vector<8x128xf32>
    %cst_373 = arith.constant 0.000000e+00 : f32
    %589 = vector.broadcast %cst_373 : f32 to vector<8x128xf32>
    %590 = arith.maximumf %588, %589 : vector<8x128xf32>
    %c240_374 = arith.constant 240 : index
    %c0_375 = arith.constant 0 : index
    %591 = vector.load %arg11[%c240_374, %c0_375] : memref<288x128xf32, #tpu.memory_space<vmem>>, vector<8x128xf32>
    tpu.vector_store %arg11[%c240_374, %c0_375], %590 {strides = array<i32>} : memref<288x128xf32, #tpu.memory_space<vmem>>, vector<8x128xf32>,
    %c232_376 = arith.constant 232 : index
    %c0_377 = arith.constant 0 : index
    %592 = vector.load %arg8[%c232_376, %c0_377] : memref<256x128xf32, #tpu.memory_space<vmem>>, vector<8x128xf32>
    %593 = vector.broadcast %354 : vector<1x128xf32> to vector<8x128xf32>
    %594 = arith.mulf %592, %593 : vector<8x128xf32>
    %595 = vector.broadcast %356 : vector<1x128xf32> to vector<8x128xf32>
    %596 = arith.addf %594, %595 : vector<8x128xf32>
    %cst_378 = arith.constant 0.000000e+00 : f32
    %597 = vector.broadcast %cst_378 : f32 to vector<8x128xf32>
    %598 = arith.maximumf %596, %597 : vector<8x128xf32>
    %c248_379 = arith.constant 248 : index
    %c0_380 = arith.constant 0 : index
    %599 = vector.load %arg11[%c248_379, %c0_380] : memref<288x128xf32, #tpu.memory_space<vmem>>, vector<8x128xf32>
    tpu.vector_store %arg11[%c248_379, %c0_380], %598 {strides = array<i32>} : memref<288x128xf32, #tpu.memory_space<vmem>>, vector<8x128xf32>,
    %c240_381 = arith.constant 240 : index
    %c0_382 = arith.constant 0 : index
    %600 = vector.load %arg8[%c240_381, %c0_382] : memref<256x128xf32, #tpu.memory_space<vmem>>, vector<8x128xf32>
    %601 = vector.broadcast %354 : vector<1x128xf32> to vector<8x128xf32>
    %602 = arith.mulf %600, %601 : vector<8x128xf32>
    %603 = vector.broadcast %356 : vector<1x128xf32> to vector<8x128xf32>
    %604 = arith.addf %602, %603 : vector<8x128xf32>
    %cst_383 = arith.constant 0.000000e+00 : f32
    %605 = vector.broadcast %cst_383 : f32 to vector<8x128xf32>
    %606 = arith.maximumf %604, %605 : vector<8x128xf32>
    %c256_384 = arith.constant 256 : index
    %c0_385 = arith.constant 0 : index
    %607 = vector.load %arg11[%c256_384, %c0_385] : memref<288x128xf32, #tpu.memory_space<vmem>>, vector<8x128xf32>
    tpu.vector_store %arg11[%c256_384, %c0_385], %606 {strides = array<i32>} : memref<288x128xf32, #tpu.memory_space<vmem>>, vector<8x128xf32>,
    %c248_386 = arith.constant 248 : index
    %c0_387 = arith.constant 0 : index
    %608 = vector.load %arg8[%c248_386, %c0_387] : memref<256x128xf32, #tpu.memory_space<vmem>>, vector<8x128xf32>
    %609 = vector.broadcast %354 : vector<1x128xf32> to vector<8x128xf32>
    %610 = arith.mulf %608, %609 : vector<8x128xf32>
    %611 = vector.broadcast %356 : vector<1x128xf32> to vector<8x128xf32>
    %612 = arith.addf %610, %611 : vector<8x128xf32>
    %cst_388 = arith.constant 0.000000e+00 : f32
    %613 = vector.broadcast %cst_388 : f32 to vector<8x128xf32>
    %614 = arith.maximumf %612, %613 : vector<8x128xf32>
    %c264_389 = arith.constant 264 : index
    %c0_390 = arith.constant 0 : index
    %615 = vector.load %arg11[%c264_389, %c0_390] : memref<288x128xf32, #tpu.memory_space<vmem>>, vector<8x128xf32>
    tpu.vector_store %arg11[%c264_389, %c0_390], %614 {strides = array<i32>} : memref<288x128xf32, #tpu.memory_space<vmem>>, vector<8x128xf32>,
    %c272_391 = arith.constant 272 : index
    %c0_392 = arith.constant 0 : index
    %616 = vector.load %arg11[%c272_391, %c0_392] : memref<288x128xf32, #tpu.memory_space<vmem>>, vector<8x128xf32>
    tpu.vector_store %arg11[%c272_391, %c0_392], %357 {strides = array<i32>} : memref<288x128xf32, #tpu.memory_space<vmem>>, vector<8x128xf32>,
    %c280_393 = arith.constant 280 : index
    %c0_394 = arith.constant 0 : index
    %617 = vector.load %arg11[%c280_393, %c0_394] : memref<288x128xf32, #tpu.memory_space<vmem>>, vector<8x128xf32>
    tpu.vector_store %arg11[%c280_393, %c0_394], %357 {strides = array<i32>} : memref<288x128xf32, #tpu.memory_space<vmem>>, vector<8x128xf32>,
    %c0_395 = arith.constant 0 : index
    %c0_396 = arith.constant 0 : index
    %618 = vector.load %arg11[%c0_395, %c0_396] : memref<288x128xf32, #tpu.memory_space<vmem>>, vector<256x128xf32>
    %619 = arith.truncf %618 : vector<256x128xf32> to vector<256x128xbf16>
    %c0_397 = arith.constant 0 : index
    %c0_398 = arith.constant 0 : index
    %620 = vector.load %arg14[%c0_397, %c0_398] : memref<256x640xbf16, #tpu.memory_space<vmem>>, vector<256x128xbf16>
    tpu.vector_store %arg14[%c0_397, %c0_398], %619 {strides = array<i32>} : memref<256x640xbf16, #tpu.memory_space<vmem>>, vector<256x128xbf16>,
    %c8_399 = arith.constant 8 : index
    %c0_400 = arith.constant 0 : index
    %621 = vector.load %arg11[%c8_399, %c0_400] : memref<288x128xf32, #tpu.memory_space<vmem>>, vector<256x128xf32>
    %622 = arith.truncf %621 : vector<256x128xf32> to vector<256x128xbf16>
    %c0_401 = arith.constant 0 : index
    %c128_402 = arith.constant 128 : index
    %623 = vector.load %arg14[%c0_401, %c128_402] : memref<256x640xbf16, #tpu.memory_space<vmem>>, vector<256x128xbf16>
    tpu.vector_store %arg14[%c0_401, %c128_402], %622 {strides = array<i32>} : memref<256x640xbf16, #tpu.memory_space<vmem>>, vector<256x128xbf16>,
    %c16_403 = arith.constant 16 : index
    %c0_404 = arith.constant 0 : index
    %624 = vector.load %arg11[%c16_403, %c0_404] : memref<288x128xf32, #tpu.memory_space<vmem>>, vector<256x128xf32>
    %625 = arith.truncf %624 : vector<256x128xf32> to vector<256x128xbf16>
    %c0_405 = arith.constant 0 : index
    %c256_406 = arith.constant 256 : index
    %626 = vector.load %arg14[%c0_405, %c256_406] : memref<256x640xbf16, #tpu.memory_space<vmem>>, vector<256x128xbf16>
    tpu.vector_store %arg14[%c0_405, %c256_406], %625 {strides = array<i32>} : memref<256x640xbf16, #tpu.memory_space<vmem>>, vector<256x128xbf16>,
    %c24_407 = arith.constant 24 : index
    %c0_408 = arith.constant 0 : index
    %627 = vector.load %arg11[%c24_407, %c0_408] : memref<288x128xf32, #tpu.memory_space<vmem>>, vector<256x128xf32>
    %628 = arith.truncf %627 : vector<256x128xf32> to vector<256x128xbf16>
    %c0_409 = arith.constant 0 : index
    %c384_410 = arith.constant 384 : index
    %629 = vector.load %arg14[%c0_409, %c384_410] : memref<256x640xbf16, #tpu.memory_space<vmem>>, vector<256x128xbf16>
    tpu.vector_store %arg14[%c0_409, %c384_410], %628 {strides = array<i32>} : memref<256x640xbf16, #tpu.memory_space<vmem>>, vector<256x128xbf16>,
    %c32_411 = arith.constant 32 : index
    %c0_412 = arith.constant 0 : index
    %630 = vector.load %arg11[%c32_411, %c0_412] : memref<288x128xf32, #tpu.memory_space<vmem>>, vector<256x128xf32>
    %631 = arith.truncf %630 : vector<256x128xf32> to vector<256x128xbf16>
    %c0_413 = arith.constant 0 : index
    %c512_414 = arith.constant 512 : index
    %632 = vector.load %arg14[%c0_413, %c512_414] : memref<256x640xbf16, #tpu.memory_space<vmem>>, vector<256x128xbf16>
    tpu.vector_store %arg14[%c0_413, %c512_414], %631 {strides = array<i32>} : memref<256x640xbf16, #tpu.memory_space<vmem>>, vector<256x128xbf16>,
    %c0_415 = arith.constant 0 : index
    %c0_416 = arith.constant 0 : index
    %633 = vector.load %arg14[%c0_415, %c0_416] : memref<256x640xbf16, #tpu.memory_space<vmem>>, vector<256x640xbf16>
    %c1280 = arith.constant 1280 : index
    %c0_417 = arith.constant 0 : index
    %634 = vector.load %arg3[%c1280, %c0_417] : memref<1920x128xbf16, #tpu.memory_space<vmem>>, vector<640x128xbf16>
    %cst_418 = arith.constant dense<0.000000e+00> : vector<256x128xf32>
    %635 = tpu.matmul %633, %634, %cst_418 {dimension_numbers = #tpu.dot_dimension_numbers<[1], [0], [0], [1], [0, 0, 1, 1], [], []>} : vector<256x640xbf16>, vector<640x128xbf16>, vector<256x128xf32> -> vector<256x128xf32>
    %c51 = arith.constant 51 : index
    %c0_419 = arith.constant 0 : index
    %636 = vector.load %arg5[%c51, %c0_419] : memref<52x128xf32, #tpu.memory_space<vmem>>, vector<1x128xf32>
    %637 = vector.broadcast %636 : vector<1x128xf32> to vector<256x128xf32>
    %638 = arith.addf %635, %637 : vector<256x128xf32>
    %639 = arith.negf %638 : vector<256x128xf32>
    %640 = math.exp %639 : vector<256x128xf32>
    %cst_420 = arith.constant 1.000000e+00 : f32
    %641 = vector.broadcast %cst_420 : f32 to vector<256x128xf32>
    %642 = arith.addf %641, %640 : vector<256x128xf32>
    %643 = arith.divf %641, %642 : vector<256x128xf32>
    %c0_421 = arith.constant 0 : index
    %c0_422 = arith.constant 0 : index
    %644 = vector.load %arg6[%c0_421, %c0_422] : memref<256x128xf32, #tpu.memory_space<vmem>>, vector<256x128xf32>
    tpu.vector_store %arg6[%c0_421, %c0_422], %643 {strides = array<i32>} : memref<256x128xf32, #tpu.memory_space<vmem>>, vector<256x128xf32>,
    return
  }
}

</mosaic_0001>

<bundles_post_ra>
// kernel: tpu_custom_call.1
= control target key start
LH: loop header
LB: loop body
LE: loop exit
PB: predicated region body
PF: predicated region fallthrough
CT: control target
= control target key end

     0   :  { %11 = vsyncpa [#allocation11], 0  ;;  %s12233_s0 = inlined_call_operand.vmem [shape: f32[8,24], index: 0, kind: input, shape index: {}]   ;;  %s12234_s1 = inlined_call_operand.vmem [shape: bf16[24,896], index: 1, kind: input, shape index: {}]   ;;  %s12235_s2 = inlined_call_operand.vmem [shape: f32[1,896], index: 2, kind: input, shape index: {}]   ;;  %s12236_s3 = inlined_call_operand.hbm [shape: bf16[1920,128], index: 3, kind: input, shape index: {}]   ;;  %s12237_s4 = inlined_call_operand.vmem [shape: f32[384,16], index: 4, kind: input, shape index: {}]   ;;  %s12238_s5 = inlined_call_operand.vmem [shape: f32[52,128], index: 5, kind: input, shape index: {}]   ;;  %s12239_s6 = inlined_call_operand.hbm [shape: f32[256,128], index: 6, kind: output, shape index: {}]  }
   0x1   :  { %12 = vsyncpa [#allocation12], 0  ;;  %s10333_s21 = smov [#allocation10]  }
   0x2   :  { %s24_s22 = sshll.u32 %s10333_s21, 4  ;;  %s25_s22 = int_to_ptr.vmem [resolvable:$true] %s24_s22 }
   0x3   :  { %s10297_s23 = scalar_lea.vmem %s25_s22, 15360  ;;  %p10302_p1 = scmp.lt.s32.totalorder %s25_s22, %s25_s22 }
   0x4   :  { %p10298_p0 = scmp.ne.s32.totalorder %s25_s22, %s10297_s23  ;;  %p10303_p2 = scmp.lt.s32.totalorder %s10297_s23, %s10297_s23 }
   0x6   :  { %p10304_p3 = por %p10303_p2, %p10302_p1 }
   0x8   :  { %p10305_p4 = pnand %p10304_p3, %p10298_p0 }
   0xa   :  { %10308 = shalt.err (!%p10305_p4)
}
   0xb   :  { %s10334_s24 = smov 64   ;;  %s10335_s25 = smov 4  }
   0xc   :  { %30 = dma.hbm_to_vmem [thread:$0]  %s12236_s3, 15360, %s25_s22, [#allocation11], %s10334_s24, %s10334_s24, %s10335_s25  }
   0xd   :  { %10329 = dma.done.wait [#allocation11], 15360  }
   0xe   :  { %10330 = vsyncadd [#allocation11], 4294951936  ;;  %v10336_v0 = vmov 0   ;;  %v49_v1 = vld [vmem:[%s12234_s1 + $0x38] sm:$0xff]  ;;  %vm148_vm0 = vcmask 1043456   ;;  %v50_v2 = vld [vmem:[%s12234_s1 + $0x40] sm:$0xff]  ;;  %v55_v41 = vlaneseq }
   0xf   :  { %202 = vmatprep.mubr.bf16.mxu0 %v10336_v0  ;;  %243 = vmatprep.mubr.bf16.mxu1 %v10336_v0  ;;  %v7606_v3 = vcombine.high %v49_v1, %v49_v1  ;;  %v7608_v4 = vcombine.high %v50_v2, %v50_v2  ;;  %v7605_v5 = vcombine.low %v49_v1, %v49_v1  ;;  %v9744_v7 = vld [vmem:[%s12234_s1 + $0x4] ss:$28 sps:$4 sm:$0xff]   ;;  %v9746_v8 = vld [vmem:[%s12234_s1 + $0xc] ss:$28 sps:$4 sm:$0xff]   ;;  %v9752_v16 = vld [vmem:[%s12234_s1 + $0x50] ss:$0 sps:$4 sm:$0xff]  }
  0x10   :  { %v7607_v6 = vcombine.low %v50_v2, %v50_v2  ;;  %v9748_v9 = vld [vmem:[%s12234_s1] ss:$28 sps:$4 sm:$0xff]   ;;  %v9749_v12 = vld [vmem:[%s12234_s1 + $0x8] ss:$28 sps:$4 sm:$0xff]   ;;  %vm144_vm1 = vcmask 195584   ;;  %v168_v20 = vsel %vm148_vm0, %v9752_v16, 0 }
  0x11   :  { %7612 = vmatprep.subr.msk.bf16.mxu0 %vm148_vm0, %v7606_v3  ;;  %7614 = vmatprep.subr.msk.bf16.mxu1 %vm148_vm0, %v7608_v4  ;;  %v150_v10 = vsel %vm148_vm0, %v7605_v5, 0  ;;  %v39_v13 = vld [vmem:[%s12233_s0] sm:$0xff]  ;;  %v51_v14 = vld [vmem:[%s12234_s1 + $0x48] sm:$0xff]  ;;  %v9755_v21 = vld [vmem:[%s12234_s1 + $0x14] ss:$28 sps:$4 sm:$0xff]   ;;  %v12240_v22 = vmov 0.0  }
  0x12   :  { %v156_v11 = vsel %vm148_vm0, %v7607_v6, 0  ;;  %183 = vmatpush1.bf16.msra.mxu0 %v150_v10  ;;  %v7609_v15 = vcombine.low %v51_v14, %v51_v14  ;;  %v7610_v17 = vcombine.high %v51_v14, %v51_v14  ;;  %v40_v18 = vpack.c.bf16 %v39_v13, %v39_v13  ;;  %v9753_v23 = vld [vmem:[%s12234_s1 + $0x10] ss:$28 sps:$4 sm:$0xff]   ;;  %v9756_v24 = vld [vmem:[%s12234_s1 + $0x18] ss:$28 sps:$4 sm:$0xff]   ;;  %v376_v28 = vld [vmem:[%s12237_s4 + $0x60] sm:$0xff] }
  0x13   :  { %224 = vmatpush1.bf16.msra.mxu1 %v156_v11  ;;  %184 = vmatprep.subr.bf16.mxu0 %v9744_v7  ;;  %vm10338_vm2 = vmmov 0   ;;  %v379_v25 = vld [vmem:[%s12237_s4 + $0x78] sm:$0xff]  ;;  %v378_v26 = vld [vmem:[%s12237_s4 + $0x70] sm:$0xff]  ;;  %v377_v27 = vld [vmem:[%s12237_s4 + $0x68] sm:$0xff]  ;;  %v56_v42 = vshrl.u32 %v55_v41, 7  ;;  %vm383_vm3 = vcmask 1040384  }
  0x14   :  { %225 = vmatprep.subr.bf16.mxu1 %v9746_v8  ;;  %v162_v19 = vsel %vm148_vm0, %v7609_v15, 0  ;;  %v375_v29 = vld [vmem:[%s12237_s4 + $0x58] sm:$0xff]  ;;  %v374_v30 = vld [vmem:[%s12237_s4 + $0x50] sm:$0xff]  ;;  %v373_v31 = vld [vmem:[%s12237_s4 + $0x48] sm:$0xff]  ;;  %vm471_vm4 = vcmask 130048  }
  0x15   :  { %v372_v32 = vld [vmem:[%s12237_s4 + $0x40] sm:$0xff]  ;;  %v371_v33 = vld [vmem:[%s12237_s4 + $0x38] sm:$0xff]  ;;  %v370_v34 = vld [vmem:[%s12237_s4 + $0x30] sm:$0xff]  ;;  %v10499_v43 = vsub.s32 0, %v56_v42  ;;  %v65_v44 = vsub.s32 2, %v56_v42  ;;  %v61_v46 = vsub.s32 1, %v56_v42 }
  0x16   :  { %185 = vmatpush1.bf16.msra.mxu0 %v9748_v9  ;;  %v369_v35 = vld [vmem:[%s12237_s4 + $0x28] sm:$0xff]  ;;  %v368_v36 = vld [vmem:[%s12237_s4 + $0x20] sm:$0xff]  ;;  %v367_v37 = vld [vmem:[%s12237_s4 + $0x18] sm:$0xff]  ;;  %v69_v49 = vsub.s32 3, %v56_v42  ;;  %v73_v53 = vsub.s32 4, %v56_v42  ;;  %v81_v59 = vsub.s32 6, %v56_v42 }
  0x17   :  { %226 = vmatpush1.bf16.msra.mxu1 %v9749_v12  ;;  %7616 = vmatprep.subr.msk.bf16.mxu0 %vm148_vm0, %v7610_v17  ;;  %v366_v38 = vld [vmem:[%s12237_s4 + $0x10] sm:$0xff]  ;;  %v365_v39 = vld [vmem:[%s12237_s4 + $0x8] sm:$0xff]  ;;  %v364_v40 = vld [vmem:[%s12237_s4] sm:$0xff]  ;;  %12246 = vst [vmem:[#allocation16_spill] sm:$0xff] %v10499_v43  ;;  %v77_v1 = vsub.s32 5, %v56_v42 }
  0x18   :  { %9468 = vmatprep.subr.bf16.mxu1 %v12240_v22  ;;  %v53_v45 = vld [vmem:[%s12235_s2] sm:$0xff] }
  0x19   :  { %7613 = vmatmul.mubr.msk.bf16.vlgmr.msra.gmra.mxu0 %vm144_vm1, %v40_v18  ;;  %v58_v47 = vrot.slane %v53_v45, %v10499_v43  ;;  %v66_v48 = vrot.slane %v53_v45, %v65_v44  ;;  %v62_v50 = vrot.slane %v53_v45, %v61_v46  ;;  %v70_v56 = vrot.slane %v53_v45, %v69_v49 }
  0x1a   :  { %7615 = vmatmul.mubr.msk.bf16.vlgmr.msra.gmra.mxu1 %vm144_vm1, %v40_v18  ;;  %265 = vmatpush1.bf16.msra.mxu0 %v162_v19  ;;  %v82_v8 = vrot.slane %v53_v45, %v81_v59  ;;  %v78_v13 = vrot.slane %v53_v45, %v77_v1  ;;  %v9770_v59 = vld [vmem:[#allocation10 + $0xb0] sm:$0xff]  }
  0x1b   :  { %9469 = vmatpush3.bf16.msra.mxu1 %v168_v20  ;;  %266 = vmatprep.subr.bf16.mxu0 %v9755_v21 }
  0x1c   :  { %9470 = vmatprep.subr.bf16.mxu1 %v12240_v22  ;;  %284 = vmatprep.mubr.bf16.mxu0 %v10336_v0  ;;  %v74_v0 = vrot.slane %v53_v45, %v73_v53  ;;  %v9757_v53 = vld [vmem:[#allocation10 + $0x78] sm:$0xff]  }
  0x1d   :  { %9472 = vmatprep.mubr.msk.bf16.mxu1 %vm10338_vm2, %v12240_v22 }
  0x1e   :  { %267 = vmatpush1.bf16.msra.mxu0 %v9753_v23 }
  0x1f   :  { %9471 = vmatpush3.bf16.msra.mxu1 %v9756_v24 }
  0x20   :  { %9476 = vmatprep.subr.mxu1 %v12240_v22 }
  0x21   :  { %7617 = vmatmul.mubr.msk.bf16.vlgmr.msra.gmra.mxu0 %vm144_vm1, %v40_v18 }
  0x22   :  { %9473 = vmatmul.mubr.msk.bf16.vlgmr.msra.gmra.mxu1 %vm144_vm1, %v40_v18 }
  0x23   :  { %9508 = vmatprep.mubr.msk.f32.mxu1 %vm10338_vm2, %v12240_v22  ;;  %9477 = vmatpush3.msra.mxu1 %v379_v25 }
  0x24   :  { %9478 = vmatprep.subr.mxu1 %v12240_v22 }
  0x25   :  { %9479 = vmatpush3.msra.mxu1 %v378_v26 }
  0x26   :  { %9480 = vmatprep.subr.mxu1 %v12240_v22 }
  0x27   :  { %9481 = vmatpush3.msra.mxu1 %v377_v27 }
  0x28   :  { %9482 = vmatprep.subr.mxu1 %v12240_v22 }
  0x29   :  { %9483 = vmatpush3.msra.mxu1 %v376_v28 }
  0x2a   :  { %9484 = vmatprep.subr.mxu1 %v12240_v22 }
  0x2b   :  { %9485 = vmatpush3.msra.mxu1 %v375_v29 }
  0x2c   :  { %9486 = vmatprep.subr.mxu1 %v12240_v22 }
  0x2d   :  { %9487 = vmatpush3.msra.mxu1 %v374_v30 }
  0x2e   :  { %9488 = vmatprep.subr.mxu1 %v12240_v22 }
  0x2f   :  { %9489 = vmatpush3.msra.mxu1 %v373_v31 }
  0x30   :  { %9490 = vmatprep.subr.mxu1 %v12240_v22 }
  0x31   :  { %9491 = vmatpush3.msra.mxu1 %v372_v32 }
  0x32   :  { %9492 = vmatprep.subr.mxu1 %v12240_v22 }
  0x33   :  { %9493 = vmatpush3.msra.mxu1 %v371_v33 }
  0x34   :  { %9494 = vmatprep.subr.mxu1 %v12240_v22 }
  0x35   :  { %9495 = vmatpush3.msra.mxu1 %v370_v34 }
  0x36   :  { %9496 = vmatprep.subr.mxu1 %v12240_v22 }
  0x37   :  { %9497 = vmatpush3.msra.mxu1 %v369_v35 }
  0x38   :  { %9498 = vmatprep.subr.mxu1 %v12240_v22 }
  0x39   :  { %9499 = vmatpush3.msra.mxu1 %v368_v36 }
  0x3a   :  { %9500 = vmatprep.subr.mxu1 %v12240_v22 }
  0x3b   :  { %9501 = vmatpush3.msra.mxu1 %v367_v37 }
  0x3c   :  { %9502 = vmatprep.subr.mxu1 %v12240_v22 }
  0x3d   :  { %9503 = vmatpush3.msra.mxu1 %v366_v38 }
  0x3e   :  { %9504 = vmatprep.subr.mxu1 %v12240_v22 }
  0x3f   :  { %9505 = vmatpush3.msra.mxu1 %v365_v39 }
  0x40   :  { %9506 = vmatprep.subr.mxu1 %v12240_v22 }
  0x41   :  { %9507 = vmatpush3.msra.mxu1 %v364_v40 }
  0x42   :  { %9511 = vmatprep.subr.mxu1 %v12240_v22 }
  0xd9   :  { %v204_v51 = vpop.f32.mrf.mxu0 }
  0xda   :  { %v245_v52 = vpop.f32.mrf.mxu1  ;;  %v10505_v54 = vadd.f32 %v204_v51, %v58_v47  ;;  %v381_v51 = vld [vmem:[%s12238_s5 + $0x8] sm:$0xff] }
  0xdb   :  { %v10507_v55 = vadd.f32 %v245_v52, %v66_v48  ;;  %v206_v57 = vpop.f32.mrf.mxu0  ;;  %v380_v52 = vld [vmem:[%s12238_s5] sm:$0xff] }
  0xdc   :  { %v247_v58 = vpop.f32.mrf.mxu1  ;;  %v10509_v60 = vadd.f32 %v206_v57, %v62_v50  ;;  %v333_v61 = vmul.f32 %v10505_v54, %v10505_v54  ;;  %v9766_v57 = vld [vmem:[#allocation10 + $0xb8] sm:$0xff]  }
  0xdd   :  { %v208_v62 = vpop.f32.mrf.mxu0  ;;  %v338_v2 = vmul.f32 %v10507_v55, %v10507_v55  ;;  %v10519_v5 = vadd.f32 %v247_v58, %v70_v56  ;;  %v9765_v56 = vld [vmem:[#allocation10 + $0xf8] sm:$0xff]   ;;  %v9769_v58 = vld [vmem:[#allocation10 + $0xf0] sm:$0xff]  }
  0xde   :  { %v249_v63 = vpop.f32.mrf.mxu1  ;;  %v334_v3 = vadd.f32 %v10509_v60, %v10505_v54  ;;  %v335_v4 = vmul.f32 %v10509_v60, %v10509_v60  ;;  %8852 = vmatprep.subr.bf16.mxu0 %v9765_v56 }
  0xdf   :  { %v209_v6 = vpop.f32.mrf.mxu0  ;;  %v341_v16 = vmul.f32 %v10519_v5, %v10519_v5  ;;  %8853 = vmatpush3.bf16.msra.mxu0 %v9766_v57 }
  0xe0   :  { %v250_v7 = vpop.f32.mrf.mxu1  ;;  %v336_v9 = vadd.f32 %v335_v4, %v333_v61  ;;  %v337_v10 = vadd.f32 %v334_v3, %v10507_v55  ;;  %8854 = vmatprep.subr.bf16.mxu0 %v9769_v58 }
  0xe1   :  { %v286_v11 = vpop.f32.mrf.mxu0 }
  0xe2   :  { %v327_v12 = vpop.f32.mrf.mxu1  ;;  %v339_v14 = vadd.f32 %v338_v2, %v336_v9  ;;  %v340_v15 = vadd.f32 %v337_v10, %v10519_v5  ;;  %v10525_v17 = vadd.f32 %v286_v11, %v74_v0  ;;  %v9758_v9 = vld [vmem:[#allocation10 + $0x38] sm:$0xff]   ;;  %v9759_v10 = vld [vmem:[#allocation10 + $0x70] sm:$0xff]  }
  0xe3   :  { %v10527_v18 = vadd.f32 %v327_v12, %v82_v8  ;;  %v288_v19 = vpop.f32.mrf.mxu0  ;;  %8855 = vmatpush3.bf16.msra.mxu0 %v9770_v59  ;;  %v9760_v12 = vld [vmem:[#allocation10 + $0x30] sm:$0xff]  }
  0xe4   :  { %v9474_v20 = vpop.f32.mrf.mxu1  ;;  %v342_v21 = vadd.f32 %v341_v16, %v339_v14  ;;  %v343_v23 = vadd.f32 %v340_v15, %v10525_v17  ;;  %v344_v24 = vmul.f32 %v10525_v17, %v10525_v17  ;;  %v10532_v25 = vadd.f32 %v288_v19, %v78_v13  ;;  %v9761_v13 = vld [vmem:[#allocation10 + $0x68] sm:$0xff]   ;;  %v9763_v15 = vld [vmem:[#allocation10 + $0x60] sm:$0xff]   ;;  %v9767_v19 = vld [vmem:[#allocation10 + $0x58] sm:$0xff]  }
  0xe5   :  { %v290_v26 = vpop.f32.mrf.mxu0  ;;  %v350_v29 = vmul.f32 %v10527_v18, %v10527_v18  ;;  %v9762_v14 = vld [vmem:[#allocation10 + $0x28] sm:$0xff]   ;;  %v9764_v16 = vld [vmem:[#allocation10 + $0x20] sm:$0xff]   ;;  %v9768_v20 = vld [vmem:[#allocation10 + $0x18] sm:$0xff]  }
  0xe6   :  { %v330_v27 = vpop.f32.mrf.mxu1  ;;  %v345_v28 = vadd.f32 %v344_v24, %v342_v21  ;;  %v346_v30 = vadd.f32 %v343_v23, %v10532_v25  ;;  %v347_v31 = vmul.f32 %v10532_v25, %v10532_v25  ;;  %v9771_v21 = vld [vmem:[#allocation10 + $0x50] sm:$0xff]   ;;  %v9773_v24 = vld [vmem:[#allocation10 + $0xe8] sm:$0xff]  }
  0xe7   :  { %v291_v32 = vpop.f32.mrf.mxu0  ;;  %v9772_v23 = vld [vmem:[#allocation10 + $0x10] sm:$0xff]   ;;  %v10552_v26 = vld [vmem:[#allocation10 + $0xa8] sm:$0xff]   ;;  %8856 = vmatprep.subr.bf16.mxu0 %v9773_v24 }
  0xe8   :  { %v9475_v33 = vpop.f32.mrf.mxu1  ;;  %v348_v34 = vadd.f32 %v347_v31, %v345_v28  ;;  %v349_v35 = vadd.f32 %v346_v30, %v10527_v18  ;;  %v10554_v27 = vld [vmem:[#allocation10 + $0x48] sm:$0xff]   ;;  %v10339_v28 = vmov 0.0|0.0   ;;  %8857 = vmatpush3.bf16.msra.mxu0 %v10552_v26  ;;  %v9777_v30 = vld [vmem:[#allocation10 + $0xe0] sm:$0xff]  }
  0xe9   :  { %673 = vst [vmem:[#allocation7] sm:$0xf] %v10339_v28  ;;  %674 = vst [vmem:[#allocation7 + $0x14] sm:$0xf] %v10339_v28  ;;  %v9778_v31 = vld [vmem:[#allocation10 + $0xa0] sm:$0xff]   ;;  %8858 = vmatprep.subr.bf16.mxu0 %v9777_v30 }
  0xea   :  { %v351_v36 = vadd.f32 %v350_v29, %v348_v34  ;;  %v352_v37 = vrot.slane %v349_v35, 4  ;;  %764 = vst [vmem:[#allocation7 + $0x4] sm:$0xf] %v10339_v28  ;;  %765 = vst [vmem:[#allocation7 + $0x18] sm:$0xf] %v10339_v28  ;;  %v9776_v29 = vld [vmem:[#allocation10 + $0x8] sm:$0xff]  }
  0xeb   :  { %675 = vst [vmem:[#allocation7 + $0x28] sm:$0xf] %v10339_v28  ;;  %677 = vst [vmem:[#allocation7 + $0x50] sm:$0xf] %v10339_v28  ;;  %v9779_v32 = vld [vmem:[#allocation10 + $0x40] sm:$0xff]   ;;  %v9781_v34 = vld [vmem:[#allocation10 + $0xd8] sm:$0xff]  }
  0xec   :  { %v353_v38 = vadd.f32 %v352_v37, %v349_v35  ;;  %v358_v39 = vrot.slane %v351_v36, 4  ;;  %679 = vst [vmem:[#allocation7 + $0x78] sm:$0xf] %v10339_v28  ;;  %681 = vst [vmem:[#allocation7 + $0xa0] sm:$0xf] %v10339_v28  ;;  %8859 = vmatpush3.bf16.msra.mxu0 %v9778_v31  ;;  %v9780_v33 = vld [vmem:[#allocation10] sm:$0xff]  }
  0xed   :  { %683 = vst [vmem:[#allocation7 + $0xc8] sm:$0xf] %v10339_v28  ;;  %685 = vst [vmem:[#allocation7 + $0xf0] sm:$0xf] %v10339_v28  ;;  %v9782_v35 = vld [vmem:[#allocation10 + $0x98] sm:$0xff]   ;;  %8860 = vmatprep.subr.bf16.mxu0 %v9781_v34 }
  0xee   :  { %v354_v40 = vrot.slane %v353_v38, 2  ;;  %v359_v41 = vadd.f32 %v358_v39, %v351_v36  ;;  %687 = vst [vmem:[#allocation7 + $0x118] sm:$0xf] %v10339_v28  ;;  %767 = vst [vmem:[#allocation7 + $0x40] sm:$0xf] %v10339_v28  ;;  %v9787_v39 = vld [vmem:[#allocation10 + $0x90] sm:$0xff]  }
  0xef   :  { %769 = vst [vmem:[#allocation7 + $0x68] sm:$0xf] %v10339_v28  ;;  %771 = vst [vmem:[#allocation7 + $0x90] sm:$0xf] %v10339_v28 }
  0xf0   :  { %v355_v42 = vadd.f32 %v354_v40, %v353_v38  ;;  %v360_v44 = vrot.slane %v359_v41, 2  ;;  %773 = vst [vmem:[#allocation7 + $0xb8] sm:$0xf] %v10339_v28  ;;  %775 = vst [vmem:[#allocation7 + $0xe0] sm:$0xf] %v10339_v28  ;;  %8861 = vmatpush3.bf16.msra.mxu0 %v9782_v35  ;;  %v9786_v38 = vld [vmem:[#allocation10 + $0xd0] sm:$0xff]  }
  0xf1   :  { %777 = vst [vmem:[#allocation7 + $0x108] sm:$0xf] %v10339_v28  ;;  %855 = vst [vmem:[#allocation7 + $0x8] sm:$0xf] %v10339_v28  ;;  %v9783_v36 = vld [vmem:[#allocation7] ss:$20 sps:$4 sm:$0xff]   ;;  %8862 = vmatprep.subr.bf16.mxu0 %v9786_v38 }
  0xf2   :  { %v356_v45 = vrot.slane %v355_v42, 1  ;;  %v361_v46 = vadd.f32 %v360_v44, %v359_v41  ;;  %857 = vst [vmem:[#allocation7 + $0x30] sm:$0xf] %v10339_v28  ;;  %859 = vst [vmem:[#allocation7 + $0x58] sm:$0xf] %v10339_v28  ;;  %v9788_v40 = vld [vmem:[#allocation10 + $0xc8] sm:$0xff]  }
  0xf3   :  { %861 = vst [vmem:[#allocation7 + $0x80] sm:$0xf] %v10339_v28  ;;  %863 = vst [vmem:[#allocation7 + $0xa8] sm:$0xf] %v10339_v28  ;;  %v9785_v37 = vld [vmem:[#allocation7 + $0x4] ss:$20 sps:$4 sm:$0xff]  }
  0xf4   :  { %v362_v47 = vrot.slane %v361_v46, 1  ;;  %v357_v48 = vadd.f32 %v356_v45, %v355_v42  ;;  %865 = vst [vmem:[#allocation7 + $0xd0] sm:$0xf] %v10339_v28  ;;  %867 = vst [vmem:[#allocation7 + $0xf8] sm:$0xf] %v10339_v28  ;;  %8863 = vmatpush3.bf16.msra.mxu0 %v9787_v39  ;;  %v9789_v41 = vld [vmem:[#allocation10 + $0x138] sm:$0xff]  }
  0xf5   :  { %869 = vst [vmem:[#allocation7 + $0x120] sm:$0xf] %v10339_v28  ;;  %947 = vst [vmem:[#allocation7 + $0x20] sm:$0xf] %v10339_v28  ;;  %v9790_v42 = vld [vmem:[#allocation10 + $0x88] sm:$0xff]   ;;  %v9791_v44 = vld [vmem:[#allocation10 + $0xc0] sm:$0xff]   ;;  %8864 = vmatprep.subr.bf16.mxu0 %v9788_v40 }
  0xf6   :  { %v363_v49 = vadd.f32 %v362_v47, %v361_v46  ;;  %949 = vst [vmem:[#allocation7 + $0x48] sm:$0xf] %v10339_v28  ;;  %951 = vst [vmem:[#allocation7 + $0x70] sm:$0xf] %v10339_v28  ;;  %v9792_v45 = vld [vmem:[#allocation10 + $0x80] sm:$0xff]   ;;  %v9799_v46 = vld [vmem:[#allocation10 + $0x130] sm:$0xff]  }
  0xf7   :  { %953 = vst [vmem:[#allocation7 + $0x98] sm:$0xf] %v10339_v28  ;;  %955 = vst [vmem:[#allocation7 + $0xc0] sm:$0xf] %v10339_v28  ;;  %v9806_v47 = vld [vmem:[#allocation10 + $0x128] sm:$0xff]  }
  0xf8   :  { %v384_v50 = vsel %vm383_vm3, %v357_v48, %v363_v49  ;;  %957 = vst [vmem:[#allocation7 + $0xe8] sm:$0xf] %v10339_v28  ;;  %959 = vst [vmem:[#allocation7 + $0x110] sm:$0xf] %v10339_v28  ;;  %8865 = vmatpush3.bf16.msra.mxu0 %v9790_v42  ;;  %v9813_v48 = vld [vmem:[#allocation10 + $0x120] sm:$0xff]   ;;  %v9820_v49 = vld [vmem:[#allocation10 + $0x118] sm:$0xff]  }
  0xf9   :  { %9509 = vmatmul.mubr.f32.vlgmr.msra.gmra.mxu1 %v384_v50  ;;  %960 = vst [vmem:[#allocation7 + $0x124] sm:$0xf] %v10339_v28  ;;  %1037 = vst [vmem:[#allocation7 + $0x10] sm:$0xf] %v10339_v28  ;;  %8866 = vmatprep.subr.bf16.mxu0 %v9791_v44  ;;  %v9827_v50 = vld [vmem:[#allocation10 + $0x110] sm:$0xff]  }
  0xfa   :  { %9515 = vmatprep.mubr.msk.f32.mxu1 %vm10338_vm2, %v12240_v22  ;;  %9512 = vmatpush3.msra.mxu1 %v381_v51  ;;  %1039 = vst [vmem:[#allocation7 + $0x38] sm:$0xf] %v10339_v28  ;;  %1041 = vst [vmem:[#allocation7 + $0x60] sm:$0xf] %v10339_v28  ;;  %v9834_v51 = vld [vmem:[#allocation10 + $0x108] sm:$0xff]  }
  0xfb   :  { %9513 = vmatprep.subr.mxu1 %v12240_v22  ;;  %1043 = vst [vmem:[#allocation7 + $0x88] sm:$0xf] %v10339_v28  ;;  %1045 = vst [vmem:[#allocation7 + $0xb0] sm:$0xf] %v10339_v28 }
  0xfc   :  { %9514 = vmatpush3.msra.mxu1 %v380_v52  ;;  %1047 = vst [vmem:[#allocation7 + $0xd8] sm:$0xf] %v10339_v28  ;;  %1049 = vst [vmem:[#allocation7 + $0x100] sm:$0xf] %v10339_v28  ;;  %8867 = vmatpush3.bf16.msra.mxu0 %v9792_v45  ;;  %v9840_v52 = vld [vmem:[#allocation10 + $0x100] sm:$0xff]  }
  0xfd   :  { %8788 = vmatprep.subr.bf16.mxu1 %v9757_v53  ;;  %1050 = vst [vmem:[#allocation7 + $0x114] sm:$0xf] %v10339_v28  ;;  %1051 = vst [vmem:[#allocation7 + $0x128] sm:$0xf] %v10339_v28  ;;  %9550 = vmatprep.subr.mxu0 %v12240_v22  ;;  %v382_v53 = vld [vmem:[%s12238_s5 + $0x30] sm:$0x1] }
  0xfe   :  { %2437 = vst [vmem:[#allocation8] sm:$0xf] %v10339_v28  ;;  %2438 = vst [vmem:[#allocation8 + $0x14] sm:$0xf] %v10339_v28 }
  0xff   :  { %2439 = vst [vmem:[#allocation8 + $0x28] sm:$0xf] %v10339_v28  ;;  %2441 = vst [vmem:[#allocation8 + $0x50] sm:$0xf] %v10339_v28 }
 0x100   :  { %2443 = vst [vmem:[#allocation8 + $0x78] sm:$0xf] %v10339_v28  ;;  %2445 = vst [vmem:[#allocation8 + $0xa0] sm:$0xf] %v10339_v28 }
 0x101   :  { %2447 = vst [vmem:[#allocation8 + $0xc8] sm:$0xf] %v10339_v28  ;;  %2449 = vst [vmem:[#allocation8 + $0xf0] sm:$0xf] %v10339_v28 }
 0x102   :  { %2451 = vst [vmem:[#allocation8 + $0x118] sm:$0xf] %v10339_v28  ;;  %2453 = vst [vmem:[#allocation8 + $0x140] sm:$0xf] %v10339_v28 }
 0x103   :  { %2455 = vst [vmem:[#allocation8 + $0x168] sm:$0xf] %v10339_v28  ;;  %2457 = vst [vmem:[#allocation8 + $0x190] sm:$0xf] %v10339_v28 }
 0x104   :  { %2459 = vst [vmem:[#allocation8 + $0x1b8] sm:$0xf] %v10339_v28  ;;  %2461 = vst [vmem:[#allocation8 + $0x1e0] sm:$0xf] %v10339_v28 }
 0x105   :  { %2463 = vst [vmem:[#allocation8 + $0x208] sm:$0xf] %v10339_v28  ;;  %2465 = vst [vmem:[#allocation8 + $0x230] sm:$0xf] %v10339_v28 }
 0x106   :  { %2467 = vst [vmem:[#allocation8 + $0x258] sm:$0xf] %v10339_v28  ;;  %2629 = vst [vmem:[#allocation8 + $0x4] sm:$0xf] %v10339_v28 }
 0x107   :  { %2630 = vst [vmem:[#allocation8 + $0x18] sm:$0xf] %v10339_v28  ;;  %2632 = vst [vmem:[#allocation8 + $0x40] sm:$0xf] %v10339_v28 }
 0x108   :  { %2634 = vst [vmem:[#allocation8 + $0x68] sm:$0xf] %v10339_v28  ;;  %2636 = vst [vmem:[#allocation8 + $0x90] sm:$0xf] %v10339_v28 }
 0x109   :  { %2638 = vst [vmem:[#allocation8 + $0xb8] sm:$0xf] %v10339_v28  ;;  %2640 = vst [vmem:[#allocation8 + $0xe0] sm:$0xf] %v10339_v28 }
 0x10a   :  { %2642 = vst [vmem:[#allocation8 + $0x108] sm:$0xf] %v10339_v28  ;;  %2644 = vst [vmem:[#allocation8 + $0x130] sm:$0xf] %v10339_v28 }
 0x10b   :  { %2646 = vst [vmem:[#allocation8 + $0x158] sm:$0xf] %v10339_v28  ;;  %2648 = vst [vmem:[#allocation8 + $0x180] sm:$0xf] %v10339_v28 }
 0x10c   :  { %2650 = vst [vmem:[#allocation8 + $0x1a8] sm:$0xf] %v10339_v28  ;;  %2652 = vst [vmem:[#allocation8 + $0x1d0] sm:$0xf] %v10339_v28 }
 0x10d   :  { %2654 = vst [vmem:[#allocation8 + $0x1f8] sm:$0xf] %v10339_v28  ;;  %2656 = vst [vmem:[#allocation8 + $0x220] sm:$0xf] %v10339_v28 }
 0x10e   :  { %2658 = vst [vmem:[#allocation8 + $0x248] sm:$0xf] %v10339_v28  ;;  %2660 = vst [vmem:[#allocation8 + $0x270] sm:$0xf] %v10339_v28 }
 0x10f   :  { %2821 = vst [vmem:[#allocation8 + $0x8] sm:$0xf] %v10339_v28  ;;  %2823 = vst [vmem:[#allocation8 + $0x30] sm:$0xf] %v10339_v28 }
 0x110   :  { %2825 = vst [vmem:[#allocation8 + $0x58] sm:$0xf] %v10339_v28  ;;  %2827 = vst [vmem:[#allocation8 + $0x80] sm:$0xf] %v10339_v28 }
 0x111   :  { %2829 = vst [vmem:[#allocation8 + $0xa8] sm:$0xf] %v10339_v28  ;;  %2831 = vst [vmem:[#allocation8 + $0xd0] sm:$0xf] %v10339_v28 }
 0x112   :  { %2833 = vst [vmem:[#allocation8 + $0xf8] sm:$0xf] %v10339_v28  ;;  %2835 = vst [vmem:[#allocation8 + $0x120] sm:$0xf] %v10339_v28 }
 0x113   :  { %2837 = vst [vmem:[#allocation8 + $0x148] sm:$0xf] %v10339_v28  ;;  %2839 = vst [vmem:[#allocation8 + $0x170] sm:$0xf] %v10339_v28 }
 0x114   :  { %2841 = vst [vmem:[#allocation8 + $0x198] sm:$0xf] %v10339_v28  ;;  %2843 = vst [vmem:[#allocation8 + $0x1c0] sm:$0xf] %v10339_v28 }
 0x115   :  { %2845 = vst [vmem:[#allocation8 + $0x1e8] sm:$0xf] %v10339_v28  ;;  %2847 = vst [vmem:[#allocation8 + $0x210] sm:$0xf] %v10339_v28 }
 0x116   :  { %2849 = vst [vmem:[#allocation8 + $0x238] sm:$0xf] %v10339_v28  ;;  %2851 = vst [vmem:[#allocation8 + $0x260] sm:$0xf] %v10339_v28 }
 0x117   :  { %2852 = vst [vmem:[#allocation8 + $0x274] sm:$0xf] %v10339_v28  ;;  %3014 = vst [vmem:[#allocation8 + $0x20] sm:$0xf] %v10339_v28 }
 0x118   :  { %3016 = vst [vmem:[#allocation8 + $0x48] sm:$0xf] %v10339_v28  ;;  %3018 = vst [vmem:[#allocation8 + $0x70] sm:$0xf] %v10339_v28 }
 0x119   :  { %3020 = vst [vmem:[#allocation8 + $0x98] sm:$0xf] %v10339_v28  ;;  %3022 = vst [vmem:[#allocation8 + $0xc0] sm:$0xf] %v10339_v28 }
 0x11a   :  { %3024 = vst [vmem:[#allocation8 + $0xe8] sm:$0xf] %v10339_v28  ;;  %3026 = vst [vmem:[#allocation8 + $0x110] sm:$0xf] %v10339_v28 }
 0x11b   :  { %3028 = vst [vmem:[#allocation8 + $0x138] sm:$0xf] %v10339_v28  ;;  %3030 = vst [vmem:[#allocation8 + $0x160] sm:$0xf] %v10339_v28 }
 0x11c   :  { %3032 = vst [vmem:[#allocation8 + $0x188] sm:$0xf] %v10339_v28  ;;  %3034 = vst [vmem:[#allocation8 + $0x1b0] sm:$0xf] %v10339_v28 }
 0x11d   :  { %3036 = vst [vmem:[#allocation8 + $0x1d8] sm:$0xf] %v10339_v28  ;;  %3038 = vst [vmem:[#allocation8 + $0x200] sm:$0xf] %v10339_v28 }
 0x11e   :  { %3040 = vst [vmem:[#allocation8 + $0x228] sm:$0xf] %v10339_v28  ;;  %3042 = vst [vmem:[#allocation8 + $0x250] sm:$0xf] %v10339_v28 }
 0x11f   :  { %3043 = vst [vmem:[#allocation8 + $0x264] sm:$0xf] %v10339_v28  ;;  %3044 = vst [vmem:[#allocation8 + $0x278] sm:$0xf] %v10339_v28 }
 0x120   :  { %3205 = vst [vmem:[#allocation8 + $0x10] sm:$0xf] %v10339_v28  ;;  %3207 = vst [vmem:[#allocation8 + $0x38] sm:$0xf] %v10339_v28 }
 0x121   :  { %3209 = vst [vmem:[#allocation8 + $0x60] sm:$0xf] %v10339_v28  ;;  %3211 = vst [vmem:[#allocation8 + $0x88] sm:$0xf] %v10339_v28 }
 0x122   :  { %3213 = vst [vmem:[#allocation8 + $0xb0] sm:$0xf] %v10339_v28  ;;  %3215 = vst [vmem:[#allocation8 + $0xd8] sm:$0xf] %v10339_v28 }
 0x123   :  { %3217 = vst [vmem:[#allocation8 + $0x100] sm:$0xf] %v10339_v28  ;;  %3219 = vst [vmem:[#allocation8 + $0x128] sm:$0xf] %v10339_v28 }
 0x124   :  { %3221 = vst [vmem:[#allocation8 + $0x150] sm:$0xf] %v10339_v28  ;;  %3223 = vst [vmem:[#allocation8 + $0x178] sm:$0xf] %v10339_v28 }
 0x125   :  { %3225 = vst [vmem:[#allocation8 + $0x1a0] sm:$0xf] %v10339_v28  ;;  %3227 = vst [vmem:[#allocation8 + $0x1c8] sm:$0xf] %v10339_v28 }
 0x126   :  { %3229 = vst [vmem:[#allocation8 + $0x1f0] sm:$0xf] %v10339_v28  ;;  %3231 = vst [vmem:[#allocation8 + $0x218] sm:$0xf] %v10339_v28 }
 0x127   :  { %3233 = vst [vmem:[#allocation8 + $0x240] sm:$0xf] %v10339_v28  ;;  %3234 = vst [vmem:[#allocation8 + $0x254] sm:$0xf] %v10339_v28 }
 0x128   :  { %3235 = vst [vmem:[#allocation8 + $0x268] sm:$0xf] %v10339_v28  ;;  %3236 = vst [vmem:[#allocation8 + $0x27c] sm:$0xf] %v10339_v28 }
 0x129   :  { %5237 = vst [vmem:[#allocation9] sm:$0xf] %v10339_v28  ;;  %5238 = vst [vmem:[#allocation9 + $0x14] sm:$0xf] %v10339_v28 }
 0x12a   :  { %5429 = vst [vmem:[#allocation9 + $0x4] sm:$0xf] %v10339_v28  ;;  %5844 = vst [vmem:[#allocation9 + $0x278] sm:$0xf] %v10339_v28 }
 0x12b   :  { %6035 = vst [vmem:[#allocation9 + $0x268] sm:$0xf] %v10339_v28  ;;  %6036 = vst [vmem:[#allocation9 + $0x27c] sm:$0xf] %v10339_v28 }
 0x1b9   :  { %v451_v61 = vpop.f32.mrf.mxu1 }
 0x1ba   :  { %v455_v62 = vmul.f32 0.0025510204, %v451_v61 }
 0x1bb   :  { %v9510_v63 = vpop.f32.mrf.mxu1 }
 0x1bc   :  { %v456_v0 = vmul.f32 %v455_v62, %v455_v62 }
 0x1be   :  { %v458_v1 = vrot.slane %v456_v0, 7 }
 0x1c0   :  { %v460_v2 = vsub.f32 %v455_v62, %v458_v1 }
 0x1c2   :  { %v461_v3 = vadd.f32 1e-05, %v460_v2 }
 0x1c4   :  { %10155 = vrsqrt.f32 %v461_v3 }
 0x1d1   :  { %v10156_v4 = vpop.eup %10155 }
 0x1d2   :  { %v464_v6 = vrot.slane %v10156_v4, 1 }
 0x1d4   :  { %v466_v7 = vmul.f32 %v464_v6, %v455_v62 }
 0x1d6   :  { %v468_v8 = vrot.slane %v466_v7, 7 }
 0x1d8   :  { %v470_v11 = vsel %vm383_vm3, %v464_v6, %v468_v8 }
 0x1d9   :  { %9516 = vmatmul.mubr.msk.f32.vlgmr.msra.gmra.mxu1 %vm471_vm4, %v470_v11 }
 0x1da   :  { %8789 = vmatpush3.bf16.msra.mxu1 %v9758_v9  ;;  %1649 = vmatprep.mubr.bf16.mxu1 %v9785_v37 }
 0x1db   :  { %8790 = vmatprep.subr.bf16.mxu1 %v9759_v10 }
 0x1de   :  { %8791 = vmatpush3.bf16.msra.mxu1 %v9760_v12 }
 0x1df   :  { %8792 = vmatprep.subr.bf16.mxu1 %v9761_v13 }
 0x1e2   :  { %8793 = vmatpush3.bf16.msra.mxu1 %v9762_v14 }
 0x1e3   :  { %8794 = vmatprep.subr.bf16.mxu1 %v9763_v15 }
 0x1e6   :  { %8795 = vmatpush3.bf16.msra.mxu1 %v9764_v16 }
 0x1e7   :  { %8796 = vmatprep.subr.bf16.mxu1 %v9767_v19 }
 0x1ea   :  { %8797 = vmatpush3.bf16.msra.mxu1 %v9768_v20 }
 0x1eb   :  { %8798 = vmatprep.subr.bf16.mxu1 %v9771_v21 }
 0x1ee   :  { %8799 = vmatpush3.bf16.msra.mxu1 %v9772_v23 }
 0x1ef   :  { %8800 = vmatprep.subr.bf16.mxu1 %v10554_v27 }
 0x1f2   :  { %8801 = vmatpush3.bf16.msra.mxu1 %v9776_v29 }
 0x1f3   :  { %8802 = vmatprep.subr.bf16.mxu1 %v9779_v32 }
 0x1f6   :  { %8803 = vmatpush3.bf16.msra.mxu1 %v9780_v33 }
 0x1f7   :  { %9518 = vmatprep.subr.bf16.mxu1 %v9789_v41 }
 0x1f9   :  { %1650 = vmatmul.mubr.bf16.vlgmr.msra.gmra.mxu1 %v9783_v36 }
 0x1fa   :  { %9519 = vmatpush3.bf16.msra.mxu1 %v9789_v41 }
 0x1fb   :  { %9520 = vmatprep.subr.bf16.mxu1 %v9799_v46 }
 0x1fe   :  { %9521 = vmatpush3.bf16.msra.mxu1 %v9799_v46 }
 0x1ff   :  { %9522 = vmatprep.subr.bf16.mxu1 %v9806_v47 }
 0x202   :  { %9523 = vmatpush3.bf16.msra.mxu1 %v9806_v47 }
 0x203   :  { %9524 = vmatprep.subr.bf16.mxu1 %v9813_v48 }
 0x206   :  { %9525 = vmatpush3.bf16.msra.mxu1 %v9813_v48 }
 0x207   :  { %9526 = vmatprep.subr.bf16.mxu1 %v9820_v49 }
 0x20a   :  { %9527 = vmatpush3.bf16.msra.mxu1 %v9820_v49 }
 0x20b   :  { %9528 = vmatprep.subr.bf16.mxu1 %v9827_v50 }
 0x20e   :  { %9529 = vmatpush3.bf16.msra.mxu1 %v9827_v50 }
 0x20f   :  { %9530 = vmatprep.subr.bf16.mxu1 %v9834_v51 }
 0x212   :  { %9531 = vmatpush3.bf16.msra.mxu1 %v9834_v51 }
 0x213   :  { %9532 = vmatprep.subr.bf16.mxu1 %v9840_v52 }
 0x216   :  { %9533 = vmatpush3.bf16.msra.mxu1 %v9840_v52 }
 0x299   :  { %v541_v56 = vpop.f32.mrf.mxu1 }
 0x29a   :  { %v546_v57 = vrot.slane %v541_v56, 1  ;;  %v555_v58 = vrot.slane %v541_v56, %v10499_v43 }
 0x29b   :  { %v9517_v59 = vpop.f32.mrf.mxu1 }
 0x29c   :  { %v548_v61 = vsub.f32 %v382_v53, %v546_v57  ;;  %v556_v62 = vmul.f32 %v555_v58, %v10505_v54  ;;  %v565_v0 = vmul.f32 %v555_v58, %v10509_v60  ;;  %v570_v1 = vmul.f32 %v555_v58, %v10507_v55  ;;  %v1095_v53 = vld [vmem:[#allocation7 + $0x120] sm:$0xff] }
 0x29d   :  { %v575_v2 = vmul.f32 %v555_v58, %v10519_v5  ;;  %v580_v3 = vmul.f32 %v555_v58, %v10525_v17  ;;  %v585_v4 = vmul.f32 %v555_v58, %v10532_v25  ;;  %v590_v6 = vmul.f32 %v555_v58, %v10527_v18 }
 0x29e   :  { %v560_v63 = vrot.slane %v548_v61, %v10499_v43  ;;  %v7733_v57 = vcombine.high %v1095_v53, %v1095_v53 }
 0x2a0   :  { %v561_v7 = vadd.f32 %v560_v63, %v556_v62  ;;  %v566_v8 = vadd.f32 %v565_v0, %v560_v63  ;;  %v571_v9 = vadd.f32 %v570_v1, %v560_v63  ;;  %v576_v10 = vadd.f32 %v575_v2, %v560_v63 }
 0x2a1   :  { %v581_v11 = vadd.f32 %v580_v3, %v560_v63  ;;  %v586_v54 = vadd.f32 %v585_v4, %v560_v63  ;;  %v591_v12 = vadd.f32 %v590_v6, %v560_v63  ;;  %v7732_v62 = vcombine.low %v1095_v53, %v1095_v53  ;;  %v9849_v6 = vld [vmem:[#allocation7 + $0x100] ss:$20 sps:$4 sm:$0xff]  }
 0x2a2   :  { %v562_v13 = vmax.f32 %v561_v7, 0.0  ;;  %v567_v14 = vmax.f32 %v566_v8, 0.0  ;;  %v572_v60 = vmax.f32 %v571_v9, 0.0  ;;  %v577_v15 = vmax.f32 %v576_v10, 0.0  ;;  %v9850_v8 = vld [vmem:[#allocation7 + $0x128] ss:$0 sps:$4 sm:$0xff]  }
 0x2a3   :  { %v582_v55 = vmax.f32 %v581_v11, 0.0  ;;  %v587_v16 = vmax.f32 %v586_v54, 0.0  ;;  %v592_v5 = vmax.f32 %v591_v12, 0.0  ;;  %v2005_v9 = vld [vmem:[%s12237_s4 + $0xf8] sm:$0xff]  ;;  %v2004_v10 = vld [vmem:[%s12237_s4 + $0xf0] sm:$0xff]  ;;  %v2003_v11 = vld [vmem:[%s12237_s4 + $0xe8] sm:$0xff] }
 0x2a4   :  { %v8373_v19 = vpack.c.bf16 %v562_v13, %v562_v13  ;;  %v8375_v17 = vpack.c.bf16 %v567_v14, %v567_v14  ;;  %v8377_v20 = vpack.c.bf16 %v572_v60, %v572_v60  ;;  %v8379_v25 = vpack.c.bf16 %v577_v15, %v577_v15  ;;  %v2002_v54 = vld [vmem:[%s12237_s4 + $0xe0] sm:$0xff]  ;;  %v2001_v12 = vld [vmem:[%s12237_s4 + $0xd8] sm:$0xff]  ;;  %v2000_v13 = vld [vmem:[%s12237_s4 + $0xd0] sm:$0xff] }
 0x2a5   :  { %v8381_v21 = vpack.c.bf16 %v582_v55, %v582_v55  ;;  %v8383_v18 = vpack.c.bf16 %v587_v16, %v587_v16  ;;  %v8399_v23 = vpack.c.bf16 %v592_v5, %v592_v5  ;;  %v1999_v14 = vld [vmem:[%s12237_s4 + $0xc8] sm:$0xff]  ;;  %v1998_v60 = vld [vmem:[%s12237_s4 + $0xc0] sm:$0xff]  ;;  %v1997_v15 = vld [vmem:[%s12237_s4 + $0xb8] sm:$0xff] }
 0x2a6   :  { %1040 = vst [vmem:[#allocation7 + $0x4c] sm:$0xf] %v8377_v20  ;;  %676 = vst [vmem:[#allocation7 + $0x3c] sm:$0xf] %v8373_v19  ;;  %v1996_v55 = vld [vmem:[%s12237_s4 + $0xb0] sm:$0xff]  ;;  %v1995_v16 = vld [vmem:[%s12237_s4 + $0xa8] sm:$0xff] }
 0x2a7   :  { %678 = vst [vmem:[#allocation7 + $0x64] sm:$0xf] %v8375_v17  ;;  %680 = vst [vmem:[#allocation7 + $0x8c] sm:$0xf] %v8377_v20  ;;  %v1994_v5 = vld [vmem:[%s12237_s4 + $0xa0] sm:$0xff] }
 0x2a8   :  { %682 = vst [vmem:[#allocation7 + $0xb4] sm:$0xf] %v8379_v25  ;;  %766 = vst [vmem:[#allocation7 + $0x2c] sm:$0xf] %v8373_v19 }
 0x2a9   :  { %768 = vst [vmem:[#allocation7 + $0x54] sm:$0xf] %v8375_v17  ;;  %770 = vst [vmem:[#allocation7 + $0x7c] sm:$0xf] %v8377_v20 }
 0x2aa   :  { %772 = vst [vmem:[#allocation7 + $0xa4] sm:$0xf] %v8379_v25  ;;  %856 = vst [vmem:[#allocation7 + $0x1c] sm:$0xf] %v8373_v19 }
 0x2ab   :  { %858 = vst [vmem:[#allocation7 + $0x44] sm:$0xf] %v8375_v17  ;;  %860 = vst [vmem:[#allocation7 + $0x6c] sm:$0xf] %v8377_v20 }
 0x2ac   :  { %862 = vst [vmem:[#allocation7 + $0x94] sm:$0xf] %v8379_v25  ;;  %946 = vst [vmem:[#allocation7 + $0xc] sm:$0xf] %v8373_v19  ;;  %v1993_v19 = vld [vmem:[%s12237_s4 + $0x98] sm:$0xff] }
 0x2ad   :  { %948 = vst [vmem:[#allocation7 + $0x34] sm:$0xf] %v8375_v17  ;;  %950 = vst [vmem:[#allocation7 + $0x5c] sm:$0xf] %v8377_v20  ;;  %v9798_v28 = vld [vmem:[#allocation7 + $0x28] ss:$20 sps:$4 sm:$0xff]  }
 0x2ae   :  { %952 = vst [vmem:[#allocation7 + $0x84] sm:$0xf] %v8379_v25  ;;  %1038 = vst [vmem:[#allocation7 + $0x24] sm:$0xf] %v8375_v17  ;;  %v9804_v31 = vld [vmem:[#allocation7 + $0x50] ss:$20 sps:$4 sm:$0xff]  }
 0x2af   :  { %1042 = vst [vmem:[#allocation7 + $0x74] sm:$0xf] %v8379_v25  ;;  %684 = vst [vmem:[#allocation7 + $0xdc] sm:$0xf] %v8381_v21  ;;  %v9793_v24 = vld [vmem:[#allocation7 + $0x2c] ss:$20 sps:$4 sm:$0xff]  }
 0x2b0   :  { %686 = vst [vmem:[#allocation7 + $0x104] sm:$0xf] %v8383_v18  ;;  %774 = vst [vmem:[#allocation7 + $0xcc] sm:$0xf] %v8381_v21  ;;  %1657 = vmatprep.mubr.bf16.mxu1 %v9793_v24  ;;  %v9800_v29 = vld [vmem:[#allocation7 + $0x54] ss:$20 sps:$4 sm:$0xff]  }
 0x2b1   :  { %776 = vst [vmem:[#allocation7 + $0xf4] sm:$0xf] %v8383_v18  ;;  %778 = vst [vmem:[#allocation7 + $0x11c] sm:$0xf] %v8399_v23  ;;  %v9795_v26 = vld [vmem:[#allocation7 + $0x8] ss:$20 sps:$4 sm:$0xff]   ;;  %1658 = vmatmul.mubr.bf16.gmra.mxu1 %v9798_v28 }
 0x2b2   :  { %864 = vst [vmem:[#allocation7 + $0xbc] sm:$0xf] %v8381_v21  ;;  %866 = vst [vmem:[#allocation7 + $0xe4] sm:$0xf] %v8383_v18  ;;  %1665 = vmatprep.mubr.bf16.mxu1 %v9800_v29  ;;  %v9805_v32 = vld [vmem:[#allocation7 + $0x30] ss:$20 sps:$4 sm:$0xff]  }
 0x2b3   :  { %868 = vst [vmem:[#allocation7 + $0x10c] sm:$0xf] %v8399_v23  ;;  %954 = vst [vmem:[#allocation7 + $0xac] sm:$0xf] %v8381_v21  ;;  %v9797_v27 = vld [vmem:[#allocation7 + $0xc] ss:$20 sps:$4 sm:$0xff]  }
 0x2b4   :  { %956 = vst [vmem:[#allocation7 + $0xd4] sm:$0xf] %v8383_v18  ;;  %958 = vst [vmem:[#allocation7 + $0xfc] sm:$0xf] %v8399_v23  ;;  %1745 = vmatprep.mubr.bf16.mxu0 %v9797_v27  ;;  %v9802_v30 = vld [vmem:[#allocation7 + $0x34] ss:$20 sps:$4 sm:$0xff]  }
 0x2b5   :  { %1044 = vst [vmem:[#allocation7 + $0x9c] sm:$0xf] %v8381_v21  ;;  %1046 = vst [vmem:[#allocation7 + $0xc4] sm:$0xf] %v8383_v18  ;;  %1746 = vmatmul.mubr.bf16.vlgmr.msra.gmra.mxu0 %v9795_v26  ;;  %v9807_v33 = vld [vmem:[#allocation7 + $0x7c] ss:$20 sps:$4 sm:$0xff]  }
 0x2b6   :  { %1048 = vst [vmem:[#allocation7 + $0xec] sm:$0xf] %v8399_v23  ;;  %1753 = vmatprep.mubr.bf16.mxu0 %v9802_v30  ;;  %v9809_v34 = vld [vmem:[#allocation7 + $0x5c] ss:$20 sps:$4 sm:$0xff]   ;;  %v9811_v35 = vld [vmem:[#allocation7 + $0x78] ss:$20 sps:$4 sm:$0xff]   ;;  %9551 = vmatpush3.msra.mxu0 %v2005_v9 }
 0x2b7   :  { %v9812_v36 = vld [vmem:[#allocation7 + $0x58] ss:$20 sps:$4 sm:$0xff]   ;;  %v9818_v39 = vld [vmem:[#allocation7 + $0xa0] ss:$20 sps:$4 sm:$0xff]   ;;  %v9825_v44 = vld [vmem:[#allocation7 + $0xc8] ss:$20 sps:$4 sm:$0xff]   ;;  %9552 = vmatprep.subr.mxu0 %v12240_v22 }
 0x2b8   :  { %v9814_v37 = vld [vmem:[#allocation7 + $0xa4] ss:$20 sps:$4 sm:$0xff]   ;;  %v9819_v40 = vld [vmem:[#allocation7 + $0x80] ss:$20 sps:$4 sm:$0xff]   ;;  %9553 = vmatpush3.msra.mxu0 %v2004_v10  ;;  %v1991_v20 = vld [vmem:[%s12237_s4 + $0x88] sm:$0xff] }
 0x2b9   :  { %1666 = vmatmul.mubr.bf16.gmra.mxu1 %v9804_v31  ;;  %v9816_v38 = vld [vmem:[#allocation7 + $0x84] ss:$20 sps:$4 sm:$0xff]   ;;  %v9821_v41 = vld [vmem:[#allocation7 + $0xcc] ss:$20 sps:$4 sm:$0xff]   ;;  %v9826_v45 = vld [vmem:[#allocation7 + $0xa8] ss:$20 sps:$4 sm:$0xff]   ;;  %v8804_v61 = vpop.f32.mrf.mxu1  ;;  %9554 = vmatprep.subr.mxu0 %v12240_v22 }
 0x2ba   :  { %1673 = vmatprep.mubr.bf16.mxu1 %v9807_v33  ;;  %v9823_v42 = vld [vmem:[#allocation7 + $0xac] ss:$20 sps:$4 sm:$0xff]   ;;  %v9828_v46 = vld [vmem:[#allocation7 + $0xf4] ss:$20 sps:$4 sm:$0xff]   ;;  %v1094_v48 = vld [vmem:[#allocation7 + $0x118] sm:$0xff]  ;;  %9555 = vmatpush3.msra.mxu0 %v2003_v11 }
 0x2bb   :  { %v9830_v47 = vld [vmem:[#allocation7 + $0xd4] ss:$20 sps:$4 sm:$0xff]   ;;  %v9832_v49 = vld [vmem:[#allocation7 + $0xf0] ss:$20 sps:$4 sm:$0xff]   ;;  %v7731_v51 = vcombine.high %v1094_v48, %v1094_v48  ;;  %v7730_v56 = vcombine.low %v1094_v48, %v1094_v48  ;;  %v9839_v58 = vld [vmem:[#allocation7 + $0xf8] ss:$20 sps:$4 sm:$0xff]   ;;  %v8805_v63 = vpop.f32.mrf.mxu1  ;;  %9556 = vmatprep.subr.mxu0 %v12240_v22 }
 0x2bc   :  { %v9833_v50 = vld [vmem:[#allocation7 + $0xd0] ss:$20 sps:$4 sm:$0xff]   ;;  %v9844_v0 = vld [vmem:[#allocation7 + $0x38] ss:$20 sps:$4 sm:$0xff]   ;;  %v10705_v1 = vadd.f32 %v8805_v63, %v8804_v61  ;;  %v9845_v2 = vld [vmem:[#allocation7 + $0x60] ss:$20 sps:$4 sm:$0xff]   ;;  %9557 = vmatpush3.msra.mxu0 %v2002_v54 }
 0x2bd   :  { %1754 = vmatmul.mubr.bf16.gmra.mxu0 %v9805_v32  ;;  %v9836_v52 = vld [vmem:[#allocation7 + $0xfc] ss:$20 sps:$4 sm:$0xff]   ;;  %v9848_v7 = vld [vmem:[#allocation7 + $0xd8] ss:$20 sps:$4 sm:$0xff]   ;;  %9558 = vmatprep.subr.mxu0 %v12240_v22  ;;  %v1990_v25 = vld [vmem:[%s12237_s4 + $0x80] sm:$0xff]  ;;  %v10773_v21 = vpop.f32.mrf.mxu1 }
 0x2be   :  { %1761 = vmatprep.mubr.bf16.mxu0 %v9809_v34  ;;  %v9841_v59 = vld [vmem:[#allocation7 + $0x10] ss:$20 sps:$4 sm:$0xff]   ;;  %v9846_v3 = vld [vmem:[#allocation7 + $0x88] ss:$20 sps:$4 sm:$0xff]   ;;  %9559 = vmatpush3.msra.mxu0 %v2001_v12 }
 0x2bf   :  { %v9847_v4 = vld [vmem:[#allocation7 + $0xb0] ss:$20 sps:$4 sm:$0xff]   ;;  %9560 = vmatprep.subr.mxu0 %v12240_v22  ;;  %v10775_v18 = vpop.f32.mrf.mxu1 }
 0x2c0   :  { %9561 = vmatpush3.msra.mxu0 %v2000_v13  ;;  %v1992_v17 = vld [vmem:[%s12237_s4 + $0x90] sm:$0xff] }
 0x2c1   :  { %1674 = vmatmul.mubr.bf16.gmra.mxu1 %v9811_v35  ;;  %9562 = vmatprep.subr.mxu0 %v12240_v22 }
 0x2c2   :  { %1681 = vmatprep.mubr.bf16.mxu1 %v9814_v37  ;;  %9563 = vmatpush3.msra.mxu0 %v1999_v14 }
 0x2c3   :  { %9564 = vmatprep.subr.mxu0 %v12240_v22 }
 0x2c4   :  { %9565 = vmatpush3.msra.mxu0 %v1998_v60 }
 0x2c5   :  { %1762 = vmatmul.mubr.bf16.gmra.mxu0 %v9812_v36  ;;  %9566 = vmatprep.subr.mxu0 %v12240_v22 }
 0x2c6   :  { %1769 = vmatprep.mubr.bf16.mxu0 %v9816_v38  ;;  %9567 = vmatpush3.msra.mxu0 %v1997_v15 }
 0x2c7   :  { %9568 = vmatprep.subr.mxu0 %v12240_v22 }
 0x2c8   :  { %9569 = vmatpush3.msra.mxu0 %v1996_v55 }
 0x2c9   :  { %1682 = vmatmul.mubr.bf16.gmra.mxu1 %v9818_v39  ;;  %9570 = vmatprep.subr.mxu0 %v12240_v22 }
 0x2ca   :  { %1689 = vmatprep.mubr.bf16.mxu1 %v9821_v41  ;;  %9571 = vmatpush3.msra.mxu0 %v1995_v16 }
 0x2cb   :  { %9572 = vmatprep.subr.mxu0 %v12240_v22 }
 0x2cc   :  { %9573 = vmatpush3.msra.mxu0 %v1994_v5 }
 0x2cd   :  { %1770 = vmatmul.mubr.bf16.gmra.mxu0 %v9819_v40  ;;  %9574 = vmatprep.subr.mxu0 %v12240_v22 }
 0x2ce   :  { %1777 = vmatprep.mubr.bf16.mxu0 %v9823_v42  ;;  %9575 = vmatpush3.msra.mxu0 %v1993_v19 }
 0x2cf   :  { %9576 = vmatprep.subr.mxu0 %v12240_v22 }
 0x2d0   :  { %9577 = vmatpush3.msra.mxu0 %v1992_v17 }
 0x2d1   :  { %1690 = vmatmul.mubr.bf16.gmra.mxu1 %v9825_v44  ;;  %9578 = vmatprep.subr.mxu0 %v12240_v22 }
 0x2d2   :  { %1697 = vmatprep.mubr.bf16.mxu1 %v9828_v46  ;;  %9579 = vmatpush3.msra.mxu0 %v1991_v20 }
 0x2d3   :  { %9580 = vmatprep.subr.mxu0 %v12240_v22 }
 0x2d4   :  { %9581 = vmatpush3.msra.mxu0 %v1990_v25 }
 0x2d5   :  { %1778 = vmatmul.mubr.bf16.gmra.mxu0 %v9826_v45  ;;  %9585 = vmatprep.subr.mxu0 %v12240_v22 }
 0x2d6   :  { %1785 = vmatprep.mubr.bf16.mxu0 %v9830_v47 }
 0x2d9   :  { %1698 = vmatmul.mubr.bf16.gmra.mxu1 %v9832_v49 }
 0x2da   :  { %1705 = vmatprep.mubr.bf16.mxu1 %v7731_v51 }
 0x2dd   :  { %1786 = vmatmul.mubr.bf16.gmra.mxu0 %v9833_v50 }
 0x2de   :  { %1793 = vmatprep.mubr.bf16.mxu0 %v9836_v52 }
 0x2e1   :  { %1706 = vmatmul.mubr.bf16.gmra.mxu1 %v7730_v56 }
 0x2e2   :  { %9534 = vmatprep.mubr.bf16.mxu1 %v9841_v59 }
 0x2e5   :  { %1794 = vmatmul.mubr.bf16.gmra.mxu0 %v9839_v58 }
 0x2e6   :  { %1801 = vmatprep.mubr.bf16.mxu0 %v7733_v57 }
 0x2e9   :  { %9535 = vmatmul.mubr.bf16.vlgmr.msra.gmra.mxu1 %v9844_v0 }
 0x2ea   :  { %9538 = vmatprep.mubr.bf16.mxu1 %v9845_v2 }
 0x2ed   :  { %1802 = vmatmul.mubr.bf16.gmra.mxu0 %v7732_v62 }
 0x2ee   :  { %9582 = vmatprep.mubr.msk.f32.mxu0 %vm10338_vm2, %v12240_v22 }
 0x2f1   :  { %9539 = vmatmul.mubr.bf16.gmra.mxu1 %v9846_v3 }
 0x2f2   :  { %9542 = vmatprep.mubr.bf16.mxu1 %v9847_v4 }
 0x2f9   :  { %9543 = vmatmul.mubr.bf16.gmra.mxu1 %v9848_v7 }
 0x2fa   :  { %9546 = vmatprep.mubr.bf16.mxu1 %v9849_v6 }
 0x301   :  { %9547 = vmatmul.mubr.bf16.gmra.mxu1 %v9850_v8 }
 0x371   :  { %v10777_v23 = vpop.f32.mrf.mxu1 }
 0x373   :  { %v8811_v26 = vpop.f32.mrf.mxu1 }
 0x375   :  { %v8868_v24 = vpop.f32.mrf.mxu0  ;;  %v10779_v28 = vpop.f32.mrf.mxu1 }
 0x377   :  { %v8869_v27 = vpop.f32.mrf.mxu0  ;;  %v10781_v30 = vpop.f32.mrf.mxu1 }
 0x378   :  { %v8870_v19 = vadd.f32 %v8869_v27, %v8868_v24  ;;  %v8815_v27 = vadd.f32 %v10781_v30, %v10779_v28 }
 0x379   :  { %v8871_v29 = vpop.f32.mrf.mxu0  ;;  %v10783_v32 = vpop.f32.mrf.mxu1 }
 0x37b   :  { %v8872_v31 = vpop.f32.mrf.mxu0  ;;  %v10785_v34 = vpop.f32.mrf.mxu1 }
 0x37c   :  { %v8873_v25 = vadd.f32 %v8872_v31, %v8871_v29 }
 0x37d   :  { %v8874_v33 = vpop.f32.mrf.mxu0  ;;  %v10787_v36 = vpop.f32.mrf.mxu1 }
 0x37f   :  { %v8875_v35 = vpop.f32.mrf.mxu0  ;;  %v10789_v38 = vpop.f32.mrf.mxu1 }
 0x380   :  { %v8876_v22 = vadd.f32 %v8875_v35, %v8874_v33 }
 0x381   :  { %v8877_v37 = vpop.f32.mrf.mxu0  ;;  %v10791_v40 = vpop.f32.mrf.mxu1 }
 0x383   :  { %v8878_v39 = vpop.f32.mrf.mxu0  ;;  %v10793_v42 = vpop.f32.mrf.mxu1 }
 0x385   :  { %v8880_v41 = vpop.f32.mrf.mxu0  ;;  %v10795_v45 = vpop.f32.mrf.mxu1 }
 0x387   :  { %v8881_v44 = vpop.f32.mrf.mxu0  ;;  %v10797_v47 = vpop.f32.mrf.mxu1 }
 0x389   :  { %v8883_v46 = vpop.f32.mrf.mxu0  ;;  %v10799_v49 = vpop.f32.mrf.mxu1 }
 0x38b   :  { %v8884_v48 = vpop.f32.mrf.mxu0  ;;  %v10801_v51 = vpop.f32.mrf.mxu1 }
 0x38d   :  { %v8886_v50 = vpop.f32.mrf.mxu0  ;;  %v10803_v53 = vpop.f32.mrf.mxu1 }
 0x38f   :  { %v8887_v52 = vpop.f32.mrf.mxu0  ;;  %v10805_v57 = vpop.f32.mrf.mxu1 }
 0x391   :  { %v8889_v56 = vpop.f32.mrf.mxu0  ;;  %v10807_v59 = vpop.f32.mrf.mxu1 }
 0x393   :  { %v8890_v58 = vpop.f32.mrf.mxu0  ;;  %v10811_v62 = vpop.f32.mrf.mxu1 }
 0x395   :  { %v10809_v61 = vpop.f32.mrf.mxu0  ;;  %v10813_v0 = vpop.f32.mrf.mxu1 }
 0x397   :  { %v8893_v63 = vpop.f32.mrf.mxu0  ;;  %v10817_v3 = vpop.f32.mrf.mxu1 }
 0x399   :  { %v10815_v2 = vpop.f32.mrf.mxu0  ;;  %v10821_v6 = vpop.f32.mrf.mxu1 }
 0x39b   :  { %v10819_v4 = vpop.f32.mrf.mxu0  ;;  %v10825_v8 = vpop.f32.mrf.mxu1 }
 0x39c   :  { %12247 = vst [vmem:[#allocation17_spill] sm:$0xff] %v10825_v8 }
 0x39d   :  { %v10823_v7 = vpop.f32.mrf.mxu0  ;;  %v10829_v10 = vpop.f32.mrf.mxu1 }
 0x39e   :  { %12248 = vst [vmem:[#allocation18_spill] sm:$0xff] %v10829_v10  ;;  %v8879_v10 = vadd.f32 %v8878_v39, %v8877_v37  ;;  %v8885_v39 = vadd.f32 %v8884_v48, %v8883_v46  ;;  %v8824_v46 = vadd.f32 %v10793_v42, %v10791_v40  ;;  %v8891_v48 = vadd.f32 %v8890_v58, %v8889_v56 }
 0x39f   :  { %v10827_v9 = vpop.f32.mrf.mxu0  ;;  %v10833_v54 = vpop.f32.mrf.mxu1  ;;  %v8830_v58 = vadd.f32 %v10801_v51, %v10799_v49 }
 0x3a0   :  { %12249 = vst [vmem:[#allocation19_spill] sm:$0xff] %v10833_v54 }
 0x3a1   :  { %v10831_v11 = vpop.f32.mrf.mxu0  ;;  %v10837_v13 = vpop.f32.mrf.mxu1 }
 0x3a2   :  { %12250 = vst [vmem:[#allocation20_spill] sm:$0xff] %v10837_v13  ;;  %v8809_v13 = vadd.f32 %v10775_v18, %v10773_v21  ;;  %v8818_v21 = vadd.f32 %v10785_v34, %v10783_v32  ;;  %v8821_v34 = vadd.f32 %v10789_v38, %v10787_v36 }
 0x3a3   :  { %v10835_v12 = vpop.f32.mrf.mxu0  ;;  %v10841_v60 = vpop.f32.mrf.mxu1 }
 0x3a4   :  { %12251 = vst [vmem:[#allocation21_spill] sm:$0xff] %v10841_v60  ;;  %v8812_v60 = vadd.f32 %v8811_v26, %v10777_v23  ;;  %v1751_v33 = vadd.f32 %v8873_v25, %v8809_v13  ;;  %v1759_v26 = vadd.f32 %v8879_v10, %v8815_v27  ;;  %v1767_v56 = vadd.f32 %v8885_v39, %v8821_v34 }
 0x3a5   :  { %v10839_v14 = vpop.f32.mrf.mxu0  ;;  %v8849_v55 = vpop.f32.mrf.mxu1  ;;  %v8897_v27 = vadd.f32 %v10819_v4, %v10815_v2  ;;  %v8903_v2 = vadd.f32 %v10835_v12, %v10831_v11 }
 0x3a6   :  { %v1748_v55 = vadd.f32 %v8870_v19, %v10705_v1  ;;  %v1756_v29 = vadd.f32 %v8876_v22, %v8812_v60  ;;  %v8827_v60 = vadd.f32 %v10797_v47, %v10795_v45 }
 0x3a7   :  { %v10843_v15 = vpop.f32.mrf.mxu0  ;;  %v8850_v5 = vpop.f32.mrf.mxu1 }
 0x3a8   :  { %v8882_v5 = vadd.f32 %v8881_v44, %v8880_v41  ;;  %v8888_v41 = vadd.f32 %v8887_v52, %v8886_v50 }
 0x3a9   :  { %v10845_v16 = vpop.f32.mrf.mxu0  ;;  %v9536_v20 = vpop.f32.mrf.mxu1 }
 0x3aa   :  { %v10863_v23 = vadd.f32 %v9536_v20, %v1756_v29  ;;  %v1764_v19 = vadd.f32 %v8882_v5, %v8818_v21  ;;  %v8894_v20 = vadd.f32 %v8893_v63, %v10809_v61  ;;  %v1772_v25 = vadd.f32 %v8888_v41, %v8824_v46 }
 0x3ab   :  { %v10847_v17 = vpop.f32.mrf.mxu0  ;;  %v1843_v54 = vpop.f32.mrf.mxu1  ;;  %v1775_v5 = vadd.f32 %v8891_v48, %v8827_v60  ;;  %v8900_v29 = vadd.f32 %v10827_v9, %v10823_v7 }
 0x3ac   :  { %v10859_v31 = vadd.f32 %v1843_v54, %v1748_v55  ;;  %v1957_v52 = vmul.f32 %v10863_v23, %v10863_v23  ;;  %v1780_v49 = vadd.f32 %v8894_v20, %v8830_v58  ;;  %v8909_v48 = vadd.f32 %v10847_v17, %v10845_v16 }
 0x3ad   :  { %v10849_v43 = vpop.f32.mrf.mxu0  ;;  %v9537_v24 = vpop.f32.mrf.mxu1 }
 0x3ae   :  { %v1955_v22 = vmul.f32 %v10859_v31, %v10859_v31  ;;  %v10869_v28 = vadd.f32 %v9537_v24, %v1759_v26  ;;  %v8833_v26 = vadd.f32 %v10805_v57, %v10803_v53  ;;  %v8906_v53 = vadd.f32 %v10843_v15, %v10839_v14 }
 0x3af   :  { %v10854_v8 = vpop.f32.mrf.mxu0  ;;  %v1846_v18 = vpop.f32.mrf.mxu1 }
 0x3b0   :  { %v10865_v37 = vadd.f32 %v1846_v18, %v1751_v33  ;;  %v1958_v38 = vmul.f32 %v10869_v28, %v10869_v28 }
 0x3b1   :  { %v8913_v35 = vpop.f32.mrf.mxu0  ;;  %v9540_v44 = vpop.f32.mrf.mxu1 }
 0x3b2   :  { %v1935_v30 = vadd.f32 %v10865_v37, %v10859_v31  ;;  %v1956_v32 = vmul.f32 %v10865_v37, %v10865_v37  ;;  %v10892_v55 = vadd.f32 %v9540_v44, %v1772_v25  ;;  %v8839_v44 = vadd.f32 %v10817_v3, %v10813_v0  ;;  %v12253_v25 = vld [vmem:[#allocation18_spill] sm:$0xff] }
 0x3b3   :  { %v8914_v1 = vpop.f32.mrf.mxu0  ;;  %v1859_v50 = vpop.f32.mrf.mxu1 }
 0x3b4   :  { %v1936_v10 = vadd.f32 %v1935_v30, %v10863_v23  ;;  %v1970_v54 = vadd.f32 %v1956_v32, %v1955_v22  ;;  %v10882_v13 = vadd.f32 %v1859_v50, %v1764_v19  ;;  %v8836_v1 = vadd.f32 %v10811_v62, %v10807_v59  ;;  %v12252_v22 = vld [vmem:[#allocation17_spill] sm:$0xff] }
 0x3b5   :  { %v9541_v36 = vpop.f32.mrf.mxu1  ;;  %v1961_v7 = vmul.f32 %v10892_v55, %v10892_v55  ;;  %v1783_v19 = vadd.f32 %v8897_v27, %v8833_v26  ;;  %v8842_v30 = vadd.f32 %v12252_v22, %v10821_v6  ;;  %v1791_v34 = vadd.f32 %v8903_v2, %v8839_v44 }
 0x3b6   :  { %v1971_v40 = vadd.f32 %v1970_v54, %v1957_v52  ;;  %v1937_v42 = vadd.f32 %v1936_v10, %v10869_v28  ;;  %v1959_v47 = vmul.f32 %v10882_v13, %v10882_v13  ;;  %v10903_v35 = vadd.f32 %v9541_v36, %v1775_v5  ;;  %v12254_v36 = vld [vmem:[#allocation19_spill] sm:$0xff] }
 0x3b7   :  { %v1862_v24 = vpop.f32.mrf.mxu1  ;;  %v1788_v57 = vadd.f32 %v8900_v29, %v8836_v1  ;;  %v8912_v50 = vadd.f32 %v10854_v8, %v10849_v43  ;;  %v1796_v6 = vadd.f32 %v8906_v53, %v8842_v30 }
 0x3b8   :  { %v1938_v45 = vadd.f32 %v1937_v42, %v10882_v13  ;;  %v1972_v61 = vadd.f32 %v1971_v40, %v1958_v38  ;;  %v10897_v63 = vadd.f32 %v1862_v24, %v1767_v56  ;;  %v1962_v62 = vmul.f32 %v10903_v35, %v10903_v35  ;;  %v12255_v40 = vld [vmem:[#allocation20_spill] sm:$0xff]  ;;  %v12256_v42 = vld [vmem:[#allocation21_spill] sm:$0xff] }
 0x3b9   :  { %v9544_v33 = vpop.f32.mrf.mxu1  ;;  %v8845_v38 = vadd.f32 %v12254_v36, %v12253_v25  ;;  %v8848_v56 = vadd.f32 %v12256_v42, %v12255_v40  ;;  %v9856_v25 = vld [vmem:[#allocation10 + $0x168] sm:$0xff]   ;;  %v9857_v36 = vld [vmem:[#allocation10 + $0x1a0] sm:$0xff]   ;;  %v9861_v40 = vld [vmem:[#allocation10 + $0x198] sm:$0xff]  }
 0x3ba   :  { %v1973_v51 = vadd.f32 %v1972_v61, %v1959_v47  ;;  %v1939_v21 = vadd.f32 %v1938_v45, %v10897_v63  ;;  %v1960_v18 = vmul.f32 %v10897_v63, %v10897_v63  ;;  %v10928_v32 = vadd.f32 %v9544_v33, %v1788_v57  ;;  %v9862_v42 = vld [vmem:[#allocation10 + $0x158] sm:$0xff]  }
 0x3bb   :  { %v1875_v4 = vpop.f32.mrf.mxu1  ;;  %v1804_v5 = vadd.f32 %v8912_v50, %v8848_v56  ;;  %v1799_v27 = vadd.f32 %v8909_v48, %v8845_v38  ;;  %v2006_v48 = vld [vmem:[%s12238_s5 + $0x10] sm:$0xff]  ;;  %v9851_v50 = vld [vmem:[#allocation10 + $0x1b8] sm:$0xff]   ;;  %v9865_v56 = vld [vmem:[#allocation10 + $0x190] sm:$0xff]  }
 0x3bc   :  { %v1940_v9 = vadd.f32 %v1939_v21, %v10892_v55  ;;  %v1974_v39 = vadd.f32 %v1973_v51, %v1960_v18  ;;  %v10917_v41 = vadd.f32 %v1875_v4, %v1780_v49  ;;  %v1965_v43 = vmul.f32 %v10928_v32, %v10928_v32  ;;  %8952 = vmatprep.subr.bf16.mxu1 %v9851_v50  ;;  %v9858_v38 = vld [vmem:[#allocation10 + $0x160] sm:$0xff]   ;;  %v9912_v50 = vld [vmem:[#allocation10 + $0x268] sm:$0xff]  }
 0x3bd   :  { %v9545_v59 = vpop.f32.mrf.mxu1 }
 0x3be   :  { %v1975_v11 = vadd.f32 %v1974_v39, %v1961_v7  ;;  %v1941_v12 = vadd.f32 %v1940_v9, %v10903_v35  ;;  %v1963_v3 = vmul.f32 %v10917_v41, %v10917_v41  ;;  %v10939_v54 = vadd.f32 %v9545_v59, %v1791_v34 }
 0x3bf   :  { %v1878_v46 = vpop.f32.mrf.mxu1 }
 0x3c0   :  { %v1942_v0 = vadd.f32 %v1941_v12, %v10917_v41  ;;  %v1976_v14 = vadd.f32 %v1975_v11, %v1962_v62  ;;  %v10933_v15 = vadd.f32 %v1878_v46, %v1783_v19  ;;  %v1966_v45 = vmul.f32 %v10939_v54, %v10939_v54 }
 0x3c1   :  { %v9548_v52 = vpop.f32.mrf.mxu1 }
 0x3c2   :  { %v1977_v10 = vadd.f32 %v1976_v14, %v1963_v3  ;;  %v1943_v60 = vadd.f32 %v1942_v0, %v10933_v15  ;;  %v1964_v20 = vmul.f32 %v10933_v15, %v10933_v15  ;;  %v10956_v29 = vadd.f32 %v9548_v52, %v1804_v5  ;;  %v2007_v14 = vld [vmem:[%s12238_s5 + $0x18] sm:$0xff]  ;;  %v9852_v52 = vld [vmem:[#allocation10 + $0x178] sm:$0xff]  }
 0x3c3   :  { %v1891_v16 = vpop.f32.mrf.mxu1  ;;  %v12257_v3 = vmov 0.0   ;;  %8953 = vmatpush3.bf16.msra.mxu1 %v9852_v52  ;;  %v9925_v52 = vld [vmem:[#allocation10 + $0x260] sm:$0xff]  }
 0x3c4   :  { %v1944_v8 = vadd.f32 %v1943_v60, %v10928_v32  ;;  %v1978_v17 = vadd.f32 %v1977_v10, %v1964_v20  ;;  %v10951_v58 = vadd.f32 %v1891_v16, %v1796_v6  ;;  %v1969_v4 = vmul.f32 %v10956_v29, %v10956_v29  ;;  %v9853_v6 = vld [vmem:[#allocation10 + $0x1b0] sm:$0xff]   ;;  %v9859_v10 = vld [vmem:[#allocation10 + $0x238] sm:$0xff]   ;;  %v9855_v20 = vld [vmem:[#allocation10 + $0x1a8] sm:$0xff]  }
 0x3c5   :  { %v9549_v24 = vpop.f32.mrf.mxu1  ;;  %v9854_v60 = vld [vmem:[#allocation10 + $0x170] sm:$0xff]   ;;  %8954 = vmatprep.subr.bf16.mxu1 %v9853_v6  ;;  %v9938_v6 = vld [vmem:[#allocation10 + $0x258] sm:$0xff]  }
 0x3c6   :  { %v1979_v47 = vadd.f32 %v1978_v17, %v1965_v43  ;;  %v1945_v61 = vadd.f32 %v1944_v8, %v10939_v54  ;;  %v1967_v51 = vmul.f32 %v10951_v58, %v10951_v58 }
 0x3c7   :  { %v1894_v33 = vpop.f32.mrf.mxu1  ;;  %8955 = vmatpush3.bf16.msra.mxu1 %v9854_v60  ;;  %v9964_v60 = vld [vmem:[#allocation10 + $0x248] sm:$0xff]  }
 0x3c8   :  { %v1946_v49 = vadd.f32 %v1945_v61, %v10951_v58  ;;  %v1980_v21 = vadd.f32 %v1979_v47, %v1966_v45  ;;  %v10961_v18 = vadd.f32 %v1894_v33, %v1799_v27  ;;  %8956 = vmatprep.subr.bf16.mxu1 %v9855_v20  ;;  %v2008_v20 = vld [vmem:[%s12238_s5 + $0x31] sm:$0x1] }
 0x3ca   :  { %v1981_v26 = vadd.f32 %v1980_v21, %v1967_v51  ;;  %v1947_v1 = vadd.f32 %v1946_v49, %v10961_v18  ;;  %v1968_v2 = vmul.f32 %v10961_v18, %v10961_v18  ;;  %v9860_v49 = vld [vmem:[#allocation10 + $0x1f8] sm:$0xff]   ;;  %v9863_v51 = vld [vmem:[#allocation10 + $0x230] sm:$0xff]  }
 0x3cb   :  { %8957 = vmatpush3.bf16.msra.mxu1 %v9856_v25 }
 0x3cc   :  { %v1948_v7 = vadd.f32 %v1947_v1, %v10956_v29  ;;  %v1982_v9 = vadd.f32 %v1981_v26, %v1968_v2  ;;  %8958 = vmatprep.subr.bf16.mxu1 %v9857_v36  ;;  %v9864_v26 = vld [vmem:[#allocation10 + $0x1f0] sm:$0xff]   ;;  %v9867_v2 = vld [vmem:[#allocation10 + $0x228] sm:$0xff]  }
 0x3cd   :  { %v9866_v1 = vld [vmem:[#allocation10 + $0x150] sm:$0xff]  }
 0x3ce   :  { %v1949_v39 = vrot.slane %v1948_v7, 4  ;;  %v1983_v44 = vadd.f32 %v1982_v9, %v1969_v4  ;;  %v9868_v4 = vld [vmem:[#allocation10 + $0x1e8] sm:$0xff]   ;;  %v9871_v9 = vld [vmem:[#allocation10 + $0x220] sm:$0xff]  }
 0x3cf   :  { %8959 = vmatpush3.bf16.msra.mxu1 %v9858_v38  ;;  %v12258_v38 = vld [vmem:[#allocation16_spill] sm:$0xff] }
 0x3d0   :  { %v1950_v53 = vadd.f32 %v1949_v39, %v1948_v7  ;;  %v1984_v57 = vrot.slane %v1983_v44, 4  ;;  %8960 = vmatprep.subr.bf16.mxu1 %v9861_v40  ;;  %v9869_v7 = vld [vmem:[#allocation10 + $0x188] sm:$0xff]  }
 0x3d1   :  { %v9870_v39 = vld [vmem:[#allocation10 + $0x148] sm:$0xff]  }
 0x3d2   :  { %v1951_v59 = vrot.slane %v1950_v53, 2  ;;  %v1985_v62 = vadd.f32 %v1984_v57, %v1983_v44  ;;  %v9872_v44 = vld [vmem:[#allocation10 + $0x1e0] sm:$0xff]   ;;  %v9875_v57 = vld [vmem:[#allocation10 + $0x218] sm:$0xff]  }
 0x3d3   :  { %8961 = vmatpush3.bf16.msra.mxu1 %v9862_v42  ;;  %v9977_v42 = vld [vmem:[#allocation10 + $0x240] sm:$0xff]  }
 0x3d4   :  { %v1952_v11 = vadd.f32 %v1951_v59, %v1950_v53  ;;  %v1986_v12 = vrot.slane %v1985_v62, 2  ;;  %8962 = vmatprep.subr.bf16.mxu1 %v9865_v56  ;;  %v9873_v53 = vld [vmem:[#allocation10 + $0x180] sm:$0xff]  }
 0x3d5   :  { %v9879_v59 = vld [vmem:[#allocation8 + $0x4] ss:$20 sps:$4 sm:$0xff]  }
 0x3d6   :  { %v1953_v19 = vrot.slane %v1952_v11, 1  ;;  %v1987_v22 = vadd.f32 %v1986_v12, %v1985_v62  ;;  %v9874_v62 = vld [vmem:[#allocation10 + $0x140] sm:$0xff]   ;;  %4101 = vmatprep.mubr.bf16.mxu1 %v9879_v59  ;;  %v9883_v12 = vld [vmem:[#allocation10 + $0x278] sm:$0xff]  }
 0x3d7   :  { %8963 = vmatpush3.bf16.msra.mxu1 %v9866_v1 }
 0x3d8   :  { %v1988_v30 = vrot.slane %v1987_v22, 1  ;;  %v1954_v34 = vadd.f32 %v1953_v19, %v1952_v11  ;;  %8964 = vmatprep.subr.bf16.mxu1 %v9869_v7  ;;  %v9876_v11 = vld [vmem:[#allocation10 + $0x1d8] sm:$0xff]   ;;  %v9880_v19 = vld [vmem:[#allocation10 + $0x210] sm:$0xff]  }
 0x3da   :  { %v1989_v46 = vadd.f32 %v1988_v30, %v1987_v22  ;;  %v9877_v22 = vld [vmem:[#allocation8] ss:$20 sps:$4 sm:$0xff]  }
 0x3db   :  { %8965 = vmatpush3.bf16.msra.mxu1 %v9870_v39  ;;  %v9881_v30 = vld [vmem:[#allocation10 + $0x1d0] sm:$0xff]  }
 0x3dc   :  { %v2009_v0 = vsel %vm383_vm3, %v1954_v34, %v1989_v46  ;;  %8966 = vmatprep.subr.bf16.mxu1 %v9873_v53  ;;  %v9882_v34 = vld [vmem:[#allocation10 + $0x208] sm:$0xff]  }
 0x3dd   :  { %9583 = vmatmul.mubr.f32.vlgmr.msra.gmra.mxu0 %v2009_v0  ;;  %v9884_v46 = vld [vmem:[#allocation10 + $0x1c8] sm:$0xff]   ;;  %v9885_v0 = vld [vmem:[#allocation10 + $0x200] sm:$0xff]  }
 0x3de   :  { %9589 = vmatprep.mubr.msk.f32.mxu0 %vm10338_vm2, %v12257_v3  ;;  %9586 = vmatpush3.msra.mxu0 %v2007_v14  ;;  %v9886_v14 = vld [vmem:[#allocation10 + $0x1c0] sm:$0xff]  }
 0x3df   :  { %9587 = vmatprep.subr.mxu0 %v12257_v3  ;;  %8967 = vmatpush3.bf16.msra.mxu1 %v9874_v62 }
 0x3e0   :  { %9588 = vmatpush3.msra.mxu0 %v2006_v48  ;;  %9592 = vmatprep.subr.bf16.mxu1 %v9883_v12  ;;  %v9899_v48 = vld [vmem:[#allocation10 + $0x270] sm:$0xff]  }
 0x3e1   :  { %9064 = vmatprep.subr.bf16.mxu0 %v9859_v10  ;;  %v9951_v10 = vld [vmem:[#allocation10 + $0x250] sm:$0xff]  }
 0x3e2   :  { %4102 = vmatmul.mubr.bf16.vlgmr.msra.gmra.mxu1 %v9877_v22 }
 0x3e3   :  { %9593 = vmatpush3.bf16.msra.mxu1 %v9883_v12 }
 0x3e4   :  { %9594 = vmatprep.subr.bf16.mxu1 %v9899_v48 }
 0x3e7   :  { %9595 = vmatpush3.bf16.msra.mxu1 %v9899_v48 }
 0x3e8   :  { %9596 = vmatprep.subr.bf16.mxu1 %v9912_v50 }
 0x3eb   :  { %9597 = vmatpush3.bf16.msra.mxu1 %v9912_v50 }
 0x3ec   :  { %9598 = vmatprep.subr.bf16.mxu1 %v9925_v52 }
 0x3ef   :  { %9599 = vmatpush3.bf16.msra.mxu1 %v9925_v52 }
 0x3f0   :  { %9600 = vmatprep.subr.bf16.mxu1 %v9938_v6 }
 0x3f3   :  { %9601 = vmatpush3.bf16.msra.mxu1 %v9938_v6 }
 0x3f4   :  { %9602 = vmatprep.subr.bf16.mxu1 %v9951_v10 }
 0x3f7   :  { %9603 = vmatpush3.bf16.msra.mxu1 %v9951_v10 }
 0x3f8   :  { %9604 = vmatprep.subr.bf16.mxu1 %v9964_v60 }
 0x3fb   :  { %9605 = vmatpush3.bf16.msra.mxu1 %v9964_v60 }
 0x3fc   :  { %9606 = vmatprep.subr.bf16.mxu1 %v9977_v42 }
 0x3ff   :  { %9607 = vmatpush3.bf16.msra.mxu1 %v9977_v42 }
 0x49d   :  { %v2076_v16 = vpop.f32.mrf.mxu0 }
 0x49e   :  { %v2080_v43 = vmul.f32 0.00055555557, %v2076_v16 }
 0x49f   :  { %v9584_v8 = vpop.f32.mrf.mxu0 }
 0x4a0   :  { %v2081_v17 = vmul.f32 %v2080_v43, %v2080_v43 }
 0x4a2   :  { %v2083_v5 = vrot.slane %v2081_v17, 7 }
 0x4a4   :  { %v2085_v24 = vsub.f32 %v2080_v43, %v2083_v5 }
 0x4a6   :  { %v2086_v45 = vadd.f32 1e-05, %v2085_v24 }
 0x4a8   :  { %10157 = vrsqrt.f32 %v2086_v45 }
 0x4b5   :  { %v10158_v47 = vpop.eup %10157 }
 0x4b6   :  { %v2089_v61 = vrot.slane %v10158_v47, 1 }
 0x4b8   :  { %v2091_v27 = vmul.f32 %v2089_v61, %v2080_v43 }
 0x4ba   :  { %v2093_v33 = vrot.slane %v2091_v27, 7 }
 0x4bc   :  { %v2095_v21 = vsel %vm383_vm3, %v2089_v61, %v2093_v33 }
 0x4bd   :  { %9590 = vmatmul.mubr.msk.f32.vlgmr.msra.gmra.mxu0 %vm471_vm4, %v2095_v21 }
 0x4be   :  { %9065 = vmatpush3.bf16.msra.mxu0 %v9860_v49 }
 0x4bf   :  { %9066 = vmatprep.subr.bf16.mxu0 %v9863_v51 }
 0x4c2   :  { %9067 = vmatpush3.bf16.msra.mxu0 %v9864_v26 }
 0x4c3   :  { %9068 = vmatprep.subr.bf16.mxu0 %v9867_v2 }
 0x4c6   :  { %9069 = vmatpush3.bf16.msra.mxu0 %v9868_v4 }
 0x4c7   :  { %9070 = vmatprep.subr.bf16.mxu0 %v9871_v9 }
 0x4ca   :  { %9071 = vmatpush3.bf16.msra.mxu0 %v9872_v44 }
 0x4cb   :  { %9072 = vmatprep.subr.bf16.mxu0 %v9875_v57 }
 0x4ce   :  { %9073 = vmatpush3.bf16.msra.mxu0 %v9876_v11 }
 0x4cf   :  { %9074 = vmatprep.subr.bf16.mxu0 %v9880_v19 }
 0x4d2   :  { %9075 = vmatpush3.bf16.msra.mxu0 %v9881_v30 }
 0x4d3   :  { %9076 = vmatprep.subr.bf16.mxu0 %v9882_v34 }
 0x4d6   :  { %9077 = vmatpush3.bf16.msra.mxu0 %v9884_v46 }
 0x4d7   :  { %9078 = vmatprep.subr.bf16.mxu0 %v9885_v0 }
 0x4da   :  { %9079 = vmatpush3.bf16.msra.mxu0 %v9886_v14 }
 0x4db   :  { %9640 = vmatprep.subr.mxu0 %v12257_v3 }
 0x57d   :  { %v2165_v25 = vpop.f32.mrf.mxu0 }
 0x57e   :  { %v2170_v36 = vrot.slane %v2165_v25, 1  ;;  %v10986_v40 = vrot.slane %v2165_v25, %v12258_v38 }
 0x57f   :  { %v9591_v56 = vpop.f32.mrf.mxu0 }
 0x580   :  { %v2172_v16 = vsub.f32 %v2008_v20, %v2170_v36  ;;  %v2181_v43 = vmul.f32 %v10986_v40, %v10859_v31  ;;  %v2191_v8 = vmul.f32 %v10986_v40, %v10865_v37  ;;  %v2197_v17 = vmul.f32 %v10986_v40, %v10863_v23 }
 0x581   :  { %v2203_v5 = vmul.f32 %v10986_v40, %v10869_v28  ;;  %v2209_v24 = vmul.f32 %v10986_v40, %v10882_v13  ;;  %v2215_v45 = vmul.f32 %v10986_v40, %v10897_v63  ;;  %v2221_v47 = vmul.f32 %v10986_v40, %v10892_v55 }
 0x582   :  { %v11003_v31 = vrot.slane %v2172_v16, %v12258_v38  ;;  %v2227_v23 = vmul.f32 %v10986_v40, %v10903_v35  ;;  %v2233_v37 = vmul.f32 %v10986_v40, %v10917_v41  ;;  %v2239_v28 = vmul.f32 %v10986_v40, %v10933_v15 }
 0x583   :  { %v2245_v13 = vmul.f32 %v10986_v40, %v10928_v32  ;;  %v2251_v63 = vmul.f32 %v10986_v40, %v10939_v54  ;;  %v11017_v55 = vmul.f32 %v10986_v40, %v10951_v58  ;;  %v11021_v61 = vmul.f32 %v10986_v40, %v10961_v18 }
 0x584   :  { %v2186_v35 = vadd.f32 %v11003_v31, %v2181_v43  ;;  %v2192_v41 = vadd.f32 %v2191_v8, %v11003_v31  ;;  %v2198_v15 = vadd.f32 %v2197_v17, %v11003_v31  ;;  %v2204_v27 = vadd.f32 %v2203_v5, %v11003_v31 }
 0x585   :  { %v2210_v32 = vadd.f32 %v2209_v24, %v11003_v31  ;;  %v2216_v54 = vadd.f32 %v2215_v45, %v11003_v31  ;;  %v2222_v33 = vadd.f32 %v2221_v47, %v11003_v31  ;;  %v2228_v58 = vadd.f32 %v2227_v23, %v11003_v31 }
 0x586   :  { %v2187_v49 = vmax.f32 %v2186_v35, 0.0  ;;  %v2193_v51 = vmax.f32 %v2192_v41, 0.0  ;;  %v2199_v18 = vmax.f32 %v2198_v15, 0.0  ;;  %v2205_v21 = vmax.f32 %v2204_v27, 0.0 }
 0x587   :  { %v2211_v26 = vmax.f32 %v2210_v32, 0.0  ;;  %v2217_v1 = vmax.f32 %v2216_v54, 0.0  ;;  %v2223_v2 = vmax.f32 %v2222_v33, 0.0  ;;  %v2229_v4 = vmax.f32 %v2228_v58, 0.0 }
 0x588   :  { %v8448_v7 = vpack.c.bf16 %v2187_v49, %v2187_v49  ;;  %v8450_v9 = vpack.c.bf16 %v2193_v51, %v2193_v51  ;;  %v8452_v39 = vpack.c.bf16 %v2199_v18, %v2199_v18  ;;  %v8454_v44 = vpack.c.bf16 %v2205_v21, %v2205_v21 }
 0x589   :  { %v8456_v53 = vpack.c.bf16 %v2211_v26, %v2211_v26  ;;  %v8458_v57 = vpack.c.bf16 %v2217_v1, %v2217_v1  ;;  %v8460_v59 = vpack.c.bf16 %v2223_v2, %v2223_v2  ;;  %v8462_v62 = vpack.c.bf16 %v2229_v4, %v2229_v4 }
 0x58a   :  { %2440 = vst [vmem:[#allocation8 + $0x3c] sm:$0xf] %v8448_v7  ;;  %2631 = vst [vmem:[#allocation8 + $0x2c] sm:$0xf] %v8448_v7  ;;  %v2234_v11 = vadd.f32 %v2233_v37, %v11003_v31  ;;  %v2240_v12 = vadd.f32 %v2239_v28, %v11003_v31  ;;  %v2246_v19 = vadd.f32 %v2245_v13, %v11003_v31 }
 0x58b   :  { %2822 = vst [vmem:[#allocation8 + $0x1c] sm:$0xf] %v8448_v7  ;;  %3013 = vst [vmem:[#allocation8 + $0xc] sm:$0xf] %v8448_v7  ;;  %v2252_v22 = vadd.f32 %v2251_v63, %v11003_v31  ;;  %v2258_v30 = vadd.f32 %v11017_v55, %v11003_v31  ;;  %v2264_v34 = vadd.f32 %v11021_v61, %v11003_v31 }
 0x58c   :  { %2442 = vst [vmem:[#allocation8 + $0x64] sm:$0xf] %v8450_v9  ;;  %2633 = vst [vmem:[#allocation8 + $0x54] sm:$0xf] %v8450_v9  ;;  %v2269_v46 = vmul.f32 %v10986_v40, %v10956_v29  ;;  %v2235_v0 = vmax.f32 %v2234_v11, 0.0  ;;  %v2241_v14 = vmax.f32 %v2240_v12, 0.0 }
 0x58d   :  { %2824 = vst [vmem:[#allocation8 + $0x44] sm:$0xf] %v8450_v9  ;;  %3015 = vst [vmem:[#allocation8 + $0x34] sm:$0xf] %v8450_v9  ;;  %v2247_v48 = vmax.f32 %v2246_v19, 0.0  ;;  %v2253_v50 = vmax.f32 %v2252_v22, 0.0 }
 0x58e   :  { %3206 = vst [vmem:[#allocation8 + $0x24] sm:$0xf] %v8450_v9  ;;  %2444 = vst [vmem:[#allocation8 + $0x8c] sm:$0xf] %v8452_v39  ;;  %v2259_v52 = vmax.f32 %v2258_v30, 0.0  ;;  %v2265_v6 = vmax.f32 %v2264_v34, 0.0  ;;  %v2270_v10 = vadd.f32 %v2269_v46, %v11003_v31  ;;  %v8464_v60 = vpack.c.bf16 %v2235_v0, %v2235_v0 }
 0x58f   :  { %2635 = vst [vmem:[#allocation8 + $0x7c] sm:$0xf] %v8452_v39  ;;  %2826 = vst [vmem:[#allocation8 + $0x6c] sm:$0xf] %v8452_v39  ;;  %v8466_v20 = vpack.c.bf16 %v2241_v14, %v2241_v14  ;;  %v8468_v25 = vpack.c.bf16 %v2247_v48, %v2247_v48  ;;  %v8470_v36 = vpack.c.bf16 %v2253_v50, %v2253_v50 }
 0x590   :  { %3017 = vst [vmem:[#allocation8 + $0x5c] sm:$0xf] %v8452_v39  ;;  %3208 = vst [vmem:[#allocation8 + $0x4c] sm:$0xf] %v8452_v39  ;;  %v8472_v42 = vpack.c.bf16 %v2259_v52, %v2259_v52  ;;  %v8474_v56 = vpack.c.bf16 %v2265_v6, %v2265_v6  ;;  %v2271_v16 = vmax.f32 %v2270_v10, 0.0  ;;  %v8968_v39 = vpop.f32.mrf.mxu1 }
 0x591   :  { %2446 = vst [vmem:[#allocation8 + $0xb4] sm:$0xf] %v8454_v44  ;;  %2637 = vst [vmem:[#allocation8 + $0xa4] sm:$0xf] %v8454_v44  ;;  %v9887_v29 = vld [vmem:[#allocation8 + $0x2c] ss:$20 sps:$4 sm:$0xff]  }
 0x592   :  { %2828 = vst [vmem:[#allocation8 + $0x94] sm:$0xf] %v8454_v44  ;;  %3019 = vst [vmem:[#allocation8 + $0x84] sm:$0xf] %v8454_v44  ;;  %v8476_v40 = vpack.c.bf16 %v2271_v16, %v2271_v16  ;;  %v9889_v43 = vld [vmem:[#allocation8 + $0x8] ss:$20 sps:$4 sm:$0xff]   ;;  %4109 = vmatprep.mubr.bf16.mxu1 %v9887_v29 }
 0x593   :  { %3210 = vst [vmem:[#allocation8 + $0x74] sm:$0xf] %v8454_v44  ;;  %2448 = vst [vmem:[#allocation8 + $0xdc] sm:$0xf] %v8456_v53  ;;  %v9891_v8 = vld [vmem:[#allocation8 + $0xc] ss:$20 sps:$4 sm:$0xff]   ;;  %v8969_v44 = vpop.f32.mrf.mxu1 }
 0x594   :  { %2639 = vst [vmem:[#allocation8 + $0xcc] sm:$0xf] %v8456_v53  ;;  %2830 = vst [vmem:[#allocation8 + $0xbc] sm:$0xf] %v8456_v53  ;;  %v9892_v17 = vld [vmem:[#allocation8 + $0x28] ss:$20 sps:$4 sm:$0xff]   ;;  %4262 = vmatprep.mubr.bf16.mxu0 %v9891_v8 }
 0x595   :  { %3021 = vst [vmem:[#allocation8 + $0xac] sm:$0xf] %v8456_v53  ;;  %3212 = vst [vmem:[#allocation8 + $0x9c] sm:$0xf] %v8456_v53  ;;  %v9893_v5 = vld [vmem:[#allocation8 + $0x54] ss:$20 sps:$4 sm:$0xff]   ;;  %4110 = vmatmul.mubr.bf16.gmra.mxu1 %v9892_v17  ;;  %4263 = vmatmul.mubr.bf16.vlgmr.msra.gmra.mxu0 %v9889_v43  ;;  %v11042_v53 = vadd.f32 %v8969_v44, %v8968_v39 }
 0x596   :  { %2450 = vst [vmem:[#allocation8 + $0x104] sm:$0xf] %v8458_v57  ;;  %2641 = vst [vmem:[#allocation8 + $0xf4] sm:$0xf] %v8458_v57  ;;  %v9895_v24 = vld [vmem:[#allocation8 + $0x34] ss:$20 sps:$4 sm:$0xff]   ;;  %4117 = vmatprep.mubr.bf16.mxu1 %v9893_v5 }
 0x597   :  { %2832 = vst [vmem:[#allocation8 + $0xe4] sm:$0xf] %v8458_v57  ;;  %3023 = vst [vmem:[#allocation8 + $0xd4] sm:$0xf] %v8458_v57  ;;  %4270 = vmatprep.mubr.bf16.mxu0 %v9895_v24  ;;  %v9897_v45 = vld [vmem:[#allocation8 + $0x50] ss:$20 sps:$4 sm:$0xff]  }
 0x598   :  { %3214 = vst [vmem:[#allocation8 + $0xc4] sm:$0xf] %v8458_v57  ;;  %2452 = vst [vmem:[#allocation8 + $0x12c] sm:$0xf] %v8460_v59  ;;  %v9898_v47 = vld [vmem:[#allocation8 + $0x30] ss:$20 sps:$4 sm:$0xff]  }
 0x599   :  { %2643 = vst [vmem:[#allocation8 + $0x11c] sm:$0xf] %v8460_v59  ;;  %2834 = vst [vmem:[#allocation8 + $0x10c] sm:$0xf] %v8460_v59  ;;  %v9900_v31 = vld [vmem:[#allocation8 + $0x7c] ss:$20 sps:$4 sm:$0xff]  }
 0x59a   :  { %3025 = vst [vmem:[#allocation8 + $0xfc] sm:$0xf] %v8460_v59  ;;  %3216 = vst [vmem:[#allocation8 + $0xec] sm:$0xf] %v8460_v59  ;;  %v9902_v23 = vld [vmem:[#allocation8 + $0x5c] ss:$20 sps:$4 sm:$0xff]  }
 0x59b   :  { %2454 = vst [vmem:[#allocation8 + $0x154] sm:$0xf] %v8462_v62  ;;  %2645 = vst [vmem:[#allocation8 + $0x144] sm:$0xf] %v8462_v62  ;;  %v9904_v37 = vld [vmem:[#allocation8 + $0x78] ss:$20 sps:$4 sm:$0xff]  }
 0x59c   :  { %2836 = vst [vmem:[#allocation8 + $0x134] sm:$0xf] %v8462_v62  ;;  %3027 = vst [vmem:[#allocation8 + $0x124] sm:$0xf] %v8462_v62  ;;  %v9905_v28 = vld [vmem:[#allocation8 + $0x58] ss:$20 sps:$4 sm:$0xff]  }
 0x59d   :  { %3218 = vst [vmem:[#allocation8 + $0x114] sm:$0xf] %v8462_v62  ;;  %2456 = vst [vmem:[#allocation8 + $0x17c] sm:$0xf] %v8464_v60  ;;  %4118 = vmatmul.mubr.bf16.gmra.mxu1 %v9897_v45  ;;  %4271 = vmatmul.mubr.bf16.gmra.mxu0 %v9898_v47  ;;  %v9906_v13 = vld [vmem:[#allocation8 + $0xa4] ss:$20 sps:$4 sm:$0xff]  }
 0x59e   :  { %2647 = vst [vmem:[#allocation8 + $0x16c] sm:$0xf] %v8464_v60  ;;  %2838 = vst [vmem:[#allocation8 + $0x15c] sm:$0xf] %v8464_v60  ;;  %4125 = vmatprep.mubr.bf16.mxu1 %v9900_v31  ;;  %4278 = vmatprep.mubr.bf16.mxu0 %v9902_v23  ;;  %v9908_v63 = vld [vmem:[#allocation8 + $0x84] ss:$20 sps:$4 sm:$0xff]  }
 0x59f   :  { %3029 = vst [vmem:[#allocation8 + $0x14c] sm:$0xf] %v8464_v60  ;;  %3220 = vst [vmem:[#allocation8 + $0x13c] sm:$0xf] %v8464_v60  ;;  %v9910_v55 = vld [vmem:[#allocation8 + $0xa0] ss:$20 sps:$4 sm:$0xff]  }
 0x5a0   :  { %2458 = vst [vmem:[#allocation8 + $0x1a4] sm:$0xf] %v8466_v20  ;;  %2649 = vst [vmem:[#allocation8 + $0x194] sm:$0xf] %v8466_v20  ;;  %v9911_v61 = vld [vmem:[#allocation8 + $0x80] ss:$20 sps:$4 sm:$0xff]  }
 0x5a1   :  { %2840 = vst [vmem:[#allocation8 + $0x184] sm:$0xf] %v8466_v20  ;;  %3031 = vst [vmem:[#allocation8 + $0x174] sm:$0xf] %v8466_v20  ;;  %v9913_v35 = vld [vmem:[#allocation8 + $0xcc] ss:$20 sps:$4 sm:$0xff]  }
 0x5a2   :  { %3222 = vst [vmem:[#allocation8 + $0x164] sm:$0xf] %v8466_v20  ;;  %2460 = vst [vmem:[#allocation8 + $0x1cc] sm:$0xf] %v8468_v25  ;;  %v9915_v41 = vld [vmem:[#allocation8 + $0xac] ss:$20 sps:$4 sm:$0xff]  }
 0x5a3   :  { %2651 = vst [vmem:[#allocation8 + $0x1bc] sm:$0xf] %v8468_v25  ;;  %2842 = vst [vmem:[#allocation8 + $0x1ac] sm:$0xf] %v8468_v25  ;;  %v9917_v15 = vld [vmem:[#allocation8 + $0xc8] ss:$20 sps:$4 sm:$0xff]  }
 0x5a4   :  { %3033 = vst [vmem:[#allocation8 + $0x19c] sm:$0xf] %v8468_v25  ;;  %3224 = vst [vmem:[#allocation8 + $0x18c] sm:$0xf] %v8468_v25  ;;  %v9918_v27 = vld [vmem:[#allocation8 + $0xa8] ss:$20 sps:$4 sm:$0xff]  }
 0x5a5   :  { %2462 = vst [vmem:[#allocation8 + $0x1f4] sm:$0xf] %v8470_v36  ;;  %2653 = vst [vmem:[#allocation8 + $0x1e4] sm:$0xf] %v8470_v36  ;;  %4126 = vmatmul.mubr.bf16.gmra.mxu1 %v9904_v37  ;;  %4279 = vmatmul.mubr.bf16.gmra.mxu0 %v9905_v28  ;;  %v9919_v32 = vld [vmem:[#allocation8 + $0xf4] ss:$20 sps:$4 sm:$0xff]  }
 0x5a6   :  { %2844 = vst [vmem:[#allocation8 + $0x1d4] sm:$0xf] %v8470_v36  ;;  %3035 = vst [vmem:[#allocation8 + $0x1c4] sm:$0xf] %v8470_v36  ;;  %4133 = vmatprep.mubr.bf16.mxu1 %v9906_v13  ;;  %4286 = vmatprep.mubr.bf16.mxu0 %v9908_v63  ;;  %v9921_v54 = vld [vmem:[#allocation8 + $0xd4] ss:$20 sps:$4 sm:$0xff]  }
 0x5a7   :  { %3226 = vst [vmem:[#allocation8 + $0x1b4] sm:$0xf] %v8470_v36  ;;  %2464 = vst [vmem:[#allocation8 + $0x21c] sm:$0xf] %v8472_v42  ;;  %v9923_v33 = vld [vmem:[#allocation8 + $0xf0] ss:$20 sps:$4 sm:$0xff]  }
 0x5a8   :  { %2655 = vst [vmem:[#allocation8 + $0x20c] sm:$0xf] %v8472_v42  ;;  %2846 = vst [vmem:[#allocation8 + $0x1fc] sm:$0xf] %v8472_v42  ;;  %v9924_v58 = vld [vmem:[#allocation8 + $0xd0] ss:$20 sps:$4 sm:$0xff]  }
 0x5a9   :  { %3037 = vst [vmem:[#allocation8 + $0x1ec] sm:$0xf] %v8472_v42  ;;  %3228 = vst [vmem:[#allocation8 + $0x1dc] sm:$0xf] %v8472_v42  ;;  %v9926_v49 = vld [vmem:[#allocation8 + $0x11c] ss:$20 sps:$4 sm:$0xff]  }
 0x5aa   :  { %2466 = vst [vmem:[#allocation8 + $0x244] sm:$0xf] %v8474_v56  ;;  %2657 = vst [vmem:[#allocation8 + $0x234] sm:$0xf] %v8474_v56  ;;  %v9928_v51 = vld [vmem:[#allocation8 + $0xfc] ss:$20 sps:$4 sm:$0xff]  }
 0x5ab   :  { %2848 = vst [vmem:[#allocation8 + $0x224] sm:$0xf] %v8474_v56  ;;  %3039 = vst [vmem:[#allocation8 + $0x214] sm:$0xf] %v8474_v56  ;;  %v9930_v18 = vld [vmem:[#allocation8 + $0x118] ss:$20 sps:$4 sm:$0xff]  }
 0x5ac   :  { %3230 = vst [vmem:[#allocation8 + $0x204] sm:$0xf] %v8474_v56  ;;  %2468 = vst [vmem:[#allocation8 + $0x26c] sm:$0xf] %v8476_v40  ;;  %v9931_v21 = vld [vmem:[#allocation8 + $0xf8] ss:$20 sps:$4 sm:$0xff]  }
 0x5ad   :  { %2659 = vst [vmem:[#allocation8 + $0x25c] sm:$0xf] %v8476_v40  ;;  %2850 = vst [vmem:[#allocation8 + $0x24c] sm:$0xf] %v8476_v40  ;;  %4134 = vmatmul.mubr.bf16.gmra.mxu1 %v9910_v55  ;;  %4287 = vmatmul.mubr.bf16.gmra.mxu0 %v9911_v61  ;;  %v9932_v26 = vld [vmem:[#allocation8 + $0x144] ss:$20 sps:$4 sm:$0xff]  }
 0x5ae   :  { %3041 = vst [vmem:[#allocation8 + $0x23c] sm:$0xf] %v8476_v40  ;;  %3232 = vst [vmem:[#allocation8 + $0x22c] sm:$0xf] %v8476_v40  ;;  %4141 = vmatprep.mubr.bf16.mxu1 %v9913_v35  ;;  %4294 = vmatprep.mubr.bf16.mxu0 %v9915_v41  ;;  %v9934_v1 = vld [vmem:[#allocation8 + $0x124] ss:$20 sps:$4 sm:$0xff]  }
 0x5af   :  { %v9936_v2 = vld [vmem:[#allocation8 + $0x140] ss:$20 sps:$4 sm:$0xff]   ;;  %v9943_v57 = vld [vmem:[#allocation8 + $0x168] ss:$20 sps:$4 sm:$0xff]   ;;  %v9949_v12 = vld [vmem:[#allocation8 + $0x190] ss:$20 sps:$4 sm:$0xff]  }
 0x5b0   :  { %v9937_v4 = vld [vmem:[#allocation8 + $0x120] ss:$20 sps:$4 sm:$0xff]   ;;  %v9944_v59 = vld [vmem:[#allocation8 + $0x148] ss:$20 sps:$4 sm:$0xff]   ;;  %v9950_v19 = vld [vmem:[#allocation8 + $0x170] ss:$20 sps:$4 sm:$0xff]  }
 0x5b1   :  { %v9939_v7 = vld [vmem:[#allocation8 + $0x16c] ss:$20 sps:$4 sm:$0xff]   ;;  %v9945_v62 = vld [vmem:[#allocation8 + $0x194] ss:$20 sps:$4 sm:$0xff]   ;;  %v9952_v22 = vld [vmem:[#allocation8 + $0x1bc] ss:$20 sps:$4 sm:$0xff]  }
 0x5b2   :  { %v9941_v9 = vld [vmem:[#allocation8 + $0x14c] ss:$20 sps:$4 sm:$0xff]   ;;  %v9947_v11 = vld [vmem:[#allocation8 + $0x174] ss:$20 sps:$4 sm:$0xff]   ;;  %v9954_v30 = vld [vmem:[#allocation8 + $0x19c] ss:$20 sps:$4 sm:$0xff]  }
 0x5b3   :  { %v9956_v34 = vld [vmem:[#allocation8 + $0x1b8] ss:$20 sps:$4 sm:$0xff]   ;;  %v9962_v48 = vld [vmem:[#allocation8 + $0x1e0] ss:$20 sps:$4 sm:$0xff]   ;;  %v9965_v10 = vld [vmem:[#allocation8 + $0x208] ss:$20 sps:$4 sm:$0xff]  }
 0x5b4   :  { %v9957_v46 = vld [vmem:[#allocation8 + $0x198] ss:$20 sps:$4 sm:$0xff]   ;;  %v9963_v50 = vld [vmem:[#allocation8 + $0x1c0] ss:$20 sps:$4 sm:$0xff]   ;;  %v9970_v60 = vld [vmem:[#allocation8 + $0x1e8] ss:$20 sps:$4 sm:$0xff]  }
 0x5b5   :  { %4142 = vmatmul.mubr.bf16.gmra.mxu1 %v9917_v15  ;;  %4295 = vmatmul.mubr.bf16.gmra.mxu0 %v9918_v27  ;;  %v9958_v0 = vld [vmem:[#allocation8 + $0x1e4] ss:$20 sps:$4 sm:$0xff]   ;;  %v9967_v52 = vld [vmem:[#allocation8 + $0x20c] ss:$20 sps:$4 sm:$0xff]   ;;  %v9973_v20 = vld [vmem:[#allocation8 + $0x234] ss:$20 sps:$4 sm:$0xff]  }
 0x5b6   :  { %4149 = vmatprep.mubr.bf16.mxu1 %v9919_v32  ;;  %4302 = vmatprep.mubr.bf16.mxu0 %v9921_v54  ;;  %v9960_v14 = vld [vmem:[#allocation8 + $0x1c4] ss:$20 sps:$4 sm:$0xff]   ;;  %v9968_v6 = vld [vmem:[#allocation8 + $0x1ec] ss:$20 sps:$4 sm:$0xff]   ;;  %v9974_v25 = vld [vmem:[#allocation8 + $0x214] ss:$20 sps:$4 sm:$0xff]  }
 0x5b7   :  { %v9971_v36 = vld [vmem:[#allocation8 + $0x230] ss:$20 sps:$4 sm:$0xff]   ;;  %v9978_v29 = vld [vmem:[#allocation8 + $0x258] ss:$20 sps:$4 sm:$0xff]   ;;  %v9987_v17 = vld [vmem:[#allocation8 + $0x260] ss:$20 sps:$4 sm:$0xff]  }
 0x5b8   :  { %v9976_v42 = vld [vmem:[#allocation8 + $0x210] ss:$20 sps:$4 sm:$0xff]   ;;  %v9983_v43 = vld [vmem:[#allocation8 + $0x238] ss:$20 sps:$4 sm:$0xff]   ;;  %v9989_v24 = vld [vmem:[#allocation8 + $0x60] ss:$20 sps:$4 sm:$0xff]  }
 0x5b9   :  { %v9980_v56 = vld [vmem:[#allocation8 + $0x25c] ss:$20 sps:$4 sm:$0xff]   ;;  %v9985_v40 = vld [vmem:[#allocation8 + $0x264] ss:$20 sps:$4 sm:$0xff]   ;;  %v9993_v23 = vld [vmem:[#allocation8 + $0x100] ss:$20 sps:$4 sm:$0xff]  }
 0x5ba   :  { %v9981_v16 = vld [vmem:[#allocation8 + $0x23c] ss:$20 sps:$4 sm:$0xff]   ;;  %v9988_v5 = vld [vmem:[#allocation8 + $0x38] ss:$20 sps:$4 sm:$0xff]   ;;  %v9997_v55 = vld [vmem:[#allocation8 + $0x1a0] ss:$20 sps:$4 sm:$0xff]  }
 0x5bb   :  { %v9984_v8 = vld [vmem:[#allocation8 + $0x10] ss:$20 sps:$4 sm:$0xff]   ;;  %v9990_v45 = vld [vmem:[#allocation8 + $0x88] ss:$20 sps:$4 sm:$0xff]   ;;  %v9992_v31 = vld [vmem:[#allocation8 + $0xd8] ss:$20 sps:$4 sm:$0xff]  }
 0x5bc   :  { %v9991_v47 = vld [vmem:[#allocation8 + $0xb0] ss:$20 sps:$4 sm:$0xff]   ;;  %v9994_v37 = vld [vmem:[#allocation8 + $0x128] ss:$20 sps:$4 sm:$0xff]   ;;  %v9996_v63 = vld [vmem:[#allocation8 + $0x178] ss:$20 sps:$4 sm:$0xff]  }
 0x5bd   :  { %4150 = vmatmul.mubr.bf16.gmra.mxu1 %v9923_v33  ;;  %4303 = vmatmul.mubr.bf16.gmra.mxu0 %v9924_v58  ;;  %v9995_v28 = vld [vmem:[#allocation8 + $0x150] ss:$20 sps:$4 sm:$0xff]   ;;  %v9998_v35 = vld [vmem:[#allocation8 + $0x1c8] ss:$20 sps:$4 sm:$0xff]   ;;  %v10001_v27 = vld [vmem:[#allocation8 + $0x240] ss:$20 sps:$4 sm:$0xff]  }
 0x5be   :  { %4157 = vmatprep.mubr.bf16.mxu1 %v9926_v49  ;;  %4310 = vmatprep.mubr.bf16.mxu0 %v9928_v51  ;;  %v4737_v13 = vld [vmem:[%s12237_s4 + $0x178] sm:$0xff]  ;;  %v4736_v61 = vld [vmem:[%s12237_s4 + $0x170] sm:$0xff]  ;;  %v4735_v15 = vld [vmem:[%s12237_s4 + $0x168] sm:$0xff]  ;;  %v11069_v51 = vpop.f32.mrf.mxu1 }
 0x5bf   :  { %9641 = vmatpush3.msra.mxu0 %v4737_v13  ;;  %v9999_v41 = vld [vmem:[#allocation8 + $0x1f0] ss:$20 sps:$4 sm:$0xff]   ;;  %v10000_v32 = vld [vmem:[#allocation8 + $0x218] ss:$20 sps:$4 sm:$0xff]   ;;  %v10002_v33 = vld [vmem:[#allocation8 + $0x268] ss:$20 sps:$4 sm:$0xff]  }
 0x5c0   :  { %9642 = vmatprep.subr.mxu0 %v12257_v3  ;;  %v4734_v54 = vld [vmem:[%s12237_s4 + $0x160] sm:$0xff]  ;;  %v4733_v58 = vld [vmem:[%s12237_s4 + $0x158] sm:$0xff]  ;;  %v4732_v49 = vld [vmem:[%s12237_s4 + $0x150] sm:$0xff] }
 0x5c1   :  { %9643 = vmatpush3.msra.mxu0 %v4736_v61  ;;  %v4731_v44 = vld [vmem:[%s12237_s4 + $0x148] sm:$0xff] }
 0x5c2   :  { %9644 = vmatprep.subr.mxu0 %v12257_v3 }
 0x5c3   :  { %9645 = vmatpush3.msra.mxu0 %v4735_v15 }
 0x5c4   :  { %9646 = vmatprep.subr.mxu0 %v12257_v3 }
 0x5c5   :  { %4158 = vmatmul.mubr.bf16.gmra.mxu1 %v9930_v18  ;;  %4311 = vmatmul.mubr.bf16.gmra.mxu0 %v9931_v21  ;;  %v11072_v18 = vpop.f32.mrf.mxu1 }
 0x5c6   :  { %4165 = vmatprep.mubr.bf16.mxu1 %v9932_v26  ;;  %4318 = vmatprep.mubr.bf16.mxu0 %v9934_v1 }
 0x5c7   :  { %9647 = vmatpush3.msra.mxu0 %v4734_v54 }
 0x5c8   :  { %9648 = vmatprep.subr.mxu0 %v12257_v3 }
 0x5c9   :  { %9649 = vmatpush3.msra.mxu0 %v4733_v58 }
 0x5ca   :  { %9650 = vmatprep.subr.mxu0 %v12257_v3 }
 0x5cb   :  { %9651 = vmatpush3.msra.mxu0 %v4732_v49  ;;  %v4726_v49 = vld [vmem:[%s12237_s4 + $0x120] sm:$0xff] }
 0x5cc   :  { %9652 = vmatprep.subr.mxu0 %v12257_v3 }
 0x5cd   :  { %4166 = vmatmul.mubr.bf16.gmra.mxu1 %v9936_v2  ;;  %4319 = vmatmul.mubr.bf16.gmra.mxu0 %v9937_v4 }
 0x5ce   :  { %4173 = vmatprep.mubr.bf16.mxu1 %v9939_v7  ;;  %4326 = vmatprep.mubr.bf16.mxu0 %v9941_v9 }
 0x5cf   :  { %9653 = vmatpush3.msra.mxu0 %v4731_v44 }
 0x5d0   :  { %9654 = vmatprep.subr.mxu0 %v12257_v3 }
 0x5d5   :  { %4174 = vmatmul.mubr.bf16.gmra.mxu1 %v9943_v57  ;;  %4327 = vmatmul.mubr.bf16.gmra.mxu0 %v9944_v59 }
 0x5d6   :  { %4181 = vmatprep.mubr.bf16.mxu1 %v9945_v62  ;;  %4334 = vmatprep.mubr.bf16.mxu0 %v9947_v11 }
 0x5dd   :  { %4182 = vmatmul.mubr.bf16.gmra.mxu1 %v9949_v12  ;;  %4335 = vmatmul.mubr.bf16.gmra.mxu0 %v9950_v19 }
 0x5de   :  { %4189 = vmatprep.mubr.bf16.mxu1 %v9952_v22  ;;  %4342 = vmatprep.mubr.bf16.mxu0 %v9954_v30 }
 0x5e5   :  { %4190 = vmatmul.mubr.bf16.gmra.mxu1 %v9956_v34  ;;  %4343 = vmatmul.mubr.bf16.gmra.mxu0 %v9957_v46 }
 0x5e6   :  { %4197 = vmatprep.mubr.bf16.mxu1 %v9958_v0  ;;  %4350 = vmatprep.mubr.bf16.mxu0 %v9960_v14 }
 0x5ed   :  { %4198 = vmatmul.mubr.bf16.gmra.mxu1 %v9962_v48  ;;  %4351 = vmatmul.mubr.bf16.gmra.mxu0 %v9963_v50 }
 0x5ee   :  { %4205 = vmatprep.mubr.bf16.mxu1 %v9967_v52  ;;  %4358 = vmatprep.mubr.bf16.mxu0 %v9968_v6 }
 0x5f5   :  { %4206 = vmatmul.mubr.bf16.gmra.mxu1 %v9965_v10  ;;  %4359 = vmatmul.mubr.bf16.gmra.mxu0 %v9970_v60 }
 0x5f6   :  { %4213 = vmatprep.mubr.bf16.mxu1 %v9973_v20  ;;  %4366 = vmatprep.mubr.bf16.mxu0 %v9974_v25  ;;  %v4729_v25 = vld [vmem:[%s12237_s4 + $0x138] sm:$0xff] }
 0x5fd   :  { %4214 = vmatmul.mubr.bf16.gmra.mxu1 %v9971_v36  ;;  %4367 = vmatmul.mubr.bf16.gmra.mxu0 %v9976_v42 }
 0x5fe   :  { %4221 = vmatprep.mubr.bf16.mxu1 %v9980_v56  ;;  %4374 = vmatprep.mubr.bf16.mxu0 %v9981_v16 }
 0x605   :  { %4222 = vmatmul.mubr.bf16.gmra.mxu1 %v9978_v29  ;;  %4375 = vmatmul.mubr.bf16.gmra.mxu0 %v9983_v43 }
 0x606   :  { %9608 = vmatprep.mubr.bf16.mxu1 %v9984_v8  ;;  %4382 = vmatprep.mubr.bf16.mxu0 %v9985_v40 }
 0x60d   :  { %9609 = vmatmul.mubr.bf16.vlgmr.msra.gmra.mxu1 %v9988_v5  ;;  %4383 = vmatmul.mubr.bf16.gmra.mxu0 %v9987_v17  ;;  %v4728_v5 = vld [vmem:[%s12237_s4 + $0x130] sm:$0xff] }
 0x60e   :  { %9612 = vmatprep.mubr.bf16.mxu1 %v9989_v24  ;;  %9672 = vmatprep.mubr.msk.f32.mxu0 %vm10338_vm2, %v12257_v3 }
 0x615   :  { %9613 = vmatmul.mubr.bf16.gmra.mxu1 %v9990_v45 }
 0x616   :  { %9616 = vmatprep.mubr.bf16.mxu1 %v9991_v47 }
 0x61d   :  { %9617 = vmatmul.mubr.bf16.gmra.mxu1 %v9992_v31 }
 0x61e   :  { %9620 = vmatprep.mubr.bf16.mxu1 %v9993_v23 }
 0x625   :  { %9621 = vmatmul.mubr.bf16.gmra.mxu1 %v9994_v37 }
 0x626   :  { %9624 = vmatprep.mubr.bf16.mxu1 %v9995_v28 }
 0x62d   :  { %9625 = vmatmul.mubr.bf16.gmra.mxu1 %v9996_v63 }
 0x62e   :  { %9628 = vmatprep.mubr.bf16.mxu1 %v9997_v55  ;;  %v4727_v55 = vld [vmem:[%s12237_s4 + $0x128] sm:$0xff] }
 0x635   :  { %9629 = vmatmul.mubr.bf16.gmra.mxu1 %v9998_v35 }
 0x636   :  { %9632 = vmatprep.mubr.bf16.mxu1 %v9999_v41 }
 0x63d   :  { %9633 = vmatmul.mubr.bf16.gmra.mxu1 %v10000_v32 }
 0x63e   :  { %9636 = vmatprep.mubr.bf16.mxu1 %v10001_v27 }
 0x645   :  { %9637 = vmatmul.mubr.bf16.gmra.mxu1 %v10002_v33 }
 0x655   :  { %v8974_v21 = vpop.f32.mrf.mxu1  ;;  %v9080_v26 = vpop.f32.mrf.mxu0 }
 0x657   :  { %v8975_v1 = vpop.f32.mrf.mxu1  ;;  %v9081_v4 = vpop.f32.mrf.mxu0 }
 0x658   :  { %v11074_v2 = vadd.f32 %v8975_v1, %v8974_v21  ;;  %v9082_v7 = vadd.f32 %v9081_v4, %v9080_v26 }
 0x659   :  { %v11076_v9 = vpop.f32.mrf.mxu1  ;;  %v11078_v39 = vpop.f32.mrf.mxu0 }
 0x65a   :  { %v11086_v59 = vadd.f32 %v9082_v7, %v11042_v53  ;;  %v4730_v53 = vld [vmem:[%s12237_s4 + $0x140] sm:$0xff] }
 0x65b   :  { %v11083_v57 = vpop.f32.mrf.mxu1  ;;  %v11088_v62 = vpop.f32.mrf.mxu0  ;;  %9655 = vmatpush3.msra.mxu0 %v4730_v53 }
 0x65c   :  { %9656 = vmatprep.subr.mxu0 %v12257_v3 }
 0x65d   :  { %v8980_v11 = vpop.f32.mrf.mxu1  ;;  %v11091_v12 = vpop.f32.mrf.mxu0  ;;  %9657 = vmatpush3.msra.mxu0 %v4729_v25 }
 0x65e   :  { %9658 = vmatprep.subr.mxu0 %v12257_v3 }
 0x65f   :  { %v8981_v19 = vpop.f32.mrf.mxu1  ;;  %v11095_v30 = vpop.f32.mrf.mxu0  ;;  %9659 = vmatpush3.msra.mxu0 %v4728_v5 }
 0x660   :  { %v11093_v22 = vadd.f32 %v8981_v19, %v8980_v11  ;;  %9660 = vmatprep.subr.mxu0 %v12257_v3 }
 0x661   :  { %v11097_v34 = vpop.f32.mrf.mxu1  ;;  %v11099_v46 = vpop.f32.mrf.mxu0  ;;  %9661 = vmatpush3.msra.mxu0 %v4727_v55 }
 0x662   :  { %9662 = vmatprep.subr.mxu0 %v12257_v3 }
 0x663   :  { %v11104_v0 = vpop.f32.mrf.mxu1  ;;  %v11106_v14 = vpop.f32.mrf.mxu0  ;;  %9663 = vmatpush3.msra.mxu0 %v4726_v49 }
 0x664   :  { %9664 = vmatprep.subr.mxu0 %v12257_v3 }
 0x665   :  { %v8986_v48 = vpop.f32.mrf.mxu1  ;;  %v11109_v50 = vpop.f32.mrf.mxu0 }
 0x667   :  { %v8987_v52 = vpop.f32.mrf.mxu1  ;;  %v11113_v10 = vpop.f32.mrf.mxu0 }
 0x668   :  { %v11111_v6 = vadd.f32 %v8987_v52, %v8986_v48  ;;  %v4725_v48 = vld [vmem:[%s12237_s4 + $0x118] sm:$0xff] }
 0x669   :  { %v11115_v60 = vpop.f32.mrf.mxu1  ;;  %v11117_v20 = vpop.f32.mrf.mxu0  ;;  %9665 = vmatpush3.msra.mxu0 %v4725_v48 }
 0x66a   :  { %9666 = vmatprep.subr.mxu0 %v12257_v3 }
 0x66b   :  { %v11122_v36 = vpop.f32.mrf.mxu1  ;;  %v11124_v42 = vpop.f32.mrf.mxu0 }
 0x66d   :  { %v8992_v56 = vpop.f32.mrf.mxu1  ;;  %v11127_v16 = vpop.f32.mrf.mxu0 }
 0x66f   :  { %v8993_v29 = vpop.f32.mrf.mxu1  ;;  %v11131_v43 = vpop.f32.mrf.mxu0 }
 0x670   :  { %v11129_v40 = vadd.f32 %v8993_v29, %v8992_v56 }
 0x671   :  { %v11133_v8 = vpop.f32.mrf.mxu1  ;;  %v11135_v17 = vpop.f32.mrf.mxu0 }
 0x673   :  { %v11140_v24 = vpop.f32.mrf.mxu1  ;;  %v11142_v45 = vpop.f32.mrf.mxu0 }
 0x675   :  { %v8998_v47 = vpop.f32.mrf.mxu1  ;;  %v11145_v31 = vpop.f32.mrf.mxu0 }
 0x677   :  { %v8999_v23 = vpop.f32.mrf.mxu1  ;;  %v11149_v28 = vpop.f32.mrf.mxu0 }
 0x678   :  { %v11147_v37 = vadd.f32 %v8999_v23, %v8998_v47 }
 0x679   :  { %v11151_v13 = vpop.f32.mrf.mxu1  ;;  %v11153_v63 = vpop.f32.mrf.mxu0 }
 0x67b   :  { %v11158_v61 = vpop.f32.mrf.mxu1  ;;  %v11160_v35 = vpop.f32.mrf.mxu0 }
 0x67d   :  { %v9004_v41 = vpop.f32.mrf.mxu1  ;;  %v11163_v15 = vpop.f32.mrf.mxu0 }
 0x67f   :  { %v9005_v27 = vpop.f32.mrf.mxu1  ;;  %v11167_v54 = vpop.f32.mrf.mxu0 }
 0x680   :  { %v11165_v32 = vadd.f32 %v9005_v27, %v9004_v41 }
 0x681   :  { %v11169_v33 = vpop.f32.mrf.mxu1  ;;  %v11171_v58 = vpop.f32.mrf.mxu0 }
 0x683   :  { %v11176_v21 = vpop.f32.mrf.mxu1  ;;  %v11178_v26 = vpop.f32.mrf.mxu0 }
 0x684   :  { %12259 = vst [vmem:[#allocation17_spill] sm:$0xff] %v11176_v21 }
 0x685   :  { %v9010_v1 = vpop.f32.mrf.mxu1  ;;  %v11181_v4 = vpop.f32.mrf.mxu0 }
 0x687   :  { %v9011_v7 = vpop.f32.mrf.mxu1  ;;  %v11185_v11 = vpop.f32.mrf.mxu0 }
 0x688   :  { %v11183_v44 = vadd.f32 %v9011_v7, %v9010_v1 }
 0x689   :  { %v11187_v19 = vpop.f32.mrf.mxu1  ;;  %v11189_v53 = vpop.f32.mrf.mxu0 }
 0x68a   :  { %12260 = vst [vmem:[#allocation18_spill] sm:$0xff] %v11183_v44  ;;  %12261 = vst [vmem:[#allocation19_spill] sm:$0xff] %v11187_v19 }
 0x68b   :  { %v11194_v52 = vpop.f32.mrf.mxu1  ;;  %v11196_v25 = vpop.f32.mrf.mxu0 }
 0x68c   :  { %12262 = vst [vmem:[#allocation20_spill] sm:$0xff] %v11194_v52 }
 0x68d   :  { %v9016_v56 = vpop.f32.mrf.mxu1  ;;  %v11199_v29 = vpop.f32.mrf.mxu0 }
 0x68f   :  { %v9017_v5 = vpop.f32.mrf.mxu1  ;;  %v11203_v23 = vpop.f32.mrf.mxu0 }
 0x690   :  { %v11201_v47 = vadd.f32 %v9017_v5, %v9016_v56  ;;  %v4724_v56 = vld [vmem:[%s12237_s4 + $0x110] sm:$0xff]  ;;  %v4723_v5 = vld [vmem:[%s12237_s4 + $0x108] sm:$0xff] }
 0x691   :  { %v11205_v55 = vpop.f32.mrf.mxu1  ;;  %v11207_v41 = vpop.f32.mrf.mxu0  ;;  %9667 = vmatpush3.msra.mxu0 %v4724_v56 }
 0x692   :  { %12263 = vst [vmem:[#allocation21_spill] sm:$0xff] %v11201_v47  ;;  %12264 = vst [vmem:[#allocation22_spill] sm:$0xff] %v11205_v55  ;;  %9668 = vmatprep.subr.mxu0 %v12257_v3 }
 0x693   :  { %12265 = vst [vmem:[#allocation23_spill] sm:$0xff] %v11207_v41  ;;  %v11209_v27 = vpop.f32.mrf.mxu1  ;;  %v11211_v49 = vpop.f32.mrf.mxu0  ;;  %9669 = vmatpush3.msra.mxu0 %v4723_v5 }
 0x694   :  { %12266 = vst [vmem:[#allocation24_spill] sm:$0xff] %v11209_v27  ;;  %12267 = vst [vmem:[#allocation25_spill] sm:$0xff] %v11211_v49  ;;  %9670 = vmatprep.subr.mxu0 %v12257_v3 }
 0x695   :  { %v9022_v1 = vpop.f32.mrf.mxu1  ;;  %v11213_v7 = vpop.f32.mrf.mxu0 }
 0x696   :  { %12268 = vst [vmem:[#allocation26_spill] sm:$0xff] %v11213_v7 }
 0x697   :  { %v9023_v48 = vpop.f32.mrf.mxu1  ;;  %v11217_v44 = vpop.f32.mrf.mxu0 }
 0x698   :  { %v11215_v38 = vadd.f32 %v9023_v48, %v9022_v1  ;;  %12270 = vst [vmem:[#allocation28_spill] sm:$0xff] %v11217_v44  ;;  %v4722_v1 = vld [vmem:[%s12237_s4 + $0x100] sm:$0xff] }
 0x699   :  { %v11225_v55 = vpop.f32.mrf.mxu1  ;;  %v11227_v27 = vpop.f32.mrf.mxu0  ;;  %9671 = vmatpush3.msra.mxu0 %v4722_v1 }
 0x69a   :  { %12269 = vst [vmem:[#allocation27_spill] sm:$0xff] %v11215_v38  ;;  %12271 = vst [vmem:[#allocation29_spill] sm:$0xff] %v11225_v55  ;;  %9675 = vmatprep.subr.mxu0 %v12257_v3 }
 0x69b   :  { %12272 = vst [vmem:[#allocation30_spill] sm:$0xff] %v11227_v27  ;;  %v11233_v48 = vpop.f32.mrf.mxu1  ;;  %v11235_v38 = vpop.f32.mrf.mxu0 }
 0x69c   :  { %12273 = vst [vmem:[#allocation31_spill] sm:$0xff] %v11233_v48  ;;  %12274 = vst [vmem:[#allocation32_spill] sm:$0xff] %v11235_v38 }
 0x69d   :  { %v9028_v47 = vpop.f32.mrf.mxu1  ;;  %v11238_v44 = vpop.f32.mrf.mxu0 }
 0x69e   :  { %12275 = vst [vmem:[#allocation33_spill] sm:$0xff] %v11238_v44 }
 0x69f   :  { %v9029_v56 = vpop.f32.mrf.mxu1  ;;  %v11243_v27 = vpop.f32.mrf.mxu0 }
 0x6a0   :  { %v11241_v55 = vadd.f32 %v9029_v56, %v9028_v47  ;;  %12277 = vst [vmem:[#allocation35_spill] sm:$0xff] %v11243_v27 }
 0x6a1   :  { %v11245_v7 = vpop.f32.mrf.mxu1  ;;  %v11247_v52 = vpop.f32.mrf.mxu0 }
 0x6a2   :  { %12276 = vst [vmem:[#allocation34_spill] sm:$0xff] %v11241_v55  ;;  %12278 = vst [vmem:[#allocation36_spill] sm:$0xff] %v11245_v7 }
 0x6a3   :  { %12279 = vst [vmem:[#allocation37_spill] sm:$0xff] %v11247_v52  ;;  %v11249_v5 = vpop.f32.mrf.mxu1  ;;  %v11251_v48 = vpop.f32.mrf.mxu0 }
 0x6a4   :  { %12280 = vst [vmem:[#allocation38_spill] sm:$0xff] %v11249_v5  ;;  %12281 = vst [vmem:[#allocation39_spill] sm:$0xff] %v11251_v48 }
 0x6a5   :  { %v9034_v38 = vpop.f32.mrf.mxu1  ;;  %v11253_v1 = vpop.f32.mrf.mxu0 }
 0x6a6   :  { %12282 = vst [vmem:[#allocation40_spill] sm:$0xff] %v11253_v1 }
 0x6a7   :  { %v9035_v19 = vpop.f32.mrf.mxu1  ;;  %v11261_v56 = vpop.f32.mrf.mxu0 }
 0x6a8   :  { %v11255_v44 = vadd.f32 %v9035_v19, %v9034_v38  ;;  %12286 = vst [vmem:[#allocation44_spill] sm:$0xff] %v11261_v56 }
 0x6a9   :  { %v11257_v3 = vpop.f32.mrf.mxu1  ;;  %v11263_v27 = vpop.f32.mrf.mxu0 }
 0x6aa   :  { %12283 = vst [vmem:[#allocation41_spill] sm:$0xff] %v11255_v44  ;;  %12284 = vst [vmem:[#allocation42_spill] sm:$0xff] %v11257_v3 }
 0x6ab   :  { %v11259_v47 = vpop.f32.mrf.mxu1  ;;  %12287 = vst [vmem:[#allocation45_spill] sm:$0xff] %v11263_v27  ;;  %v11267_v49 = vpop.f32.mrf.mxu0 }
 0x6ac   :  { %12285 = vst [vmem:[#allocation43_spill] sm:$0xff] %v11259_v47  ;;  %12289 = vst [vmem:[#allocation47_spill] sm:$0xff] %v11267_v49 }
 0x6ad   :  { %v9040_v55 = vpop.f32.mrf.mxu1  ;;  %v11271_v44 = vpop.f32.mrf.mxu0 }
 0x6ae   :  { %12291 = vst [vmem:[#allocation49_spill] sm:$0xff] %v11271_v44 }
 0x6af   :  { %v9041_v7 = vpop.f32.mrf.mxu1  ;;  %v11275_v1 = vpop.f32.mrf.mxu0 }
 0x6b0   :  { %v11265_v52 = vadd.f32 %v9041_v7, %v9040_v55  ;;  %12293 = vst [vmem:[#allocation51_spill] sm:$0xff] %v11275_v1 }
 0x6b1   :  { %v9043_v5 = vpop.f32.mrf.mxu1 }
 0x6b2   :  { %12288 = vst [vmem:[#allocation46_spill] sm:$0xff] %v11265_v52  ;;  %v11279_v52 = vpop.f32.mrf.mxu0 }
 0x6b3   :  { %v9044_v48 = vpop.f32.mrf.mxu1 }
 0x6b4   :  { %v11269_v41 = vadd.f32 %v9044_v48, %v9043_v5 }
 0x6b5   :  { %v9046_v38 = vpop.f32.mrf.mxu1 }
 0x6b6   :  { %12290 = vst [vmem:[#allocation48_spill] sm:$0xff] %v11269_v41  ;;  %v11283_v41 = vpop.f32.mrf.mxu0 }
 0x6b7   :  { %v9047_v19 = vpop.f32.mrf.mxu1 }
 0x6b8   :  { %v11273_v3 = vadd.f32 %v9047_v19, %v9046_v38 }
 0x6b9   :  { %v9049_v47 = vpop.f32.mrf.mxu1 }
 0x6ba   :  { %12292 = vst [vmem:[#allocation50_spill] sm:$0xff] %v11273_v3  ;;  %v11287_v3 = vpop.f32.mrf.mxu0 }
 0x6bb   :  { %v9050_v56 = vpop.f32.mrf.mxu1 }
 0x6bc   :  { %v11277_v21 = vadd.f32 %v9050_v56, %v9049_v47 }
 0x6bd   :  { %v9052_v55 = vpop.f32.mrf.mxu1 }
 0x6be   :  { %12294 = vst [vmem:[#allocation52_spill] sm:$0xff] %v11277_v21  ;;  %v11291_v21 = vpop.f32.mrf.mxu0 }
 0x6bf   :  { %v9053_v7 = vpop.f32.mrf.mxu1 }
 0x6c0   :  { %v11281_v27 = vadd.f32 %v9053_v7, %v9052_v55  ;;  %v9085_v7 = vadd.f32 %v11088_v62, %v11078_v39 }
 0x6c1   :  { %v9055_v48 = vpop.f32.mrf.mxu1 }
 0x6c3   :  { %v9056_v5 = vpop.f32.mrf.mxu1 }
 0x6c4   :  { %v11285_v49 = vadd.f32 %v9056_v5, %v9055_v48  ;;  %v9088_v48 = vadd.f32 %v11095_v30, %v11091_v12 }
 0x6c5   :  { %v9058_v38 = vpop.f32.mrf.mxu1 }
 0x6c6   :  { %12295 = vst [vmem:[#allocation53_spill] sm:$0xff] %v11285_v49  ;;  %v8973_v49 = vadd.f32 %v11072_v18, %v11069_v51  ;;  %v4273_v39 = vadd.f32 %v9088_v48, %v11074_v2 }
 0x6c7   :  { %v9059_v19 = vpop.f32.mrf.mxu1 }
 0x6c8   :  { %v11289_v44 = vadd.f32 %v9059_v19, %v9058_v38  ;;  %v9091_v38 = vadd.f32 %v11106_v14, %v11099_v46  ;;  %v11303_v19 = vpop.f32.mrf.mxu0  ;;  %v4268_v12 = vadd.f32 %v9085_v7, %v8973_v49 }
 0x6c9   :  { %v9061_v47 = vpop.f32.mrf.mxu1 }
 0x6ca   :  { %v11313_v51 = vpop.f32.mrf.mxu0 }
 0x6cb   :  { %v9062_v56 = vpop.f32.mrf.mxu1 }
 0x6cc   :  { %v11293_v1 = vadd.f32 %v9062_v56, %v9061_v47  ;;  %v9094_v47 = vadd.f32 %v11113_v10, %v11109_v50  ;;  %v9097_v50 = vadd.f32 %v11124_v42, %v11117_v20  ;;  %v8985_v20 = vadd.f32 %v11104_v0, %v11097_v34 }
 0x6cd   :  { %v9610_v55 = vpop.f32.mrf.mxu1  ;;  %v9103_v42 = vadd.f32 %v11142_v45, %v11135_v17  ;;  %v9106_v34 = vadd.f32 %v11149_v28, %v11145_v31  ;;  %v9109_v28 = vadd.f32 %v11160_v35, %v11153_v63  ;;  %v9115_v63 = vadd.f32 %v11178_v26, %v11171_v58 }
 0x6ce   :  { %12296 = vst [vmem:[#allocation54_spill] sm:$0xff] %v11293_v1  ;;  %v8979_v1 = vadd.f32 %v11083_v57, %v11076_v9  ;;  %v11315_v18 = vadd.f32 %v9610_v55, %v4273_v39  ;;  %v9100_v9 = vadd.f32 %v11131_v43, %v11127_v16  ;;  %v4281_v2 = vadd.f32 %v9094_v47, %v11093_v22  ;;  %v11336_v43 = vpop.f32.mrf.mxu0 }
 0x6cf   :  { %v4425_v5 = vpop.f32.mrf.mxu1 }
 0x6d0   :  { %v11311_v62 = vadd.f32 %v4425_v5, %v11086_v59  ;;  %v4276_v46 = vadd.f32 %v9091_v38, %v8979_v1  ;;  %v4655_v22 = vmul.f32 %v11315_v18, %v11315_v18  ;;  %v8991_v5 = vadd.f32 %v11122_v36, %v11115_v60 }
 0x6d1   :  { %v9611_v56 = vpop.f32.mrf.mxu1  ;;  %v4289_v0 = vadd.f32 %v9100_v9, %v11111_v6 }
 0x6d2   :  { %v4653_v59 = vmul.f32 %v11311_v62, %v11311_v62  ;;  %v11326_v10 = vadd.f32 %v9611_v56, %v4276_v46  ;;  %v4284_v56 = vadd.f32 %v9097_v50, %v8985_v20  ;;  %v11353_v46 = vpop.f32.mrf.mxu0  ;;  %v9112_v50 = vadd.f32 %v11167_v54, %v11163_v15 }
 0x6d3   :  { %v4428_v30 = vpop.f32.mrf.mxu1  ;;  %v8997_v20 = vadd.f32 %v11140_v24, %v11133_v8  ;;  %v9118_v8 = vadd.f32 %v11185_v11, %v11181_v4  ;;  %v9121_v11 = vadd.f32 %v11196_v25, %v11189_v53 }
 0x6d4   :  { %v11317_v14 = vadd.f32 %v4428_v30, %v4268_v12  ;;  %v4656_v45 = vmul.f32 %v11326_v10, %v11326_v10  ;;  %v4292_v12 = vadd.f32 %v9103_v42, %v8991_v5  ;;  %v11374_v42 = vpop.f32.mrf.mxu0  ;;  %v4305_v24 = vadd.f32 %v9112_v50, %v11147_v37  ;;  %v12298_v50 = vld [vmem:[#allocation23_spill] sm:$0xff] }
 0x6d5   :  { %v9614_v57 = vpop.f32.mrf.mxu1  ;;  %v4300_v5 = vadd.f32 %v9109_v28, %v8997_v20 }
 0x6d6   :  { %v4616_v49 = vadd.f32 %v11317_v14, %v11311_v62  ;;  %v4654_v1 = vmul.f32 %v11317_v14, %v11317_v14  ;;  %v11351_v39 = vadd.f32 %v9614_v57, %v4289_v0  ;;  %v4297_v57 = vadd.f32 %v9106_v34, %v11129_v40 }
 0x6d7   :  { %v4441_v16 = vpop.f32.mrf.mxu1 }
 0x6d8   :  { %v4617_v55 = vadd.f32 %v4616_v49, %v11315_v18  ;;  %v4685_v7 = vadd.f32 %v4654_v1, %v4653_v59  ;;  %v11341_v48 = vadd.f32 %v4441_v16, %v4281_v2  ;;  %v4659_v40 = vmul.f32 %v11351_v39, %v11351_v39 }
 0x6d9   :  { %v9615_v17 = vpop.f32.mrf.mxu1 }
 0x6da   :  { %v4686_v38 = vadd.f32 %v4685_v7, %v4655_v22  ;;  %v4618_v47 = vadd.f32 %v4617_v55, %v11326_v10  ;;  %v4657_v36 = vmul.f32 %v11341_v48, %v11341_v48  ;;  %v11365_v59 = vadd.f32 %v9615_v17, %v4292_v12 }
 0x6db   :  { %v4444_v30 = vpop.f32.mrf.mxu1  ;;  %v9003_v22 = vadd.f32 %v11158_v61, %v11151_v13 }
 0x6dc   :  { %v4619_v60 = vadd.f32 %v4618_v47, %v11341_v48  ;;  %v4687_v6 = vadd.f32 %v4686_v38, %v4656_v45  ;;  %v11358_v31 = vadd.f32 %v4444_v30, %v4284_v56  ;;  %v4660_v26 = vmul.f32 %v11365_v59, %v11365_v59  ;;  %v11391_v45 = vpop.f32.mrf.mxu0 }
 0x6dd   :  { %v9618_v9 = vpop.f32.mrf.mxu1  ;;  %v4308_v0 = vadd.f32 %v9115_v63, %v9003_v22  ;;  %v9124_v38 = vadd.f32 %v11203_v23, %v11199_v29  ;;  %v4313_v56 = vadd.f32 %v9118_v8, %v11165_v32  ;;  %v12302_v63 = vld [vmem:[#allocation26_spill] sm:$0xff] }
 0x6de   :  { %v4688_v2 = vadd.f32 %v4687_v6, %v4657_v36  ;;  %v4620_v49 = vadd.f32 %v4619_v60, %v11358_v31  ;;  %v4658_v1 = vmul.f32 %v11358_v31, %v11358_v31  ;;  %v11389_v34 = vadd.f32 %v9618_v9, %v4305_v24  ;;  %v12297_v6 = vld [vmem:[#allocation17_spill] sm:$0xff] }
 0x6df   :  { %v4457_v35 = vpop.f32.mrf.mxu1  ;;  %v9009_v28 = vadd.f32 %v12297_v6, %v11169_v33  ;;  %v12299_v9 = vld [vmem:[#allocation25_spill] sm:$0xff] }
 0x6e0   :  { %v4621_v15 = vadd.f32 %v4620_v49, %v11351_v39  ;;  %v4689_v54 = vadd.f32 %v4688_v2, %v4658_v1  ;;  %v11379_v16 = vadd.f32 %v4457_v35, %v4297_v57  ;;  %v9127_v53 = vadd.f32 %v12299_v9, %v12298_v50  ;;  %v11412_v57 = vpop.f32.mrf.mxu0  ;;  %v12300_v49 = vld [vmem:[#allocation19_spill] sm:$0xff]  ;;  %v12301_v1 = vld [vmem:[#allocation20_spill] sm:$0xff] }
 0x6e1   :  { %v9619_v58 = vpop.f32.mrf.mxu1  ;;  %v4663_v32 = vmul.f32 %v11389_v34, %v11389_v34  ;;  %v9015_v20 = vadd.f32 %v12301_v1, %v12300_v49  ;;  %v12303_v35 = vld [vmem:[#allocation28_spill] sm:$0xff]  ;;  %v12313_v49 = vld [vmem:[#allocation39_spill] sm:$0xff] }
 0x6e2   :  { %v4690_v55 = vadd.f32 %v4689_v54, %v4659_v40  ;;  %v4622_v7 = vadd.f32 %v4621_v15, %v11365_v59  ;;  %v4661_v61 = vmul.f32 %v11379_v16, %v11379_v16  ;;  %v11403_v30 = vadd.f32 %v9619_v58, %v4308_v0  ;;  %v12304_v40 = vld [vmem:[#allocation18_spill] sm:$0xff] }
 0x6e3   :  { %v4460_v17 = vpop.f32.mrf.mxu1  ;;  %v9130_v33 = vadd.f32 %v12303_v35, %v12302_v63  ;;  %v4321_v15 = vadd.f32 %v9124_v38, %v12304_v40  ;;  %v4316_v58 = vadd.f32 %v9121_v11, %v9009_v28  ;;  %v12306_v38 = vld [vmem:[#allocation32_spill] sm:$0xff] }
 0x6e4   :  { %v4623_v13 = vadd.f32 %v4622_v7, %v11379_v16  ;;  %v4691_v37 = vadd.f32 %v4690_v55, %v4660_v26  ;;  %v11396_v4 = vadd.f32 %v4460_v17, %v4300_v5  ;;  %v4664_v22 = vmul.f32 %v11403_v30, %v11403_v30  ;;  %v11429_v5 = vpop.f32.mrf.mxu0 }
 0x6e5   :  { %v9622_v47 = vpop.f32.mrf.mxu1  ;;  %v4324_v55 = vadd.f32 %v9127_v53, %v9015_v20 }
 0x6e6   :  { %v4692_v12 = vadd.f32 %v4691_v37, %v4661_v61  ;;  %v4624_v60 = vadd.f32 %v4623_v13, %v11396_v4  ;;  %v4662_v36 = vmul.f32 %v11396_v4, %v11396_v4  ;;  %v11427_v26 = vadd.f32 %v9622_v47, %v4321_v15  ;;  %v12305_v37 = vld [vmem:[#allocation30_spill] sm:$0xff]  ;;  %v11450_v63 = vpop.f32.mrf.mxu0 }
 0x6e7   :  { %v4473_v25 = vpop.f32.mrf.mxu1 }
 0x6e8   :  { %v4625_v29 = vadd.f32 %v4624_v60, %v11389_v34  ;;  %v4693_v23 = vadd.f32 %v4692_v12, %v4662_v36  ;;  %v11417_v2 = vadd.f32 %v4473_v25, %v4313_v56  ;;  %v9133_v56 = vadd.f32 %v12306_v38, %v12305_v37  ;;  %v12307_v12 = vld [vmem:[#allocation33_spill] sm:$0xff]  ;;  %v12308_v60 = vld [vmem:[#allocation35_spill] sm:$0xff]  ;;  %v12310_v25 = vld [vmem:[#allocation22_spill] sm:$0xff] }
 0x6e9   :  { %v9623_v54 = vpop.f32.mrf.mxu1  ;;  %v9136_v11 = vadd.f32 %v12308_v60, %v12307_v12  ;;  %v12309_v36 = vld [vmem:[#allocation21_spill] sm:$0xff]  ;;  %v4667_v35 = vmul.f32 %v11427_v26, %v11427_v26 }
 0x6ea   :  { %v4694_v8 = vadd.f32 %v4693_v23, %v4663_v32  ;;  %v4626_v24 = vadd.f32 %v4625_v29, %v11403_v30  ;;  %v4665_v17 = vmul.f32 %v11417_v2, %v11417_v2  ;;  %v4329_v6 = vadd.f32 %v9130_v33, %v12309_v36  ;;  %v12311_v32 = vld [vmem:[#allocation24_spill] sm:$0xff]  ;;  %v12312_v23 = vld [vmem:[#allocation37_spill] sm:$0xff] }
 0x6eb   :  { %v4476_v7 = vpop.f32.mrf.mxu1  ;;  %v11441_v50 = vadd.f32 %v9623_v54, %v4324_v55  ;;  %v9021_v29 = vadd.f32 %v12311_v32, %v12310_v25  ;;  %v9139_v1 = vadd.f32 %v12313_v49, %v12312_v23  ;;  %v12314_v54 = vld [vmem:[#allocation29_spill] sm:$0xff]  ;;  %v12320_v23 = vld [vmem:[#allocation47_spill] sm:$0xff] }
 0x6ec   :  { %v4627_v0 = vadd.f32 %v4626_v24, %v11417_v2  ;;  %v4695_v13 = vadd.f32 %v4694_v8, %v4664_v22  ;;  %v11434_v61 = vadd.f32 %v4476_v7, %v4316_v58  ;;  %v12315_v22 = vld [vmem:[#allocation31_spill] sm:$0xff]  ;;  %v12316_v24 = vld [vmem:[#allocation40_spill] sm:$0xff]  ;;  %v12319_v32 = vld [vmem:[#allocation45_spill] sm:$0xff] }
 0x6ed   :  { %v9626_v47 = vpop.f32.mrf.mxu1  ;;  %v9027_v8 = vadd.f32 %v12315_v22, %v12314_v54  ;;  %v12317_v58 = vld [vmem:[#allocation44_spill] sm:$0xff]  ;;  %v12318_v7 = vld [vmem:[#allocation27_spill] sm:$0xff]  ;;  %v4332_v12 = vadd.f32 %v9133_v56, %v9021_v29  ;;  %v9145_v49 = vadd.f32 %v12320_v23, %v12319_v32  ;;  %v12323_v29 = vld [vmem:[#allocation34_spill] sm:$0xff] }
 0x6ee   :  { %v4696_v28 = vadd.f32 %v4695_v13, %v4665_v17  ;;  %v4628_v9 = vadd.f32 %v4627_v0, %v11434_v61  ;;  %v4666_v53 = vmul.f32 %v11434_v61, %v11434_v61  ;;  %v9142_v55 = vadd.f32 %v12317_v58, %v12316_v24  ;;  %v12325_v24 = vld [vmem:[#allocation38_spill] sm:$0xff] }
 0x6ef   :  { %v4489_v20 = vpop.f32.mrf.mxu1  ;;  %v4337_v0 = vadd.f32 %v9136_v11, %v12318_v7  ;;  %v4668_v13 = vmul.f32 %v11441_v50, %v11441_v50  ;;  %v4340_v36 = vadd.f32 %v9139_v1, %v9027_v8  ;;  %v12324_v8 = vld [vmem:[#allocation36_spill] sm:$0xff]  ;;  %v9151_v7 = vadd.f32 %v11283_v41, %v11279_v52 }
 0x6f0   :  { %v4629_v33 = vadd.f32 %v4628_v9, %v11427_v26  ;;  %v4697_v40 = vadd.f32 %v4696_v28, %v4666_v53  ;;  %v11455_v15 = vadd.f32 %v4489_v20, %v4329_v6  ;;  %v11467_v28 = vpop.f32.mrf.mxu0  ;;  %v12321_v20 = vld [vmem:[#allocation49_spill] sm:$0xff]  ;;  %v4345_v1 = vadd.f32 %v9142_v55, %v12323_v29 }
 0x6f1   :  { %v9627_v17 = vpop.f32.mrf.mxu1  ;;  %v11465_v60 = vadd.f32 %v9626_v47, %v4337_v0  ;;  %v9033_v58 = vadd.f32 %v12325_v24, %v12324_v8  ;;  %v9160_v8 = vadd.f32 %v11353_v46, %v11336_v43 }
 0x6f2   :  { %v4698_v37 = vadd.f32 %v4697_v40, %v4667_v35  ;;  %v4630_v38 = vadd.f32 %v4629_v33, %v11441_v50  ;;  %v4669_v53 = vmul.f32 %v11455_v15, %v11455_v15  ;;  %v12322_v35 = vld [vmem:[#allocation51_spill] sm:$0xff]  ;;  %v11479_v40 = vadd.f32 %v9627_v17, %v4340_v36 }
 0x6f3   :  { %v4492_v6 = vpop.f32.mrf.mxu1  ;;  %v9148_v56 = vadd.f32 %v12322_v35, %v12321_v20  ;;  %v12327_v36 = vld [vmem:[#allocation43_spill] sm:$0xff]  ;;  %v4348_v20 = vadd.f32 %v9145_v49, %v9033_v58 }
 0x6f4   :  { %v4631_v9 = vadd.f32 %v4630_v38, %v11455_v15  ;;  %v4699_v11 = vadd.f32 %v4698_v37, %v4668_v13  ;;  %v11472_v25 = vadd.f32 %v4492_v6, %v4332_v12  ;;  %v9170_v13 = vpop.f32.mrf.mxu0  ;;  %v4671_v37 = vmul.f32 %v11465_v60, %v11465_v60  ;;  %v12326_v12 = vld [vmem:[#allocation42_spill] sm:$0xff] }
 0x6f5   :  { %v9630_v47 = vpop.f32.mrf.mxu1  ;;  %v9039_v6 = vadd.f32 %v12327_v36, %v12326_v12  ;;  %v4672_v52 = vmul.f32 %v11479_v40, %v11479_v40  ;;  %v9166_v36 = vadd.f32 %v11429_v5, %v11412_v57 }
 0x6f6   :  { %v4700_v33 = vadd.f32 %v4699_v11, %v4669_v53  ;;  %v4632_v54 = vadd.f32 %v4631_v9, %v11472_v25  ;;  %v4670_v22 = vmul.f32 %v11472_v25, %v11472_v25  ;;  %v9154_v9 = vadd.f32 %v11291_v21, %v11287_v3  ;;  %v12328_v53 = vld [vmem:[#allocation41_spill] sm:$0xff] }
 0x6f7   :  { %v4505_v0 = vpop.f32.mrf.mxu1  ;;  %v4353_v11 = vadd.f32 %v9148_v56, %v12328_v53  ;;  %v4356_v29 = vadd.f32 %v9151_v7, %v9039_v6  ;;  %v12330_v6 = vld [vmem:[#allocation50_spill] sm:$0xff] }
 0x6f8   :  { %v4633_v55 = vadd.f32 %v4632_v54, %v11465_v60  ;;  %v4701_v17 = vadd.f32 %v4700_v33, %v4670_v22  ;;  %v11491_v38 = vadd.f32 %v4505_v0, %v4345_v1  ;;  %v9171_v33 = vpop.f32.mrf.mxu0  ;;  %v9157_v22 = vadd.f32 %v11313_v51, %v11303_v19 }
 0x6f9   :  { %v9631_v32 = vpop.f32.mrf.mxu1  ;;  %v11501_v35 = vadd.f32 %v9630_v47, %v4353_v11  ;;  %v12329_v47 = vld [vmem:[#allocation46_spill] sm:$0xff] }
 0x6fa   :  { %v4702_v41 = vadd.f32 %v4701_v17, %v4671_v37  ;;  %v4634_v23 = vadd.f32 %v4633_v55, %v11479_v40  ;;  %v4673_v3 = vmul.f32 %v11491_v38, %v11491_v38  ;;  %v4361_v24 = vadd.f32 %v9154_v9, %v12329_v47  ;;  %v9173_v12 = vpop.f32.mrf.mxu0 }
 0x6fb   :  { %v4508_v1 = vpop.f32.mrf.mxu1  ;;  %v11513_v7 = vadd.f32 %v9631_v32, %v4356_v29  ;;  %v9163_v55 = vadd.f32 %v11391_v45, %v11374_v42  ;;  %v4675_v19 = vmul.f32 %v11501_v35, %v11501_v35  ;;  %v4369_v9 = vadd.f32 %v9160_v8, %v12330_v6  ;;  %v12331_v32 = vld [vmem:[#allocation48_spill] sm:$0xff] }
 0x6fc   :  { %v4635_v54 = vadd.f32 %v4634_v23, %v11491_v38  ;;  %v4703_v21 = vadd.f32 %v4702_v41, %v4672_v52  ;;  %v11506_v56 = vadd.f32 %v4508_v1, %v4348_v20  ;;  %v4364_v52 = vadd.f32 %v9157_v22, %v12331_v32  ;;  %v12332_v23 = vld [vmem:[#allocation52_spill] sm:$0xff]  ;;  %v9174_v1 = vpop.f32.mrf.mxu0 }
 0x6fd   :  { %v9634_v49 = vpop.f32.mrf.mxu1  ;;  %v4676_v11 = vmul.f32 %v11513_v7, %v11513_v7  ;;  %v4372_v20 = vadd.f32 %v9163_v55, %v12332_v23  ;;  %v9172_v8 = vadd.f32 %v9171_v33, %v9170_v13  ;;  %v4377_v22 = vadd.f32 %v9166_v36, %v11281_v27  ;;  %v12333_v36 = vld [vmem:[#allocation53_spill] sm:$0xff] }
 0x6fe   :  { %v4704_v58 = vadd.f32 %v4703_v21, %v4673_v3  ;;  %v4636_v0 = vadd.f32 %v4635_v54, %v11506_v56  ;;  %v4674_v37 = vmul.f32 %v11506_v56, %v11506_v56  ;;  %v11532_v41 = vadd.f32 %v9634_v49, %v4369_v9  ;;  %v12334_v9 = vld [vmem:[#allocation54_spill] sm:$0xff] }
 0x6ff   :  { %v4521_v17 = vpop.f32.mrf.mxu1  ;;  %v9169_v21 = vadd.f32 %v11467_v28, %v11450_v63  ;;  %v4385_v27 = vadd.f32 %v9172_v8, %v11289_v44 }
 0x700   :  { %v4637_v51 = vadd.f32 %v4636_v0, %v11501_v35  ;;  %v4705_v43 = vadd.f32 %v4704_v58, %v4674_v37  ;;  %v11523_v46 = vadd.f32 %v4521_v17, %v4361_v24  ;;  %v9175_v37 = vadd.f32 %v9174_v1, %v9173_v12 }
 0x701   :  { %v9635_v53 = vpop.f32.mrf.mxu1  ;;  %v4679_v17 = vmul.f32 %v11532_v41, %v11532_v41  ;;  %v4380_v12 = vadd.f32 %v9169_v21, %v12333_v36  ;;  %v4739_v36 = vld [vmem:[%s12238_s5 + $0x28] sm:$0xff] }
 0x702   :  { %v4706_v42 = vadd.f32 %v4705_v43, %v4675_v19  ;;  %v4638_v45 = vadd.f32 %v4637_v51, %v11513_v7  ;;  %v4677_v57 = vmul.f32 %v11523_v46, %v11523_v46  ;;  %v11543_v24 = vadd.f32 %v9635_v53, %v4372_v20 }
 0x703   :  { %v4524_v29 = vpop.f32.mrf.mxu1  ;;  %v4388_v53 = vadd.f32 %v9175_v37, %v12334_v9  ;;  %v10003_v9 = vld [vmem:[#allocation10 + $0x2f8] sm:$0xff]  }
 0x704   :  { %v4639_v54 = vadd.f32 %v4638_v45, %v11523_v46  ;;  %v4707_v5 = vadd.f32 %v4706_v42, %v4676_v11  ;;  %v11538_v3 = vadd.f32 %v4524_v29, %v4364_v52  ;;  %v4680_v33 = vmul.f32 %v11543_v24, %v11543_v24 }
 0x705   :  { %v9638_v47 = vpop.f32.mrf.mxu1 }
 0x706   :  { %v4708_v49 = vadd.f32 %v4707_v5, %v4677_v57  ;;  %v4640_v58 = vadd.f32 %v4639_v54, %v11538_v3  ;;  %v4678_v0 = vmul.f32 %v11538_v3, %v11538_v3  ;;  %v11558_v6 = vadd.f32 %v9638_v47, %v4385_v27 }
 0x707   :  { %v4537_v55 = vpop.f32.mrf.mxu1 }
 0x708   :  { %v4641_v19 = vadd.f32 %v4640_v58, %v11532_v41  ;;  %v4709_v63 = vadd.f32 %v4708_v49, %v4678_v0  ;;  %v11551_v28 = vadd.f32 %v4537_v55, %v4377_v22  ;;  %v4683_v1 = vmul.f32 %v11558_v6, %v11558_v6 }
 0x709   :  { %v9639_v13 = vpop.f32.mrf.mxu1 }
 0x70a   :  { %v4710_v51 = vadd.f32 %v4709_v63, %v4679_v17  ;;  %v4642_v43 = vadd.f32 %v4641_v19, %v11543_v24  ;;  %v4681_v45 = vmul.f32 %v11551_v28, %v11551_v28  ;;  %v11566_v23 = vadd.f32 %v9639_v13, %v4388_v53  ;;  %v10004_v53 = vld [vmem:[#allocation10 + $0x378] sm:$0xff]  }
 0x70b   :  { %v4540_v11 = vpop.f32.mrf.mxu1  ;;  %9332 = vmatprep.subr.bf16.mxu1 %v10004_v53  ;;  %v10024_v53 = vld [vmem:[#allocation10 + $0x350] sm:$0xff]  }
 0x70c   :  { %v4643_v42 = vadd.f32 %v4642_v43, %v11551_v28  ;;  %v4711_v44 = vadd.f32 %v4710_v51, %v4680_v33  ;;  %v11564_v32 = vadd.f32 %v4540_v11, %v4380_v12  ;;  %v4684_v5 = vmul.f32 %v11566_v23, %v11566_v23  ;;  %v4738_v12 = vld [vmem:[%s12238_s5 + $0x20] sm:$0xff] }
 0x70d   :  { %v12335_v43 = vmov 0.0   ;;  %v10006_v11 = vld [vmem:[#allocation10 + $0x338] sm:$0xff]  }
 0x70e   :  { %v4712_v52 = vadd.f32 %v4711_v44, %v4681_v45  ;;  %v4644_v20 = vadd.f32 %v4643_v42, %v11564_v32  ;;  %v4682_v29 = vmul.f32 %v11564_v32, %v11564_v32  ;;  %v10008_v42 = vld [vmem:[#allocation10 + $0x370] sm:$0xff]   ;;  %9333 = vmatpush3.bf16.msra.mxu1 %v10006_v11 }
 0x70f   :  { %9334 = vmatprep.subr.bf16.mxu1 %v10008_v42  ;;  %v10010_v45 = vld [vmem:[#allocation10 + $0x330] sm:$0xff]  }
 0x710   :  { %v4645_v54 = vadd.f32 %v4644_v20, %v11558_v6  ;;  %v4713_v57 = vadd.f32 %v4712_v52, %v4682_v29  ;;  %v10025_v11 = vld [vmem:[#allocation10 + $0x290] sm:$0xff]  }
 0x711   :  { %v10026_v42 = vld [vmem:[#allocation10 + $0x310] sm:$0xff]  }
 0x712   :  { %v4646_v21 = vadd.f32 %v4645_v54, %v11566_v23  ;;  %v4714_v8 = vadd.f32 %v4713_v57, %v4683_v1  ;;  %9335 = vmatpush3.bf16.msra.mxu1 %v10010_v45  ;;  %v10027_v45 = vld [vmem:[#allocation10 + $0x2c8] sm:$0xff]  }
 0x714   :  { %v4647_v47 = vrot.slane %v4646_v21, 4  ;;  %v4715_v22 = vadd.f32 %v4714_v8, %v4684_v5 }
 0x716   :  { %v4648_v49 = vadd.f32 %v4647_v47, %v4646_v21  ;;  %v4716_v58 = vrot.slane %v4715_v22, 4 }
 0x718   :  { %v4649_v0 = vrot.slane %v4648_v49, 2  ;;  %v4717_v37 = vadd.f32 %v4716_v58, %v4715_v22  ;;  %v10005_v22 = vld [vmem:[#allocation10 + $0x2b8] sm:$0xff]  }
 0x71a   :  { %v4650_v55 = vadd.f32 %v4649_v0, %v4648_v49  ;;  %v4718_v17 = vrot.slane %v4717_v37, 2  ;;  %v10007_v49 = vld [vmem:[#allocation10 + $0x2f0] sm:$0xff]  }
 0x71b   :  { %v10009_v0 = vld [vmem:[#allocation10 + $0x2b0] sm:$0xff]  }
 0x71c   :  { %v4651_v19 = vrot.slane %v4650_v55, 1  ;;  %v4719_v63 = vadd.f32 %v4718_v17, %v4717_v37  ;;  %v10011_v37 = vld [vmem:[#allocation10 + $0x2e8] sm:$0xff]  }
 0x71d   :  { %v10013_v17 = vld [vmem:[#allocation10 + $0x2a8] sm:$0xff]  }
 0x71e   :  { %v4720_v27 = vrot.slane %v4719_v63, 1  ;;  %v4652_v13 = vadd.f32 %v4651_v19, %v4650_v55  ;;  %v10012_v55 = vld [vmem:[#allocation10 + $0x368] sm:$0xff]  }
 0x71f   :  { %v10014_v19 = vld [vmem:[#allocation10 + $0x328] sm:$0xff]   ;;  %9336 = vmatprep.subr.bf16.mxu1 %v10012_v55 }
 0x720   :  { %v4721_v33 = vadd.f32 %v4720_v27, %v4719_v63  ;;  %v10015_v63 = vld [vmem:[#allocation10 + $0x2e0] sm:$0xff]   ;;  %9337 = vmatpush3.bf16.msra.mxu1 %v10014_v19 }
 0x721   :  { %v10016_v27 = vld [vmem:[#allocation10 + $0x360] sm:$0xff]  }
 0x722   :  { %v4741_v51 = vsel %vm383_vm3, %v4652_v13, %v4721_v33  ;;  %v10017_v13 = vld [vmem:[#allocation10 + $0x2a0] sm:$0xff]   ;;  %9338 = vmatprep.subr.bf16.mxu1 %v10016_v27 }
 0x723   :  { %9673 = vmatmul.mubr.f32.vlgmr.msra.gmra.mxu0 %v4741_v51  ;;  %v10018_v33 = vld [vmem:[#allocation10 + $0x320] sm:$0xff]   ;;  %v10019_v51 = vld [vmem:[#allocation10 + $0x2d8] sm:$0xff]  }
 0x724   :  { %9679 = vmatprep.mubr.msk.f32.mxu0 %vm10338_vm2, %v12335_v43  ;;  %9676 = vmatpush3.msra.mxu0 %v4739_v36  ;;  %v10021_v36 = vld [vmem:[#allocation10 + $0x298] sm:$0xff]  }
 0x725   :  { %9677 = vmatprep.subr.mxu0 %v12335_v43  ;;  %v10020_v43 = vld [vmem:[#allocation10 + $0x358] sm:$0xff]   ;;  %9339 = vmatpush3.bf16.msra.mxu1 %v10018_v33 }
 0x726   :  { %9678 = vmatpush3.msra.mxu0 %v4738_v12  ;;  %v10022_v12 = vld [vmem:[#allocation10 + $0x318] sm:$0xff]   ;;  %9340 = vmatprep.subr.bf16.mxu1 %v10020_v43 }
 0x727   :  { %9220 = vmatprep.subr.bf16.mxu0 %v10003_v9  ;;  %v10023_v9 = vld [vmem:[#allocation10 + $0x2d0] sm:$0xff]  }
 0x729   :  { %9341 = vmatpush3.bf16.msra.mxu1 %v10022_v12 }
 0x72a   :  { %9342 = vmatprep.subr.bf16.mxu1 %v10024_v53 }
 0x72d   :  { %9343 = vmatpush3.bf16.msra.mxu1 %v10026_v42 }
 0x7e3   :  { %v4808_v44 = vpop.f32.mrf.mxu0 }
 0x7e4   :  { %v4812_v52 = vmul.f32 0.00012207031, %v4808_v44  ;;  %v10028_v44 = vld [vmem:[#allocation10 + $0x348] sm:$0xff]  }
 0x7e5   :  { %v9674_v20 = vpop.f32.mrf.mxu0  ;;  %9344 = vmatprep.subr.bf16.mxu1 %v10028_v44 }
 0x7e6   :  { %v4813_v29 = vmul.f32 %v4812_v52, %v4812_v52  ;;  %v10030_v20 = vld [vmem:[#allocation10 + $0x308] sm:$0xff]  }
 0x7e7   :  { %9345 = vmatpush3.bf16.msra.mxu1 %v10030_v20 }
 0x7e8   :  { %v4815_v1 = vrot.slane %v4813_v29, 7  ;;  %v10031_v29 = vld [vmem:[#allocation10 + $0x2c0] sm:$0xff]  }
 0x7ea   :  { %v4817_v54 = vsub.f32 %v4812_v52, %v4815_v1  ;;  %v10032_v1 = vld [vmem:[#allocation10 + $0x340] sm:$0xff]  }
 0x7eb   :  { %9346 = vmatprep.subr.bf16.mxu1 %v10032_v1 }
 0x7ec   :  { %v4818_v57 = vadd.f32 1e-05, %v4817_v54  ;;  %v10033_v54 = vld [vmem:[#allocation10 + $0x280] sm:$0xff]  }
 0x7ee   :  { %10159 = vrsqrt.f32 %v4818_v57  ;;  %v10034_v57 = vld [vmem:[#allocation10 + $0x300] sm:$0xff]  }
 0x7ef   :  { %9347 = vmatpush3.bf16.msra.mxu1 %v10034_v57 }
 0x7fb   :  { %v10160_v5 = vpop.eup %10159 }
 0x7fc   :  { %v4821_v21 = vrot.slane %v10160_v5, 1  ;;  %v11589_v5 = vld [vmem:[#allocation10 + $0x3b8] sm:$0xff]  }
 0x7fe   :  { %v4823_v8 = vmul.f32 %v4821_v21, %v4812_v52  ;;  %v10029_v52 = vld [vmem:[#allocation10 + $0x288] sm:$0xff]  }
 0x800   :  { %v4825_v47 = vrot.slane %v4823_v8, 7 }
 0x802   :  { %v4827_v58 = vsel %vm383_vm3, %v4821_v21, %v4825_v47  ;;  %v4740_v21 = vld [vmem:[%s12238_s5 + $0x32] sm:$0x1] }
 0x803   :  { %9680 = vmatmul.mubr.msk.f32.vlgmr.msra.gmra.mxu0 %vm471_vm4, %v4827_v58 }
 0x804   :  { %9221 = vmatpush3.bf16.msra.mxu0 %v10005_v22  ;;  %v12336_v22 = vld [vmem:[#allocation16_spill] sm:$0xff] }
 0x805   :  { %9222 = vmatprep.subr.bf16.mxu0 %v10007_v49 }
 0x808   :  { %9223 = vmatpush3.bf16.msra.mxu0 %v10009_v0 }
 0x809   :  { %9224 = vmatprep.subr.bf16.mxu0 %v10011_v37 }
 0x80c   :  { %9225 = vmatpush3.bf16.msra.mxu0 %v10013_v17 }
 0x80d   :  { %9226 = vmatprep.subr.bf16.mxu0 %v10015_v63 }
 0x810   :  { %9227 = vmatpush3.bf16.msra.mxu0 %v10017_v13 }
 0x811   :  { %9228 = vmatprep.subr.bf16.mxu0 %v10019_v51 }
 0x814   :  { %9229 = vmatpush3.bf16.msra.mxu0 %v10021_v36 }
 0x815   :  { %9230 = vmatprep.subr.bf16.mxu0 %v10023_v9 }
 0x818   :  { %9231 = vmatpush3.bf16.msra.mxu0 %v10025_v11 }
 0x819   :  { %9232 = vmatprep.subr.bf16.mxu0 %v10027_v45 }
 0x81c   :  { %9233 = vmatpush3.bf16.msra.mxu0 %v10029_v52 }
 0x81d   :  { %9234 = vmatprep.subr.bf16.mxu0 %v10031_v29 }
 0x820   :  { %9235 = vmatpush3.bf16.msra.mxu0 %v10033_v54 }
 0x821   :  { %9682 = vmatprep.subr.bf16.mxu0 %v11589_v5 }
 0x8c3   :  { %v4897_v8 = vpop.f32.mrf.mxu0 }
 0x8c4   :  { %v4902_v47 = vrot.slane %v4897_v8, 1  ;;  %v4911_v49 = vrot.slane %v4897_v8, %v12336_v22 }
 0x8c5   :  { %v9681_v58 = vpop.f32.mrf.mxu0 }
 0x8c6   :  { %v4904_v0 = vsub.f32 %v4740_v21, %v4902_v47  ;;  %v4912_v37 = vmul.f32 %v4911_v49, %v11311_v62  ;;  %v4921_v55 = vmul.f32 %v4911_v49, %v11317_v14  ;;  %v4926_v17 = vmul.f32 %v4911_v49, %v11315_v18 }
 0x8c7   :  { %v4931_v19 = vmul.f32 %v4911_v49, %v11326_v10  ;;  %v4936_v63 = vmul.f32 %v4911_v49, %v11341_v48  ;;  %v4941_v27 = vmul.f32 %v4911_v49, %v11358_v31  ;;  %v4946_v13 = vmul.f32 %v4911_v49, %v11351_v39 }
 0x8c8   :  { %v11604_v33 = vrot.slane %v4904_v0, %v12336_v22  ;;  %v4951_v51 = vmul.f32 %v4911_v49, %v11365_v59  ;;  %v4956_v43 = vmul.f32 %v4911_v49, %v11379_v16  ;;  %v4961_v62 = vmul.f32 %v4911_v49, %v11396_v4 }
 0x8c9   :  { %v4966_v14 = vmul.f32 %v4911_v49, %v11389_v34  ;;  %v4971_v18 = vmul.f32 %v4911_v49, %v11403_v30  ;;  %v4976_v10 = vmul.f32 %v4911_v49, %v11417_v2  ;;  %v4981_v48 = vmul.f32 %v4911_v49, %v11434_v61 }
 0x8ca   :  { %v4986_v31 = vmul.f32 %v4911_v49, %v11427_v26  ;;  %v4991_v39 = vmul.f32 %v4911_v49, %v11441_v50  ;;  %v4996_v36 = vmul.f32 %v4911_v49, %v11455_v15  ;;  %v5001_v59 = vmul.f32 %v4911_v49, %v11472_v25 }
 0x8cb   :  { %v5006_v16 = vmul.f32 %v4911_v49, %v11465_v60  ;;  %v5011_v4 = vmul.f32 %v4911_v49, %v11479_v40  ;;  %v5016_v34 = vmul.f32 %v4911_v49, %v11491_v38  ;;  %v5021_v30 = vmul.f32 %v4911_v49, %v11506_v56 }
 0x8cc   :  { %v5026_v2 = vmul.f32 %v4911_v49, %v11501_v35  ;;  %v5031_v61 = vmul.f32 %v4911_v49, %v11513_v7  ;;  %v5036_v26 = vmul.f32 %v4911_v49, %v11523_v46  ;;  %v5041_v50 = vmul.f32 %v4911_v49, %v11538_v3 }
 0x8cd   :  { %v5046_v15 = vmul.f32 %v4911_v49, %v11532_v41  ;;  %v5051_v25 = vmul.f32 %v4911_v49, %v11543_v24  ;;  %v5056_v60 = vmul.f32 %v4911_v49, %v11551_v28  ;;  %v5061_v40 = vmul.f32 %v4911_v49, %v11564_v32 }
 0x8ce   :  { %v5066_v38 = vmul.f32 %v4911_v49, %v11558_v6  ;;  %v5071_v56 = vmul.f32 %v4911_v49, %v11566_v23  ;;  %v11632_v35 = vadd.f32 %v11604_v33, %v4912_v37  ;;  %v11635_v7 = vadd.f32 %v4921_v55, %v11604_v33 }
 0x8cf   :  { %v11638_v46 = vadd.f32 %v4926_v17, %v11604_v33  ;;  %v11641_v41 = vadd.f32 %v4931_v19, %v11604_v33  ;;  %v11644_v3 = vadd.f32 %v4936_v63, %v11604_v33  ;;  %v11647_v24 = vadd.f32 %v4941_v27, %v11604_v33 }
 0x8d0   :  { %v4918_v28 = vmax.f32 %v11632_v35, 0.0  ;;  %v4923_v6 = vmax.f32 %v11635_v7, 0.0  ;;  %v11652_v32 = vadd.f32 %v4946_v13, %v11604_v33  ;;  %v11655_v23 = vadd.f32 %v4951_v51, %v11604_v33 }
 0x8d1   :  { %v4928_v12 = vmax.f32 %v11638_v46, 0.0  ;;  %v4933_v9 = vmax.f32 %v11641_v41, 0.0  ;;  %v4938_v53 = vmax.f32 %v11644_v3, 0.0  ;;  %v4943_v11 = vmax.f32 %v11647_v24, 0.0 }
 0x8d2   :  { %v4948_v42 = vmax.f32 %v11652_v32, 0.0  ;;  %v4953_v45 = vmax.f32 %v11655_v23, 0.0  ;;  %v4957_v44 = vadd.f32 %v4956_v43, %v11604_v33  ;;  %v4962_v52 = vadd.f32 %v4961_v62, %v11604_v33 }
 0x8d3   :  { %v11666_v20 = vadd.f32 %v4966_v14, %v11604_v33  ;;  %v11669_v29 = vadd.f32 %v4971_v18, %v11604_v33  ;;  %v11672_v1 = vadd.f32 %v4976_v10, %v11604_v33  ;;  %v11675_v54 = vadd.f32 %v4981_v48, %v11604_v33 }
 0x8d4   :  { %v4958_v57 = vmax.f32 %v4957_v44, 0.0  ;;  %v4963_v21 = vmax.f32 %v4962_v52, 0.0  ;;  %v11678_v8 = vadd.f32 %v4986_v31, %v11604_v33  ;;  %v11681_v47 = vadd.f32 %v4991_v39, %v11604_v33 }
 0x8d5   :  { %v4968_v22 = vmax.f32 %v11666_v20, 0.0  ;;  %v4973_v49 = vmax.f32 %v11669_v29, 0.0  ;;  %v4978_v58 = vmax.f32 %v11672_v1, 0.0  ;;  %v4983_v0 = vmax.f32 %v11675_v54, 0.0 }
 0x8d6   :  { %v4988_v37 = vmax.f32 %v11678_v8, 0.0  ;;  %v4993_v55 = vmax.f32 %v11681_v47, 0.0  ;;  %v11690_v17 = vadd.f32 %v4996_v36, %v11604_v33  ;;  %v11693_v19 = vadd.f32 %v5001_v59, %v11604_v33 }
 0x8d7   :  { %v11696_v63 = vadd.f32 %v5006_v16, %v11604_v33  ;;  %v11699_v27 = vadd.f32 %v5011_v4, %v11604_v33  ;;  %v11702_v13 = vadd.f32 %v5016_v34, %v11604_v33  ;;  %v11705_v51 = vadd.f32 %v5021_v30, %v11604_v33 }
 0x8d8   :  { %v4998_v43 = vmax.f32 %v11690_v17, 0.0  ;;  %v5003_v62 = vmax.f32 %v11693_v19, 0.0  ;;  %v11710_v14 = vadd.f32 %v5026_v2, %v11604_v33  ;;  %v11713_v18 = vadd.f32 %v5031_v61, %v11604_v33  ;;  %v10035_v19 = vld [vmem:[#allocation9] ss:$20 sps:$4 sm:$0xff]  }
 0x8d9   :  { %v5008_v10 = vmax.f32 %v11696_v63, 0.0  ;;  %v5013_v48 = vmax.f32 %v11699_v27, 0.0  ;;  %v5018_v31 = vmax.f32 %v11702_v13, 0.0  ;;  %v5023_v39 = vmax.f32 %v11705_v51, 0.0  ;;  %v10054_v27 = vld [vmem:[#allocation10 + $0x3b0] sm:$0xff]  }
 0x8da   :  { %v5028_v36 = vmax.f32 %v11710_v14, 0.0  ;;  %v5033_v59 = vmax.f32 %v11713_v18, 0.0  ;;  %v11722_v16 = vadd.f32 %v5036_v26, %v11604_v33  ;;  %v11725_v4 = vadd.f32 %v5041_v50, %v11604_v33  ;;  %v10067_v14 = vld [vmem:[#allocation10 + $0x3a8] sm:$0xff]   ;;  %v10080_v18 = vld [vmem:[#allocation10 + $0x3a0] sm:$0xff]  }
 0x8db   :  { %v11728_v34 = vadd.f32 %v5046_v15, %v11604_v33  ;;  %v11731_v30 = vadd.f32 %v5051_v25, %v11604_v33  ;;  %v11734_v2 = vadd.f32 %v5056_v60, %v11604_v33  ;;  %v11737_v61 = vadd.f32 %v5061_v40, %v11604_v33 }
 0x8dc   :  { %v5038_v35 = vmax.f32 %v11722_v16, 0.0  ;;  %v5043_v26 = vmax.f32 %v11725_v4, 0.0  ;;  %v11742_v7 = vadd.f32 %v5066_v38, %v11604_v33  ;;  %v11745_v50 = vadd.f32 %v5071_v56, %v11604_v33 }
 0x8dd   :  { %v5048_v15 = vmax.f32 %v11728_v34, 0.0  ;;  %v5053_v25 = vmax.f32 %v11731_v30, 0.0  ;;  %v5058_v60 = vmax.f32 %v11734_v2, 0.0  ;;  %v5063_v46 = vmax.f32 %v11737_v61, 0.0  ;;  %v10119_v30 = vld [vmem:[#allocation10 + $0x388] sm:$0xff]   ;;  %v10132_v2 = vld [vmem:[#allocation10 + $0x380] sm:$0xff]  }
 0x8de   :  { %v5068_v40 = vmax.f32 %v11742_v7, 0.0  ;;  %v5073_v41 = vmax.f32 %v11745_v50, 0.0  ;;  %v8607_v3 = vpack.c.bf16 %v4918_v28, %v4918_v28  ;;  %v8608_v24 = vpack.c.bf16 %v4923_v6, %v4923_v6 }
 0x8df   :  { %v8609_v32 = vpack.c.bf16 %v4928_v12, %v4928_v12  ;;  %v8610_v38 = vpack.c.bf16 %v4933_v9, %v4933_v9  ;;  %v8611_v23 = vpack.c.bf16 %v4938_v53, %v4938_v53  ;;  %v8612_v44 = vpack.c.bf16 %v4943_v11, %v4943_v11 }
 0x8e0   :  { %v8613_v33 = vpack.c.bf16 %v4948_v42, %v4948_v42  ;;  %v8614_v56 = vpack.c.bf16 %v4953_v45, %v4953_v45  ;;  %v8615_v52 = vpack.c.bf16 %v4958_v57, %v4958_v57  ;;  %v8616_v20 = vpack.c.bf16 %v4963_v21, %v4963_v21  ;;  %5239 = vst [vmem:[#allocation9 + $0x28] sm:$0xf] %v8607_v3 }
 0x8e1   :  { %5240 = vst [vmem:[#allocation9 + $0x3c] sm:$0xf] %v8608_v24  ;;  %5430 = vst [vmem:[#allocation9 + $0x18] sm:$0xf] %v8607_v3  ;;  %v11753_v29 = vpack.c.bf16 %v4968_v22, %v4968_v22  ;;  %v11755_v1 = vpack.c.bf16 %v4973_v49, %v4973_v49  ;;  %v11757_v28 = vpack.c.bf16 %v4978_v58, %v4978_v58 }
 0x8e2   :  { %5431 = vst [vmem:[#allocation9 + $0x2c] sm:$0xf] %v8608_v24  ;;  %5621 = vst [vmem:[#allocation9 + $0x8] sm:$0xf] %v8607_v3  ;;  %v11759_v6 = vpack.c.bf16 %v4983_v0, %v4983_v0  ;;  %v11764_v12 = vpack.c.bf16 %v4988_v37, %v4988_v37  ;;  %v11769_v9 = vpack.c.bf16 %v4993_v55, %v4993_v55 }
 0x8e3   :  { %5622 = vst [vmem:[#allocation9 + $0x1c] sm:$0xf] %v8608_v24  ;;  %5813 = vst [vmem:[#allocation9 + $0xc] sm:$0xf] %v8608_v24  ;;  %v11774_v53 = vpack.c.bf16 %v4998_v43, %v4998_v43  ;;  %v11779_v11 = vpack.c.bf16 %v5003_v62, %v5003_v62  ;;  %v11784_v42 = vpack.c.bf16 %v5008_v10, %v5008_v10 }
 0x8e4   :  { %5241 = vst [vmem:[#allocation9 + $0x50] sm:$0xf] %v8609_v32  ;;  %5242 = vst [vmem:[#allocation9 + $0x64] sm:$0xf] %v8610_v38  ;;  %v11789_v45 = vpack.c.bf16 %v5013_v48, %v5013_v48  ;;  %v11794_v54 = vpack.c.bf16 %v5018_v31, %v5018_v31  ;;  %v11799_v57 = vpack.c.bf16 %v5023_v39, %v5023_v39 }
 0x8e5   :  { %5243 = vst [vmem:[#allocation9 + $0x78] sm:$0xf] %v8611_v23  ;;  %5244 = vst [vmem:[#allocation9 + $0x8c] sm:$0xf] %v8612_v44  ;;  %v11824_v21 = vpack.c.bf16 %v5028_v36, %v5028_v36  ;;  %v11829_v8 = vpack.c.bf16 %v5033_v59, %v5033_v59  ;;  %v11834_v47 = vpack.c.bf16 %v5038_v35, %v5038_v35  ;;  %v10093_v36 = vld [vmem:[#allocation10 + $0x398] sm:$0xff]  }
 0x8e6   :  { %5432 = vst [vmem:[#allocation9 + $0x40] sm:$0xf] %v8609_v32  ;;  %5433 = vst [vmem:[#allocation9 + $0x54] sm:$0xf] %v8610_v38  ;;  %v11839_v22 = vpack.c.bf16 %v5043_v26, %v5043_v26  ;;  %v8633_v49 = vpack.c.bf16 %v5048_v15, %v5048_v15  ;;  %v8634_v58 = vpack.c.bf16 %v5053_v25, %v5053_v25 }
 0x8e7   :  { %5434 = vst [vmem:[#allocation9 + $0x68] sm:$0xf] %v8611_v23  ;;  %5435 = vst [vmem:[#allocation9 + $0x7c] sm:$0xf] %v8612_v44  ;;  %v8635_v0 = vpack.c.bf16 %v5058_v60, %v5058_v60  ;;  %v8636_v37 = vpack.c.bf16 %v5063_v46, %v5063_v46  ;;  %v8668_v55 = vpack.c.bf16 %v5068_v40, %v5068_v40 }
 0x8e8   :  { %5623 = vst [vmem:[#allocation9 + $0x30] sm:$0xf] %v8609_v32  ;;  %5624 = vst [vmem:[#allocation9 + $0x44] sm:$0xf] %v8610_v38  ;;  %v8700_v17 = vpack.c.bf16 %v5073_v41, %v5073_v41  ;;  %v10037_v63 = vld [vmem:[#allocation9 + $0x4] ss:$20 sps:$4 sm:$0xff]  }
 0x8e9   :  { %5625 = vst [vmem:[#allocation9 + $0x58] sm:$0xf] %v8611_v23  ;;  %5626 = vst [vmem:[#allocation9 + $0x6c] sm:$0xf] %v8612_v44  ;;  %6906 = vmatprep.mubr.bf16.mxu0 %v10037_v63  ;;  %v10042_v10 = vld [vmem:[#allocation9 + $0x28] ss:$20 sps:$4 sm:$0xff]  }
 0x8ea   :  { %5814 = vst [vmem:[#allocation9 + $0x20] sm:$0xf] %v8609_v32  ;;  %5815 = vst [vmem:[#allocation9 + $0x34] sm:$0xf] %v8610_v38  ;;  %v10038_v13 = vld [vmem:[#allocation9 + $0x8] ss:$20 sps:$4 sm:$0xff]   ;;  %6907 = vmatmul.mubr.bf16.vlgmr.msra.gmra.mxu0 %v10035_v19 }
 0x8eb   :  { %5816 = vst [vmem:[#allocation9 + $0x48] sm:$0xf] %v8611_v23  ;;  %5817 = vst [vmem:[#allocation9 + $0x5c] sm:$0xf] %v8612_v44  ;;  %9683 = vmatpush3.bf16.msra.mxu0 %v11589_v5  ;;  %v10106_v5 = vld [vmem:[#allocation10 + $0x390] sm:$0xff]  }
 0x8ec   :  { %6005 = vst [vmem:[#allocation9 + $0x10] sm:$0xf] %v8609_v32  ;;  %6006 = vst [vmem:[#allocation9 + $0x24] sm:$0xf] %v8610_v38  ;;  %9684 = vmatprep.subr.bf16.mxu0 %v10054_v27  ;;  %v10048_v59 = vld [vmem:[#allocation9 + $0x50] ss:$20 sps:$4 sm:$0xff]  }
 0x8ed   :  { %6007 = vst [vmem:[#allocation9 + $0x38] sm:$0xf] %v8611_v23  ;;  %6008 = vst [vmem:[#allocation9 + $0x4c] sm:$0xf] %v8612_v44  ;;  %v10044_v43 = vld [vmem:[#allocation9 + $0x2c] ss:$20 sps:$4 sm:$0xff]  }
 0x8ee   :  { %5245 = vst [vmem:[#allocation9 + $0xa0] sm:$0xf] %v8613_v33  ;;  %5246 = vst [vmem:[#allocation9 + $0xb4] sm:$0xf] %v8614_v56  ;;  %6914 = vmatprep.mubr.bf16.mxu0 %v10044_v43  ;;  %v10050_v48 = vld [vmem:[#allocation9 + $0x54] ss:$20 sps:$4 sm:$0xff]  }
 0x8ef   :  { %5247 = vst [vmem:[#allocation9 + $0xc8] sm:$0xf] %v8615_v52  ;;  %5248 = vst [vmem:[#allocation9 + $0xdc] sm:$0xf] %v8616_v20  ;;  %9685 = vmatpush3.bf16.msra.mxu0 %v10054_v27  ;;  %v10045_v31 = vld [vmem:[#allocation9 + $0x30] ss:$20 sps:$4 sm:$0xff]  }
 0x8f0   :  { %5436 = vst [vmem:[#allocation9 + $0x90] sm:$0xf] %v8613_v33  ;;  %5437 = vst [vmem:[#allocation9 + $0xa4] sm:$0xf] %v8614_v56  ;;  %9686 = vmatprep.subr.bf16.mxu0 %v10067_v14  ;;  %v10051_v4 = vld [vmem:[#allocation9 + $0x58] ss:$20 sps:$4 sm:$0xff]  }
 0x8f1   :  { %5438 = vst [vmem:[#allocation9 + $0xb8] sm:$0xf] %v8615_v52  ;;  %5439 = vst [vmem:[#allocation9 + $0xcc] sm:$0xf] %v8616_v20  ;;  %v10040_v51 = vld [vmem:[#allocation9 + $0xc] ss:$20 sps:$4 sm:$0xff]  }
 0x8f2   :  { %5627 = vst [vmem:[#allocation9 + $0x80] sm:$0xf] %v8613_v33  ;;  %5628 = vst [vmem:[#allocation9 + $0x94] sm:$0xf] %v8614_v56  ;;  %7067 = vmatprep.mubr.bf16.mxu1 %v10040_v51  ;;  %v10047_v62 = vld [vmem:[#allocation9 + $0x34] ss:$20 sps:$4 sm:$0xff]   ;;  %6915 = vmatmul.mubr.bf16.gmra.mxu0 %v10042_v10 }
 0x8f3   :  { %5629 = vst [vmem:[#allocation9 + $0xa8] sm:$0xf] %v8615_v52  ;;  %5630 = vst [vmem:[#allocation9 + $0xbc] sm:$0xf] %v8616_v20  ;;  %7068 = vmatmul.mubr.bf16.vlgmr.msra.gmra.mxu1 %v10038_v13  ;;  %6922 = vmatprep.mubr.bf16.mxu0 %v10050_v48  ;;  %v10055_v61 = vld [vmem:[#allocation9 + $0x78] ss:$20 sps:$4 sm:$0xff]  }
 0x8f4   :  { %5818 = vst [vmem:[#allocation9 + $0x70] sm:$0xf] %v8613_v33  ;;  %5819 = vst [vmem:[#allocation9 + $0x84] sm:$0xf] %v8614_v56  ;;  %7075 = vmatprep.mubr.bf16.mxu1 %v10047_v62  ;;  %9687 = vmatpush3.bf16.msra.mxu0 %v10067_v14  ;;  %v10139_v62 = vld [vmem:[#allocation9 + $0x10] ss:$20 sps:$4 sm:$0xff]  }
 0x8f5   :  { %5820 = vst [vmem:[#allocation9 + $0x98] sm:$0xf] %v8615_v52  ;;  %5821 = vst [vmem:[#allocation9 + $0xac] sm:$0xf] %v8616_v20  ;;  %9688 = vmatprep.subr.bf16.mxu0 %v10080_v18  ;;  %v10061_v50 = vld [vmem:[#allocation9 + $0xa0] ss:$20 sps:$4 sm:$0xff]  }
 0x8f6   :  { %6009 = vst [vmem:[#allocation9 + $0x60] sm:$0xf] %v8613_v33  ;;  %6010 = vst [vmem:[#allocation9 + $0x74] sm:$0xf] %v8614_v56  ;;  %v10068_v46 = vld [vmem:[#allocation9 + $0xc8] ss:$20 sps:$4 sm:$0xff]  }
 0x8f7   :  { %6011 = vst [vmem:[#allocation9 + $0x88] sm:$0xf] %v8615_v52  ;;  %6012 = vst [vmem:[#allocation9 + $0x9c] sm:$0xf] %v8616_v20  ;;  %v10057_v16 = vld [vmem:[#allocation9 + $0x7c] ss:$20 sps:$4 sm:$0xff]  }
 0x8f8   :  { %5249 = vst [vmem:[#allocation9 + $0xf0] sm:$0xf] %v11753_v29  ;;  %5250 = vst [vmem:[#allocation9 + $0x104] sm:$0xf] %v11755_v1  ;;  %9689 = vmatpush3.bf16.msra.mxu0 %v10080_v18  ;;  %v10063_v35 = vld [vmem:[#allocation9 + $0xa4] ss:$20 sps:$4 sm:$0xff]  }
 0x8f9   :  { %5251 = vst [vmem:[#allocation9 + $0x118] sm:$0xf] %v11757_v28  ;;  %5252 = vst [vmem:[#allocation9 + $0x12c] sm:$0xf] %v11759_v6  ;;  %9690 = vmatprep.subr.bf16.mxu0 %v10093_v36  ;;  %v10058_v26 = vld [vmem:[#allocation9 + $0x80] ss:$20 sps:$4 sm:$0xff]  }
 0x8fa   :  { %5440 = vst [vmem:[#allocation9 + $0xe0] sm:$0xf] %v11753_v29  ;;  %5441 = vst [vmem:[#allocation9 + $0xf4] sm:$0xf] %v11755_v1  ;;  %6923 = vmatmul.mubr.bf16.gmra.mxu0 %v10048_v59  ;;  %v10064_v25 = vld [vmem:[#allocation9 + $0xa8] ss:$20 sps:$4 sm:$0xff]  }
 0x8fb   :  { %5442 = vst [vmem:[#allocation9 + $0x108] sm:$0xf] %v11757_v28  ;;  %5443 = vst [vmem:[#allocation9 + $0x11c] sm:$0xf] %v11759_v6  ;;  %v10053_v39 = vld [vmem:[#allocation9 + $0x5c] ss:$20 sps:$4 sm:$0xff]   ;;  %7076 = vmatmul.mubr.bf16.gmra.mxu1 %v10045_v31  ;;  %6930 = vmatprep.mubr.bf16.mxu0 %v10057_v16 }
 0x8fc   :  { %5631 = vst [vmem:[#allocation9 + $0xd0] sm:$0xf] %v11753_v29  ;;  %5632 = vst [vmem:[#allocation9 + $0xe4] sm:$0xf] %v11755_v1  ;;  %7083 = vmatprep.mubr.bf16.mxu1 %v10053_v39  ;;  %v10060_v34 = vld [vmem:[#allocation9 + $0x84] ss:$20 sps:$4 sm:$0xff]   ;;  %9691 = vmatpush3.bf16.msra.mxu0 %v10093_v36 }
 0x8fd   :  { %5633 = vst [vmem:[#allocation9 + $0xf8] sm:$0xf] %v11757_v28  ;;  %5634 = vst [vmem:[#allocation9 + $0x10c] sm:$0xf] %v11759_v6  ;;  %9692 = vmatprep.subr.bf16.mxu0 %v10106_v5  ;;  %v10140_v18 = vld [vmem:[#allocation9 + $0x38] ss:$20 sps:$4 sm:$0xff]  }
 0x8fe   :  { %5822 = vst [vmem:[#allocation9 + $0xc0] sm:$0xf] %v11753_v29  ;;  %5823 = vst [vmem:[#allocation9 + $0xd4] sm:$0xf] %v11755_v1  ;;  %v10141_v10 = vld [vmem:[#allocation9 + $0x60] ss:$20 sps:$4 sm:$0xff]  }
 0x8ff   :  { %5824 = vst [vmem:[#allocation9 + $0xe8] sm:$0xf] %v11757_v28  ;;  %5825 = vst [vmem:[#allocation9 + $0xfc] sm:$0xf] %v11759_v6  ;;  %v10074_v24 = vld [vmem:[#allocation9 + $0xf0] ss:$20 sps:$4 sm:$0xff]  }
 0x900   :  { %6013 = vst [vmem:[#allocation9 + $0xb0] sm:$0xf] %v11753_v29  ;;  %6014 = vst [vmem:[#allocation9 + $0xc4] sm:$0xf] %v11755_v1  ;;  %9693 = vmatpush3.bf16.msra.mxu0 %v10106_v5  ;;  %v10081_v44 = vld [vmem:[#allocation9 + $0x118] ss:$20 sps:$4 sm:$0xff]  }
 0x901   :  { %6015 = vst [vmem:[#allocation9 + $0xd8] sm:$0xf] %v11757_v28  ;;  %6016 = vst [vmem:[#allocation9 + $0xec] sm:$0xf] %v11759_v6  ;;  %9694 = vmatprep.subr.bf16.mxu0 %v10119_v30  ;;  %v10070_v15 = vld [vmem:[#allocation9 + $0xcc] ss:$20 sps:$4 sm:$0xff]  }
 0x902   :  { %5253 = vst [vmem:[#allocation9 + $0x140] sm:$0xf] %v11764_v12  ;;  %5254 = vst [vmem:[#allocation9 + $0x154] sm:$0xf] %v11769_v9  ;;  %6931 = vmatmul.mubr.bf16.gmra.mxu0 %v10055_v61  ;;  %v10076_v40 = vld [vmem:[#allocation9 + $0xf4] ss:$20 sps:$4 sm:$0xff]  }
 0x903   :  { %5255 = vst [vmem:[#allocation9 + $0x168] sm:$0xf] %v11774_v53  ;;  %5256 = vst [vmem:[#allocation9 + $0x17c] sm:$0xf] %v11779_v11  ;;  %7084 = vmatmul.mubr.bf16.gmra.mxu1 %v10051_v4  ;;  %6938 = vmatprep.mubr.bf16.mxu0 %v10063_v35  ;;  %v10071_v41 = vld [vmem:[#allocation9 + $0xd0] ss:$20 sps:$4 sm:$0xff]  }
 0x904   :  { %5444 = vst [vmem:[#allocation9 + $0x130] sm:$0xf] %v11764_v12  ;;  %5445 = vst [vmem:[#allocation9 + $0x144] sm:$0xf] %v11769_v9  ;;  %7091 = vmatprep.mubr.bf16.mxu1 %v10060_v34  ;;  %9695 = vmatpush3.bf16.msra.mxu0 %v10119_v30  ;;  %v10077_v38 = vld [vmem:[#allocation9 + $0xf8] ss:$20 sps:$4 sm:$0xff]  }
 0x905   :  { %5446 = vst [vmem:[#allocation9 + $0x158] sm:$0xf] %v11774_v53  ;;  %5447 = vst [vmem:[#allocation9 + $0x16c] sm:$0xf] %v11779_v11  ;;  %v10066_v7 = vld [vmem:[#allocation9 + $0xac] ss:$20 sps:$4 sm:$0xff]   ;;  %9696 = vmatprep.subr.bf16.mxu0 %v10132_v2 }
 0x906   :  { %5635 = vst [vmem:[#allocation9 + $0x120] sm:$0xf] %v11764_v12  ;;  %5636 = vst [vmem:[#allocation9 + $0x134] sm:$0xf] %v11769_v9  ;;  %v10073_v60 = vld [vmem:[#allocation9 + $0xd4] ss:$20 sps:$4 sm:$0xff]  }
 0x907   :  { %5637 = vst [vmem:[#allocation9 + $0x148] sm:$0xf] %v11774_v53  ;;  %5638 = vst [vmem:[#allocation9 + $0x15c] sm:$0xf] %v11779_v11  ;;  %v10142_v48 = vld [vmem:[#allocation9 + $0x88] ss:$20 sps:$4 sm:$0xff]  }
 0x908   :  { %5826 = vst [vmem:[#allocation9 + $0x110] sm:$0xf] %v11764_v12  ;;  %5827 = vst [vmem:[#allocation9 + $0x124] sm:$0xf] %v11769_v9  ;;  %9697 = vmatpush3.bf16.msra.mxu0 %v10132_v2  ;;  %v10143_v31 = vld [vmem:[#allocation9 + $0xb0] ss:$20 sps:$4 sm:$0xff]  }
 0x909   :  { %5828 = vst [vmem:[#allocation9 + $0x138] sm:$0xf] %v11774_v53  ;;  %5829 = vst [vmem:[#allocation9 + $0x14c] sm:$0xf] %v11779_v11  ;;  %v10087_v20 = vld [vmem:[#allocation9 + $0x140] ss:$20 sps:$4 sm:$0xff]  }
 0x90a   :  { %6017 = vst [vmem:[#allocation9 + $0x100] sm:$0xf] %v11764_v12  ;;  %6018 = vst [vmem:[#allocation9 + $0x114] sm:$0xf] %v11769_v9  ;;  %6939 = vmatmul.mubr.bf16.gmra.mxu0 %v10061_v50  ;;  %v10094_v6 = vld [vmem:[#allocation9 + $0x168] ss:$20 sps:$4 sm:$0xff]  }
 0x90b   :  { %6019 = vst [vmem:[#allocation9 + $0x128] sm:$0xf] %v11774_v53  ;;  %6020 = vst [vmem:[#allocation9 + $0x13c] sm:$0xf] %v11779_v11  ;;  %7092 = vmatmul.mubr.bf16.gmra.mxu1 %v10058_v26  ;;  %6946 = vmatprep.mubr.bf16.mxu0 %v10070_v15  ;;  %v10083_v32 = vld [vmem:[#allocation9 + $0x11c] ss:$20 sps:$4 sm:$0xff]  }
 0x90c   :  { %5257 = vst [vmem:[#allocation9 + $0x190] sm:$0xf] %v11784_v42  ;;  %5258 = vst [vmem:[#allocation9 + $0x1a4] sm:$0xf] %v11789_v45  ;;  %7099 = vmatprep.mubr.bf16.mxu1 %v10066_v7  ;;  %v10089_v33 = vld [vmem:[#allocation9 + $0x144] ss:$20 sps:$4 sm:$0xff]  }
 0x90d   :  { %5259 = vst [vmem:[#allocation9 + $0x1b8] sm:$0xf] %v11794_v54  ;;  %5260 = vst [vmem:[#allocation9 + $0x1cc] sm:$0xf] %v11799_v57  ;;  %v10084_v56 = vld [vmem:[#allocation9 + $0x120] ss:$20 sps:$4 sm:$0xff]  }
 0x90e   :  { %5448 = vst [vmem:[#allocation9 + $0x180] sm:$0xf] %v11784_v42  ;;  %5449 = vst [vmem:[#allocation9 + $0x194] sm:$0xf] %v11789_v45  ;;  %v10090_v1 = vld [vmem:[#allocation9 + $0x148] ss:$20 sps:$4 sm:$0xff]  }
 0x90f   :  { %5450 = vst [vmem:[#allocation9 + $0x1a8] sm:$0xf] %v11794_v54  ;;  %5451 = vst [vmem:[#allocation9 + $0x1bc] sm:$0xf] %v11799_v57  ;;  %v10079_v3 = vld [vmem:[#allocation9 + $0xfc] ss:$20 sps:$4 sm:$0xff]  }
 0x910   :  { %5639 = vst [vmem:[#allocation9 + $0x170] sm:$0xf] %v11784_v42  ;;  %5640 = vst [vmem:[#allocation9 + $0x184] sm:$0xf] %v11789_v45  ;;  %v10086_v23 = vld [vmem:[#allocation9 + $0x124] ss:$20 sps:$4 sm:$0xff]  }
 0x911   :  { %5641 = vst [vmem:[#allocation9 + $0x198] sm:$0xf] %v11794_v54  ;;  %5642 = vst [vmem:[#allocation9 + $0x1ac] sm:$0xf] %v11799_v57  ;;  %v10144_v39 = vld [vmem:[#allocation9 + $0xd8] ss:$20 sps:$4 sm:$0xff]  }
 0x912   :  { %5830 = vst [vmem:[#allocation9 + $0x160] sm:$0xf] %v11784_v42  ;;  %5831 = vst [vmem:[#allocation9 + $0x174] sm:$0xf] %v11789_v45  ;;  %6947 = vmatmul.mubr.bf16.gmra.mxu0 %v10068_v46  ;;  %v10145_v36 = vld [vmem:[#allocation9 + $0x100] ss:$20 sps:$4 sm:$0xff]  }
 0x913   :  { %5832 = vst [vmem:[#allocation9 + $0x188] sm:$0xf] %v11794_v54  ;;  %5833 = vst [vmem:[#allocation9 + $0x19c] sm:$0xf] %v11799_v57  ;;  %7100 = vmatmul.mubr.bf16.gmra.mxu1 %v10064_v25  ;;  %6954 = vmatprep.mubr.bf16.mxu0 %v10076_v40  ;;  %v10100_v11 = vld [vmem:[#allocation9 + $0x190] ss:$20 sps:$4 sm:$0xff]  }
 0x914   :  { %6021 = vst [vmem:[#allocation9 + $0x150] sm:$0xf] %v11784_v42  ;;  %6022 = vst [vmem:[#allocation9 + $0x164] sm:$0xf] %v11789_v45  ;;  %7107 = vmatprep.mubr.bf16.mxu1 %v10073_v60  ;;  %v10146_v5 = vld [vmem:[#allocation9 + $0x128] ss:$20 sps:$4 sm:$0xff]  }
 0x915   :  { %6023 = vst [vmem:[#allocation9 + $0x178] sm:$0xf] %v11794_v54  ;;  %6024 = vst [vmem:[#allocation9 + $0x18c] sm:$0xf] %v11799_v57  ;;  %v10096_v29 = vld [vmem:[#allocation9 + $0x16c] ss:$20 sps:$4 sm:$0xff]  }
 0x916   :  { %5261 = vst [vmem:[#allocation9 + $0x1e0] sm:$0xf] %v11824_v21  ;;  %5262 = vst [vmem:[#allocation9 + $0x1f4] sm:$0xf] %v11829_v8  ;;  %v10102_v12 = vld [vmem:[#allocation9 + $0x194] ss:$20 sps:$4 sm:$0xff]  }
 0x917   :  { %5263 = vst [vmem:[#allocation9 + $0x208] sm:$0xf] %v11834_v47  ;;  %5264 = vst [vmem:[#allocation9 + $0x21c] sm:$0xf] %v11839_v22  ;;  %v10097_v9 = vld [vmem:[#allocation9 + $0x170] ss:$20 sps:$4 sm:$0xff]  }
 0x918   :  { %5452 = vst [vmem:[#allocation9 + $0x1d0] sm:$0xf] %v11824_v21  ;;  %5453 = vst [vmem:[#allocation9 + $0x1e4] sm:$0xf] %v11829_v8  ;;  %v10103_v45 = vld [vmem:[#allocation9 + $0x198] ss:$20 sps:$4 sm:$0xff]  }
 0x919   :  { %5454 = vst [vmem:[#allocation9 + $0x1f8] sm:$0xf] %v11834_v47  ;;  %5455 = vst [vmem:[#allocation9 + $0x20c] sm:$0xf] %v11839_v22  ;;  %v10092_v52 = vld [vmem:[#allocation9 + $0x14c] ss:$20 sps:$4 sm:$0xff]  }
 0x91a   :  { %5643 = vst [vmem:[#allocation9 + $0x1c0] sm:$0xf] %v11824_v21  ;;  %5644 = vst [vmem:[#allocation9 + $0x1d4] sm:$0xf] %v11829_v8  ;;  %6955 = vmatmul.mubr.bf16.gmra.mxu0 %v10074_v24  ;;  %v10099_v28 = vld [vmem:[#allocation9 + $0x174] ss:$20 sps:$4 sm:$0xff]  }
 0x91b   :  { %5645 = vst [vmem:[#allocation9 + $0x1e8] sm:$0xf] %v11834_v47  ;;  %5646 = vst [vmem:[#allocation9 + $0x1fc] sm:$0xf] %v11839_v22  ;;  %7108 = vmatmul.mubr.bf16.gmra.mxu1 %v10071_v41  ;;  %6962 = vmatprep.mubr.bf16.mxu0 %v10083_v32  ;;  %v10107_v57 = vld [vmem:[#allocation9 + $0x1b8] ss:$20 sps:$4 sm:$0xff]  }
 0x91c   :  { %5834 = vst [vmem:[#allocation9 + $0x1b0] sm:$0xf] %v11824_v21  ;;  %5835 = vst [vmem:[#allocation9 + $0x1c4] sm:$0xf] %v11829_v8  ;;  %7115 = vmatprep.mubr.bf16.mxu1 %v10079_v3  ;;  %v10147_v59 = vld [vmem:[#allocation9 + $0x150] ss:$20 sps:$4 sm:$0xff]  }
 0x91d   :  { %5836 = vst [vmem:[#allocation9 + $0x1d8] sm:$0xf] %v11834_v47  ;;  %5837 = vst [vmem:[#allocation9 + $0x1ec] sm:$0xf] %v11839_v22  ;;  %v10148_v16 = vld [vmem:[#allocation9 + $0x178] ss:$20 sps:$4 sm:$0xff]  }
 0x91e   :  { %6025 = vst [vmem:[#allocation9 + $0x1a0] sm:$0xf] %v11824_v21  ;;  %6026 = vst [vmem:[#allocation9 + $0x1b4] sm:$0xf] %v11829_v8  ;;  %v10154_v35 = vld [vmem:[#allocation9 + $0x268] ss:$20 sps:$4 sm:$0xff]  }
 0x91f   :  { %6027 = vst [vmem:[#allocation9 + $0x1c8] sm:$0xf] %v11834_v47  ;;  %6028 = vst [vmem:[#allocation9 + $0x1dc] sm:$0xf] %v11839_v22  ;;  %v10109_v42 = vld [vmem:[#allocation9 + $0x1bc] ss:$20 sps:$4 sm:$0xff]  }
 0x920   :  { %5265 = vst [vmem:[#allocation9 + $0x230] sm:$0xf] %v8633_v49  ;;  %5266 = vst [vmem:[#allocation9 + $0x244] sm:$0xf] %v8634_v58  ;;  %v10115_v21 = vld [vmem:[#allocation9 + $0x1e4] ss:$20 sps:$4 sm:$0xff]  }
 0x921   :  { %5267 = vst [vmem:[#allocation9 + $0x258] sm:$0xf] %v8635_v0  ;;  %5268 = vst [vmem:[#allocation9 + $0x26c] sm:$0xf] %v8636_v37  ;;  %v10110_v8 = vld [vmem:[#allocation9 + $0x1c0] ss:$20 sps:$4 sm:$0xff]  }
 0x922   :  { %5456 = vst [vmem:[#allocation9 + $0x220] sm:$0xf] %v8633_v49  ;;  %5457 = vst [vmem:[#allocation9 + $0x234] sm:$0xf] %v8634_v58  ;;  %6963 = vmatmul.mubr.bf16.gmra.mxu0 %v10081_v44  ;;  %v10113_v22 = vld [vmem:[#allocation9 + $0x1e0] ss:$20 sps:$4 sm:$0xff]  }
 0x923   :  { %5458 = vst [vmem:[#allocation9 + $0x248] sm:$0xf] %v8635_v0  ;;  %5459 = vst [vmem:[#allocation9 + $0x25c] sm:$0xf] %v8636_v37  ;;  %7116 = vmatmul.mubr.bf16.gmra.mxu1 %v10077_v38  ;;  %6970 = vmatprep.mubr.bf16.mxu0 %v10089_v33  ;;  %v10105_v53 = vld [vmem:[#allocation9 + $0x19c] ss:$20 sps:$4 sm:$0xff]  }
 0x924   :  { %5647 = vst [vmem:[#allocation9 + $0x210] sm:$0xf] %v8633_v49  ;;  %5648 = vst [vmem:[#allocation9 + $0x224] sm:$0xf] %v8634_v58  ;;  %7123 = vmatprep.mubr.bf16.mxu1 %v10086_v23  ;;  %v10112_v54 = vld [vmem:[#allocation9 + $0x1c4] ss:$20 sps:$4 sm:$0xff]  }
 0x925   :  { %5649 = vst [vmem:[#allocation9 + $0x238] sm:$0xf] %v8635_v0  ;;  %5650 = vst [vmem:[#allocation9 + $0x24c] sm:$0xf] %v8636_v37  ;;  %v10149_v4 = vld [vmem:[#allocation9 + $0x1a0] ss:$20 sps:$4 sm:$0xff]  }
 0x926   :  { %5838 = vst [vmem:[#allocation9 + $0x200] sm:$0xf] %v8633_v49  ;;  %5839 = vst [vmem:[#allocation9 + $0x214] sm:$0xf] %v8634_v58  ;;  %v10150_v34 = vld [vmem:[#allocation9 + $0x1c8] ss:$20 sps:$4 sm:$0xff]  }
 0x927   :  { %5840 = vst [vmem:[#allocation9 + $0x228] sm:$0xf] %v8635_v0  ;;  %5841 = vst [vmem:[#allocation9 + $0x23c] sm:$0xf] %v8636_v37  ;;  %v10126_v63 = vld [vmem:[#allocation9 + $0x230] ss:$20 sps:$4 sm:$0xff]  }
 0x928   :  { %6029 = vst [vmem:[#allocation9 + $0x1f0] sm:$0xf] %v8633_v49  ;;  %6030 = vst [vmem:[#allocation9 + $0x204] sm:$0xf] %v8634_v58  ;;  %v10116_v58 = vld [vmem:[#allocation9 + $0x1e8] ss:$20 sps:$4 sm:$0xff]  }
 0x929   :  { %6031 = vst [vmem:[#allocation9 + $0x218] sm:$0xf] %v8635_v0  ;;  %6032 = vst [vmem:[#allocation9 + $0x22c] sm:$0xf] %v8636_v37  ;;  %v10122_v49 = vld [vmem:[#allocation9 + $0x20c] ss:$20 sps:$4 sm:$0xff]  }
 0x92a   :  { %5460 = vst [vmem:[#allocation9 + $0x270] sm:$0xf] %v8668_v55  ;;  %5651 = vst [vmem:[#allocation9 + $0x260] sm:$0xf] %v8668_v55  ;;  %6971 = vmatmul.mubr.bf16.gmra.mxu0 %v10087_v20  ;;  %v10120_v37 = vld [vmem:[#allocation9 + $0x208] ss:$20 sps:$4 sm:$0xff]  }
 0x92b   :  { %5652 = vst [vmem:[#allocation9 + $0x274] sm:$0xf] %v8700_v17  ;;  %5842 = vst [vmem:[#allocation9 + $0x250] sm:$0xf] %v8668_v55  ;;  %7124 = vmatmul.mubr.bf16.gmra.mxu1 %v10084_v56  ;;  %6978 = vmatprep.mubr.bf16.mxu0 %v10096_v29  ;;  %v10133_v43 = vld [vmem:[#allocation9 + $0x258] ss:$20 sps:$4 sm:$0xff]  }
 0x92c   :  { %5843 = vst [vmem:[#allocation9 + $0x264] sm:$0xf] %v8700_v17  ;;  %6033 = vst [vmem:[#allocation9 + $0x240] sm:$0xf] %v8668_v55  ;;  %7131 = vmatprep.mubr.bf16.mxu1 %v10092_v52  ;;  %v10128_v55 = vld [vmem:[#allocation9 + $0x234] ss:$20 sps:$4 sm:$0xff]  }
 0x92d   :  { %6034 = vst [vmem:[#allocation9 + $0x254] sm:$0xf] %v8700_v17  ;;  %v10118_v47 = vld [vmem:[#allocation9 + $0x1ec] ss:$20 sps:$4 sm:$0xff]   ;;  %v10123_v17 = vld [vmem:[#allocation9 + $0x210] ss:$20 sps:$4 sm:$0xff]  }
 0x92e   :  { %v10125_v0 = vld [vmem:[#allocation9 + $0x214] ss:$20 sps:$4 sm:$0xff]   ;;  %v10129_v13 = vld [vmem:[#allocation9 + $0x238] ss:$20 sps:$4 sm:$0xff]   ;;  %v11923_v50 = vld [vmem:[%s12238_s5 + $0x33] ss:$0 sm:$0xff] }
 0x92f   :  { %v10151_v30 = vld [vmem:[#allocation9 + $0x1f0] ss:$20 sps:$4 sm:$0xff]   ;;  %s10340_s5 = smov [#allocation13]  }
 0x930   :  { %v10152_v2 = vld [vmem:[#allocation9 + $0x218] ss:$20 sps:$4 sm:$0xff]   ;;  %s7586_s7 = sshll.u32 %s10340_s5, 4  ;;  %s7587_s7 = int_to_ptr.vmem [resolvable:$true] %s7586_s7 }
 0x931   :  { %v10135_v27 = vld [vmem:[#allocation9 + $0x25c] ss:$20 sps:$4 sm:$0xff]   ;;  %s10309_s2 = scalar_lea.vmem %s7587_s7, 4096  ;;  %p10314_p6 = scmp.lt.s32.totalorder %s7587_s7, %s7587_s7 }
 0x932   :  { %6979 = vmatmul.mubr.bf16.gmra.mxu0 %v10094_v6  ;;  %v10131_v19 = vld [vmem:[#allocation9 + $0x23c] ss:$20 sps:$4 sm:$0xff]   ;;  %v10136_v14 = vld [vmem:[#allocation9 + $0x260] ss:$20 sps:$4 sm:$0xff]   ;;  %p10310_p5 = scmp.ne.s32.totalorder %s7587_s7, %s10309_s2  ;;  %p10315_p7 = scmp.lt.s32.totalorder %s10309_s2, %s10309_s2 }
 0x933   :  { %7132 = vmatmul.mubr.bf16.gmra.mxu1 %v10090_v1  ;;  %6986 = vmatprep.mubr.bf16.mxu0 %v10102_v12  ;;  %v10138_v51 = vld [vmem:[#allocation9 + $0x264] ss:$20 sps:$4 sm:$0xff]  }
 0x934   :  { %7139 = vmatprep.mubr.bf16.mxu1 %v10099_v28  ;;  %v10153_v61 = vld [vmem:[#allocation9 + $0x240] ss:$20 sps:$4 sm:$0xff]   ;;  %p10316_p8 = por %p10315_p7, %p10314_p6 }
 0x936   :  { %p10317_p9 = pnand %p10316_p8, %p10310_p5 }
 0x93a   :  { %6987 = vmatmul.mubr.bf16.gmra.mxu0 %v10100_v11 }
 0x93b   :  { %7140 = vmatmul.mubr.bf16.gmra.mxu1 %v10097_v9  ;;  %6994 = vmatprep.mubr.bf16.mxu0 %v10109_v42 }
 0x93c   :  { %7147 = vmatprep.mubr.bf16.mxu1 %v10105_v53 }
 0x942   :  { %6995 = vmatmul.mubr.bf16.gmra.mxu0 %v10107_v57 }
 0x943   :  { %7148 = vmatmul.mubr.bf16.gmra.mxu1 %v10103_v45  ;;  %7002 = vmatprep.mubr.bf16.mxu0 %v10115_v21 }
 0x944   :  { %7155 = vmatprep.mubr.bf16.mxu1 %v10112_v54 }
 0x94a   :  { %7003 = vmatmul.mubr.bf16.gmra.mxu0 %v10113_v22 }
 0x94b   :  { %7156 = vmatmul.mubr.bf16.gmra.mxu1 %v10110_v8  ;;  %7010 = vmatprep.mubr.bf16.mxu0 %v10122_v49 }
 0x94c   :  { %7163 = vmatprep.mubr.bf16.mxu1 %v10118_v47 }
 0x952   :  { %7011 = vmatmul.mubr.bf16.gmra.mxu0 %v10120_v37 }
 0x953   :  { %7164 = vmatmul.mubr.bf16.gmra.mxu1 %v10116_v58  ;;  %7018 = vmatprep.mubr.bf16.mxu0 %v10128_v55 }
 0x954   :  { %7171 = vmatprep.mubr.bf16.mxu1 %v10125_v0 }
 0x95a   :  { %7019 = vmatmul.mubr.bf16.gmra.mxu0 %v10126_v63 }
 0x95b   :  { %7172 = vmatmul.mubr.bf16.gmra.mxu1 %v10123_v17  ;;  %7026 = vmatprep.mubr.bf16.mxu0 %v10135_v27 }
 0x95c   :  { %7179 = vmatprep.mubr.bf16.mxu1 %v10131_v19 }
 0x962   :  { %7027 = vmatmul.mubr.bf16.gmra.mxu0 %v10133_v43 }
 0x963   :  { %7180 = vmatmul.mubr.bf16.gmra.mxu1 %v10129_v13  ;;  %9698 = vmatprep.mubr.bf16.mxu0 %v10139_v62 }
 0x964   :  { %7187 = vmatprep.mubr.bf16.mxu1 %v10138_v51 }
 0x96a   :  { %9699 = vmatmul.mubr.bf16.vlgmr.msra.gmra.mxu0 %v10140_v18 }
 0x96b   :  { %7188 = vmatmul.mubr.bf16.gmra.mxu1 %v10136_v14  ;;  %9702 = vmatprep.mubr.bf16.mxu0 %v10141_v10 }
 0x972   :  { %9703 = vmatmul.mubr.bf16.gmra.mxu0 %v10142_v48 }
 0x973   :  { %9706 = vmatprep.mubr.bf16.mxu0 %v10143_v31 }
 0x97a   :  { %9707 = vmatmul.mubr.bf16.gmra.mxu0 %v10144_v39 }
 0x97b   :  { %9710 = vmatprep.mubr.bf16.mxu0 %v10145_v36 }
 0x982   :  { %9711 = vmatmul.mubr.bf16.gmra.mxu0 %v10146_v5 }
 0x983   :  { %9714 = vmatprep.mubr.bf16.mxu0 %v10147_v59 }
 0x98a   :  { %9715 = vmatmul.mubr.bf16.gmra.mxu0 %v10148_v16 }
 0x98b   :  { %9718 = vmatprep.mubr.bf16.mxu0 %v10149_v4 }
 0x992   :  { %9719 = vmatmul.mubr.bf16.gmra.mxu0 %v10150_v34 }
 0x993   :  { %9722 = vmatprep.mubr.bf16.mxu0 %v10151_v30 }
 0x99a   :  { %9723 = vmatmul.mubr.bf16.gmra.mxu0 %v10152_v2 }
 0x99b   :  { %9726 = vmatprep.mubr.bf16.mxu0 %v10153_v61 }
 0x9a2   :  { %9727 = vmatmul.mubr.bf16.gmra.mxu0 %v10154_v35 }
 0x9aa   :  { %v9236_v26 = vpop.f32.mrf.mxu0 }
 0x9ac   :  { %v9237_v15 = vpop.f32.mrf.mxu0 }
 0x9ad   :  { %v9238_v25 = vadd.f32 %v9237_v15, %v9236_v26 }
 0x9ae   :  { %v9239_v46 = vpop.f32.mrf.mxu0 }
 0x9af   :  { %v6909_v40 = vadd.f32 %v9238_v25, %v11923_v50 }
 0x9b0   :  { %v9240_v24 = vpop.f32.mrf.mxu0 }
 0x9b1   :  { %v9241_v32 = vadd.f32 %v9240_v24, %v9239_v46 }
 0x9b2   :  { %v9242_v44 = vpop.f32.mrf.mxu0 }
 0x9b3   :  { %v9348_v7 = vpop.f32.mrf.mxu1  ;;  %v6912_v33 = vadd.f32 %v9241_v32, %v11923_v50 }
 0x9b4   :  { %v9243_v20 = vpop.f32.mrf.mxu0 }
 0x9b5   :  { %v9349_v60 = vpop.f32.mrf.mxu1  ;;  %v11931_v29 = vadd.f32 %v9243_v20, %v9242_v44 }
 0x9b6   :  { %v9350_v41 = vadd.f32 %v9349_v60, %v9348_v7  ;;  %v9245_v6 = vpop.f32.mrf.mxu0 }
 0x9b7   :  { %v9351_v3 = vpop.f32.mrf.mxu1 }
 0x9b8   :  { %v11926_v38 = vadd.f32 %v9350_v41, %v6909_v40  ;;  %v9246_v9 = vpop.f32.mrf.mxu0 }
 0x9b9   :  { %v9352_v23 = vpop.f32.mrf.mxu1  ;;  %v11939_v53 = vadd.f32 %v9246_v9, %v9245_v6 }
 0x9ba   :  { %v9353_v56 = vadd.f32 %v9352_v23, %v9351_v3  ;;  %v9248_v42 = vpop.f32.mrf.mxu0 }
 0x9bb   :  { %v11929_v52 = vpop.f32.mrf.mxu1 }
 0x9bc   :  { %v11933_v1 = vadd.f32 %v9353_v56, %v6912_v33  ;;  %v9249_v54 = vpop.f32.mrf.mxu0 }
 0x9bd   :  { %v11935_v28 = vpop.f32.mrf.mxu1  ;;  %v11945_v57 = vadd.f32 %v9249_v54, %v9248_v42 }
 0x9be   :  { %v9251_v8 = vpop.f32.mrf.mxu0 }
 0x9bf   :  { %v11937_v12 = vpop.f32.mrf.mxu1 }
 0x9c0   :  { %v9252_v22 = vpop.f32.mrf.mxu0 }
 0x9c1   :  { %v11941_v11 = vpop.f32.mrf.mxu1  ;;  %v11951_v49 = vadd.f32 %v9252_v22, %v9251_v8 }
 0x9c2   :  { %v9254_v0 = vpop.f32.mrf.mxu0 }
 0x9c3   :  { %v11943_v45 = vpop.f32.mrf.mxu1 }
 0x9c4   :  { %v9255_v55 = vpop.f32.mrf.mxu0 }
 0x9c5   :  { %v11947_v21 = vpop.f32.mrf.mxu1  ;;  %v11957_v17 = vadd.f32 %v9255_v55, %v9254_v0 }
 0x9c6   :  { %v9257_v63 = vpop.f32.mrf.mxu0 }
 0x9c7   :  { %v11949_v47 = vpop.f32.mrf.mxu1 }
 0x9c8   :  { %v9258_v13 = vpop.f32.mrf.mxu0 }
 0x9c9   :  { %v11953_v58 = vpop.f32.mrf.mxu1  ;;  %v11963_v51 = vadd.f32 %v9258_v13, %v9257_v63 }
 0x9ca   :  { %v9260_v62 = vpop.f32.mrf.mxu0 }
 0x9cb   :  { %v11955_v37 = vpop.f32.mrf.mxu1 }
 0x9cc   :  { %v9261_v18 = vpop.f32.mrf.mxu0 }
 0x9cd   :  { %v11959_v19 = vpop.f32.mrf.mxu1  ;;  %v11969_v10 = vadd.f32 %v9261_v18, %v9260_v62 }
 0x9ce   :  { %v9263_v31 = vpop.f32.mrf.mxu0 }
 0x9cf   :  { %v11961_v27 = vpop.f32.mrf.mxu1 }
 0x9d0   :  { %v9264_v36 = vpop.f32.mrf.mxu0 }
 0x9d1   :  { %v11965_v43 = vpop.f32.mrf.mxu1  ;;  %v11975_v5 = vadd.f32 %v9264_v36, %v9263_v31 }
 0x9d2   :  { %v9266_v16 = vpop.f32.mrf.mxu0 }
 0x9d3   :  { %v11967_v14 = vpop.f32.mrf.mxu1 }
 0x9d4   :  { %v9267_v34 = vpop.f32.mrf.mxu0 }
 0x9d5   :  { %v11971_v48 = vpop.f32.mrf.mxu1  ;;  %v11981_v30 = vadd.f32 %v9267_v34, %v9266_v16 }
 0x9d6   :  { %v9269_v61 = vpop.f32.mrf.mxu0 }
 0x9d7   :  { %v11973_v39 = vpop.f32.mrf.mxu1 }
 0x9d8   :  { %v9270_v26 = vpop.f32.mrf.mxu0 }
 0x9d9   :  { %v11977_v59 = vpop.f32.mrf.mxu1  ;;  %v11987_v7 = vadd.f32 %v9270_v26, %v9269_v61 }
 0x9da   :  { %v9272_v25 = vpop.f32.mrf.mxu0 }
 0x9db   :  { %v11979_v4 = vpop.f32.mrf.mxu1 }
 0x9dc   :  { %v9273_v46 = vpop.f32.mrf.mxu0 }
 0x9dd   :  { %v11983_v2 = vpop.f32.mrf.mxu1  ;;  %v11993_v40 = vadd.f32 %v9273_v46, %v9272_v25 }
 0x9de   :  { %v9275_v3 = vpop.f32.mrf.mxu0 }
 0x9df   :  { %v11985_v35 = vpop.f32.mrf.mxu1 }
 0x9e0   :  { %v9276_v32 = vpop.f32.mrf.mxu0 }
 0x9e1   :  { %v11989_v15 = vpop.f32.mrf.mxu1  ;;  %v11999_v23 = vadd.f32 %v9276_v32, %v9275_v3 }
 0x9e2   :  { %v9278_v33 = vpop.f32.mrf.mxu0 }
 0x9e3   :  { %v11991_v60 = vpop.f32.mrf.mxu1 }
 0x9e4   :  { %v9279_v20 = vpop.f32.mrf.mxu0 }
 0x9e5   :  { %v11995_v41 = vpop.f32.mrf.mxu1  ;;  %v12005_v6 = vadd.f32 %v9279_v20, %v9278_v33 }
 0x9e6   :  { %v9281_v42 = vpop.f32.mrf.mxu0 }
 0x9e7   :  { %v11997_v24 = vpop.f32.mrf.mxu1 }
 0x9e8   :  { %v9282_v8 = vpop.f32.mrf.mxu0 }
 0x9e9   :  { %v12001_v44 = vpop.f32.mrf.mxu1  ;;  %v12011_v22 = vadd.f32 %v9282_v8, %v9281_v42 }
 0x9ea   :  { %v9284_v55 = vpop.f32.mrf.mxu0 }
 0x9eb   :  { %v12003_v56 = vpop.f32.mrf.mxu1 }
 0x9ec   :  { %v9285_v13 = vpop.f32.mrf.mxu0 }
 0x9ed   :  { %v12007_v9 = vpop.f32.mrf.mxu1  ;;  %v12017_v62 = vadd.f32 %v9285_v13, %v9284_v55 }
 0x9ee   :  { %v9287_v31 = vpop.f32.mrf.mxu0 }
 0x9ef   :  { %v12009_v54 = vpop.f32.mrf.mxu1 }
 0x9f0   :  { %v9288_v16 = vpop.f32.mrf.mxu0 }
 0x9f1   :  { %v12013_v0 = vpop.f32.mrf.mxu1  ;;  %v12023_v34 = vadd.f32 %v9288_v16, %v9287_v31 }
 0x9f2   :  { %v9290_v26 = vpop.f32.mrf.mxu0 }
 0x9f3   :  { %v12015_v63 = vpop.f32.mrf.mxu1  ;;  %12338 = vst [vmem:[#allocation23_spill] sm:$0xff] %v12023_v34 }
 0x9f4   :  { %v9291_v46 = vpop.f32.mrf.mxu0 }
 0x9f5   :  { %v12019_v18 = vpop.f32.mrf.mxu1  ;;  %v12029_v3 = vadd.f32 %v9291_v46, %v9290_v26 }
 0x9f6   :  { %v9293_v32 = vpop.f32.mrf.mxu0 }
 0x9f7   :  { %v12021_v36 = vpop.f32.mrf.mxu1 }
 0x9f8   :  { %12337 = vst [vmem:[#allocation17_spill] sm:$0xff] %v12021_v36  ;;  %v9294_v20 = vpop.f32.mrf.mxu0 }
 0x9f9   :  { %v12025_v61 = vpop.f32.mrf.mxu1  ;;  %v12033_v42 = vadd.f32 %v9294_v20, %v9293_v32 }
 0x9fa   :  { %12339 = vst [vmem:[#allocation25_spill] sm:$0xff] %v12025_v61  ;;  %v9296_v8 = vpop.f32.mrf.mxu0 }
 0x9fb   :  { %v12027_v25 = vpop.f32.mrf.mxu1  ;;  %12342 = vst [vmem:[#allocation26_spill] sm:$0xff] %v12033_v42 }
 0x9fc   :  { %12340 = vst [vmem:[#allocation19_spill] sm:$0xff] %v12027_v25  ;;  %v9297_v13 = vpop.f32.mrf.mxu0 }
 0x9fd   :  { %v12031_v33 = vpop.f32.mrf.mxu1  ;;  %v12037_v31 = vadd.f32 %v9297_v13, %v9296_v8 }
 0x9fe   :  { %12341 = vst [vmem:[#allocation20_spill] sm:$0xff] %v12031_v33  ;;  %v9299_v16 = vpop.f32.mrf.mxu0 }
 0x9ff   :  { %v12035_v55 = vpop.f32.mrf.mxu1  ;;  %12344 = vst [vmem:[#allocation18_spill] sm:$0xff] %v12037_v31 }
 0xa00   :  { %12343 = vst [vmem:[#allocation28_spill] sm:$0xff] %v12035_v55  ;;  %v9300_v36 = vpop.f32.mrf.mxu0 }
 0xa01   :  { %v12039_v61 = vpop.f32.mrf.mxu1  ;;  %v12041_v34 = vadd.f32 %v9300_v36, %v9299_v16 }
 0xa02   :  { %12345 = vst [vmem:[#allocation30_spill] sm:$0xff] %v12039_v61  ;;  %v9302_v26 = vpop.f32.mrf.mxu0 }
 0xa03   :  { %12346 = vst [vmem:[#allocation32_spill] sm:$0xff] %v12041_v34  ;;  %v12043_v46 = vpop.f32.mrf.mxu1 }
 0xa04   :  { %12347 = vst [vmem:[#allocation33_spill] sm:$0xff] %v12043_v46  ;;  %v9303_v25 = vpop.f32.mrf.mxu0 }
 0xa05   :  { %v12045_v33 = vadd.f32 %v9303_v25, %v9302_v26  ;;  %v12047_v20 = vpop.f32.mrf.mxu1 }
 0xa06   :  { %v9305_v32 = vpop.f32.mrf.mxu0  ;;  %12349 = vst [vmem:[#allocation21_spill] sm:$0xff] %v12047_v20 }
 0xa07   :  { %12348 = vst [vmem:[#allocation35_spill] sm:$0xff] %v12045_v33  ;;  %v12051_v13 = vpop.f32.mrf.mxu1 }
 0xa08   :  { %v9306_v42 = vpop.f32.mrf.mxu0  ;;  %12351 = vst [vmem:[#allocation24_spill] sm:$0xff] %v12051_v13 }
 0xa09   :  { %v12049_v55 = vadd.f32 %v9306_v42, %v9305_v32  ;;  %v12055_v16 = vpop.f32.mrf.mxu1 }
 0xa0a   :  { %v9308_v8 = vpop.f32.mrf.mxu0  ;;  %12353 = vst [vmem:[#allocation39_spill] sm:$0xff] %v12055_v16 }
 0xa0b   :  { %12350 = vst [vmem:[#allocation22_spill] sm:$0xff] %v12049_v55  ;;  %v12059_v26 = vpop.f32.mrf.mxu1 }
 0xa0c   :  { %v9309_v31 = vpop.f32.mrf.mxu0  ;;  %12355 = vst [vmem:[#allocation31_spill] sm:$0xff] %v12059_v26 }
 0xa0d   :  { %v12053_v61 = vadd.f32 %v9309_v31, %v9308_v8  ;;  %v12063_v32 = vpop.f32.mrf.mxu1 }
 0xa0e   :  { %v9311_v36 = vpop.f32.mrf.mxu0 }
 0xa0f   :  { %12352 = vst [vmem:[#allocation37_spill] sm:$0xff] %v12053_v61  ;;  %v12067_v8 = vpop.f32.mrf.mxu1 }
 0xa10   :  { %v9312_v34 = vpop.f32.mrf.mxu0 }
 0xa11   :  { %v12057_v46 = vadd.f32 %v9312_v34, %v9311_v36  ;;  %v12071_v36 = vpop.f32.mrf.mxu1 }
 0xa12   :  { %v9314_v25 = vpop.f32.mrf.mxu0 }
 0xa13   :  { %12354 = vst [vmem:[#allocation29_spill] sm:$0xff] %v12057_v46 }
 0xa14   :  { %v9315_v33 = vpop.f32.mrf.mxu0 }
 0xa15   :  { %v12061_v20 = vadd.f32 %v9315_v33, %v9314_v25  ;;  %v12077_v25 = vpop.f32.mrf.mxu1 }
 0xa16   :  { %v9317_v42 = vpop.f32.mrf.mxu0 }
 0xa17   :  { %12356 = vst [vmem:[#allocation40_spill] sm:$0xff] %v12061_v20 }
 0xa18   :  { %v9318_v55 = vpop.f32.mrf.mxu0 }
 0xa19   :  { %v12065_v13 = vadd.f32 %v9318_v55, %v9317_v42  ;;  %v6917_v55 = vadd.f32 %v11931_v29, %v11923_v50 }
 0xa1a   :  { %v9320_v31 = vpop.f32.mrf.mxu0 }
 0xa1b   :  { %12357 = vst [vmem:[#allocation44_spill] sm:$0xff] %v12065_v13 }
 0xa1c   :  { %v9321_v61 = vpop.f32.mrf.mxu0 }
 0xa1d   :  { %v12069_v16 = vadd.f32 %v9321_v61, %v9320_v31  ;;  %v9356_v61 = vadd.f32 %v11935_v28, %v11929_v52  ;;  %v12087_v31 = vpop.f32.mrf.mxu1 }
 0xa1e   :  { %v9323_v34 = vpop.f32.mrf.mxu0  ;;  %12363 = vst [vmem:[#allocation34_spill] sm:$0xff] %v12087_v31 }
 0xa1f   :  { %12358 = vst [vmem:[#allocation27_spill] sm:$0xff] %v12069_v16 }
 0xa20   :  { %v9324_v46 = vpop.f32.mrf.mxu0 }
 0xa21   :  { %v12073_v26 = vadd.f32 %v9324_v46, %v9323_v34  ;;  %v6920_v46 = vadd.f32 %v11939_v53, %v11923_v50  ;;  %v7078_v34 = vadd.f32 %v9356_v61, %v6917_v55  ;;  %v9368_v55 = vadd.f32 %v11959_v19, %v11955_v37 }
 0xa22   :  { %v12075_v33 = vpop.f32.mrf.mxu0  ;;  %v6928_v37 = vadd.f32 %v11951_v49, %v11923_v50  ;;  %v9371_v19 = vadd.f32 %v11965_v43, %v11961_v27  ;;  %v6941_v27 = vadd.f32 %v11969_v10, %v11923_v50 }
 0xa23   :  { %12359 = vst [vmem:[#allocation45_spill] sm:$0xff] %v12073_v26  ;;  %12360 = vst [vmem:[#allocation47_spill] sm:$0xff] %v12075_v33  ;;  %v12095_v33 = vpop.f32.mrf.mxu1 }
 0xa24   :  { %v12079_v20 = vpop.f32.mrf.mxu0 }
 0xa25   :  { %12361 = vst [vmem:[#allocation49_spill] sm:$0xff] %v12079_v20  ;;  %v9359_v20 = vadd.f32 %v11941_v11, %v11937_v12  ;;  %v12104_v61 = vpop.f32.mrf.mxu1 }
 0xa26   :  { %v12083_v42 = vpop.f32.mrf.mxu0 }
 0xa27   :  { %12362 = vst [vmem:[#allocation51_spill] sm:$0xff] %v12083_v42  ;;  %v6933_v42 = vadd.f32 %v11957_v17, %v11923_v50  ;;  %v7081_v31 = vadd.f32 %v9359_v20, %v6920_v46  ;;  %v6936_v17 = vadd.f32 %v11963_v51, %v11923_v50  ;;  %v9365_v51 = vadd.f32 %v11953_v58, %v11949_v47 }
 0xa28   :  { %v12089_v16 = vpop.f32.mrf.mxu0 }
 0xa29   :  { %12364 = vst [vmem:[#allocation36_spill] sm:$0xff] %v12089_v16  ;;  %v6925_v16 = vadd.f32 %v11945_v57, %v11923_v50 }
 0xa2a   :  { %v9700_v26 = vpop.f32.mrf.mxu0 }
 0xa2b   :  { %v7239_v29 = vadd.f32 %v9700_v26, %v7078_v34  ;;  %v9362_v26 = vadd.f32 %v11947_v21, %v11943_v45 }
 0xa2c   :  { %v7230_v13 = vpop.f32.mrf.mxu0 }
 0xa2d   :  { %v8340_v52 = vmul.f32 -1.442695, %v7239_v29  ;;  %v7231_v28 = vadd.f32 %v7230_v13, %v11926_v38  ;;  %v7094_v13 = vadd.f32 %v9368_v55, %v6933_v42  ;;  %v7086_v34 = vadd.f32 %v9362_v26, %v6925_v16 }
 0xa2e   :  { %v9701_v53 = vpop.f32.mrf.mxu0  ;;  %v9374_v55 = vadd.f32 %v11971_v48, %v11967_v14 }
 0xa2f   :  { %10161 = vpow2.f32 %v8340_v52  ;;  %v8338_v12 = vmul.f32 -1.442695, %v7231_v28  ;;  %v7242_v11 = vadd.f32 %v9701_v53, %v7081_v31  ;;  %v12115_v31 = vpop.f32.mrf.mxu1  ;;  %v7097_v52 = vadd.f32 %v9371_v19, %v6936_v17 }
 0xa30   :  { %v7233_v38 = vpop.f32.mrf.mxu0  ;;  %v7089_v28 = vadd.f32 %v9365_v51, %v6928_v37  ;;  %v9380_v53 = vadd.f32 %v11983_v2, %v11979_v4  ;;  %v6944_v17 = vadd.f32 %v11975_v5, %v11923_v50  ;;  %v9383_v4 = vadd.f32 %v11989_v15, %v11985_v35 }
 0xa31   :  { %10163 = vpow2.f32 %v8338_v12  ;;  %v8341_v20 = vmul.f32 -1.442695, %v7242_v11  ;;  %v7234_v57 = vadd.f32 %v7233_v38, %v11933_v1  ;;  %v6949_v1 = vadd.f32 %v11981_v30, %v11923_v50  ;;  %v12125_v16 = vpop.f32.mrf.mxu1 }
 0xa32   :  { %v9704_v46 = vpop.f32.mrf.mxu0  ;;  %v6952_v30 = vadd.f32 %v11987_v7, %v11923_v50  ;;  %v6957_v2 = vadd.f32 %v11993_v40, %v11923_v50  ;;  %v7102_v7 = vadd.f32 %v9374_v55, %v6941_v27  ;;  %v9386_v5 = vadd.f32 %v11995_v41, %v11991_v60 }
 0xa33   :  { %10165 = vpow2.f32 %v8341_v20  ;;  %v8339_v45 = vmul.f32 -1.442695, %v7234_v57  ;;  %v7255_v21 = vadd.f32 %v9704_v46, %v7094_v13  ;;  %v7110_v26 = vadd.f32 %v9380_v53, %v6949_v1  ;;  %v12137_v20 = vpop.f32.mrf.mxu1 }
 0xa34   :  { %v7246_v29 = vpop.f32.mrf.mxu0  ;;  %v9377_v13 = vadd.f32 %v11977_v59, %v11973_v39  ;;  %v6965_v35 = vadd.f32 %v12005_v6, %v11923_v50  ;;  %v7113_v37 = vadd.f32 %v9383_v4, %v6952_v30  ;;  %v6968_v1 = vadd.f32 %v12011_v22, %v11923_v50  ;;  %v12366_v4 = vld [vmem:[#allocation20_spill] sm:$0xff] }
 0xa35   :  { %10167 = vpow2.f32 %v8339_v45  ;;  %v8344_v49 = vmul.f32 -1.442695, %v7255_v21  ;;  %v7247_v42 = vadd.f32 %v7246_v29, %v7086_v34  ;;  %v9392_v21 = vadd.f32 %v12007_v9, %v12003_v56  ;;  %v12147_v39 = vpop.f32.mrf.mxu1 }
 0xa36   :  { %v9705_v43 = vpop.f32.mrf.mxu0  ;;  %v7105_v51 = vadd.f32 %v9377_v13, %v6944_v17  ;;  %v7118_v29 = vadd.f32 %v9386_v5, %v6957_v2  ;;  %v9395_v53 = vadd.f32 %v12013_v0, %v12009_v54  ;;  %v12365_v17 = vld [vmem:[#allocation19_spill] sm:$0xff] }
 0xa37   :  { %10169 = vpow2.f32 %v8344_v49  ;;  %v8342_v47 = vmul.f32 -1.442695, %v7247_v42  ;;  %v7258_v58 = vadd.f32 %v9705_v43, %v7097_v52  ;;  %v6960_v52 = vadd.f32 %v11999_v23, %v11923_v50  ;;  %v12159_v22 = vpop.f32.mrf.mxu1  ;;  %v12367_v13 = vld [vmem:[#allocation23_spill] sm:$0xff] }
 0xa38   :  { %v7249_v12 = vpop.f32.mrf.mxu0  ;;  %v7126_v42 = vadd.f32 %v9392_v21, %v6965_v35  ;;  %v6973_v23 = vadd.f32 %v12017_v62, %v11923_v50  ;;  %v7129_v54 = vadd.f32 %v9395_v53, %v6968_v1  ;;  %v9404_v2 = vadd.f32 %v12366_v4, %v12365_v17  ;;  %v12368_v35 = vld [vmem:[#allocation26_spill] sm:$0xff] }
 0xa39   :  { %10171 = vpow2.f32 %v8342_v47  ;;  %v8345_v11 = vmul.f32 -1.442695, %v7258_v58  ;;  %v7250_v10 = vadd.f32 %v7249_v12, %v7089_v28  ;;  %v9389_v28 = vadd.f32 %v12001_v44, %v11997_v24 }
 0xa3a   :  { %v9708_v38 = vpop.f32.mrf.mxu0  ;;  %v6981_v24 = vadd.f32 %v12029_v3, %v11923_v50  ;;  %v6976_v5 = vadd.f32 %v12367_v13, %v11923_v50 }
 0xa3b   :  { %10173 = vpow2.f32 %v8345_v11  ;;  %v8343_v14 = vmul.f32 -1.442695, %v7250_v10  ;;  %v7271_v48 = vadd.f32 %v9708_v38, %v7110_v26  ;;  %v9398_v11 = vadd.f32 %v12019_v18, %v12015_v63 }
 0xa3c   :  { %v10162_v57 = vpop.eup %10161  ;;  %v7262_v15 = vpop.f32.mrf.mxu0 }
 0xa3d   :  { %v7455_v40 = vadd.f32 1.0, %v10162_v57  ;;  %10175 = vpow2.f32 %v8343_v14  ;;  %v8348_v19 = vmul.f32 -1.442695, %v7271_v48  ;;  %v7263_v46 = vadd.f32 %v7262_v15, %v7102_v7  ;;  %v12167_v7 = vpop.f32.mrf.mxu1 }
 0xa3e   :  { %v10164_v45 = vpop.eup %10163  ;;  %v9709_v34 = vpop.f32.mrf.mxu0  ;;  %v7121_v14 = vadd.f32 %v9389_v28, %v6960_v52  ;;  %v7134_v48 = vadd.f32 %v9398_v11, %v6973_v23  ;;  %v6984_v15 = vadd.f32 %v12368_v35, %v11923_v50 }
 0xa3f   :  { %10177 = vrcp.f32 %v7455_v40  ;;  %v7453_v59 = vadd.f32 1.0, %v10164_v45  ;;  %v8346_v60 = vmul.f32 -1.442695, %v7263_v46  ;;  %v7274_v41 = vadd.f32 %v9709_v34, %v7113_v37  ;;  %v12369_v34 = vld [vmem:[#allocation17_spill] sm:$0xff] }
 0xa40   :  { %v10166_v6 = vpop.eup %10165  ;;  %10179 = vpow2.f32 %v8348_v19  ;;  %v7265_v49 = vpop.f32.mrf.mxu0  ;;  %v7142_v40 = vadd.f32 %v9404_v2, %v6981_v24 }
 0xa41   :  { %10181 = vrcp.f32 %v7453_v59  ;;  %v7456_v56 = vadd.f32 1.0, %v10166_v6  ;;  %v8349_v9 = vmul.f32 -1.442695, %v7274_v41  ;;  %v7266_v27 = vadd.f32 %v7265_v49, %v7105_v51  ;;  %v12370_v51 = vld [vmem:[#allocation25_spill] sm:$0xff]  ;;  %v12371_v59 = vld [vmem:[#allocation28_spill] sm:$0xff]  ;;  %v12373_v6 = vld [vmem:[#allocation18_spill] sm:$0xff]  ;;  %v12179_v49 = vpop.f32.mrf.mxu1 }
 0xa42   :  { %v10168_v43 = vpop.eup %10167  ;;  %10183 = vpow2.f32 %v8346_v60  ;;  %v9712_v47 = vpop.f32.mrf.mxu0  ;;  %v12372_v60 = vld [vmem:[#allocation30_spill] sm:$0xff]  ;;  %v6989_v52 = vadd.f32 %v12373_v6, %v11923_v50 }
 0xa43   :  { %10185 = vrcp.f32 %v7456_v56  ;;  %v7454_v58 = vadd.f32 1.0, %v10168_v43  ;;  %v8347_v55 = vmul.f32 -1.442695, %v7266_v27  ;;  %v7287_v30 = vadd.f32 %v9712_v47, %v7126_v42  ;;  %v12374_v43 = vld [vmem:[#allocation35_spill] sm:$0xff]  ;;  %v12189_v2 = vpop.f32.mrf.mxu1 }
 0xa44   :  { %v10170_v12 = vpop.eup %10169  ;;  %10187 = vpow2.f32 %v8349_v9  ;;  %v7278_v44 = vpop.f32.mrf.mxu0  ;;  %v9407_v41 = vadd.f32 %v12372_v60, %v12371_v59  ;;  %v6997_v28 = vadd.f32 %v12374_v43, %v11923_v50  ;;  %v9419_v60 = vadd.f32 %v12071_v36, %v12067_v8 }
 0xa45   :  { %10189 = vrcp.f32 %v7454_v58  ;;  %v7459_v0 = vadd.f32 1.0, %v10170_v12  ;;  %v8352_v62 = vmul.f32 -1.442695, %v7287_v30  ;;  %v7279_v10 = vadd.f32 %v7278_v44, %v7118_v29  ;;  %v12376_v30 = vld [vmem:[#allocation21_spill] sm:$0xff] }
 0xa46   :  { %v10172_v26 = vpop.eup %10171  ;;  %10191 = vpow2.f32 %v8347_v55  ;;  %v9713_v38 = vpop.f32.mrf.mxu0  ;;  %v9401_v29 = vadd.f32 %v12370_v51, %v12369_v34  ;;  %v7145_v23 = vadd.f32 %v9407_v41, %v6984_v15  ;;  %v12375_v55 = vld [vmem:[#allocation33_spill] sm:$0xff]  ;;  %v12381_v15 = vld [vmem:[#allocation22_spill] sm:$0xff] }
 0xa47   :  { %10193 = vrcp.f32 %v7459_v0  ;;  %v7457_v63 = vadd.f32 1.0, %v10172_v26  ;;  %v8350_v18 = vmul.f32 -1.442695, %v7279_v10  ;;  %v7290_v3 = vadd.f32 %v9713_v38, %v7129_v54  ;;  %v12377_v54 = vld [vmem:[#allocation32_spill] sm:$0xff]  ;;  %v12199_v41 = vpop.f32.mrf.mxu1 }
 0xa48   :  { %v10174_v57 = vpop.eup %10173  ;;  %10195 = vpow2.f32 %v8352_v62  ;;  %v7281_v37 = vpop.f32.mrf.mxu0  ;;  %v7137_v47 = vadd.f32 %v9401_v29, %v6976_v5  ;;  %v9410_v12 = vadd.f32 %v12376_v30, %v12375_v55  ;;  %v6992_v0 = vadd.f32 %v12377_v54, %v11923_v50  ;;  %v12378_v62 = vld [vmem:[#allocation31_spill] sm:$0xff] }
 0xa49   :  { %10197 = vrcp.f32 %v7457_v63  ;;  %v7460_v19 = vadd.f32 1.0, %v10174_v57  ;;  %v8353_v46 = vmul.f32 -1.442695, %v7290_v3  ;;  %v7282_v45 = vadd.f32 %v7281_v37, %v7121_v14  ;;  %v12380_v3 = vld [vmem:[#allocation39_spill] sm:$0xff] }
 0xa4a   :  { %v10176_v21 = vpop.eup %10175  ;;  %10199 = vpow2.f32 %v8350_v18  ;;  %v9716_v1 = vpop.f32.mrf.mxu0  ;;  %v9416_v10 = vadd.f32 %v12063_v32, %v12378_v62  ;;  %v7150_v63 = vadd.f32 %v9410_v12, %v6989_v52  ;;  %v7000_v37 = vadd.f32 %v12381_v15, %v11923_v50 }
 0xa4b   :  { %10201 = vrcp.f32 %v7460_v19  ;;  %v7458_v42 = vadd.f32 1.0, %v10176_v21  ;;  %v8351_v56 = vmul.f32 -1.442695, %v7282_v45  ;;  %v7303_v9 = vadd.f32 %v9716_v1, %v7142_v40  ;;  %v12382_v45 = vld [vmem:[#allocation37_spill] sm:$0xff] }
 0xa4c   :  { %v10178_v27 = vpop.eup %10177  ;;  %10203 = vpow2.f32 %v8353_v46  ;;  %v7294_v53 = vpop.f32.mrf.mxu0  ;;  %v7158_v35 = vadd.f32 %v9416_v10, %v6997_v28  ;;  %v7005_v21 = vadd.f32 %v12382_v45, %v11923_v50  ;;  %v12386_v10 = vld [vmem:[#allocation47_spill] sm:$0xff]  ;;  %v12390_v45 = vld [vmem:[#allocation36_spill] sm:$0xff] }
 0xa4d   :  { %v10180_v58 = vpop.eup %10179  ;;  %7551 = vst [vmem:[#allocation13 + $0x10] sm:$0xff] %v10178_v27  ;;  %10205 = vrcp.f32 %v7458_v42  ;;  %v8356_v11 = vmul.f32 -1.442695, %v7303_v9  ;;  %v7295_v24 = vadd.f32 %v7294_v53, %v7134_v48  ;;  %v12379_v48 = vld [vmem:[#allocation24_spill] sm:$0xff]  ;;  %v12383_v42 = vld [vmem:[#allocation34_spill] sm:$0xff] }
 0xa4e   :  { %v10182_v44 = vpop.eup %10181  ;;  %v7463_v26 = vadd.f32 1.0, %v10180_v58  ;;  %10207 = vpow2.f32 %v8351_v56  ;;  %v9717_v17 = vpop.f32.mrf.mxu0  ;;  %v9413_v57 = vadd.f32 %v12380_v3, %v12379_v48  ;;  %v9422_v56 = vadd.f32 %v12383_v42, %v12077_v25  ;;  %v12384_v9 = vld [vmem:[#allocation40_spill] sm:$0xff]  ;;  %v12388_v3 = vld [vmem:[#allocation29_spill] sm:$0xff] }
 0xa4f   :  { %v10184_v4 = vpop.eup %10183  ;;  %7549 = vst [vmem:[#allocation13] sm:$0xff] %v10182_v44  ;;  %10209 = vpow2.f32 %v8356_v11  ;;  %v8354_v38 = vmul.f32 -1.442695, %v7295_v24  ;;  %v7306_v14 = vadd.f32 %v9717_v17, %v7145_v23  ;;  %v7013_v27 = vadd.f32 %v12384_v9, %v11923_v50  ;;  %v12385_v11 = vld [vmem:[#allocation44_spill] sm:$0xff]  ;;  %v9439_v44 = vpop.f32.mrf.mxu1 }
 0xa50   :  { %v10186_v18 = vpop.eup %10185  ;;  %10211 = vrcp.f32 %v7463_v26  ;;  %v7461_v13 = vadd.f32 1.0, %v10184_v4  ;;  %v7297_v5 = vpop.f32.mrf.mxu0  ;;  %v7153_v29 = vadd.f32 %v9413_v57, %v6992_v0  ;;  %v7161_v23 = vadd.f32 %v9419_v60, %v7000_v37  ;;  %v12387_v26 = vld [vmem:[#allocation49_spill] sm:$0xff] }
 0xa51   :  { %v10188_v32 = vpop.eup %10187  ;;  %7552 = vst [vmem:[#allocation13 + $0x18] sm:$0xff] %v10186_v18  ;;  %10213 = vpow2.f32 %v8354_v38  ;;  %v8357_v40 = vmul.f32 -1.442695, %v7306_v14  ;;  %v7298_v19 = vadd.f32 %v7297_v5, %v7137_v47  ;;  %v9428_v58 = vadd.f32 %v12125_v16, %v12115_v31  ;;  %v9441_v15 = vpop.f32.mrf.mxu1 }
 0xa52   :  { %v10190_v46 = vpop.eup %10189  ;;  %10215 = vrcp.f32 %v7461_v13  ;;  %v7464_v34 = vadd.f32 1.0, %v10188_v32  ;;  %v9720_v51 = vpop.f32.mrf.mxu0  ;;  %v7166_v25 = vadd.f32 %v9422_v56, %v7005_v21  ;;  %v7016_v24 = vadd.f32 %v12385_v11, %v11923_v50  ;;  %v12392_v11 = vld [vmem:[#allocation45_spill] sm:$0xff] }
 0xa53   :  { %v10192_v59 = vpop.eup %10191  ;;  %7550 = vst [vmem:[#allocation13 + $0x8] sm:$0xff] %v10190_v46  ;;  %10217 = vpow2.f32 %v8357_v40  ;;  %v8355_v6 = vmul.f32 -1.442695, %v7298_v19  ;;  %v7319_v52 = vadd.f32 %v9720_v51, %v7158_v35  ;;  %v9328_v17 = vadd.f32 %v12387_v26, %v12386_v10  ;;  %v12389_v46 = vld [vmem:[#allocation51_spill] sm:$0xff] }
 0xa54   :  { %v10194_v1 = vpop.eup %10193  ;;  %10219 = vrcp.f32 %v7464_v34  ;;  %v7462_v43 = vadd.f32 1.0, %v10192_v59  ;;  %v7310_v28 = vpop.f32.mrf.mxu0  ;;  %v7174_v16 = vadd.f32 %v9428_v58, %v7013_v27  ;;  %v9431_v14 = vadd.f32 %v12147_v39, %v12137_v20 }
 0xa55   :  { %v10196_v53 = vpop.eup %10195  ;;  %7555 = vst [vmem:[#allocation13 + $0x30] sm:$0xff] %v10194_v1  ;;  %10221 = vpow2.f32 %v8355_v6  ;;  %v8360_v8 = vmul.f32 -1.442695, %v7319_v52  ;;  %v7311_v36 = vadd.f32 %v7310_v28, %v7150_v63  ;;  %v7008_v57 = vadd.f32 %v12388_v3, %v11923_v50  ;;  %v12391_v6 = vld [vmem:[#allocation27_spill] sm:$0xff]  ;;  %v9442_v27 = vpop.f32.mrf.mxu1 }
 0xa56   :  { %v10198_v47 = vpop.eup %10197  ;;  %10223 = vrcp.f32 %v7462_v43  ;;  %v7467_v55 = vadd.f32 1.0, %v10196_v53  ;;  %v9721_v30 = vpop.f32.mrf.mxu0  ;;  %v9425_v13 = vadd.f32 %v12104_v61, %v12095_v33  ;;  %v7177_v39 = vadd.f32 %v9431_v14, %v7016_v24 }
 0xa57   :  { %v10200_v12 = vpop.eup %10199  ;;  %7553 = vst [vmem:[#allocation13 + $0x20] sm:$0xff] %v10198_v47  ;;  %10225 = vpow2.f32 %v8360_v8  ;;  %v8358_v54 = vmul.f32 -1.442695, %v7311_v36  ;;  %v7322_v0 = vadd.f32 %v9721_v30, %v7161_v23  ;;  %v7029_v19 = vadd.f32 %v9328_v17, %v11923_v50 }
 0xa58   :  { %v10202_v62 = vpop.eup %10201  ;;  %10227 = vrcp.f32 %v7467_v55  ;;  %v7465_v4 = vadd.f32 1.0, %v10200_v12  ;;  %v7313_v31 = vpop.f32.mrf.mxu0  ;;  %v9331_v21 = vadd.f32 %v12390_v45, %v12389_v46  ;;  %v7021_v52 = vadd.f32 %v12391_v6, %v11923_v50 }
 0xa59   :  { %v10204_v38 = vpop.eup %10203  ;;  %7556 = vst [vmem:[#allocation13 + $0x38] sm:$0xff] %v10202_v62  ;;  %10229 = vpow2.f32 %v8358_v54  ;;  %v8361_v63 = vmul.f32 -1.442695, %v7322_v0  ;;  %v7314_v18 = vadd.f32 %v7313_v31, %v7153_v29  ;;  %v9440_v1 = vadd.f32 %v9439_v44, %v12199_v41 }
 0xa5a   :  { %v10206_v48 = vpop.eup %10205  ;;  %10231 = vrcp.f32 %v7465_v4  ;;  %v7468_v5 = vadd.f32 1.0, %v10204_v38  ;;  %v9724_v35 = vpop.f32.mrf.mxu0  ;;  %v7169_v56 = vadd.f32 %v9425_v13, %v7008_v57  ;;  %v9434_v36 = vadd.f32 %v12167_v7, %v12159_v22 }
 0xa5b   :  { %v10208_v32 = vpop.eup %10207  ;;  %7554 = vst [vmem:[#allocation13 + $0x28] sm:$0xff] %v10206_v48  ;;  %10233 = vpow2.f32 %v8361_v63  ;;  %v8359_v37 = vmul.f32 -1.442695, %v7314_v18  ;;  %v7335_v20 = vadd.f32 %v9724_v35, %v7174_v16  ;;  %v7032_v23 = vadd.f32 %v9331_v21, %v11923_v50 }
 0xa5c   :  { %v10210_v40 = vpop.eup %10209  ;;  %10235 = vrcp.f32 %v7468_v5  ;;  %v7466_v34 = vadd.f32 1.0, %v10208_v32  ;;  %v7326_v51 = vpop.f32.mrf.mxu0  ;;  %v7190_v41 = vadd.f32 %v9440_v1, %v7029_v19  ;;  %v7024_v24 = vadd.f32 %v12392_v11, %v11923_v50 }
 0xa5d   :  { %v10212_v33 = vpop.eup %10211  ;;  %v7471_v61 = vadd.f32 1.0, %v10210_v40  ;;  %10237 = vpow2.f32 %v8359_v37  ;;  %v8364_v29 = vmul.f32 -1.442695, %v7335_v20  ;;  %v7327_v59 = vadd.f32 %v7326_v51, %v7166_v25 }
 0xa5e   :  { %v10214_v60 = vpop.eup %10213  ;;  %7559 = vst [vmem:[#allocation13 + $0x50] sm:$0xff] %v10212_v33  ;;  %10239 = vrcp.f32 %v7466_v34  ;;  %v9725_v42 = vpop.f32.mrf.mxu0  ;;  %v9443_v44 = vadd.f32 %v9442_v27, %v9441_v15  ;;  %v7182_v22 = vadd.f32 %v9434_v36, %v7021_v52  ;;  %v9437_v17 = vadd.f32 %v12189_v2, %v12179_v49 }
 0xa5f   :  { %v10216_v9 = vpop.eup %10215  ;;  %10241 = vrcp.f32 %v7471_v61  ;;  %v7469_v43 = vadd.f32 1.0, %v10214_v60  ;;  %v8362_v28 = vmul.f32 -1.442695, %v7327_v59  ;;  %v7338_v53 = vadd.f32 %v9725_v42, %v7177_v39 }
 0xa60   :  { %v10218_v8 = vpop.eup %10217  ;;  %7557 = vst [vmem:[#allocation13 + $0x40] sm:$0xff] %v10216_v9  ;;  %10243 = vpow2.f32 %v8364_v29  ;;  %v7329_v47 = vpop.f32.mrf.mxu0  ;;  %v7193_v31 = vadd.f32 %v9443_v44, %v7032_v23  ;;  %v7185_v48 = vadd.f32 %v9437_v17, %v7024_v24 }
 0xa61   :  { %v10220_v58 = vpop.eup %10219  ;;  %10245 = vrcp.f32 %v7469_v43  ;;  %v7472_v55 = vadd.f32 1.0, %v10218_v8  ;;  %v8365_v30 = vmul.f32 -1.442695, %v7338_v53  ;;  %v7330_v25 = vadd.f32 %v7329_v47, %v7169_v56 }
 0xa62   :  { %v10222_v12 = vpop.eup %10221  ;;  %7560 = vst [vmem:[#allocation13 + $0x58] sm:$0xff] %v10220_v58  ;;  %10247 = vpow2.f32 %v8362_v28  ;;  %v9728_v54 = vpop.f32.mrf.mxu0 }
 0xa63   :  { %v10224_v7 = vpop.eup %10223  ;;  %10249 = vrcp.f32 %v7472_v55  ;;  %v7470_v0 = vadd.f32 1.0, %v10222_v12  ;;  %v8363_v62 = vmul.f32 -1.442695, %v7330_v25  ;;  %v7351_v10 = vadd.f32 %v9728_v54, %v7190_v41 }
 0xa64   :  { %v10226_v26 = vpop.eup %10225  ;;  %7558 = vst [vmem:[#allocation13 + $0x48] sm:$0xff] %v10224_v7  ;;  %10251 = vpow2.f32 %v8365_v30  ;;  %v7342_v4 = vpop.f32.mrf.mxu0 }
 0xa65   :  { %v10228_v16 = vpop.eup %10227  ;;  %10253 = vrcp.f32 %v7470_v0  ;;  %v7475_v50 = vadd.f32 1.0, %v10226_v26  ;;  %v8368_v38 = vmul.f32 -1.442695, %v7351_v10  ;;  %v7343_v14 = vadd.f32 %v7342_v4, %v7182_v22 }
 0xa66   :  { %v10230_v63 = vpop.eup %10229  ;;  %7563 = vst [vmem:[#allocation13 + $0x70] sm:$0xff] %v10228_v16  ;;  %10255 = vpow2.f32 %v8363_v62  ;;  %v9729_v18 = vpop.f32.mrf.mxu0 }
 0xa67   :  { %v10232_v3 = vpop.eup %10231  ;;  %10257 = vrcp.f32 %v7475_v50  ;;  %v7473_v57 = vadd.f32 1.0, %v10230_v63  ;;  %v8366_v13 = vmul.f32 -1.442695, %v7343_v14  ;;  %v7354_v5 = vadd.f32 %v9729_v18, %v7193_v31 }
 0xa68   :  { %v10234_v49 = vpop.eup %10233  ;;  %7561 = vst [vmem:[#allocation13 + $0x60] sm:$0xff] %v10232_v3  ;;  %10259 = vpow2.f32 %v8368_v38  ;;  %v7345_v2 = vpop.f32.mrf.mxu0 }
 0xa69   :  { %v10236_v35 = vpop.eup %10235  ;;  %10261 = vrcp.f32 %v7473_v57  ;;  %v7476_v32 = vadd.f32 1.0, %v10234_v49  ;;  %v8369_v15 = vmul.f32 -1.442695, %v7354_v5  ;;  %v7346_v37 = vadd.f32 %v7345_v2, %v7185_v48 }
 0xa6a   :  { %v10238_v20 = vpop.eup %10237  ;;  %7564 = vst [vmem:[#allocation13 + $0x78] sm:$0xff] %v10236_v35  ;;  %10263 = vpow2.f32 %v8366_v13 }
 0xa6b   :  { %v10240_v39 = vpop.eup %10239  ;;  %10265 = vrcp.f32 %v7476_v32  ;;  %v7474_v40 = vadd.f32 1.0, %v10238_v20  ;;  %v8367_v19 = vmul.f32 -1.442695, %v7346_v37 }
 0xa6c   :  { %v10242_v46 = vpop.eup %10241  ;;  %7562 = vst [vmem:[#allocation13 + $0x68] sm:$0xff] %v10240_v39  ;;  %10267 = vpow2.f32 %v8369_v15 }
 0xa6d   :  { %v10244_v45 = vpop.eup %10243  ;;  %7567 = vst [vmem:[#allocation13 + $0x90] sm:$0xff] %v10242_v46  ;;  %10269 = vrcp.f32 %v7474_v40 }
 0xa6e   :  { %v10246_v21 = vpop.eup %10245  ;;  %v7479_v34 = vadd.f32 1.0, %v10244_v45  ;;  %10271 = vpow2.f32 %v8367_v19 }
 0xa6f   :  { %v10248_v51 = vpop.eup %10247  ;;  %7565 = vst [vmem:[#allocation13 + $0x80] sm:$0xff] %v10246_v21 }
 0xa70   :  { %v10250_v33 = vpop.eup %10249  ;;  %10273 = vrcp.f32 %v7479_v34  ;;  %v7477_v61 = vadd.f32 1.0, %v10248_v51 }
 0xa71   :  { %v10252_v29 = vpop.eup %10251  ;;  %7568 = vst [vmem:[#allocation13 + $0x98] sm:$0xff] %v10250_v33 }
 0xa72   :  { %v10254_v59 = vpop.eup %10253  ;;  %10275 = vrcp.f32 %v7477_v61  ;;  %v7480_v60 = vadd.f32 1.0, %v10252_v29 }
 0xa73   :  { %v10256_v6 = vpop.eup %10255  ;;  %7566 = vst [vmem:[#allocation13 + $0x88] sm:$0xff] %v10254_v59 }
 0xa74   :  { %v10258_v52 = vpop.eup %10257  ;;  %10277 = vrcp.f32 %v7480_v60  ;;  %v7478_v1 = vadd.f32 1.0, %v10256_v6 }
 0xa75   :  { %v10260_v42 = vpop.eup %10259  ;;  %7571 = vst [vmem:[#allocation13 + $0xb0] sm:$0xff] %v10258_v52 }
 0xa76   :  { %v10262_v56 = vpop.eup %10261  ;;  %10279 = vrcp.f32 %v7478_v1  ;;  %v7483_v9 = vadd.f32 1.0, %v10260_v42 }
 0xa77   :  { %v10264_v27 = vpop.eup %10263  ;;  %7569 = vst [vmem:[#allocation13 + $0xa0] sm:$0xff] %v10262_v56 }
 0xa78   :  { %v10266_v43 = vpop.eup %10265  ;;  %10281 = vrcp.f32 %v7483_v9  ;;  %v7481_v28 = vadd.f32 1.0, %v10264_v27 }
 0xa79   :  { %v10268_v53 = vpop.eup %10267  ;;  %7572 = vst [vmem:[#allocation13 + $0xb8] sm:$0xff] %v10266_v43 }
 0xa7a   :  { %v10270_v8 = vpop.eup %10269  ;;  %10283 = vrcp.f32 %v7481_v28  ;;  %v7484_v36 = vadd.f32 1.0, %v10268_v53 }
 0xa7b   :  { %v10272_v23 = vpop.eup %10271  ;;  %7570 = vst [vmem:[#allocation13 + $0xa8] sm:$0xff] %v10270_v8 }
 0xa7c   :  { %10285 = vrcp.f32 %v7484_v36  ;;  %v7482_v47 = vadd.f32 1.0, %v10272_v23 }
 0xa7d   :  { %v10274_v41 = vpop.eup %10273 }
 0xa7e   :  { %7575 = vst [vmem:[#allocation13 + $0xd0] sm:$0xff] %v10274_v41  ;;  %10287 = vrcp.f32 %v7482_v47 }
 0xa7f   :  { %v10276_v58 = vpop.eup %10275 }
 0xa80   :  { %7573 = vst [vmem:[#allocation13 + $0xc0] sm:$0xff] %v10276_v58 }
 0xa81   :  { %v10278_v55 = vpop.eup %10277 }
 0xa82   :  { %7576 = vst [vmem:[#allocation13 + $0xd8] sm:$0xff] %v10278_v55 }
 0xa83   :  { %v10280_v30 = vpop.eup %10279 }
 0xa84   :  { %7574 = vst [vmem:[#allocation13 + $0xc8] sm:$0xff] %v10280_v30 }
 0xa85   :  { %v10282_v25 = vpop.eup %10281 }
 0xa86   :  { %7579 = vst [vmem:[#allocation13 + $0xf0] sm:$0xff] %v10282_v25 }
 0xa87   :  { %v10284_v12 = vpop.eup %10283 }
 0xa88   :  { %7577 = vst [vmem:[#allocation13 + $0xe0] sm:$0xff] %v10284_v12 }
 0xa89   :  { %v10286_v11 = vpop.eup %10285 }
 0xa8a   :  { %7580 = vst [vmem:[#allocation13 + $0xf8] sm:$0xff] %v10286_v11 }
 0xa8b   :  { %v10288_v24 = vpop.eup %10287 }
 0xa8c   :  { %7578 = vst [vmem:[#allocation13 + $0xe8] sm:$0xff] %v10288_v24 }
 0xa8d   :  { %10320 = shalt.err (!%p10317_p9)
}
 0xa8e   :  { %s10341_s8 = smov 128   ;;  %s10342_s3 = smov 8  }
 0xa8f   :  { %7592 = dma.vmem_to_hbm [thread:$0]  %s7587_s7, 4096, %s12239_s6, [#allocation12], %s10341_s8, %s10341_s8, %s10342_s3  }
 0xa90   :  { %10331 = dma.done.wait [#allocation12], 4096  }
 0xa91   :  { %10332 = vsyncadd [#allocation12], 4294963200 }
 0xa92   :  { %7596 = vsyncpa [#allocation11], 1 }
 0xa93   :  { %7597 = vsyncpa [#allocation12], 1 }

</bundles_post_ra>
